<compile_context>
chip_gen: v5e
topology: v5e:2x2
jax: 0.10.0
libtpu: 0.0.40
codegen_flags: <defaults>
</compile_context>

<pallas_src>
import functools

import numpy as np

import jax
import jax.numpy as jnp
from jax import lax
from jax.experimental import pallas as pl
from jax.experimental.pallas import tpu as pltpu


# ----------------------------------------------------------------------------
# Pallas kernels
# ----------------------------------------------------------------------------
def _linear_kernel(x_ref, w_ref, b_ref, o_ref):
    # (B, K) @ (K, N) + bias, ReLU.  bf16 inputs, f32 accumulate/epilogue.
    acc = jnp.dot(x_ref[...], w_ref[...], preferred_element_type=jnp.float32)
    acc = jnp.maximum(acc + b_ref[...], 0.0)
    o_ref[...] = acc.astype(o_ref.dtype)


def _convt_kernel(a_ref, w_ref, b_ref, o_ref, *, cin, tap_offsets, n_rows):
    # ConvTranspose2d(K=4, stride=2) + ReLU in parity form:
    #   a_ref : (n_rows + pad, Cin)   zero-padded input, one pixel per row
    #   w_ref : (4*Cin, 4*Cout)       row block t = tap (th,tw),
    #                                 col block = output parity (ph,pw)
    # The 4 taps are shifted row windows of a_ref -> im2col never leaves VMEM.
    n_out = o_ref.shape[1]
    acc = jnp.zeros((n_rows, n_out), jnp.float32)
    for t, off in enumerate(tap_offsets):
        lhs = a_ref[pl.ds(off, n_rows), :]                 # (n_rows, Cin) bf16
        rhs = w_ref[pl.ds(t * cin, cin), :]                # (Cin, 4*Cout) bf16
        acc += jnp.dot(lhs, rhs, preferred_element_type=jnp.float32)
    acc = jnp.maximum(acc + b_ref[...], 0.0)
    o_ref[...] = acc.astype(o_ref.dtype)


def _conv_rows_kernel(x_ref, m_ref, b_ref, o_ref, *, kh_taps, wc, n_rows):
    # Conv2d(Cin->1, 7x7, valid) as a banded GEMM over full image rows:
    #   x_ref : (B*H, W*C)            one image row per matrix row
    #   m_ref : (KH*W*C, W_out)       banded weight matrix, one block per kh
    n_out = o_ref.shape[1]
    acc = jnp.zeros((n_rows, n_out), jnp.float32)
    for kh in range(kh_taps):
        lhs = x_ref[pl.ds(kh, n_rows), :]                  # (n_rows, W*C)
        rhs = m_ref[pl.ds(kh * wc, wc), :]                 # (W*C, W_out)
        acc += jnp.dot(lhs, rhs, preferred_element_type=jnp.float32)
    o_ref[...] = (acc + b_ref[...]).astype(o_ref.dtype)


def _run_block(kernel, out_shape, out_dtype, *operands):
    """Single-block pallas_call: every operand fits comfortably in VMEM."""
    return pl.pallas_call(
        kernel,
        out_shape=jax.ShapeDtypeStruct(out_shape, out_dtype),
        grid=(1,),
        in_specs=[pl.BlockSpec(op.shape, lambda i: (0, 0)) for op in operands],
        out_specs=pl.BlockSpec(out_shape, lambda i: (0, 0)),
        compiler_params=pltpu.CompilerParams(
            dimension_semantics=("arbitrary",)),
    )(*operands)


# ----------------------------------------------------------------------------
# One-time weight packing (outside the jitted forward).
# ----------------------------------------------------------------------------
def _pack_lin1(w, b):
    # PyTorch Linear weight (3136, K).  Permute output features from NCHW
    # order (c*49 + p) to NHWC pixel-major order (p*64 + c) so the GEMM
    # directly produces the layout the ct1 kernel consumes.
    w = np.asarray(w, np.float32)
    b = np.asarray(b, np.float32)
    k = w.shape[1]
    w_p = w.reshape(64, 49, k).transpose(1, 0, 2).reshape(3136, k)
    b_p = b.reshape(64, 49).T.reshape(3136)
    return jnp.asarray(w_p.T, jnp.bfloat16), jnp.asarray(b_p[None, :], jnp.float32)


def _pack_convt(w, b):
    # PyTorch ConvTranspose2d weight (Cin, Cout, 4, 4), stride 2.
    # w_eq[t*Cin + ci, par*Cout + co] = w[ci, co, ph + 2*(1-th), pw + 2*(1-tw)]
    # with tap t = (th, tw) and output parity par = (ph, pw).
    w = np.asarray(w, np.float32)
    cin, cout, kh, kw = w.shape
    assert kh == 4 and kw == 4
    blocks = []
    for th in range(2):
        for tw in range(2):
            cols = []
            for ph in range(2):
                for pw in range(2):
                    cols.append(w[:, :, ph + 2 * (1 - th), pw + 2 * (1 - tw)])
            blocks.append(np.concatenate(cols, axis=1))          # (Cin, 4*Cout)
    w_eq = np.concatenate(blocks, axis=0)                        # (4*Cin, 4*Cout)
    b_eq = np.tile(np.asarray(b, np.float32), 4)[None, :]        # (1, 4*Cout)
    return jnp.asarray(w_eq, jnp.bfloat16), jnp.asarray(b_eq, jnp.float32)


def _pack_conv(w, b, w_in):
    # PyTorch Conv2d weight (1, Cin, 7, 7) -> KH banded (W_in*Cin, W_out)
    # matrices (one per kernel row), stacked along rows.
    w = np.asarray(w, np.float32)
    cout, cin, kh_sz, kw_sz = w.shape
    assert cout == 1
    w_out = w_in - kw_sz + 1
    m = np.zeros((kh_sz, w_in * cin, w_out), np.float32)
    for kh in range(kh_sz):
        for kw in range(kw_sz):
            for ow in range(w_out):
                m[kh, (ow + kw) * cin:(ow + kw + 1) * cin, ow] = w[0, :, kh, kw]
    m = m.reshape(kh_sz * w_in * cin, w_out)
    b_eq = np.full((1, w_out), float(np.asarray(b)[0]), np.float32)
    return jnp.asarray(m, jnp.bfloat16), jnp.asarray(b_eq, jnp.float32)


def prepare_params(params):
    lw, lb = _pack_lin1(params["lin1_w"], params["lin1_b"])
    c1w, c1b = _pack_convt(params["ct1_w"], params["ct1_b"])
    c2w, c2b = _pack_convt(params["ct2_w"], params["ct2_b"])
    cw, cb = _pack_conv(params["conv_w"], params["conv_b"], w_in=34)
    return {"lin1_w": lw, "lin1_b": lb, "ct1_w": c1w, "ct1_b": c1b,
            "ct2_w": c2w, "ct2_b": c2b, "conv_w": cw, "conv_b": cb}


# ----------------------------------------------------------------------------
# Layer wrappers (Pallas kernel + tiny XLA glue on KB-sized tensors).
# ----------------------------------------------------------------------------
def _conv_transpose_layer(h, w_eq, b_eq, cout):
    """ConvTranspose2d(K=4, stride=2, pad=0) + ReLU.

    h: (B, H, W, Cin) bf16 NHWC  ->  (B, 2H+2, 2W+2, Cout) bf16 NHWC
    """
    B, H, W, cin = h.shape
    Hp, Wp = H + 2, W + 2
    Sp = Hp * Wp
    # zero-pad by one pixel, flatten to (pixel-rows, channels), append a few
    # zero rows so every tap window inside the kernel stays in range.
    a = jnp.pad(h, ((0, 0), (1, 1), (1, 1), (0, 0))).reshape(B * Sp, cin)
    a = jnp.concatenate([a, jnp.zeros((Wp + 1, cin), a.dtype)], axis=0)
    n_rows = B * Sp
    kernel = functools.partial(_convt_kernel, cin=cin,
                               tap_offsets=(0, 1, Wp, Wp + 1), n_rows=n_rows)
    r = _run_block(kernel, (n_rows, 4 * cout), jnp.bfloat16, a, w_eq, b_eq)
    # depth-to-space: (b, m, n, ph, pw, co) -> (b, 2m+ph, 2n+pw, co)
    r = r.reshape(B, Hp, Wp, 2, 2, cout)[:, :H + 1, :W + 1]
    r = r.transpose(0, 1, 3, 2, 4, 5).reshape(B, 2 * (H + 1), 2 * (W + 1), cout)
    return r


def _final_conv_layer(h, m_eq, b_eq):
    """Conv2d(16 -> 1, 7x7, valid), banded-GEMM formulation.

    h: (B, 34, 34, 16) bf16 NHWC  ->  (B, 1, 28, 28) f32 NCHW
    """
    B, H, W, C = h.shape
    KH = 7
    Ho, Wo = H - KH + 1, W - KH + 1
    x = h.reshape(B * H, W * C)
    n_rows = (B - 1) * H + Ho
    kernel = functools.partial(_conv_rows_kernel, kh_taps=KH, wc=W * C,
                               n_rows=n_rows)
    r = _run_block(kernel, (n_rows, Wo), jnp.float32, x, m_eq, b_eq)
    # rows [b*H, b*H + Ho) belong to batch b; rows straddling batches are junk
    r = jnp.pad(r, ((0, H - Ho), (0, 0))).reshape(B, H, Wo)[:, :Ho, :]
    return r[:, None, :, :]


def generator_forward(x, packed):
    B = x.shape[0]
    bf16 = jnp.bfloat16
    # lin1 + relu (output columns already permuted to NHWC pixel-major order)
    h = _run_block(_linear_kernel, (B, 7 * 7 * 64), bf16,
                   x.astype(bf16), packed["lin1_w"], packed["lin1_b"])
    h = h.reshape(B, 7, 7, 64)                                   # NHWC
    h = _conv_transpose_layer(h, packed["ct1_w"], packed["ct1_b"], cout=32)
    h = _conv_transpose_layer(h, packed["ct2_w"], packed["ct2_b"], cout=16)
    return _final_conv_layer(h, packed["conv_w"], packed["conv_b"])


# ----------------------------------------------------------------------------
# Plain-XLA reference (PyTorch semantics) for a loose numerical check.
# ----------------------------------------------------------------------------
def _reference_forward(x, p):
    B = x.shape[0]
    h = jax.nn.relu(x @ p["lin1_w"].T + p["lin1_b"]).reshape(B, 64, 7, 7)

    def conv_t(a, w, b):
        w_eq = jnp.flip(w, (2, 3)).transpose(1, 0, 2, 3)        # (Cout,Cin,KH,KW)
        y = lax.conv_general_dilated(
            a, w_eq, window_strides=(1, 1), padding=[(3, 3), (3, 3)],
            lhs_dilation=(2, 2), dimension_numbers=("NCHW", "OIHW", "NCHW"))
        return y + b[None, :, None, None]

    h = jax.nn.relu(conv_t(h, p["ct1_w"], p["ct1_b"]))
    h = jax.nn.relu(conv_t(h, p["ct2_w"], p["ct2_b"]))
    y = lax.conv_general_dilated(
        h, p["conv_w"], window_strides=(1, 1), padding="VALID",
        dimension_numbers=("NCHW", "OIHW", "NCHW"))
    return y + p["conv_b"][None, :, None, None]


def init_params(latent_dim, key):
    ks = jax.random.split(key, 8)
    s = 0.05
    return {
        "lin1_w": s * jax.random.normal(ks[0], (7 * 7 * 64, latent_dim), jnp.float32),
        "lin1_b": s * jax.random.normal(ks[1], (7 * 7 * 64,), jnp.float32),
        "ct1_w":  s * jax.random.normal(ks[2], (64, 32, 4, 4), jnp.float32),
        "ct1_b":  s * jax.random.normal(ks[3], (32,), jnp.float32),
        "ct2_w":  s * jax.random.normal(ks[4], (32, 16, 4, 4), jnp.float32),
        "ct2_b":  s * jax.random.normal(ks[5], (16,), jnp.float32),
        "conv_w": s * jax.random.normal(ks[6], (1, 16, 7, 7), jnp.float32),
        "conv_b": s * jax.random.normal(ks[7], (1,), jnp.float32),
    }


if __name__ == "__main__":
    latent_dim = 32
    batch = 2

    key = jax.random.PRNGKey(0)
    k_params, k_x = jax.random.split(key)
    params = init_params(latent_dim, k_params)
    packed = prepare_params(params)          # one-time packing, outside jit
    x = jax.random.normal(k_x, (batch, latent_dim), jnp.float32)

    fwd = jax.jit(generator_forward)
    out = jax.block_until_ready(fwd(x, packed))

    assert out.shape == (batch, 1, 28, 28), out.shape
    assert out.dtype == jnp.float32
    assert bool(jnp.all(jnp.isfinite(out)))

    # Loose tolerance: Pallas path uses bf16 matmul inputs, f32 accumulation.
    ref = jax.jit(_reference_forward)(x, params)
    err = float(jnp.max(jnp.abs(out - ref)))
    scale = float(jnp.max(jnp.abs(ref)))
    assert err <= 1e-2 + 5e-2 * scale, (err, scale)

    print("KERNEL_OK")
</pallas_src>

<mosaic_0001>
module attributes {stable_mosaic.version = 11 : i64} {
  func.func @_linear_kernel(%arg0: i32, %arg1: memref<2x32xbf16, #tpu.memory_space<vmem>>, %arg2: memref<32x3136xbf16, #tpu.memory_space<vmem>>, %arg3: memref<1x3136xf32, #tpu.memory_space<vmem>>, %arg4: memref<2x3136xbf16, #tpu.memory_space<vmem>>) attributes {dimension_semantics = [#tpu.dimension_semantics<arbitrary>], iteration_bounds = array<i64: 1>, scalar_prefetch = 0 : i64, scratch_operands = 0 : i64, tpu.core_type = #tpu.core_type<tc>, window_params = [{pipeline_mode = #tpu.pipeline_mode<synchronous>, transform_indices = @transform_0, window_bounds = array<i64: 2, 32>}, {pipeline_mode = #tpu.pipeline_mode<synchronous>, transform_indices = @transform_1, window_bounds = array<i64: 32, 3136>}, {pipeline_mode = #tpu.pipeline_mode<synchronous>, transform_indices = @transform_2, window_bounds = array<i64: 1, 3136>}, {pipeline_mode = #tpu.pipeline_mode<synchronous>, transform_indices = @transform_3, window_bounds = array<i64: 2, 3136>}]} {
    %c0 = arith.constant 0 : index
    %c0_0 = arith.constant 0 : index
    %0 = vector.load %arg1[%c0, %c0_0] : memref<2x32xbf16, #tpu.memory_space<vmem>>, vector<2x32xbf16>
    %c0_1 = arith.constant 0 : index
    %c0_2 = arith.constant 0 : index
    %1 = vector.load %arg2[%c0_1, %c0_2] : memref<32x3136xbf16, #tpu.memory_space<vmem>>, vector<32x3136xbf16>
    %cst = arith.constant dense<0.000000e+00> : vector<2x3136xf32>
    %2 = tpu.matmul %0, %1, %cst {dimension_numbers = #tpu.dot_dimension_numbers<[1], [0], [0], [1], [0, 0, 1, 1], [], []>} : vector<2x32xbf16>, vector<32x3136xbf16>, vector<2x3136xf32> -> vector<2x3136xf32>
    %c0_3 = arith.constant 0 : index
    %c0_4 = arith.constant 0 : index
    %3 = vector.load %arg3[%c0_3, %c0_4] : memref<1x3136xf32, #tpu.memory_space<vmem>>, vector<1x3136xf32>
    %4 = vector.broadcast %3 : vector<1x3136xf32> to vector<2x3136xf32>
    %5 = arith.addf %2, %4 : vector<2x3136xf32>
    %cst_5 = arith.constant 0.000000e+00 : f32
    %6 = vector.broadcast %cst_5 : f32 to vector<2x3136xf32>
    %7 = arith.maximumf %5, %6 : vector<2x3136xf32>
    %8 = arith.truncf %7 : vector<2x3136xf32> to vector<2x3136xbf16>
    %c0_6 = arith.constant 0 : index
    %c0_7 = arith.constant 0 : index
    %9 = vector.load %arg4[%c0_6, %c0_7] : memref<2x3136xbf16, #tpu.memory_space<vmem>>, vector<2x3136xbf16>
    tpu.vector_store %arg4[%c0_6, %c0_7], %8 {strides = array<i32>} : memref<2x3136xbf16, #tpu.memory_space<vmem>>, vector<2x3136xbf16>,
    return
  }
  func.func @transform_0(%arg0: i32) -> (i32, i32) {
    %c0_i32 = arith.constant 0 : i32
    %c0_i32_0 = arith.constant 0 : i32
    %c0_i32_1 = arith.constant 0 : i32
    return %c0_i32, %c0_i32_0 : i32, i32
  }
  func.func @transform_1(%arg0: i32) -> (i32, i32) {
    %c0_i32 = arith.constant 0 : i32
    %c0_i32_0 = arith.constant 0 : i32
    %c0_i32_1 = arith.constant 0 : i32
    return %c0_i32, %c0_i32_0 : i32, i32
  }
  func.func @transform_2(%arg0: i32) -> (i32, i32) {
    %c0_i32 = arith.constant 0 : i32
    %c0_i32_0 = arith.constant 0 : i32
    %c0_i32_1 = arith.constant 0 : i32
    return %c0_i32, %c0_i32_0 : i32, i32
  }
  func.func @transform_3(%arg0: i32) -> (i32, i32) {
    %c0_i32 = arith.constant 0 : i32
    %c0_i32_0 = arith.constant 0 : i32
    %c0_i32_1 = arith.constant 0 : i32
    return %c0_i32, %c0_i32_0 : i32, i32
  }
}

module attributes {stable_mosaic.version = 11 : i64} {
  func.func @_convt_kernel(%arg0: i32, %arg1: memref<172x64xbf16, #tpu.memory_space<vmem>>, %arg2: memref<256x128xbf16, #tpu.memory_space<vmem>>, %arg3: memref<1x128xf32, #tpu.memory_space<vmem>>, %arg4: memref<162x128xbf16, #tpu.memory_space<vmem>>) attributes {dimension_semantics = [#tpu.dimension_semantics<arbitrary>], iteration_bounds = array<i64: 1>, scalar_prefetch = 0 : i64, scratch_operands = 0 : i64, tpu.core_type = #tpu.core_type<tc>, window_params = [{pipeline_mode = #tpu.pipeline_mode<synchronous>, transform_indices = @transform_0, window_bounds = array<i64: 172, 64>}, {pipeline_mode = #tpu.pipeline_mode<synchronous>, transform_indices = @transform_1, window_bounds = array<i64: 256, 128>}, {pipeline_mode = #tpu.pipeline_mode<synchronous>, transform_indices = @transform_2, window_bounds = array<i64: 1, 128>}, {pipeline_mode = #tpu.pipeline_mode<synchronous>, transform_indices = @transform_3, window_bounds = array<i64: 162, 128>}]} {
    %cst = arith.constant 0.000000e+00 : f32
    %0 = vector.broadcast %cst : f32 to vector<162x128xf32>
    %c0 = arith.constant 0 : index
    %c0_0 = arith.constant 0 : index
    %1 = vector.load %arg1[%c0, %c0_0] : memref<172x64xbf16, #tpu.memory_space<vmem>>, vector<162x64xbf16>
    %c0_1 = arith.constant 0 : index
    %c0_2 = arith.constant 0 : index
    %2 = vector.load %arg2[%c0_1, %c0_2] : memref<256x128xbf16, #tpu.memory_space<vmem>>, vector<64x128xbf16>
    %cst_3 = arith.constant dense<0.000000e+00> : vector<162x128xf32>
    %3 = tpu.matmul %1, %2, %cst_3 {dimension_numbers = #tpu.dot_dimension_numbers<[1], [0], [0], [1], [0, 0, 1, 1], [], []>} : vector<162x64xbf16>, vector<64x128xbf16>, vector<162x128xf32> -> vector<162x128xf32>
    %4 = arith.addf %0, %3 : vector<162x128xf32>
    %c1 = arith.constant 1 : index
    %c0_4 = arith.constant 0 : index
    %5 = vector.load %arg1[%c1, %c0_4] : memref<172x64xbf16, #tpu.memory_space<vmem>>, vector<162x64xbf16>
    %c64 = arith.constant 64 : index
    %c0_5 = arith.constant 0 : index
    %6 = vector.load %arg2[%c64, %c0_5] : memref<256x128xbf16, #tpu.memory_space<vmem>>, vector<64x128xbf16>
    %cst_6 = arith.constant dense<0.000000e+00> : vector<162x128xf32>
    %7 = tpu.matmul %5, %6, %cst_6 {dimension_numbers = #tpu.dot_dimension_numbers<[1], [0], [0], [1], [0, 0, 1, 1], [], []>} : vector<162x64xbf16>, vector<64x128xbf16>, vector<162x128xf32> -> vector<162x128xf32>
    %8 = arith.addf %4, %7 : vector<162x128xf32>
    %c9 = arith.constant 9 : index
    %c0_7 = arith.constant 0 : index
    %9 = vector.load %arg1[%c9, %c0_7] : memref<172x64xbf16, #tpu.memory_space<vmem>>, vector<162x64xbf16>
    %c128 = arith.constant 128 : index
    %c0_8 = arith.constant 0 : index
    %10 = vector.load %arg2[%c128, %c0_8] : memref<256x128xbf16, #tpu.memory_space<vmem>>, vector<64x128xbf16>
    %cst_9 = arith.constant dense<0.000000e+00> : vector<162x128xf32>
    %11 = tpu.matmul %9, %10, %cst_9 {dimension_numbers = #tpu.dot_dimension_numbers<[1], [0], [0], [1], [0, 0, 1, 1], [], []>} : vector<162x64xbf16>, vector<64x128xbf16>, vector<162x128xf32> -> vector<162x128xf32>
    %12 = arith.addf %8, %11 : vector<162x128xf32>
    %c10 = arith.constant 10 : index
    %c0_10 = arith.constant 0 : index
    %13 = vector.load %arg1[%c10, %c0_10] : memref<172x64xbf16, #tpu.memory_space<vmem>>, vector<162x64xbf16>
    %c192 = arith.constant 192 : index
    %c0_11 = arith.constant 0 : index
    %14 = vector.load %arg2[%c192, %c0_11] : memref<256x128xbf16, #tpu.memory_space<vmem>>, vector<64x128xbf16>
    %cst_12 = arith.constant dense<0.000000e+00> : vector<162x128xf32>
    %15 = tpu.matmul %13, %14, %cst_12 {dimension_numbers = #tpu.dot_dimension_numbers<[1], [0], [0], [1], [0, 0, 1, 1], [], []>} : vector<162x64xbf16>, vector<64x128xbf16>, vector<162x128xf32> -> vector<162x128xf32>
    %16 = arith.addf %12, %15 : vector<162x128xf32>
    %c0_13 = arith.constant 0 : index
    %c0_14 = arith.constant 0 : index
    %17 = vector.load %arg3[%c0_13, %c0_14] : memref<1x128xf32, #tpu.memory_space<vmem>>, vector<1x128xf32>
    %18 = vector.broadcast %17 : vector<1x128xf32> to vector<162x128xf32>
    %19 = arith.addf %16, %18 : vector<162x128xf32>
    %cst_15 = arith.constant 0.000000e+00 : f32
    %20 = vector.broadcast %cst_15 : f32 to vector<162x128xf32>
    %21 = arith.maximumf %19, %20 : vector<162x128xf32>
    %22 = arith.truncf %21 : vector<162x128xf32> to vector<162x128xbf16>
    %c0_16 = arith.constant 0 : index
    %c0_17 = arith.constant 0 : index
    %23 = vector.load %arg4[%c0_16, %c0_17] : memref<162x128xbf16, #tpu.memory_space<vmem>>, vector<162x128xbf16>
    tpu.vector_store %arg4[%c0_16, %c0_17], %22 {strides = array<i32>} : memref<162x128xbf16, #tpu.memory_space<vmem>>, vector<162x128xbf16>,
    return
  }
  func.func @transform_0(%arg0: i32) -> (i32, i32) {
    %c0_i32 = arith.constant 0 : i32
    %c0_i32_0 = arith.constant 0 : i32
    %c0_i32_1 = arith.constant 0 : i32
    return %c0_i32, %c0_i32_0 : i32, i32
  }
  func.func @transform_1(%arg0: i32) -> (i32, i32) {
    %c0_i32 = arith.constant 0 : i32
    %c0_i32_0 = arith.constant 0 : i32
    %c0_i32_1 = arith.constant 0 : i32
    return %c0_i32, %c0_i32_0 : i32, i32
  }
  func.func @transform_2(%arg0: i32) -> (i32, i32) {
    %c0_i32 = arith.constant 0 : i32
    %c0_i32_0 = arith.constant 0 : i32
    %c0_i32_1 = arith.constant 0 : i32
    return %c0_i32, %c0_i32_0 : i32, i32
  }
  func.func @transform_3(%arg0: i32) -> (i32, i32) {
    %c0_i32 = arith.constant 0 : i32
    %c0_i32_0 = arith.constant 0 : i32
    %c0_i32_1 = arith.constant 0 : i32
    return %c0_i32, %c0_i32_0 : i32, i32
  }
}

module attributes {stable_mosaic.version = 11 : i64} {
  func.func @_convt_kernel(%arg0: i32, %arg1: memref<667x32xbf16, #tpu.memory_space<vmem>>, %arg2: memref<128x64xbf16, #tpu.memory_space<vmem>>, %arg3: memref<1x64xf32, #tpu.memory_space<vmem>>, %arg4: memref<648x64xbf16, #tpu.memory_space<vmem>>) attributes {dimension_semantics = [#tpu.dimension_semantics<arbitrary>], iteration_bounds = array<i64: 1>, scalar_prefetch = 0 : i64, scratch_operands = 0 : i64, tpu.core_type = #tpu.core_type<tc>, window_params = [{pipeline_mode = #tpu.pipeline_mode<synchronous>, transform_indices = @transform_0, window_bounds = array<i64: 667, 32>}, {pipeline_mode = #tpu.pipeline_mode<synchronous>, transform_indices = @transform_1, window_bounds = array<i64: 128, 64>}, {pipeline_mode = #tpu.pipeline_mode<synchronous>, transform_indices = @transform_2, window_bounds = array<i64: 1, 64>}, {pipeline_mode = #tpu.pipeline_mode<synchronous>, transform_indices = @transform_3, window_bounds = array<i64: 648, 64>}]} {
    %cst = arith.constant 0.000000e+00 : f32
    %0 = vector.broadcast %cst : f32 to vector<648x64xf32>
    %c0 = arith.constant 0 : index
    %c0_0 = arith.constant 0 : index
    %1 = vector.load %arg1[%c0, %c0_0] : memref<667x32xbf16, #tpu.memory_space<vmem>>, vector<648x32xbf16>
    %c0_1 = arith.constant 0 : index
    %c0_2 = arith.constant 0 : index
    %2 = vector.load %arg2[%c0_1, %c0_2] : memref<128x64xbf16, #tpu.memory_space<vmem>>, vector<32x64xbf16>
    %cst_3 = arith.constant dense<0.000000e+00> : vector<648x64xf32>
    %3 = tpu.matmul %1, %2, %cst_3 {dimension_numbers = #tpu.dot_dimension_numbers<[1], [0], [0], [1], [0, 0, 1, 1], [], []>} : vector<648x32xbf16>, vector<32x64xbf16>, vector<648x64xf32> -> vector<648x64xf32>
    %4 = arith.addf %0, %3 : vector<648x64xf32>
    %c1 = arith.constant 1 : index
    %c0_4 = arith.constant 0 : index
    %5 = vector.load %arg1[%c1, %c0_4] : memref<667x32xbf16, #tpu.memory_space<vmem>>, vector<648x32xbf16>
    %c32 = arith.constant 32 : index
    %c0_5 = arith.constant 0 : index
    %6 = vector.load %arg2[%c32, %c0_5] : memref<128x64xbf16, #tpu.memory_space<vmem>>, vector<32x64xbf16>
    %cst_6 = arith.constant dense<0.000000e+00> : vector<648x64xf32>
    %7 = tpu.matmul %5, %6, %cst_6 {dimension_numbers = #tpu.dot_dimension_numbers<[1], [0], [0], [1], [0, 0, 1, 1], [], []>} : vector<648x32xbf16>, vector<32x64xbf16>, vector<648x64xf32> -> vector<648x64xf32>
    %8 = arith.addf %4, %7 : vector<648x64xf32>
    %c18 = arith.constant 18 : index
    %c0_7 = arith.constant 0 : index
    %9 = vector.load %arg1[%c18, %c0_7] : memref<667x32xbf16, #tpu.memory_space<vmem>>, vector<648x32xbf16>
    %c64 = arith.constant 64 : index
    %c0_8 = arith.constant 0 : index
    %10 = vector.load %arg2[%c64, %c0_8] : memref<128x64xbf16, #tpu.memory_space<vmem>>, vector<32x64xbf16>
    %cst_9 = arith.constant dense<0.000000e+00> : vector<648x64xf32>
    %11 = tpu.matmul %9, %10, %cst_9 {dimension_numbers = #tpu.dot_dimension_numbers<[1], [0], [0], [1], [0, 0, 1, 1], [], []>} : vector<648x32xbf16>, vector<32x64xbf16>, vector<648x64xf32> -> vector<648x64xf32>
    %12 = arith.addf %8, %11 : vector<648x64xf32>
    %c19 = arith.constant 19 : index
    %c0_10 = arith.constant 0 : index
    %13 = vector.load %arg1[%c19, %c0_10] : memref<667x32xbf16, #tpu.memory_space<vmem>>, vector<648x32xbf16>
    %c96 = arith.constant 96 : index
    %c0_11 = arith.constant 0 : index
    %14 = vector.load %arg2[%c96, %c0_11] : memref<128x64xbf16, #tpu.memory_space<vmem>>, vector<32x64xbf16>
    %cst_12 = arith.constant dense<0.000000e+00> : vector<648x64xf32>
    %15 = tpu.matmul %13, %14, %cst_12 {dimension_numbers = #tpu.dot_dimension_numbers<[1], [0], [0], [1], [0, 0, 1, 1], [], []>} : vector<648x32xbf16>, vector<32x64xbf16>, vector<648x64xf32> -> vector<648x64xf32>
    %16 = arith.addf %12, %15 : vector<648x64xf32>
    %c0_13 = arith.constant 0 : index
    %c0_14 = arith.constant 0 : index
    %17 = vector.load %arg3[%c0_13, %c0_14] : memref<1x64xf32, #tpu.memory_space<vmem>>, vector<1x64xf32>
    %18 = vector.broadcast %17 : vector<1x64xf32> to vector<648x64xf32>
    %19 = arith.addf %16, %18 : vector<648x64xf32>
    %cst_15 = arith.constant 0.000000e+00 : f32
    %20 = vector.broadcast %cst_15 : f32 to vector<648x64xf32>
    %21 = arith.maximumf %19, %20 : vector<648x64xf32>
    %22 = arith.truncf %21 : vector<648x64xf32> to vector<648x64xbf16>
    %c0_16 = arith.constant 0 : index
    %c0_17 = arith.constant 0 : index
    %23 = vector.load %arg4[%c0_16, %c0_17] : memref<648x64xbf16, #tpu.memory_space<vmem>>, vector<648x64xbf16>
    tpu.vector_store %arg4[%c0_16, %c0_17], %22 {strides = array<i32>} : memref<648x64xbf16, #tpu.memory_space<vmem>>, vector<648x64xbf16>,
    return
  }
  func.func @transform_0(%arg0: i32) -> (i32, i32) {
    %c0_i32 = arith.constant 0 : i32
    %c0_i32_0 = arith.constant 0 : i32
    %c0_i32_1 = arith.constant 0 : i32
    return %c0_i32, %c0_i32_0 : i32, i32
  }
  func.func @transform_1(%arg0: i32) -> (i32, i32) {
    %c0_i32 = arith.constant 0 : i32
    %c0_i32_0 = arith.constant 0 : i32
    %c0_i32_1 = arith.constant 0 : i32
    return %c0_i32, %c0_i32_0 : i32, i32
  }
  func.func @transform_2(%arg0: i32) -> (i32, i32) {
    %c0_i32 = arith.constant 0 : i32
    %c0_i32_0 = arith.constant 0 : i32
    %c0_i32_1 = arith.constant 0 : i32
    return %c0_i32, %c0_i32_0 : i32, i32
  }
  func.func @transform_3(%arg0: i32) -> (i32, i32) {
    %c0_i32 = arith.constant 0 : i32
    %c0_i32_0 = arith.constant 0 : i32
    %c0_i32_1 = arith.constant 0 : i32
    return %c0_i32, %c0_i32_0 : i32, i32
  }
}

module attributes {stable_mosaic.version = 11 : i64} {
  func.func @_conv_rows_kernel(%arg0: i32, %arg1: memref<68x544xbf16, #tpu.memory_space<vmem>>, %arg2: memref<3808x28xbf16, #tpu.memory_space<vmem>>, %arg3: memref<1x28xf32, #tpu.memory_space<vmem>>, %arg4: memref<62x28xf32, #tpu.memory_space<vmem>>) attributes {dimension_semantics = [#tpu.dimension_semantics<arbitrary>], iteration_bounds = array<i64: 1>, scalar_prefetch = 0 : i64, scratch_operands = 0 : i64, tpu.core_type = #tpu.core_type<tc>, window_params = [{pipeline_mode = #tpu.pipeline_mode<synchronous>, transform_indices = @transform_0, window_bounds = array<i64: 68, 544>}, {pipeline_mode = #tpu.pipeline_mode<synchronous>, transform_indices = @transform_1, window_bounds = array<i64: 3808, 28>}, {pipeline_mode = #tpu.pipeline_mode<synchronous>, transform_indices = @transform_2, window_bounds = array<i64: 1, 28>}, {pipeline_mode = #tpu.pipeline_mode<synchronous>, transform_indices = @transform_3, window_bounds = array<i64: 62, 28>}]} {
    %cst = arith.constant 0.000000e+00 : f32
    %0 = vector.broadcast %cst : f32 to vector<62x28xf32>
    %c0 = arith.constant 0 : index
    %c0_0 = arith.constant 0 : index
    %1 = vector.load %arg1[%c0, %c0_0] : memref<68x544xbf16, #tpu.memory_space<vmem>>, vector<62x544xbf16>
    %c0_1 = arith.constant 0 : index
    %c0_2 = arith.constant 0 : index
    %2 = vector.load %arg2[%c0_1, %c0_2] : memref<3808x28xbf16, #tpu.memory_space<vmem>>, vector<544x28xbf16>
    %cst_3 = arith.constant dense<0.000000e+00> : vector<62x28xf32>
    %3 = tpu.matmul %1, %2, %cst_3 {dimension_numbers = #tpu.dot_dimension_numbers<[1], [0], [0], [1], [0, 0, 1, 1], [], []>} : vector<62x544xbf16>, vector<544x28xbf16>, vector<62x28xf32> -> vector<62x28xf32>
    %4 = arith.addf %0, %3 : vector<62x28xf32>
    %c1 = arith.constant 1 : index
    %c0_4 = arith.constant 0 : index
    %5 = vector.load %arg1[%c1, %c0_4] : memref<68x544xbf16, #tpu.memory_space<vmem>>, vector<62x544xbf16>
    %c544 = arith.constant 544 : index
    %c0_5 = arith.constant 0 : index
    %6 = vector.load %arg2[%c544, %c0_5] : memref<3808x28xbf16, #tpu.memory_space<vmem>>, vector<544x28xbf16>
    %cst_6 = arith.constant dense<0.000000e+00> : vector<62x28xf32>
    %7 = tpu.matmul %5, %6, %cst_6 {dimension_numbers = #tpu.dot_dimension_numbers<[1], [0], [0], [1], [0, 0, 1, 1], [], []>} : vector<62x544xbf16>, vector<544x28xbf16>, vector<62x28xf32> -> vector<62x28xf32>
    %8 = arith.addf %4, %7 : vector<62x28xf32>
    %c2 = arith.constant 2 : index
    %c0_7 = arith.constant 0 : index
    %9 = vector.load %arg1[%c2, %c0_7] : memref<68x544xbf16, #tpu.memory_space<vmem>>, vector<62x544xbf16>
    %c1088 = arith.constant 1088 : index
    %c0_8 = arith.constant 0 : index
    %10 = vector.load %arg2[%c1088, %c0_8] : memref<3808x28xbf16, #tpu.memory_space<vmem>>, vector<544x28xbf16>
    %cst_9 = arith.constant dense<0.000000e+00> : vector<62x28xf32>
    %11 = tpu.matmul %9, %10, %cst_9 {dimension_numbers = #tpu.dot_dimension_numbers<[1], [0], [0], [1], [0, 0, 1, 1], [], []>} : vector<62x544xbf16>, vector<544x28xbf16>, vector<62x28xf32> -> vector<62x28xf32>
    %12 = arith.addf %8, %11 : vector<62x28xf32>
    %c3 = arith.constant 3 : index
    %c0_10 = arith.constant 0 : index
    %13 = vector.load %arg1[%c3, %c0_10] : memref<68x544xbf16, #tpu.memory_space<vmem>>, vector<62x544xbf16>
    %c1632 = arith.constant 1632 : index
    %c0_11 = arith.constant 0 : index
    %14 = vector.load %arg2[%c1632, %c0_11] : memref<3808x28xbf16, #tpu.memory_space<vmem>>, vector<544x28xbf16>
    %cst_12 = arith.constant dense<0.000000e+00> : vector<62x28xf32>
    %15 = tpu.matmul %13, %14, %cst_12 {dimension_numbers = #tpu.dot_dimension_numbers<[1], [0], [0], [1], [0, 0, 1, 1], [], []>} : vector<62x544xbf16>, vector<544x28xbf16>, vector<62x28xf32> -> vector<62x28xf32>
    %16 = arith.addf %12, %15 : vector<62x28xf32>
    %c4 = arith.constant 4 : index
    %c0_13 = arith.constant 0 : index
    %17 = vector.load %arg1[%c4, %c0_13] : memref<68x544xbf16, #tpu.memory_space<vmem>>, vector<62x544xbf16>
    %c2176 = arith.constant 2176 : index
    %c0_14 = arith.constant 0 : index
    %18 = vector.load %arg2[%c2176, %c0_14] : memref<3808x28xbf16, #tpu.memory_space<vmem>>, vector<544x28xbf16>
    %cst_15 = arith.constant dense<0.000000e+00> : vector<62x28xf32>
    %19 = tpu.matmul %17, %18, %cst_15 {dimension_numbers = #tpu.dot_dimension_numbers<[1], [0], [0], [1], [0, 0, 1, 1], [], []>} : vector<62x544xbf16>, vector<544x28xbf16>, vector<62x28xf32> -> vector<62x28xf32>
    %20 = arith.addf %16, %19 : vector<62x28xf32>
    %c5 = arith.constant 5 : index
    %c0_16 = arith.constant 0 : index
    %21 = vector.load %arg1[%c5, %c0_16] : memref<68x544xbf16, #tpu.memory_space<vmem>>, vector<62x544xbf16>
    %c2720 = arith.constant 2720 : index
    %c0_17 = arith.constant 0 : index
    %22 = vector.load %arg2[%c2720, %c0_17] : memref<3808x28xbf16, #tpu.memory_space<vmem>>, vector<544x28xbf16>
    %cst_18 = arith.constant dense<0.000000e+00> : vector<62x28xf32>
    %23 = tpu.matmul %21, %22, %cst_18 {dimension_numbers = #tpu.dot_dimension_numbers<[1], [0], [0], [1], [0, 0, 1, 1], [], []>} : vector<62x544xbf16>, vector<544x28xbf16>, vector<62x28xf32> -> vector<62x28xf32>
    %24 = arith.addf %20, %23 : vector<62x28xf32>
    %c6 = arith.constant 6 : index
    %c0_19 = arith.constant 0 : index
    %25 = vector.load %arg1[%c6, %c0_19] : memref<68x544xbf16, #tpu.memory_space<vmem>>, vector<62x544xbf16>
    %c3264 = arith.constant 3264 : index
    %c0_20 = arith.constant 0 : index
    %26 = vector.load %arg2[%c3264, %c0_20] : memref<3808x28xbf16, #tpu.memory_space<vmem>>, vector<544x28xbf16>
    %cst_21 = arith.constant dense<0.000000e+00> : vector<62x28xf32>
    %27 = tpu.matmul %25, %26, %cst_21 {dimension_numbers = #tpu.dot_dimension_numbers<[1], [0], [0], [1], [0, 0, 1, 1], [], []>} : vector<62x544xbf16>, vector<544x28xbf16>, vector<62x28xf32> -> vector<62x28xf32>
    %28 = arith.addf %24, %27 : vector<62x28xf32>
    %c0_22 = arith.constant 0 : index
    %c0_23 = arith.constant 0 : index
    %29 = vector.load %arg3[%c0_22, %c0_23] : memref<1x28xf32, #tpu.memory_space<vmem>>, vector<1x28xf32>
    %30 = vector.broadcast %29 : vector<1x28xf32> to vector<62x28xf32>
    %31 = arith.addf %28, %30 : vector<62x28xf32>
    %c0_24 = arith.constant 0 : index
    %c0_25 = arith.constant 0 : index
    %32 = vector.load %arg4[%c0_24, %c0_25] : memref<62x28xf32, #tpu.memory_space<vmem>>, vector<62x28xf32>
    tpu.vector_store %arg4[%c0_24, %c0_25], %31 {strides = array<i32>} : memref<62x28xf32, #tpu.memory_space<vmem>>, vector<62x28xf32>,
    return
  }
  func.func @transform_0(%arg0: i32) -> (i32, i32) {
    %c0_i32 = arith.constant 0 : i32
    %c0_i32_0 = arith.constant 0 : i32
    %c0_i32_1 = arith.constant 0 : i32
    return %c0_i32, %c0_i32_0 : i32, i32
  }
  func.func @transform_1(%arg0: i32) -> (i32, i32) {
    %c0_i32 = arith.constant 0 : i32
    %c0_i32_0 = arith.constant 0 : i32
    %c0_i32_1 = arith.constant 0 : i32
    return %c0_i32, %c0_i32_0 : i32, i32
  }
  func.func @transform_2(%arg0: i32) -> (i32, i32) {
    %c0_i32 = arith.constant 0 : i32
    %c0_i32_0 = arith.constant 0 : i32
    %c0_i32_1 = arith.constant 0 : i32
    return %c0_i32, %c0_i32_0 : i32, i32
  }
  func.func @transform_3(%arg0: i32) -> (i32, i32) {
    %c0_i32 = arith.constant 0 : i32
    %c0_i32_0 = arith.constant 0 : i32
    %c0_i32_1 = arith.constant 0 : i32
    return %c0_i32, %c0_i32_0 : i32, i32
  }
}

</mosaic_0001>

<bundles_post_ra>
// kernel: generator_forward.4
= control target key start
LH: loop header
LB: loop body
LE: loop exit
PB: predicated region body
PF: predicated region fallthrough
CT: control target
= control target key end

     0   :  { %8 = vsyncpa [#allocation3], 0  ;;  %s1341_s0 = inlined_call_operand.vmem [shape: bf16[2,32], index: 0, kind: input, shape index: {}]   ;;  %s1342_s1 = inlined_call_operand.hbm [shape: bf16[32,3136], index: 1, kind: input, shape index: {}]   ;;  %s1343_s2 = inlined_call_operand.hbm [shape: f32[1,3136], index: 2, kind: input, shape index: {}]   ;;  %s1344_s3 = inlined_call_operand.vmem [shape: bf16[2,3136], index: 3, kind: output, shape index: {}]  }
   0x1   :  { %s16_s14 = sshll.u32 %s1342_s1, 4  ;;  %s17_s14 = int_to_ptr.hbm [resolvable:$true] %s16_s14 }
   0x2   :  { %9 = vsyncpa [#allocation5], 0  ;;  %s1212_s15 = smov [#allocation2]   ;;  %s30_s19 = sshll.u32 %s1343_s2, 4  ;;  %s31_s19 = int_to_ptr.hbm [resolvable:$true] %s30_s19 }
   0x3   :  { %s18_s16 = sshll.u32 %s1212_s15, 4  ;;  %s1213_s20 = smov 1600   ;;  %s19_s16 = int_to_ptr.vmem [resolvable:$true] %s18_s16 }
   0x4   :  { %s1214_s21 = smov 100   ;;  %s1215_s22 = smov [#allocation4]  }
   0x5   :  { %24 = dma.hbm_to_vmem [thread:$0]  %s17_s14, 6400, %s19_s16, [#allocation3], %s1213_s20, %s1213_s20, %s1214_s21  }
   0x6   :  { %s32_s23 = sshll.u32 %s1215_s22, 4  ;;  %s33_s23 = int_to_ptr.vmem [resolvable:$true] %s32_s23 }
   0x7   :  { %35 = dma.hbm_to_vmem [thread:$0]  %s31_s19, 400, %s33_s23, [#allocation5]  }
   0x8   :  { %1208 = dma.done.wait [#allocation3], 6400  }
   0x9   :  { %1209 = vsyncadd [#allocation3], 4294960896 }
   0xa   :  { %1210 = dma.done.wait [#allocation5], 400  }
   0xb   :  { %1211 = vsyncadd [#allocation5], 4294966896  ;;  %vm408_vm0 = vcmask 261120   ;;  %v982_v0 = vld [vmem:[#allocation2 + $0xc8] sm:$0xf]  ;;  %vm814_vm1 = vcmask 1042434  }
   0xc   :  { %v1142_v1 = vld [vmem:[#allocation2 + $0x128] sm:$0xf0]  ;;  %v984_v4 = vld [vmem:[#allocation2 + $0x12c] sm:$0xf0]  ;;  %v1143_v6 = vld [vmem:[#allocation2 + $0x130] sm:$0xf0] }
   0xd   :  { %v1130_v2 = vld [vmem:[#allocation2 + $0xcc] sm:$0xf]  ;;  %v983_v3 = vor.u32 %v1142_v1, %v982_v0  ;;  %v990_v5 = vld [vmem:[#allocation2 + $0xd0] sm:$0xf]  ;;  %v1131_v9 = vld [vmem:[#allocation2 + $0xd4] sm:$0xf] }
   0xe   :  { %v987_v7 = vor.u32 %v1130_v2, %v984_v4  ;;  %v991_v8 = vor.u32 %v1143_v6, %v990_v5  ;;  %v992_v10 = vld [vmem:[#allocation2 + $0x134] sm:$0xf0]  ;;  %v882_v11 = vld [vmem:[#allocation2] sm:$0xf]  ;;  %v1117_v13 = vld [vmem:[#allocation2 + $0x60] sm:$0xf0] }
   0xf   :  { %418 = vmatpush.bf16.msra.mxu0 %v983_v3  ;;  %v995_v12 = vor.u32 %v1131_v9, %v992_v10  ;;  %v1105_v14 = vld [vmem:[#allocation2 + $0x4] sm:$0xf]  ;;  %v884_v15 = vld [vmem:[#allocation2 + $0x64] sm:$0xf0]  ;;  %v883_v16 = vor.u32 %v1117_v13, %v882_v11  ;;  %v1118_v19 = vld [vmem:[#allocation2 + $0x68] sm:$0xf0] }
  0x10   :  { %431 = vmatpush.bf16.msra.mxu1 %v987_v7  ;;  %444 = vmatpush.bf16.msra.mxu2 %v991_v8  ;;  %v887_v17 = vor.u32 %v1105_v14, %v884_v15  ;;  %v890_v18 = vld [vmem:[#allocation2 + $0x8] sm:$0xf]  ;;  %v1106_v20 = vld [vmem:[#allocation2 + $0xc] sm:$0xf]  ;;  %v892_v22 = vld [vmem:[#allocation2 + $0x6c] sm:$0xf0] }
  0x11   :  { %457 = vmatpush.bf16.msra.mxu3 %v995_v12  ;;  %v891_v21 = vor.u32 %v1118_v19, %v890_v18  ;;  %v1245_v23 = vld [vmem:[%s1341_s0] sm:$0x1]  ;;  %v998_v24 = vld [vmem:[#allocation2 + $0xd8] sm:$0xf]  ;;  %v895_v25 = vor.u32 %v1106_v20, %v892_v22  ;;  %v1144_v26 = vld [vmem:[#allocation2 + $0x138] sm:$0xf0] }
  0x12   :  { %v898_v27 = vld [vmem:[#allocation2 + $0x10] sm:$0xf]  ;;  %v1119_v28 = vld [vmem:[#allocation2 + $0x70] sm:$0xf0]  ;;  %v999_v29 = vor.u32 %v1144_v26, %v998_v24  ;;  %v1006_v30 = vld [vmem:[#allocation2 + $0xe0] sm:$0xf] }
  0x13   :  { %419 = vmatpush.bf16.msra.mxu0 %v883_v16  ;;  %v1145_v31 = vld [vmem:[#allocation2 + $0x140] sm:$0xf0]  ;;  %v1008_v34 = vld [vmem:[#allocation2 + $0x144] sm:$0xf0]  ;;  %v1132_v35 = vld [vmem:[#allocation2 + $0xdc] sm:$0xf]  ;;  %v899_v37 = vor.u32 %v1119_v28, %v898_v27 }
  0x14   :  { %v1133_v32 = vld [vmem:[#allocation2 + $0xe4] sm:$0xf]  ;;  %432 = vmatpush.bf16.msra.mxu1 %v887_v17  ;;  %445 = vmatpush.bf16.msra.mxu2 %v891_v21  ;;  %v1007_v33 = vor.u32 %v1145_v31, %v1006_v30  ;;  %v1000_v36 = vld [vmem:[#allocation2 + $0x13c] sm:$0xf0]  ;;  %v1107_v40 = vld [vmem:[#allocation2 + $0x14] sm:$0xf] }
  0x15   :  { %458 = vmatpush.bf16.msra.mxu3 %v895_v25  ;;  %v1011_v38 = vor.u32 %v1133_v32, %v1008_v34  ;;  %v1003_v39 = vor.u32 %v1132_v35, %v1000_v36  ;;  %v900_v41 = vld [vmem:[#allocation2 + $0x74] sm:$0xf0]  ;;  %v1120_v43 = vld [vmem:[#allocation2 + $0x78] sm:$0xf0]  ;;  %v908_v45 = vld [vmem:[#allocation2 + $0x7c] sm:$0xf0] }
  0x16   :  { %v906_v42 = vld [vmem:[#allocation2 + $0x18] sm:$0xf]  ;;  %1080 = vmatmul.msk.bf16.vlgmr.msra.gmra.mxu0 %vm408_vm0, %v1245_v23  ;;  %v1108_v44 = vld [vmem:[#allocation2 + $0x1c] sm:$0xf]  ;;  %v1014_v47 = vld [vmem:[#allocation2 + $0xe8] sm:$0xf]  ;;  %v903_v50 = vor.u32 %v1107_v40, %v900_v41 }
  0x17   :  { %470 = vmatpush.bf16.msrb.mxu0 %v999_v29  ;;  %1081 = vmatmul.msk.bf16.vlgmr.msra.gmra.mxu1 %vm408_vm0, %v1245_v23  ;;  %v907_v46 = vor.u32 %v1120_v43, %v906_v42  ;;  %v1146_v48 = vld [vmem:[#allocation2 + $0x148] sm:$0xf0]  ;;  %v914_v49 = vld [vmem:[#allocation2 + $0x20] sm:$0xf]  ;;  %v1121_v52 = vld [vmem:[#allocation2 + $0x80] sm:$0xf0]  ;;  %v911_v55 = vor.u32 %v1108_v44, %v908_v45 }
  0x18   :  { %496 = vmatpush.bf16.msrb.mxu2 %v1007_v33  ;;  %1083 = vmatmul.msk.bf16.vlgmr.msra.gmra.mxu3 %vm408_vm0, %v1245_v23  ;;  %v1015_v51 = vor.u32 %v1146_v48, %v1014_v47  ;;  %v1022_v53 = vld [vmem:[#allocation2 + $0xf0] sm:$0xf]  ;;  %v1147_v54 = vld [vmem:[#allocation2 + $0x150] sm:$0xf0]  ;;  %v1024_v58 = vld [vmem:[#allocation2 + $0x154] sm:$0xf0]  ;;  %v915_v60 = vor.u32 %v1121_v52, %v914_v49 }
  0x19   :  { %1082 = vmatmul.msk.bf16.vlgmr.msra.gmra.mxu2 %vm408_vm0, %v1245_v23  ;;  %483 = vmatpush.bf16.msrb.mxu1 %v1003_v39  ;;  %v1023_v56 = vor.u32 %v1147_v54, %v1022_v53  ;;  %v1135_v57 = vld [vmem:[#allocation2 + $0xf4] sm:$0xf]  ;;  %v1134_v59 = vld [vmem:[#allocation2 + $0xec] sm:$0xf]  ;;  %v1016_v62 = vld [vmem:[#allocation2 + $0x14c] sm:$0xf0] }
  0x1a   :  { %509 = vmatpush.bf16.msrb.mxu3 %v1011_v38  ;;  %v1027_v61 = vor.u32 %v1135_v57, %v1024_v58  ;;  %v1109_v63 = vld [vmem:[#allocation2 + $0x24] sm:$0xf]  ;;  %v916_v0 = vld [vmem:[#allocation2 + $0x84] sm:$0xf0]  ;;  %v1019_v1 = vor.u32 %v1134_v59, %v1016_v62  ;;  %v1122_v3 = vld [vmem:[#allocation2 + $0x88] sm:$0xf0] }
  0x1b   :  { %471 = vmatpush.bf16.msrb.mxu0 %v899_v37  ;;  %v922_v2 = vld [vmem:[#allocation2 + $0x28] sm:$0xf]  ;;  %v1110_v4 = vld [vmem:[#allocation2 + $0x2c] sm:$0xf]  ;;  %v924_v6 = vld [vmem:[#allocation2 + $0x8c] sm:$0xf0]  ;;  %v919_v7 = vor.u32 %v1109_v63, %v916_v0 }
  0x1c   :  { %497 = vmatpush.bf16.msrb.mxu2 %v907_v46  ;;  %v923_v5 = vor.u32 %v1122_v3, %v922_v2  ;;  %v927_v8 = vor.u32 %v1110_v4, %v924_v6  ;;  %v1030_v9 = vld [vmem:[#allocation2 + $0xf8] sm:$0xf]  ;;  %v1148_v10 = vld [vmem:[#allocation2 + $0x158] sm:$0xf0]  ;;  %v1038_v11 = vld [vmem:[#allocation2 + $0x100] sm:$0xf] }
  0x1d   :  { %484 = vmatpush.bf16.msrb.mxu1 %v903_v50  ;;  %v1149_v12 = vld [vmem:[#allocation2 + $0x160] sm:$0xf0]  ;;  %v1040_v14 = vld [vmem:[#allocation2 + $0x164] sm:$0xf0]  ;;  %v1136_v15 = vld [vmem:[#allocation2 + $0xfc] sm:$0xf]  ;;  %v1031_v17 = vor.u32 %v1148_v10, %v1030_v9 }
  0x1e   :  { %510 = vmatpush.bf16.msrb.mxu3 %v911_v55  ;;  %v1137_v13 = vld [vmem:[#allocation2 + $0x104] sm:$0xf]  ;;  %v1032_v16 = vld [vmem:[#allocation2 + $0x15c] sm:$0xf0]  ;;  %v930_v18 = vld [vmem:[#allocation2 + $0x30] sm:$0xf]  ;;  %v1039_v20 = vor.u32 %v1149_v12, %v1038_v11 }
  0x1f   :  { %522 = vmatpush.bf16.msra.mxu0 %v1015_v51  ;;  %v1123_v19 = vld [vmem:[#allocation2 + $0x90] sm:$0xf0]  ;;  %v1043_v21 = vor.u32 %v1137_v13, %v1040_v14  ;;  %v938_v22 = vld [vmem:[#allocation2 + $0x38] sm:$0xf]  ;;  %v1035_v24 = vor.u32 %v1136_v15, %v1032_v16  ;;  %v1124_v25 = vld [vmem:[#allocation2 + $0x98] sm:$0xf0] }
  0x20   :  { %548 = vmatpush.bf16.msra.mxu2 %v1023_v56  ;;  %v1112_v26 = vld [vmem:[#allocation2 + $0x3c] sm:$0xf]  ;;  %v940_v27 = vld [vmem:[#allocation2 + $0x9c] sm:$0xf0]  ;;  %v1111_v28 = vld [vmem:[#allocation2 + $0x34] sm:$0xf]  ;;  %v931_v30 = vor.u32 %v1123_v19, %v930_v18  ;;  %v939_v31 = vor.u32 %v1124_v25, %v938_v22 }
  0x21   :  { %535 = vmatpush.bf16.msra.mxu1 %v1019_v1  ;;  %v932_v29 = vld [vmem:[#allocation2 + $0x94] sm:$0xf0]  ;;  %v943_v32 = vor.u32 %v1112_v26, %v940_v27  ;;  %v1046_v34 = vld [vmem:[#allocation2 + $0x108] sm:$0xf]  ;;  %v1150_v35 = vld [vmem:[#allocation2 + $0x168] sm:$0xf0] }
  0x22   :  { %561 = vmatpush.bf16.msra.mxu3 %v1027_v61  ;;  %v935_v33 = vor.u32 %v1111_v28, %v932_v29  ;;  %v1054_v36 = vld [vmem:[#allocation2 + $0x110] sm:$0xf]  ;;  %v1151_v37 = vld [vmem:[#allocation2 + $0x170] sm:$0xf0]  ;;  %v1056_v39 = vld [vmem:[#allocation2 + $0x174] sm:$0xf0]  ;;  %v1047_v42 = vor.u32 %v1150_v35, %v1046_v34 }
  0x23   :  { %523 = vmatpush.bf16.msra.mxu0 %v915_v60  ;;  %v1139_v38 = vld [vmem:[#allocation2 + $0x114] sm:$0xf]  ;;  %v1138_v40 = vld [vmem:[#allocation2 + $0x10c] sm:$0xf]  ;;  %v1048_v41 = vld [vmem:[#allocation2 + $0x16c] sm:$0xf0]  ;;  %v1055_v45 = vor.u32 %v1151_v37, %v1054_v36 }
  0x24   :  { %549 = vmatpush.bf16.msra.mxu2 %v923_v5  ;;  %v946_v43 = vld [vmem:[#allocation2 + $0x40] sm:$0xf]  ;;  %v1125_v44 = vld [vmem:[#allocation2 + $0xa0] sm:$0xf0]  ;;  %v1059_v46 = vor.u32 %v1139_v38, %v1056_v39  ;;  %v954_v47 = vld [vmem:[#allocation2 + $0x48] sm:$0xf]  ;;  %v1051_v48 = vor.u32 %v1138_v40, %v1048_v41 }
  0x25   :  { %536 = vmatpush.bf16.msra.mxu1 %v919_v7  ;;  %v1126_v49 = vld [vmem:[#allocation2 + $0xa8] sm:$0xf0]  ;;  %v956_v51 = vld [vmem:[#allocation2 + $0xac] sm:$0xf0]  ;;  %v1113_v52 = vld [vmem:[#allocation2 + $0x44] sm:$0xf]  ;;  %v947_v54 = vor.u32 %v1125_v44, %v946_v43 }
  0x26   :  { %562 = vmatpush.bf16.msra.mxu3 %v927_v8  ;;  %1084 = vmatmul.msk.bf16.vlgmr.msrb.gmra.mxu0 %vm408_vm0, %v1245_v23  ;;  %v1114_v50 = vld [vmem:[#allocation2 + $0x4c] sm:$0xf]  ;;  %v948_v53 = vld [vmem:[#allocation2 + $0xa4] sm:$0xf0]  ;;  %v955_v55 = vor.u32 %v1126_v49, %v954_v47  ;;  %v1062_v58 = vld [vmem:[#allocation2 + $0x118] sm:$0xf] }
  0x27   :  { %1085 = vmatmul.msk.bf16.vlgmr.msrb.gmra.mxu1 %vm408_vm0, %v1245_v23  ;;  %574 = vmatpush.bf16.msrb.mxu0 %v1031_v17  ;;  %v959_v56 = vor.u32 %v1114_v50, %v956_v51  ;;  %v951_v57 = vor.u32 %v1113_v52, %v948_v53  ;;  %v1152_v59 = vld [vmem:[#allocation2 + $0x178] sm:$0xf0]  ;;  %v1070_v60 = vld [vmem:[#allocation2 + $0x120] sm:$0xf]  ;;  %v1153_v61 = vld [vmem:[#allocation2 + $0x180] sm:$0xf0] }
  0x28   :  { %1087 = vmatmul.msk.bf16.vlgmr.msrb.gmra.mxu3 %vm408_vm0, %v1245_v23  ;;  %v1141_v62 = vld [vmem:[#allocation2 + $0x124] sm:$0xf]  ;;  %v1072_v63 = vld [vmem:[#allocation2 + $0x184] sm:$0xf0]  ;;  %v1140_v0 = vld [vmem:[#allocation2 + $0x11c] sm:$0xf]  ;;  %v1063_v2 = vor.u32 %v1152_v59, %v1062_v58  ;;  %v1071_v5 = vor.u32 %v1153_v61, %v1070_v60 }
  0x29   :  { %1086 = vmatmul.msk.bf16.vlgmr.msrb.gmra.mxu2 %vm408_vm0, %v1245_v23  ;;  %587 = vmatpush.bf16.msrb.mxu1 %v1035_v24  ;;  %v1064_v1 = vld [vmem:[#allocation2 + $0x17c] sm:$0xf0]  ;;  %v962_v3 = vld [vmem:[#allocation2 + $0x50] sm:$0xf]  ;;  %v1127_v4 = vld [vmem:[#allocation2 + $0xb0] sm:$0xf0]  ;;  %v1075_v6 = vor.u32 %v1141_v62, %v1072_v63 }
  0x2a   :  { %600 = vmatpush.bf16.msrb.mxu2 %v1039_v20  ;;  %613 = vmatpush.bf16.msrb.mxu3 %v1043_v21  ;;  %v970_v7 = vld [vmem:[#allocation2 + $0x58] sm:$0xf]  ;;  %v1067_v8 = vor.u32 %v1140_v0, %v1064_v1  ;;  %v1128_v9 = vld [vmem:[#allocation2 + $0xb8] sm:$0xf0]  ;;  %v972_v11 = vld [vmem:[#allocation2 + $0xbc] sm:$0xf0]  ;;  %v963_v14 = vor.u32 %v1127_v4, %v962_v3 }
  0x2b   :  { %575 = vmatpush.bf16.msrb.mxu0 %v931_v30  ;;  %v1116_v10 = vld [vmem:[#allocation2 + $0x5c] sm:$0xf]  ;;  %v1115_v12 = vld [vmem:[#allocation2 + $0x54] sm:$0xf]  ;;  %v964_v13 = vld [vmem:[#allocation2 + $0xb4] sm:$0xf0]  ;;  %v971_v15 = vor.u32 %v1128_v9, %v970_v7 }
  0x2c   :  { %v975_v16 = vor.u32 %v1116_v10, %v972_v11  ;;  %v967_v17 = vor.u32 %v1115_v12, %v964_v13  ;;  %v1078_v18 = vld [vmem:[#allocation2 + $0x128] sm:$0xf]  ;;  %v1154_v19 = vld [vmem:[#allocation2 + $0x188] sm:$0xf0]  ;;  %v978_v21 = vld [vmem:[#allocation2 + $0x60] sm:$0xf] }
  0x2d   :  { %588 = vmatpush.bf16.msrb.mxu1 %v935_v33  ;;  %v1079_v20 = vor.u32 %v1154_v19, %v1078_v18  ;;  %v1129_v22 = vld [vmem:[#allocation2 + $0xc0] sm:$0xf0]  ;;  %vm810_vm2 = vcmask 1040384   ;;  %vm818_vm3 = vcmask 1041408   ;;  %vm820_vm4 = vcmask 1044484  }
  0x2e   :  { %601 = vmatpush.bf16.msrb.mxu2 %v939_v31  ;;  %614 = vmatpush.bf16.msrb.mxu3 %v943_v32  ;;  %v979_v24 = vor.u32 %v1129_v22, %v978_v21  ;;  %v98_v31 = vld [vmem:[#allocation4] sm:$0xff]  ;;  %vm824_vm5 = vcmask 1046534   ;;  %vm828_vm6 = vcmask 1045508   ;;  %vm830_vm7 = vcmask 1043456  }
  0x2f   :  { %v108_v32 = vperm.slane %v98_v31, 2  ;;  %v109_v33 = vperm.slane %v98_v31, 3  ;;  %v106_v34 = vperm.slane %v98_v31, 0  ;;  %v107_v35 = vperm.slane %v98_v31, 1 }
  0x30   :  { %v110_v36 = vperm.slane %v98_v31, 4  ;;  %v111_v37 = vperm.slane %v98_v31, 5  ;;  %v112_v49 = vperm.slane %v98_v31, 6  ;;  %v113_v50 = vperm.slane %v98_v31, 7 }
  0x31   :  { %vm872_vm8 = vcmask 516096  }
  0x36   :  { %1088 = vmatmul.msk.bf16.vlgmr.msra.gmra.mxu0 %vm408_vm0, %v1245_v23 }
  0x37   :  { %1089 = vmatmul.msk.bf16.vlgmr.msra.gmra.mxu1 %vm408_vm0, %v1245_v23  ;;  %626 = vmatpush.bf16.msra.mxu0 %v1047_v42 }
  0x38   :  { %1091 = vmatmul.msk.bf16.vlgmr.msra.gmra.mxu3 %vm408_vm0, %v1245_v23  ;;  %639 = vmatpush.bf16.msra.mxu1 %v1051_v48 }
  0x39   :  { %1090 = vmatmul.msk.bf16.vlgmr.msra.gmra.mxu2 %vm408_vm0, %v1245_v23  ;;  %665 = vmatpush.bf16.msra.mxu3 %v1059_v46 }
  0x3a   :  { %652 = vmatpush.bf16.msra.mxu2 %v1055_v45 }
  0x3b   :  { %627 = vmatpush.bf16.msra.mxu0 %v947_v54 }
  0x3c   :  { %640 = vmatpush.bf16.msra.mxu1 %v951_v57 }
  0x3d   :  { %666 = vmatpush.bf16.msra.mxu3 %v959_v56 }
  0x3e   :  { %653 = vmatpush.bf16.msra.mxu2 %v955_v55 }
  0x46   :  { %1092 = vmatmul.msk.bf16.vlgmr.msrb.gmra.mxu0 %vm408_vm0, %v1245_v23 }
  0x47   :  { %1093 = vmatmul.msk.bf16.vlgmr.msrb.gmra.mxu1 %vm408_vm0, %v1245_v23  ;;  %678 = vmatpush.bf16.msrb.mxu0 %v1063_v2 }
  0x48   :  { %1095 = vmatmul.msk.bf16.vlgmr.msrb.gmra.mxu3 %vm408_vm0, %v1245_v23  ;;  %691 = vmatpush.bf16.msrb.mxu1 %v1067_v8 }
  0x49   :  { %1094 = vmatmul.msk.bf16.vlgmr.msrb.gmra.mxu2 %vm408_vm0, %v1245_v23  ;;  %717 = vmatpush.bf16.msrb.mxu3 %v1075_v6 }
  0x4a   :  { %704 = vmatpush.bf16.msrb.mxu2 %v1071_v5 }
  0x4b   :  { %679 = vmatpush.bf16.msrb.mxu0 %v963_v14 }
  0x4c   :  { %692 = vmatpush.bf16.msrb.mxu1 %v967_v17 }
  0x4d   :  { %718 = vmatpush.bf16.msrb.mxu3 %v975_v16 }
  0x4e   :  { %705 = vmatpush.bf16.msrb.mxu2 %v971_v15 }
  0x56   :  { %1096 = vmatmul.msk.bf16.vlgmr.msra.gmra.mxu0 %vm408_vm0, %v1245_v23 }
  0x57   :  { %1097 = vmatmul.msk.bf16.vlgmr.msra.gmra.mxu1 %vm408_vm0, %v1245_v23  ;;  %730 = vmatpush.bf16.msra.mxu0 %v1079_v20 }
  0x58   :  { %1099 = vmatmul.msk.bf16.vlgmr.msra.gmra.mxu3 %vm408_vm0, %v1245_v23 }
  0x59   :  { %1098 = vmatmul.msk.bf16.vlgmr.msra.gmra.mxu2 %vm408_vm0, %v1245_v23 }
  0x5b   :  { %731 = vmatpush.bf16.msra.mxu0 %v979_v24 }
  0x66   :  { %1100 = vmatmul.msk.bf16.vlgmr.msrb.gmra.mxu0 %vm408_vm0, %v1245_v23 }
  0x67   :  { %1101 = vmatmul.msk.bf16.vlgmr.msrb.gmra.mxu1 %vm408_vm0, %v1245_v23 }
  0x68   :  { %1103 = vmatmul.msk.bf16.vlgmr.msrb.gmra.mxu3 %vm408_vm0, %v1245_v23 }
  0x69   :  { %1102 = vmatmul.msk.bf16.vlgmr.msrb.gmra.mxu2 %vm408_vm0, %v1245_v23 }
  0x76   :  { %1104 = vmatmul.msk.bf16.vlgmr.msra.gmra.mxu0 %vm408_vm0, %v1245_v23 }
  0x93   :  { %v421_v25 = vpop.f32.mrf.mxu0 }
  0x94   :  { %v434_v26 = vpop.f32.mrf.mxu1  ;;  %v422_v43 = vadd.f32 %v421_v25, %v106_v34 }
  0x95   :  { %v435_v23 = vadd.f32 %v434_v26, %v107_v35  ;;  %v99_v26 = vld [vmem:[#allocation4 + $0x8] sm:$0xff] }
  0x96   :  { %v737_v51 = vmax.f32 %v422_v43, 0.0  ;;  %v118_v31 = vperm.slane %v99_v26, 4 }
  0x97   :  { %v738_v52 = vmax.f32 %v435_v23, 0.0 }
  0x99   :  { %v762_v60 = vpack.c.bf16 %v738_v52, %v737_v51 }
  0x9b   :  { %v460_v28 = vpop.f32.mrf.mxu3  ;;  %v423_v29 = vpop.f32.mrf.mxu0  ;;  %v788_v4 = vrot.slane %v762_v60, 3 }
  0x9c   :  { %v447_v27 = vpop.f32.mrf.mxu2  ;;  %v436_v30 = vpop.f32.mrf.mxu1  ;;  %v461_v39 = vadd.f32 %v460_v28, %v109_v33  ;;  %v117_v28 = vperm.slane %v99_v26, 3  ;;  %v114_v29 = vperm.slane %v99_v26, 0 }
  0x9d   :  { %v448_v38 = vadd.f32 %v447_v27, %v108_v32  ;;  %v813_v14 = vsel %vm810_vm2, %v762_v60, %v788_v4  ;;  %v116_v27 = vperm.slane %v99_v26, 2  ;;  %v115_v30 = vperm.slane %v99_v26, 1 }
  0x9e   :  { %v740_v48 = vmax.f32 %v461_v39, 0.0  ;;  %v119_v32 = vperm.slane %v99_v26, 5 }
  0x9f   :  { %v739_v47 = vmax.f32 %v448_v38, 0.0 }
  0xa1   :  { %v763_v55 = vpack.c.bf16 %v740_v48, %v739_v47 }
  0xa3   :  { %v462_v41 = vpop.f32.mrf.mxu3  ;;  %v473_v42 = vpop.f32.mrf.mxu0  ;;  %v789_v1 = vrot.slane %v763_v55, 6  ;;  %v790_v2 = vrot.slane %v763_v55, 1 }
  0xa4   :  { %v449_v40 = vpop.f32.mrf.mxu2  ;;  %v474_v44 = vadd.f32 %v473_v42, %v110_v36  ;;  %v486_v45 = vpop.f32.mrf.mxu1 }
  0xa5   :  { %v487_v46 = vadd.f32 %v486_v45, %v111_v37  ;;  %v817_v8 = vsel %vm814_vm1, %v789_v1, %v790_v2  ;;  %v121_v45 = vperm.slane %v99_v26, 7 }
  0xa6   :  { %v741_v53 = vmax.f32 %v474_v44, 0.0  ;;  %v819_v18 = vsel %vm818_vm3, %v813_v14, %v817_v8  ;;  %v120_v44 = vperm.slane %v99_v26, 6 }
  0xa7   :  { %v742_v54 = vmax.f32 %v487_v46, 0.0 }
  0xa9   :  { %v764_v61 = vpack.c.bf16 %v742_v54, %v741_v53 }
  0xab   :  { %v512_v58 = vpop.f32.mrf.mxu3  ;;  %v475_v59 = vpop.f32.mrf.mxu0  ;;  %v791_v5 = vrot.slane %v764_v61, 4  ;;  %v792_v6 = vrot.slane %v764_v61, 7 }
  0xac   :  { %v499_v56 = vpop.f32.mrf.mxu2  ;;  %v513_v62 = vadd.f32 %v512_v58, %v113_v50  ;;  %v488_v63 = vpop.f32.mrf.mxu1  ;;  %v1307_v59 = vld [vmem:[#allocation4 + $0x10] sm:$0xff] }
  0xad   :  { %v500_v57 = vadd.f32 %v499_v56, %v112_v49  ;;  %v823_v15 = vsel %vm820_vm4, %v791_v5, %v792_v6  ;;  %v123_v5 = vperm.slane %v1307_v59, 1 }
  0xae   :  { %v744_v3 = vmax.f32 %v513_v62, 0.0 }
  0xaf   :  { %v743_v0 = vmax.f32 %v500_v57, 0.0 }
  0xb1   :  { %v765_v7 = vpack.c.bf16 %v744_v3, %v743_v0  ;;  %v122_v0 = vperm.slane %v1307_v59, 0 }
  0xb3   :  { %v793_v9 = vrot.slane %v765_v7, 2  ;;  %v794_v10 = vrot.slane %v765_v7, 5  ;;  %v514_v12 = vpop.f32.mrf.mxu3  ;;  %v525_v13 = vpop.f32.mrf.mxu0 }
  0xb4   :  { %v501_v11 = vpop.f32.mrf.mxu2  ;;  %v538_v17 = vpop.f32.mrf.mxu1  ;;  %v526_v38 = vadd.f32 %v525_v13, %v114_v29 }
  0xb5   :  { %v827_v16 = vsel %vm824_vm5, %v793_v9, %v794_v10  ;;  %v539_v39 = vadd.f32 %v538_v17, %v115_v30 }
  0xb6   :  { %v829_v19 = vsel %vm828_vm6, %v823_v15, %v827_v16  ;;  %v745_v46 = vmax.f32 %v526_v38, 0.0  ;;  %v127_v38 = vperm.slane %v1307_v59, 5 }
  0xb7   :  { %v831_v20 = vsel %vm830_vm7, %v819_v18, %v829_v19  ;;  %v746_v47 = vmax.f32 %v539_v39, 0.0 }
  0xb8   :  { %869 = vst [vmem:[%s1344_s3] sm:$0xff] %v831_v20 }
  0xb9   :  { %v766_v55 = vpack.c.bf16 %v746_v47, %v745_v46 }
  0xbb   :  { %v564_v22 = vpop.f32.mrf.mxu3  ;;  %v527_v24 = vpop.f32.mrf.mxu0  ;;  %v795_v1 = vrot.slane %v766_v55, 3 }
  0xbc   :  { %v551_v21 = vpop.f32.mrf.mxu2  ;;  %v540_v25 = vpop.f32.mrf.mxu1  ;;  %v565_v34 = vadd.f32 %v564_v22, %v117_v28 }
  0xbd   :  { %v552_v33 = vadd.f32 %v551_v21, %v116_v27  ;;  %v834_v12 = vsel %vm810_vm2, %v766_v55, %v795_v1  ;;  %v124_v21 = vperm.slane %v1307_v59, 2  ;;  %v125_v25 = vperm.slane %v1307_v59, 3 }
  0xbe   :  { %v748_v23 = vmax.f32 %v565_v34, 0.0 }
  0xbf   :  { %v747_v43 = vmax.f32 %v552_v33, 0.0 }
  0xc1   :  { %v767_v50 = vpack.c.bf16 %v748_v23, %v747_v43 }
  0xc3   :  { %v566_v36 = vpop.f32.mrf.mxu3  ;;  %v577_v37 = vpop.f32.mrf.mxu0  ;;  %v796_v61 = vrot.slane %v767_v50, 6  ;;  %v797_v62 = vrot.slane %v767_v50, 1 }
  0xc4   :  { %v553_v35 = vpop.f32.mrf.mxu2  ;;  %v578_v40 = vadd.f32 %v577_v37, %v118_v31  ;;  %v590_v41 = vpop.f32.mrf.mxu1  ;;  %v126_v37 = vperm.slane %v1307_v59, 4 }
  0xc5   :  { %v591_v42 = vadd.f32 %v590_v41, %v119_v32  ;;  %v837_v6 = vsel %vm814_vm1, %v796_v61, %v797_v62 }
  0xc6   :  { %v749_v48 = vmax.f32 %v578_v40, 0.0  ;;  %v838_v17 = vsel %vm818_vm3, %v834_v12, %v837_v6 }
  0xc7   :  { %v750_v49 = vmax.f32 %v591_v42, 0.0 }
  0xc9   :  { %v768_v56 = vpack.c.bf16 %v750_v49, %v749_v48  ;;  %v128_v49 = vperm.slane %v1307_v59, 6 }
  0xcb   :  { %v616_v53 = vpop.f32.mrf.mxu3  ;;  %v579_v54 = vpop.f32.mrf.mxu0  ;;  %v798_v2 = vrot.slane %v768_v56, 4  ;;  %v799_v3 = vrot.slane %v768_v56, 7 }
  0xcc   :  { %v603_v51 = vpop.f32.mrf.mxu2  ;;  %v617_v57 = vadd.f32 %v616_v53, %v121_v45  ;;  %v592_v58 = vpop.f32.mrf.mxu1 }
  0xcd   :  { %v604_v52 = vadd.f32 %v603_v51, %v120_v44  ;;  %v841_v13 = vsel %vm820_vm4, %v798_v2, %v799_v3  ;;  %v1159_v2 = vld [vmem:[#allocation4 + $0x18] ss:$0 sm:$0xff] }
  0xce   :  { %v752_v63 = vmax.f32 %v617_v57, 0.0 }
  0xcf   :  { %v751_v60 = vmax.f32 %v604_v52, 0.0  ;;  %v129_v52 = vperm.slane %v1307_v59, 7 }
  0xd1   :  { %v769_v4 = vpack.c.bf16 %v752_v63, %v751_v60 }
  0xd3   :  { %v800_v7 = vrot.slane %v769_v4, 2  ;;  %v801_v8 = vrot.slane %v769_v4, 5  ;;  %v618_v10 = vpop.f32.mrf.mxu3  ;;  %v629_v11 = vpop.f32.mrf.mxu0 }
  0xd4   :  { %v605_v9 = vpop.f32.mrf.mxu2  ;;  %v630_v15 = vadd.f32 %v629_v11, %v122_v0  ;;  %v642_v16 = vpop.f32.mrf.mxu1 }
  0xd5   :  { %v844_v14 = vsel %vm824_vm5, %v800_v7, %v801_v8  ;;  %v643_v19 = vadd.f32 %v642_v16, %v123_v5 }
  0xd6   :  { %v845_v18 = vsel %vm828_vm6, %v841_v13, %v844_v14  ;;  %v753_v22 = vmax.f32 %v630_v15, 0.0 }
  0xd7   :  { %v846_v20 = vsel %vm830_vm7, %v838_v17, %v845_v18  ;;  %v754_v24 = vmax.f32 %v643_v19, 0.0 }
  0xd8   :  { %870 = vst [vmem:[%s1344_s3 + $0x8] sm:$0xff] %v846_v20 }
  0xd9   :  { %v770_v30 = vpack.c.bf16 %v754_v24, %v753_v22 }
  0xdb   :  { %v668_v28 = vpop.f32.mrf.mxu3  ;;  %v631_v29 = vpop.f32.mrf.mxu0  ;;  %v802_v35 = vrot.slane %v770_v30, 3 }
  0xdc   :  { %v655_v26 = vpop.f32.mrf.mxu2  ;;  %v669_v31 = vadd.f32 %v668_v28, %v125_v25  ;;  %v644_v32 = vpop.f32.mrf.mxu1 }
  0xdd   :  { %v656_v27 = vadd.f32 %v655_v26, %v124_v21  ;;  %v849_v23 = vsel %vm810_vm2, %v770_v30, %v802_v35 }
  0xde   :  { %v756_v34 = vmax.f32 %v669_v31, 0.0 }
  0xdf   :  { %v755_v33 = vmax.f32 %v656_v27, 0.0 }
  0xe1   :  { %v771_v36 = vpack.c.bf16 %v756_v34, %v755_v33 }
  0xe3   :  { %v803_v39 = vrot.slane %v771_v36, 6  ;;  %v804_v40 = vrot.slane %v771_v36, 1  ;;  %v670_v42 = vpop.f32.mrf.mxu3  ;;  %v681_v43 = vpop.f32.mrf.mxu0 }
  0xe4   :  { %v657_v41 = vpop.f32.mrf.mxu2  ;;  %v682_v45 = vadd.f32 %v681_v43, %v126_v37  ;;  %v694_v46 = vpop.f32.mrf.mxu1 }
  0xe5   :  { %v852_v44 = vsel %vm814_vm1, %v803_v39, %v804_v40  ;;  %v695_v48 = vadd.f32 %v694_v46, %v127_v38 }
  0xe6   :  { %v853_v47 = vsel %vm818_vm3, %v849_v23, %v852_v44  ;;  %v757_v50 = vmax.f32 %v682_v45, 0.0 }
  0xe7   :  { %v758_v51 = vmax.f32 %v695_v48, 0.0 }
  0xe9   :  { %v772_v57 = vpack.c.bf16 %v758_v51, %v757_v50 }
  0xeb   :  { %v720_v55 = vpop.f32.mrf.mxu3  ;;  %v683_v56 = vpop.f32.mrf.mxu0  ;;  %v805_v63 = vrot.slane %v772_v57, 4  ;;  %v806_v0 = vrot.slane %v772_v57, 7 }
  0xec   :  { %v707_v53 = vpop.f32.mrf.mxu2  ;;  %v721_v58 = vadd.f32 %v720_v55, %v129_v52  ;;  %v696_v60 = vpop.f32.mrf.mxu1 }
  0xed   :  { %v708_v54 = vadd.f32 %v707_v53, %v128_v49  ;;  %v856_v59 = vsel %vm820_vm4, %v805_v63, %v806_v0 }
  0xee   :  { %v760_v62 = vmax.f32 %v721_v58, 0.0 }
  0xef   :  { %v759_v61 = vmax.f32 %v708_v54, 0.0 }
  0xf1   :  { %v773_v1 = vpack.c.bf16 %v760_v62, %v759_v61 }
  0xf3   :  { %v807_v3 = vrot.slane %v773_v1, 2  ;;  %v808_v4 = vrot.slane %v773_v1, 5  ;;  %v722_v6 = vpop.f32.mrf.mxu3  ;;  %v733_v7 = vpop.f32.mrf.mxu0 }
  0xf4   :  { %v709_v5 = vpop.f32.mrf.mxu2  ;;  %v734_v9 = vadd.f32 %v1159_v2, %v733_v7 }
  0xf5   :  { %v859_v8 = vsel %vm824_vm5, %v807_v3, %v808_v4 }
  0xf6   :  { %v860_v10 = vsel %vm828_vm6, %v856_v59, %v859_v8  ;;  %v761_v12 = vmax.f32 %v734_v9, 0.0 }
  0xf7   :  { %v861_v11 = vsel %vm830_vm7, %v853_v47, %v860_v10 }
  0xf8   :  { %871 = vst [vmem:[%s1344_s3 + $0x10] sm:$0xff] %v861_v11  ;;  %v774_v13 = vpack.c.bf16 %v761_v12, %v761_v12 }
  0xfa   :  { %v809_v14 = vrot.slane %v774_v13, 3 }
  0xfb   :  { %v735_v15 = vpop.f32.mrf.mxu0 }
  0xfc   :  { %v864_v16 = vsel %vm810_vm2, %v774_v13, %v809_v14 }
  0xfd   :  { %873 = vst.msk [vmem:[%s1344_s3 + $0x18] sm:$0x1] %vm872_vm8, %v864_v16 }
  0xfe   :  { %878 = vsyncpa [#allocation3], 1 }
  0xff   :  { %879 = vsyncpa [#allocation5], 1 }

// kernel: generator_forward.5
= control target key start
LH: loop header
LB: loop body
LE: loop exit
PB: predicated region body
PF: predicated region fallthrough
CT: control target
= control target key end

     0   :  { %vm106_vm0 = vsmask.f32 7424  ;;  %vm750_vm1 = vcmask 1046528   ;;  %vm218_vm2 = vcmask 523264   ;;  %s1573_s1 = inlined_call_operand.vmem [shape: bf16[256,128], index: 1, kind: input, shape index: {}]   ;;  %s1574_s0 = inlined_call_operand.vmem [shape: bf16[172,64], index: 0, kind: input, shape index: {}]   ;;  %s1575_s2 = inlined_call_operand.vmem [shape: f32[1,128], index: 2, kind: input, shape index: {}]   ;;  %s1576_s3 = inlined_call_operand.vmem [shape: bf16[162,128], index: 3, kind: output, shape index: {}]  }
   0x1   :  { %v1206_v0 = vld [vmem:[%s1573_s1 + $0x38] sm:$0xff]  ;;  %v1205_v4 = vld [vmem:[%s1573_s1 + $0x30] sm:$0xff]  ;;  %v1204_v8 = vld [vmem:[%s1573_s1 + $0x28] sm:$0xff] }
   0x2   :  { %v1202_v1 = vld [vmem:[%s1573_s1 + $0x18] sm:$0xff]  ;;  %256 = vmatpush.bf16.msra.mxu0 %v1206_v0  ;;  %v1201_v5 = vld [vmem:[%s1573_s1 + $0x10] sm:$0xff]  ;;  %v1200_v9 = vld [vmem:[%s1573_s1 + $0x8] sm:$0xff] }
   0x3   :  { %v1219_v2 = vld [vmem:[%s1573_s1 + $0x58] sm:$0xff]  ;;  %369 = vmatpush.bf16.msra.mxu1 %v1202_v1  ;;  %v1218_v6 = vld [vmem:[%s1573_s1 + $0x50] sm:$0xff]  ;;  %v1189_v10 = vld [vmem:[%s1574_s0] sm:$0xff] }
   0x4   :  { %v1223_v3 = vld [vmem:[%s1573_s1 + $0x78] sm:$0xff]  ;;  %658 = vmatpush.bf16.msra.mxu2 %v1219_v2  ;;  %v1222_v7 = vld [vmem:[%s1573_s1 + $0x70] sm:$0xff]  ;;  %v1343_v11 = vld [vmem:[%s1574_s0 + $0x8] sm:$0xff]  ;;  %v108_v18 = vshrl.u32 %v1189_v10, 16  ;;  %v110_v19 = vshll.u32 %v1189_v10, 16 }
   0x5   :  { %833 = vmatpush.bf16.msra.mxu3 %v1223_v3  ;;  %v428_v12 = vld [vmem:[%s1574_s0 + $0x4] sm:$0xff]   ;;  %v1207_v14 = vld [vmem:[%s1574_s0 + $0xc] sm:$0xff]  ;;  %v115_v20 = vshll.u32 %v1343_v11, 16  ;;  %v1208_v41 = vld [vmem:[%s1574_s0 + $0x14] sm:$0xff]  ;;  %v119_v42 = vshrl.u32 %v1343_v11, 16 }
   0x6   :  { %257 = vmatpush.bf16.msra.mxu0 %v1205_v4  ;;  %v1284_v13 = vld [vmem:[%s1574_s0 + $0x4] sm:$0xf0]  ;;  %v1285_v15 = vld [vmem:[%s1574_s0 + $0x4] sm:$0xe]  ;;  %v112_v21 = vrot.slane %v110_v19, 1  ;;  %v518_v25 = vshll.u32 %v1207_v14, 16 }
   0x7   :  { %370 = vmatpush.bf16.msra.mxu1 %v1201_v5  ;;  %v1217_v16 = vld [vmem:[%s1573_s1 + $0x48] sm:$0xff]  ;;  %v1203_v22 = vld [vmem:[%s1573_s1 + $0x20] sm:$0xff]  ;;  %v117_v24 = vrot.slane %v115_v20, 1  ;;  %v1286_v26 = vor.u32 %v1285_v15, %v1284_v13  ;;  %v752_v30 = vrot.slane %v1207_v14, 1  ;;  %v511_v31 = vshrl.u32 %v428_v12, 16  ;;  %v1191_v40 = vld [vmem:[%s1574_s0 + $0x10] sm:$0xff] }
   0x8   :  { %659 = vmatpush.bf16.msra.mxu2 %v1218_v6  ;;  %v1221_v17 = vld [vmem:[%s1573_s1 + $0x68] sm:$0xff]  ;;  %v1199_v23 = vld [vmem:[%s1573_s1] sm:$0xff]  ;;  %v113_v29 = vor.u32 %v112_v21, %v108_v18  ;;  %v513_v32 = vshll.u32 %v428_v12, 16  ;;  %v520_v36 = vrot.slane %v518_v25, 1  ;;  %v123_v43 = vshll.u32 %v1191_v40, 16  ;;  %v1192_v54 = vld [vmem:[%s1574_s0 + $0x18] sm:$0xff] }
   0x9   :  { %834 = vmatpush.bf16.msra.mxu3 %v1222_v7  ;;  %v1216_v27 = vld [vmem:[%s1573_s1 + $0x40] sm:$0xff]  ;;  %v751_v33 = vrot.slane %v1286_v26, 1  ;;  %v522_v44 = vshrl.u32 %v1207_v14, 16  ;;  %v526_v45 = vshll.u32 %v1208_v41, 16  ;;  %v121_v46 = vor.u32 %v119_v42, %v117_v24  ;;  %v1194_v18 = vld [vmem:[%s1574_s0 + $0x28] sm:$0xff] }
   0xa   :  { %258 = vmatpush.bf16.msra.mxu0 %v1204_v8  ;;  %v1220_v28 = vld [vmem:[%s1573_s1 + $0x60] sm:$0xff]  ;;  %v118_v34 = vsel %vm106_vm0, %v113_v29, %v117_v24  ;;  %v515_v35 = vrot.slane %v513_v32, 1  ;;  %v125_v47 = vrot.slane %v123_v43, 1  ;;  %v754_v48 = vrot.slane %v1208_v41, 1  ;;  %v1211_v19 = vld [vmem:[%s1574_s0 + $0x2c] sm:$0xff] }
   0xb   :  { %371 = vmatpush.bf16.msra.mxu1 %v1200_v9  ;;  %v753_v37 = vsel %vm750_vm1, %v751_v33, %v752_v30  ;;  %v524_v49 = vor.u32 %v522_v44, %v520_v36  ;;  %v528_v50 = vrot.slane %v526_v45, 1  ;;  %v1209_v55 = vld [vmem:[%s1574_s0 + $0x1c] sm:$0xff]  ;;  %v127_v56 = vshrl.u32 %v1191_v40, 16  ;;  %v1210_v5 = vld [vmem:[%s1574_s0 + $0x24] sm:$0xff]  ;;  %v1195_v32 = vld [vmem:[%s1574_s0 + $0x30] sm:$0xff] }
   0xc   :  { %660 = vmatpush.bf16.msra.mxu2 %v1217_v16  ;;  %v516_v38 = vor.u32 %v515_v35, %v511_v31  ;;  %v126_v51 = vsel %vm106_vm0, %v121_v46, %v125_v47  ;;  %v755_v52 = vsel %vm750_vm1, %v752_v30, %v754_v48  ;;  %v131_v57 = vshll.u32 %v1192_v54, 16  ;;  %v1193_v4 = vld [vmem:[%s1574_s0 + $0x20] sm:$0xff]  ;;  %v1212_v33 = vld [vmem:[%s1574_s0 + $0x34] sm:$0xff] }
   0xd   :  { %835 = vmatpush.bf16.msra.mxu3 %v1221_v17  ;;  %v529_v53 = vsel %vm106_vm0, %v524_v49, %v528_v50  ;;  %v530_v58 = vshrl.u32 %v1208_v41, 16  ;;  %v534_v59 = vshll.u32 %v1209_v55, 16  ;;  %v129_v60 = vor.u32 %v127_v56, %v125_v47  ;;  %v1196_v46 = vld [vmem:[%s1574_s0 + $0x38] sm:$0xff] }
   0xe   :  { %259 = vmatpush.bf16.msra.mxu0 %v1203_v22  ;;  %v521_v39 = vsel %vm106_vm0, %v516_v38, %v520_v36  ;;  %v133_v61 = vrot.slane %v131_v57, 1  ;;  %v756_v62 = vrot.slane %v1209_v55, 1  ;;  %v135_v6 = vshrl.u32 %v1192_v54, 16  ;;  %v1213_v47 = vld [vmem:[%s1574_s0 + $0x3c] sm:$0xff] }
   0xf   :  { %372 = vmatpush.bf16.msra.mxu1 %v1199_v23  ;;  %v532_v63 = vor.u32 %v530_v58, %v528_v50  ;;  %v536_v0 = vrot.slane %v534_v59, 1  ;;  %v139_v7 = vshll.u32 %v1193_v4, 16  ;;  %v538_v8 = vshrl.u32 %v1209_v55, 16 }
  0x10   :  { %661 = vmatpush.bf16.msra.mxu2 %v1216_v27  ;;  %v134_v1 = vsel %vm106_vm0, %v129_v60, %v133_v61  ;;  %v757_v2 = vsel %vm750_vm1, %v754_v48, %v756_v62  ;;  %v542_v9 = vshll.u32 %v1210_v5, 16  ;;  %v758_v12 = vrot.slane %v1210_v5, 1  ;;  %v1197_v60 = vld [vmem:[%s1574_s0 + $0x40] sm:$0xff] }
  0x11   :  { %836 = vmatpush.bf16.msra.mxu3 %v1220_v28  ;;  %1061 = vmatmul.msk.bf16.vlgmr.msra.gmra.mxu0 %vm218_vm2, %v118_v34  ;;  %v537_v3 = vsel %vm106_vm0, %v532_v63, %v536_v0  ;;  %v540_v13 = vor.u32 %v538_v8, %v536_v0  ;;  %v143_v20 = vshrl.u32 %v1193_v4, 16  ;;  %v147_v21 = vshll.u32 %v1194_v18, 16 }
  0x12   :  { %1088 = vmatmul.msk.bf16.vlgmr.msra.gmra.mxu1 %vm218_vm2, %v1189_v10  ;;  %v137_v10 = vor.u32 %v135_v6, %v133_v61  ;;  %v544_v14 = vrot.slane %v542_v9, 1  ;;  %v759_v16 = vsel %vm750_vm1, %v756_v62, %v758_v12  ;;  %v546_v22 = vshrl.u32 %v1210_v5, 16  ;;  %v1214_v61 = vld [vmem:[%s1574_s0 + $0x44] sm:$0xff] }
  0x13   :  { %1151 = vmatmul.msk.bf16.vlgmr.msra.gmra.mxu2 %vm218_vm2, %v521_v39  ;;  %v550_v23 = vshll.u32 %v1211_v19, 16  ;;  %v149_v25 = vrot.slane %v147_v21, 1  ;;  %v760_v26 = vrot.slane %v1211_v19, 1  ;;  %v151_v34 = vshrl.u32 %v1194_v18, 16 }
  0x14   :  { %1178 = vmatmul.msk.bf16.vlgmr.msra.gmra.mxu3 %vm218_vm2, %v753_v37  ;;  %v545_v17 = vsel %vm106_vm0, %v540_v13, %v544_v14  ;;  %v548_v27 = vor.u32 %v546_v22, %v544_v14  ;;  %v155_v35 = vshll.u32 %v1195_v32, 16  ;;  %v554_v36 = vshrl.u32 %v1211_v19, 16  ;;  %v44_v19 = vld [vmem:[%s1574_s0 + $0x50] sm:$0x3]  ;;  %v448_v22 = vld [vmem:[%s1574_s0 + $0x54] sm:$0x3] }
  0x15   :  { %v552_v28 = vrot.slane %v550_v23, 1  ;;  %v761_v30 = vsel %vm750_vm1, %v758_v12, %v760_v26  ;;  %v558_v37 = vshll.u32 %v1212_v33, 16  ;;  %v153_v38 = vor.u32 %v151_v34, %v149_v25 }
  0x16   :  { %v157_v39 = vrot.slane %v155_v35, 1  ;;  %v159_v48 = vshrl.u32 %v1195_v32, 16  ;;  %v163_v49 = vshll.u32 %v1196_v46, 16  ;;  %v562_v50 = vshrl.u32 %v1212_v33, 16 }
  0x17   :  { %v553_v31 = vsel %vm106_vm0, %v548_v27, %v552_v28  ;;  %v556_v41 = vor.u32 %v554_v36, %v552_v28  ;;  %v560_v42 = vrot.slane %v558_v37, 1  ;;  %v167_v62 = vshrl.u32 %v1196_v46, 16 }
  0x18   :  { %v158_v43 = vsel %vm106_vm0, %v153_v38, %v157_v39  ;;  %v171_v63 = vshll.u32 %v1197_v60, 16  ;;  %v570_v0 = vshrl.u32 %v1213_v47, 16  ;;  %v175_v12 = vshrl.u32 %v1197_v60, 16 }
  0x19   :  { %v561_v45 = vsel %vm106_vm0, %v556_v41, %v560_v42  ;;  %v564_v55 = vor.u32 %v562_v50, %v560_v42  ;;  %v578_v14 = vshrl.u32 %v1214_v61, 16 }
  0x21   :  { %1062 = vmatmul.msk.bf16.gmra.mxu0 %vm218_vm2, %v126_v51  ;;  %v566_v51 = vshll.u32 %v1213_v47, 16 }
  0x22   :  { %1089 = vmatmul.msk.bf16.gmra.mxu1 %vm218_vm2, %v1343_v11  ;;  %v141_v11 = vrot.slane %v139_v7, 1 }
  0x23   :  { %1152 = vmatmul.msk.bf16.gmra.mxu2 %vm218_vm2, %v529_v53  ;;  %v165_v53 = vrot.slane %v163_v49, 1  ;;  %v568_v56 = vrot.slane %v566_v51, 1 }
  0x24   :  { %1179 = vmatmul.msk.bf16.gmra.mxu3 %vm218_vm2, %v755_v52  ;;  %v142_v15 = vsel %vm106_vm0, %v137_v10, %v141_v11  ;;  %v145_v24 = vor.u32 %v143_v20, %v141_v11  ;;  %v161_v52 = vor.u32 %v159_v48, %v157_v39  ;;  %v1198_v10 = vld [vmem:[%s1574_s0 + $0x48] sm:$0xff]  ;;  %v1502_v48 = vld [vmem:[%s1575_s2] ss:$0 sm:$0xff] }
  0x25   :  { %v569_v59 = vsel %vm106_vm0, %v564_v55, %v568_v56  ;;  %v572_v5 = vor.u32 %v570_v0, %v568_v56  ;;  %v1215_v11 = vld [vmem:[%s1574_s0 + $0x4c] sm:$0xff]  ;;  %v179_v13 = vshll.u32 %v1198_v10, 16  ;;  %v183_v36 = vshrl.u32 %v1198_v10, 16 }
  0x26   :  { %v150_v29 = vsel %vm106_vm0, %v145_v24, %v149_v25  ;;  %v166_v57 = vsel %vm106_vm0, %v161_v52, %v165_v53  ;;  %v586_v39 = vshrl.u32 %v1215_v11, 16 }
  0x31   :  { %1063 = vmatmul.msk.bf16.gmra.mxu0 %vm218_vm2, %v134_v1  ;;  %v574_v1 = vshll.u32 %v1214_v61, 16 }
  0x32   :  { %1090 = vmatmul.msk.bf16.gmra.mxu1 %vm218_vm2, %v1191_v40  ;;  %v762_v40 = vrot.slane %v1212_v33, 1 }
  0x33   :  { %1153 = vmatmul.msk.bf16.gmra.mxu2 %vm218_vm2, %v537_v3  ;;  %v173_v3 = vrot.slane %v171_v63, 1  ;;  %v576_v6 = vrot.slane %v574_v1, 1 }
  0x34   :  { %1180 = vmatmul.msk.bf16.gmra.mxu3 %vm218_vm2, %v757_v2  ;;  %v763_v44 = vsel %vm750_vm1, %v760_v26, %v762_v40  ;;  %v169_v2 = vor.u32 %v167_v62, %v165_v53  ;;  %v94_v26 = vunpack.c.l.b16 %v44_v19 }
  0x35   :  { %v577_v9 = vsel %vm106_vm0, %v572_v5, %v576_v6  ;;  %v580_v20 = vor.u32 %v578_v14, %v576_v6 }
  0x36   :  { %v174_v7 = vsel %vm106_vm0, %v169_v2, %v173_v3 }
  0x41   :  { %1064 = vmatmul.msk.bf16.gmra.mxu0 %vm218_vm2, %v142_v15  ;;  %v582_v15 = vshll.u32 %v1215_v11, 16 }
  0x42   :  { %1091 = vmatmul.msk.bf16.gmra.mxu1 %vm218_vm2, %v1192_v54  ;;  %v764_v54 = vrot.slane %v1213_v47, 1 }
  0x43   :  { %1154 = vmatmul.msk.bf16.gmra.mxu2 %vm218_vm2, %v545_v17  ;;  %v181_v17 = vrot.slane %v179_v13, 1  ;;  %v584_v21 = vrot.slane %v582_v15, 1 }
  0x44   :  { %1181 = vmatmul.msk.bf16.gmra.mxu3 %vm218_vm2, %v759_v16  ;;  %v765_v58 = vsel %vm750_vm1, %v762_v40, %v764_v54  ;;  %v177_v16 = vor.u32 %v175_v12, %v173_v3  ;;  %v35_v3 = vld [vmem:[%s1574_s0 + $0x50] sm:$0x1] }
  0x45   :  { %v585_v28 = vsel %vm106_vm0, %v580_v20, %v584_v21  ;;  %v185_v42 = vor.u32 %v183_v36, %v181_v17 }
  0x46   :  { %v182_v25 = vsel %vm106_vm0, %v177_v16, %v181_v17 }
  0x51   :  { %1065 = vmatmul.msk.bf16.gmra.mxu0 %vm218_vm2, %v150_v29  ;;  %v498_v29 = vunpack.c.l.b16 %v448_v22 }
  0x52   :  { %1092 = vmatmul.msk.bf16.gmra.mxu1 %vm218_vm2, %v1193_v4  ;;  %v766_v4 = vrot.slane %v1214_v61, 1 }
  0x53   :  { %1155 = vmatmul.msk.bf16.gmra.mxu2 %vm218_vm2, %v553_v31  ;;  %v1495_v31 = vpack.c.b16 %v498_v29, %v498_v29 }
  0x54   :  { %1182 = vmatmul.msk.bf16.gmra.mxu3 %vm218_vm2, %v761_v30  ;;  %v767_v8 = vsel %vm750_vm1, %v764_v54, %v766_v4  ;;  %v105_v30 = vpack.c.b16 %v94_v26, %v94_v26 }
  0x55   :  { %v590_v40 = vshll.u32 %v1495_v31, 16 }
  0x56   :  { %v187_v37 = vshll.u32 %v105_v30, 16 }
  0x61   :  { %1066 = vmatmul.msk.bf16.gmra.mxu0 %vm218_vm2, %v158_v43  ;;  %v189_v43 = vrot.slane %v187_v37, 1 }
  0x62   :  { %1093 = vmatmul.msk.bf16.gmra.mxu1 %vm218_vm2, %v1194_v18  ;;  %v768_v18 = vrot.slane %v1215_v11, 1 }
  0x63   :  { %1156 = vmatmul.msk.bf16.gmra.mxu2 %vm218_vm2, %v561_v45  ;;  %v588_v45 = vor.u32 %v586_v39, %v584_v21  ;;  %v190_v53 = vsel %vm106_vm0, %v185_v42, %v189_v43 }
  0x64   :  { %1183 = vmatmul.msk.bf16.gmra.mxu3 %vm218_vm2, %v763_v44  ;;  %v769_v27 = vsel %vm750_vm1, %v766_v4, %v768_v18  ;;  %v770_v44 = vrot.slane %v1495_v31, 1 }
  0x66   :  { %v771_v56 = vsel %vm750_vm1, %v768_v18, %v770_v44 }
  0x71   :  { %1067 = vmatmul.msk.bf16.gmra.mxu0 %vm218_vm2, %v166_v57 }
  0x72   :  { %1094 = vmatmul.msk.bf16.gmra.mxu1 %vm218_vm2, %v1195_v32 }
  0x73   :  { %1157 = vmatmul.msk.bf16.gmra.mxu2 %vm218_vm2, %v569_v59 }
  0x74   :  { %1184 = vmatmul.msk.bf16.gmra.mxu3 %vm218_vm2, %v765_v58 }
  0x81   :  { %1068 = vmatmul.msk.bf16.gmra.mxu0 %vm218_vm2, %v174_v7  ;;  %v191_v7 = vshrl.u32 %v105_v30, 16 }
  0x82   :  { %1095 = vmatmul.msk.bf16.gmra.mxu1 %vm218_vm2, %v1196_v46  ;;  %v592_v46 = vrot.slane %v590_v40, 1 }
  0x83   :  { %1158 = vmatmul.msk.bf16.gmra.mxu2 %vm218_vm2, %v577_v9  ;;  %v594_v9 = vshrl.u32 %v1495_v31, 16  ;;  %v193_v13 = vor.u32 %v191_v7, %v189_v43 }
  0x84   :  { %1185 = vmatmul.msk.bf16.gmra.mxu3 %vm218_vm2, %v767_v8  ;;  %v593_v57 = vsel %vm106_vm0, %v588_v45, %v592_v46  ;;  %v316_v8 = vunpack.c.l.b16 %v35_v3 }
  0x85   :  { %v596_v19 = vor.u32 %v594_v9, %v592_v46 }
  0x86   :  { %v317_v14 = vpack.c.b16 %v316_v8, %v316_v8 }
  0x8e   :  { %v261_v23 = vpop.f32.mrf.mxu0 }
  0x8f   :  { %v374_v24 = vpop.f32.mrf.mxu1 }
  0x90   :  { %v375_v32 = vadd.f32 %v374_v24, %v261_v23 }
  0x91   :  { %1069 = vmatmul.msk.bf16.gmra.mxu0 %vm218_vm2, %v182_v25 }
  0x92   :  { %1096 = vmatmul.msk.bf16.gmra.mxu1 %vm218_vm2, %v1197_v60 }
  0x93   :  { %1159 = vmatmul.msk.bf16.gmra.mxu2 %vm218_vm2, %v585_v28 }
  0x94   :  { %1186 = vmatmul.msk.bf16.gmra.mxu3 %vm218_vm2, %v769_v27 }
  0x96   :  { %v663_v34 = vpop.f32.mrf.mxu2  ;;  %v263_v35 = vpop.f32.mrf.mxu0 }
  0x97   :  { %v838_v33 = vpop.f32.mrf.mxu3  ;;  %v376_v38 = vpop.f32.mrf.mxu1  ;;  %v717_v41 = vadd.f32 %v663_v34, %v375_v32 }
  0x98   :  { %v377_v49 = vadd.f32 %v376_v38, %v263_v35 }
  0x99   :  { %v892_v47 = vadd.f32 %v838_v33, %v717_v41 }
  0x9b   :  { %v917_v58 = vadd.f32 %v1502_v48, %v892_v47 }
  0x9d   :  { %v938_v61 = vmax.f32 %v917_v58, 0.0 }
  0x9e   :  { %v665_v51 = vpop.f32.mrf.mxu2  ;;  %v266_v52 = vpop.f32.mrf.mxu0 }
  0x9f   :  { %v840_v50 = vpop.f32.mrf.mxu3  ;;  %v718_v54 = vadd.f32 %v665_v51, %v377_v49  ;;  %v379_v55 = vpop.f32.mrf.mxu1 }
  0xa0   :  { %v380_v63 = vadd.f32 %v379_v55, %v266_v52 }
  0xa1   :  { %v893_v59 = vadd.f32 %v840_v50, %v718_v54  ;;  %1070 = vmatmul.msk.bf16.gmra.mxu0 %vm218_vm2, %v190_v53 }
  0xa2   :  { %1097 = vmatmul.msk.bf16.gmra.mxu1 %vm218_vm2, %v1198_v10 }
  0xa3   :  { %v918_v60 = vadd.f32 %v1502_v48, %v893_v59  ;;  %1160 = vmatmul.msk.bf16.gmra.mxu2 %vm218_vm2, %v593_v57 }
  0xa4   :  { %1187 = vmatmul.msk.bf16.gmra.mxu3 %vm218_vm2, %v771_v56 }
  0xa5   :  { %v939_v62 = vmax.f32 %v918_v60, 0.0 }
  0xa6   :  { %v668_v1 = vpop.f32.mrf.mxu2  ;;  %v268_v2 = vpop.f32.mrf.mxu0 }
  0xa7   :  { %v843_v0 = vpop.f32.mrf.mxu3  ;;  %v1227_v4 = vpack.c.bf16 %v939_v62, %v938_v61  ;;  %v381_v5 = vpop.f32.mrf.mxu1  ;;  %v719_v6 = vadd.f32 %v668_v1, %v380_v63 }
  0xa8   :  { %v382_v11 = vadd.f32 %v381_v5, %v268_v2 }
  0xa9   :  { %1228 = vst [vmem:[%s1576_s3] sm:$0xff] %v1227_v4   ;;  %v894_v10 = vadd.f32 %v843_v0, %v719_v6 }
  0xab   :  { %v919_v20 = vadd.f32 %v1502_v48, %v894_v10 }
  0xad   :  { %v940_v23 = vmax.f32 %v919_v20, 0.0 }
  0xae   :  { %v670_v15 = vpop.f32.mrf.mxu2  ;;  %v271_v16 = vpop.f32.mrf.mxu0 }
  0xaf   :  { %v845_v12 = vpop.f32.mrf.mxu3  ;;  %v720_v17 = vadd.f32 %v670_v15, %v382_v11  ;;  %v384_v18 = vpop.f32.mrf.mxu1 }
  0xb0   :  { %v385_v25 = vadd.f32 %v384_v18, %v271_v16 }
  0xb1   :  { %v895_v21 = vadd.f32 %v845_v12, %v720_v17  ;;  %1071 = vmatmul.msk.bf16.gmra.mxu0 %vm218_vm2, %v193_v13 }
  0xb2   :  { %1098 = vmatmul.msk.bf16.gmra.mxu1 %vm218_vm2, %v317_v14 }
  0xb3   :  { %v920_v22 = vadd.f32 %v1502_v48, %v895_v21  ;;  %1161 = vmatmul.msk.bf16.gmra.mxu2 %vm218_vm2, %v596_v19 }
  0xb4   :  { %1188 = vmatmul.msk.bf16.gmra.mxu3 %vm218_vm2, %v770_v44 }
  0xb5   :  { %v941_v24 = vmax.f32 %v920_v22, 0.0 }
  0xb6   :  { %v673_v27 = vpop.f32.mrf.mxu2  ;;  %v273_v28 = vpop.f32.mrf.mxu0 }
  0xb7   :  { %v848_v26 = vpop.f32.mrf.mxu3  ;;  %v1232_v29 = vpack.c.bf16 %v941_v24, %v940_v23  ;;  %v386_v30 = vpop.f32.mrf.mxu1  ;;  %v721_v31 = vadd.f32 %v673_v27, %v385_v25 }
  0xb8   :  { %v387_v33 = vadd.f32 %v386_v30, %v273_v28 }
  0xb9   :  { %1274 = vst [vmem:[%s1576_s3 + $0x8] sm:$0xff] %v1232_v29   ;;  %v896_v32 = vadd.f32 %v848_v26, %v721_v31 }
  0xbb   :  { %v921_v39 = vadd.f32 %v1502_v48, %v896_v32 }
  0xbd   :  { %v942_v42 = vmax.f32 %v921_v39, 0.0 }
  0xbe   :  { %v675_v35 = vpop.f32.mrf.mxu2  ;;  %v276_v36 = vpop.f32.mrf.mxu0 }
  0xbf   :  { %v850_v34 = vpop.f32.mrf.mxu3  ;;  %v722_v37 = vadd.f32 %v675_v35, %v387_v33  ;;  %v389_v38 = vpop.f32.mrf.mxu1 }
  0xc0   :  { %v390_v44 = vadd.f32 %v389_v38, %v276_v36 }
  0xc1   :  { %v897_v40 = vadd.f32 %v850_v34, %v722_v37 }
  0xc3   :  { %v922_v41 = vadd.f32 %v1502_v48, %v897_v40 }
  0xc5   :  { %v943_v43 = vmax.f32 %v922_v41, 0.0 }
  0xc6   :  { %v678_v46 = vpop.f32.mrf.mxu2  ;;  %v278_v47 = vpop.f32.mrf.mxu0 }
  0xc7   :  { %v853_v45 = vpop.f32.mrf.mxu3  ;;  %v1237_v49 = vpack.c.bf16 %v943_v43, %v942_v42  ;;  %v391_v50 = vpop.f32.mrf.mxu1  ;;  %v723_v51 = vadd.f32 %v678_v46, %v390_v44 }
  0xc8   :  { %v392_v53 = vadd.f32 %v391_v50, %v278_v47 }
  0xc9   :  { %1275 = vst [vmem:[%s1576_s3 + $0x10] sm:$0xff] %v1237_v49   ;;  %v898_v52 = vadd.f32 %v853_v45, %v723_v51 }
  0xcb   :  { %v923_v59 = vadd.f32 %v1502_v48, %v898_v52 }
  0xcd   :  { %v944_v62 = vmax.f32 %v923_v59, 0.0 }
  0xce   :  { %v680_v55 = vpop.f32.mrf.mxu2  ;;  %v281_v56 = vpop.f32.mrf.mxu0 }
  0xcf   :  { %v855_v54 = vpop.f32.mrf.mxu3  ;;  %v724_v57 = vadd.f32 %v680_v55, %v392_v53  ;;  %v394_v58 = vpop.f32.mrf.mxu1 }
  0xd0   :  { %v395_v0 = vadd.f32 %v394_v58, %v281_v56 }
  0xd1   :  { %v899_v60 = vadd.f32 %v855_v54, %v724_v57 }
  0xd3   :  { %v924_v61 = vadd.f32 %v1502_v48, %v899_v60 }
  0xd5   :  { %v945_v63 = vmax.f32 %v924_v61, 0.0 }
  0xd6   :  { %v683_v2 = vpop.f32.mrf.mxu2  ;;  %v283_v3 = vpop.f32.mrf.mxu0 }
  0xd7   :  { %v858_v1 = vpop.f32.mrf.mxu3  ;;  %v1242_v4 = vpack.c.bf16 %v945_v63, %v944_v62  ;;  %v396_v5 = vpop.f32.mrf.mxu1  ;;  %v725_v6 = vadd.f32 %v683_v2, %v395_v0 }
  0xd8   :  { %v397_v8 = vadd.f32 %v396_v5, %v283_v3 }
  0xd9   :  { %1276 = vst [vmem:[%s1576_s3 + $0x18] sm:$0xff] %v1242_v4   ;;  %v900_v7 = vadd.f32 %v858_v1, %v725_v6 }
  0xdb   :  { %v925_v14 = vadd.f32 %v1502_v48, %v900_v7 }
  0xdd   :  { %v946_v17 = vmax.f32 %v925_v14, 0.0 }
  0xde   :  { %v685_v10 = vpop.f32.mrf.mxu2  ;;  %v286_v11 = vpop.f32.mrf.mxu0 }
  0xdf   :  { %v860_v9 = vpop.f32.mrf.mxu3  ;;  %v726_v12 = vadd.f32 %v685_v10, %v397_v8  ;;  %v399_v13 = vpop.f32.mrf.mxu1 }
  0xe0   :  { %v400_v19 = vadd.f32 %v399_v13, %v286_v11 }
  0xe1   :  { %v901_v15 = vadd.f32 %v860_v9, %v726_v12 }
  0xe3   :  { %v926_v16 = vadd.f32 %v1502_v48, %v901_v15 }
  0xe5   :  { %v947_v18 = vmax.f32 %v926_v16, 0.0 }
  0xe6   :  { %v688_v21 = vpop.f32.mrf.mxu2  ;;  %v288_v22 = vpop.f32.mrf.mxu0 }
  0xe7   :  { %v863_v20 = vpop.f32.mrf.mxu3  ;;  %v1247_v23 = vpack.c.bf16 %v947_v18, %v946_v17  ;;  %v401_v24 = vpop.f32.mrf.mxu1  ;;  %v727_v25 = vadd.f32 %v688_v21, %v400_v19 }
  0xe8   :  { %v402_v27 = vadd.f32 %v401_v24, %v288_v22 }
  0xe9   :  { %1277 = vst [vmem:[%s1576_s3 + $0x20] sm:$0xff] %v1247_v23   ;;  %v902_v26 = vadd.f32 %v863_v20, %v727_v25 }
  0xeb   :  { %v927_v33 = vadd.f32 %v1502_v48, %v902_v26 }
  0xed   :  { %v948_v36 = vmax.f32 %v927_v33, 0.0 }
  0xee   :  { %v690_v29 = vpop.f32.mrf.mxu2  ;;  %v291_v30 = vpop.f32.mrf.mxu0 }
  0xef   :  { %v865_v28 = vpop.f32.mrf.mxu3  ;;  %v728_v31 = vadd.f32 %v690_v29, %v402_v27  ;;  %v404_v32 = vpop.f32.mrf.mxu1 }
  0xf0   :  { %v405_v38 = vadd.f32 %v404_v32, %v291_v30 }
  0xf1   :  { %v903_v34 = vadd.f32 %v865_v28, %v728_v31 }
  0xf3   :  { %v928_v35 = vadd.f32 %v1502_v48, %v903_v34 }
  0xf5   :  { %v949_v37 = vmax.f32 %v928_v35, 0.0 }
  0xf6   :  { %v693_v40 = vpop.f32.mrf.mxu2  ;;  %v293_v41 = vpop.f32.mrf.mxu0 }
  0xf7   :  { %v868_v39 = vpop.f32.mrf.mxu3  ;;  %v1252_v42 = vpack.c.bf16 %v949_v37, %v948_v36  ;;  %v406_v43 = vpop.f32.mrf.mxu1  ;;  %v729_v44 = vadd.f32 %v693_v40, %v405_v38 }
  0xf8   :  { %v407_v46 = vadd.f32 %v406_v43, %v293_v41 }
  0xf9   :  { %1278 = vst [vmem:[%s1576_s3 + $0x28] sm:$0xff] %v1252_v42   ;;  %v904_v45 = vadd.f32 %v868_v39, %v729_v44 }
  0xfb   :  { %v929_v53 = vadd.f32 %v1502_v48, %v904_v45 }
  0xfd   :  { %v950_v56 = vmax.f32 %v929_v53, 0.0 }
  0xfe   :  { %v695_v49 = vpop.f32.mrf.mxu2  ;;  %v296_v50 = vpop.f32.mrf.mxu0 }
  0xff   :  { %v870_v47 = vpop.f32.mrf.mxu3  ;;  %v730_v51 = vadd.f32 %v695_v49, %v407_v46  ;;  %v409_v52 = vpop.f32.mrf.mxu1 }
 0x100   :  { %v410_v58 = vadd.f32 %v409_v52, %v296_v50 }
 0x101   :  { %v905_v54 = vadd.f32 %v870_v47, %v730_v51 }
 0x103   :  { %v930_v55 = vadd.f32 %v1502_v48, %v905_v54 }
 0x105   :  { %v951_v57 = vmax.f32 %v930_v55, 0.0 }
 0x106   :  { %v698_v60 = vpop.f32.mrf.mxu2  ;;  %v298_v61 = vpop.f32.mrf.mxu0 }
 0x107   :  { %v873_v59 = vpop.f32.mrf.mxu3  ;;  %v1257_v62 = vpack.c.bf16 %v951_v57, %v950_v56  ;;  %v411_v63 = vpop.f32.mrf.mxu1  ;;  %v731_v0 = vadd.f32 %v698_v60, %v410_v58 }
 0x108   :  { %v412_v2 = vadd.f32 %v411_v63, %v298_v61 }
 0x109   :  { %1279 = vst [vmem:[%s1576_s3 + $0x30] sm:$0xff] %v1257_v62   ;;  %v906_v1 = vadd.f32 %v873_v59, %v731_v0 }
 0x10b   :  { %v931_v8 = vadd.f32 %v1502_v48, %v906_v1 }
 0x10d   :  { %v952_v11 = vmax.f32 %v931_v8, 0.0 }
 0x10e   :  { %v700_v4 = vpop.f32.mrf.mxu2  ;;  %v301_v5 = vpop.f32.mrf.mxu0 }
 0x10f   :  { %v875_v3 = vpop.f32.mrf.mxu3  ;;  %v732_v6 = vadd.f32 %v700_v4, %v412_v2  ;;  %v414_v7 = vpop.f32.mrf.mxu1 }
 0x110   :  { %v415_v13 = vadd.f32 %v414_v7, %v301_v5 }
 0x111   :  { %v907_v9 = vadd.f32 %v875_v3, %v732_v6 }
 0x113   :  { %v932_v10 = vadd.f32 %v1502_v48, %v907_v9 }
 0x115   :  { %v953_v12 = vmax.f32 %v932_v10, 0.0 }
 0x116   :  { %v703_v15 = vpop.f32.mrf.mxu2  ;;  %v303_v16 = vpop.f32.mrf.mxu0 }
 0x117   :  { %v878_v14 = vpop.f32.mrf.mxu3  ;;  %v1262_v17 = vpack.c.bf16 %v953_v12, %v952_v11  ;;  %v416_v18 = vpop.f32.mrf.mxu1  ;;  %v733_v19 = vadd.f32 %v703_v15, %v415_v13 }
 0x118   :  { %v417_v21 = vadd.f32 %v416_v18, %v303_v16 }
 0x119   :  { %1280 = vst [vmem:[%s1576_s3 + $0x38] sm:$0xff] %v1262_v17   ;;  %v908_v20 = vadd.f32 %v878_v14, %v733_v19 }
 0x11b   :  { %v933_v27 = vadd.f32 %v1502_v48, %v908_v20 }
 0x11d   :  { %v954_v30 = vmax.f32 %v933_v27, 0.0 }
 0x11e   :  { %v705_v23 = vpop.f32.mrf.mxu2  ;;  %v306_v24 = vpop.f32.mrf.mxu0 }
 0x11f   :  { %v880_v22 = vpop.f32.mrf.mxu3  ;;  %v734_v25 = vadd.f32 %v705_v23, %v417_v21  ;;  %v419_v26 = vpop.f32.mrf.mxu1 }
 0x120   :  { %v420_v32 = vadd.f32 %v419_v26, %v306_v24 }
 0x121   :  { %v909_v28 = vadd.f32 %v880_v22, %v734_v25 }
 0x123   :  { %v934_v29 = vadd.f32 %v1502_v48, %v909_v28 }
 0x125   :  { %v955_v31 = vmax.f32 %v934_v29, 0.0 }
 0x126   :  { %v708_v34 = vpop.f32.mrf.mxu2  ;;  %v308_v35 = vpop.f32.mrf.mxu0 }
 0x127   :  { %v883_v33 = vpop.f32.mrf.mxu3  ;;  %v1267_v36 = vpack.c.bf16 %v955_v31, %v954_v30  ;;  %v421_v37 = vpop.f32.mrf.mxu1  ;;  %v735_v38 = vadd.f32 %v708_v34, %v420_v32 }
 0x128   :  { %v422_v40 = vadd.f32 %v421_v37, %v308_v35 }
 0x129   :  { %1281 = vst [vmem:[%s1576_s3 + $0x40] sm:$0xff] %v1267_v36   ;;  %v910_v39 = vadd.f32 %v883_v33, %v735_v38 }
 0x12b   :  { %v935_v46 = vadd.f32 %v1502_v48, %v910_v39 }
 0x12d   :  { %v956_v51 = vmax.f32 %v935_v46, 0.0 }
 0x12e   :  { %v710_v42 = vpop.f32.mrf.mxu2  ;;  %v311_v43 = vpop.f32.mrf.mxu0 }
 0x12f   :  { %v885_v41 = vpop.f32.mrf.mxu3  ;;  %v736_v44 = vadd.f32 %v710_v42, %v422_v40  ;;  %v424_v45 = vpop.f32.mrf.mxu1 }
 0x130   :  { %v425_v50 = vadd.f32 %v424_v45, %v311_v43 }
 0x131   :  { %v911_v47 = vadd.f32 %v885_v41, %v736_v44 }
 0x133   :  { %v936_v49 = vadd.f32 %v1502_v48, %v911_v47 }
 0x135   :  { %v957_v52 = vmax.f32 %v936_v49, 0.0 }
 0x136   :  { %v713_v54 = vpop.f32.mrf.mxu2  ;;  %v313_v55 = vpop.f32.mrf.mxu0 }
 0x137   :  { %v888_v53 = vpop.f32.mrf.mxu3  ;;  %v1272_v56 = vpack.c.bf16 %v957_v52, %v956_v51  ;;  %v737_v57 = vadd.f32 %v713_v54, %v425_v50  ;;  %v426_v58 = vpop.f32.mrf.mxu1 }
 0x139   :  { %1282 = vst [vmem:[%s1576_s3 + $0x48] sm:$0xff] %v1272_v56   ;;  %v912_v59 = vadd.f32 %v888_v53, %v737_v57 }
 0x13b   :  { %v937_v60 = vadd.f32 %v1502_v48, %v912_v59 }
 0x13d   :  { %v958_v61 = vmax.f32 %v937_v60, 0.0 }
 0x13e   :  { %v715_v63 = vpop.f32.mrf.mxu2 }
 0x13f   :  { %v890_v62 = vpop.f32.mrf.mxu3  ;;  %v979_v0 = vpack.c.bf16 %v958_v61, %v958_v61 }
 0x141   :  { %1000 = vst [vmem:[%s1576_s3 + $0x50] sm:$0x1] %v979_v0 }

// kernel: generator_forward.6
= control target key start
LH: loop header
LB: loop body
LE: loop exit
PB: predicated region body
PF: predicated region fallthrough
CT: control target
= control target key end

     0   :  { %vm310_vm0 = vsmask.f32 7424  ;;  %vm650_vm1 = vcmask 261120   ;;  %vm1587_vm2 = vcmask 1046528   ;;  %vm2106_vm3 = vsmask.f32 6400  ;;  %s5159_s1 = inlined_call_operand.vmem [shape: bf16[128,64], index: 1, kind: input, shape index: {}]   ;;  %s5160_s0 = inlined_call_operand.vmem [shape: bf16[667,32], index: 0, kind: input, shape index: {}]   ;;  %s5161_s2 = inlined_call_operand.vmem [shape: f32[1,64], index: 2, kind: input, shape index: {}]   ;;  %s5162_s3 = inlined_call_operand.vmem [shape: bf16[648,64], index: 3, kind: output, shape index: {}]  }
   0x1   :  { %v3796_v0 = vld [vmem:[%s5159_s1 + $0x18] sm:$0xff]  ;;  %v3794_v1 = vld [vmem:[%s5159_s1 + $0x8] sm:$0xff]  ;;  %v3795_v4 = vld [vmem:[%s5159_s1 + $0x10] sm:$0xff]  ;;  %vm3151_vm4 = vcmask 519168  }
   0x2   :  { %v3838_v2 = vld [vmem:[%s5159_s1 + $0x28] sm:$0xff]  ;;  %v3840_v3 = vld [vmem:[%s5159_s1 + $0x38] sm:$0xff]  ;;  %v3793_v5 = vld [vmem:[%s5159_s1] sm:$0xff]  ;;  %780 = vmatpush.bf16.msra.mxu0 %v3796_v0  ;;  %1089 = vmatpush.bf16.msra.mxu1 %v3794_v1 }
   0x3   :  { %v3837_v6 = vld [vmem:[%s5159_s1 + $0x20] sm:$0xff]  ;;  %v3839_v7 = vld [vmem:[%s5159_s1 + $0x30] sm:$0xff]  ;;  %1810 = vmatpush.bf16.msra.mxu2 %v3838_v2  ;;  %2616 = vmatpush.bf16.msra.mxu3 %v3840_v3  ;;  %v3754_v9 = vld [vmem:[%s5160_s0 + $0x8] sm:$0xff] }
   0x4   :  { %v3753_v8 = vld [vmem:[%s5160_s0] sm:$0xff]  ;;  %v3497_v10 = vld [vmem:[%s5160_s0 + $0x8] sm:$0xe]  ;;  %v3797_v11 = vld [vmem:[%s5160_s0 + $0x8] sm:$0xf0]  ;;  %v319_v16 = vshll.u32 %v3754_v9, 16 }
   0x5   :  { %v312_v12 = vshrl.u32 %v3753_v8, 16  ;;  %v314_v13 = vshll.u32 %v3753_v8, 16  ;;  %v3798_v14 = vld [vmem:[%s5160_s0 + $0x10] sm:$0xff]  ;;  %v3498_v15 = vor.u32 %v3797_v11, %v3497_v10  ;;  %v3799_v34 = vld [vmem:[%s5160_s0 + $0x18] sm:$0xff]  ;;  %v323_v39 = vshrl.u32 %v3754_v9, 16  ;;  %v3800_v50 = vld [vmem:[%s5160_s0 + $0x20] sm:$0xff] }
   0x6   :  { %781 = vmatpush.bf16.msra.mxu0 %v3795_v4  ;;  %1090 = vmatpush.bf16.msra.mxu1 %v3793_v5  ;;  %v1589_v19 = vrot.slane %v3798_v14, 1  ;;  %v321_v21 = vrot.slane %v319_v16, 1  ;;  %v2116_v23 = vshrl.u32 %v3798_v14, 16  ;;  %v2119_v24 = vshll.u32 %v3798_v14, 16  ;;  %v3755_v35 = vld [vmem:[%s5160_s0 + $0x10] sm:$0xff]  ;;  %v3756_v51 = vld [vmem:[%s5160_s0 + $0x18] sm:$0xff] }
   0x7   :  { %v316_v17 = vrot.slane %v314_v13, 1  ;;  %v1588_v18 = vrot.slane %v3498_v15, 1  ;;  %v2108_v20 = vshrl.u32 %v3498_v15, 16  ;;  %1811 = vmatpush.bf16.msra.mxu2 %v3837_v6  ;;  %2617 = vmatpush.bf16.msra.mxu3 %v3839_v7  ;;  %v2111_v22 = vshll.u32 %v3498_v15, 16  ;;  %v3801_v1 = vld [vmem:[%s5160_s0 + $0x28] sm:$0xff]  ;;  %v3757_v2 = vld [vmem:[%s5160_s0 + $0x20] sm:$0xff] }
   0x8   :  { %v2118_v29 = vrot.slane %v2116_v23, 1  ;;  %v2121_v30 = vrot.slane %v2119_v24, 2  ;;  %v2125_v37 = vshrl.u32 %v3799_v34, 16  ;;  %v2128_v38 = vshll.u32 %v3799_v34, 16  ;;  %v3802_v16 = vld [vmem:[%s5160_s0 + $0x30] sm:$0xff] }
   0x9   :  { %v317_v25 = vor.u32 %v316_v17, %v312_v12  ;;  %v1590_v26 = vsel %vm1587_vm2, %v1588_v18, %v1589_v19  ;;  %v2110_v27 = vrot.slane %v2108_v20, 1  ;;  %3454 = vmatmul.msk.bf16.vlgmr.msra.gmra.mxu1 %vm650_vm1, %v3753_v8  ;;  %v2113_v28 = vrot.slane %v2111_v22, 2  ;;  %v3758_v17 = vld [vmem:[%s5160_s0 + $0x28] sm:$0xff] }
   0xa   :  { %3663 = vmatmul.msk.bf16.vlgmr.msra.gmra.mxu2 %vm650_vm1, %v1590_v26  ;;  %v2122_v33 = vor.u32 %v2121_v30, %v2118_v29  ;;  %v327_v40 = vshll.u32 %v3755_v35, 16  ;;  %v1591_v41 = vrot.slane %v3799_v34, 1  ;;  %v2127_v42 = vrot.slane %v2125_v37, 1 }
   0xb   :  { %v322_v31 = vsel %vm310_vm0, %v317_v25, %v321_v21  ;;  %v2114_v32 = vor.u32 %v2113_v28, %v2110_v27  ;;  %v2130_v43 = vrot.slane %v2128_v38, 2  ;;  %v325_v44 = vor.u32 %v323_v39, %v321_v21 }
   0xc   :  { %3405 = vmatmul.msk.bf16.vlgmr.msra.gmra.mxu0 %vm650_vm1, %v322_v31  ;;  %v329_v45 = vrot.slane %v327_v40, 1  ;;  %v1592_v46 = vsel %vm1587_vm2, %v1589_v19, %v1591_v41  ;;  %v2134_v52 = vshrl.u32 %v3800_v50, 16  ;;  %v2137_v53 = vshll.u32 %v3800_v50, 16  ;;  %v3803_v31 = vld [vmem:[%s5160_s0 + $0x38] sm:$0xff] }
   0xd   :  { %v2123_v36 = vsel %vm2106_vm3, %v2114_v32, %v2122_v33  ;;  %v2131_v47 = vor.u32 %v2130_v43, %v2127_v42  ;;  %v331_v54 = vshrl.u32 %v3755_v35, 16  ;;  %v335_v55 = vshll.u32 %v3756_v51, 16  ;;  %v3759_v32 = vld [vmem:[%s5160_s0 + $0x30] sm:$0xff] }
   0xe   :  { %3712 = vmatmul.msk.bf16.vlgmr.msra.gmra.mxu3 %vm650_vm1, %v2123_v36  ;;  %v330_v48 = vsel %vm310_vm0, %v325_v44, %v329_v45  ;;  %v1593_v56 = vrot.slane %v3800_v50, 1  ;;  %v2136_v57 = vrot.slane %v2134_v52, 1  ;;  %v2139_v58 = vrot.slane %v2137_v53, 2 }
   0xf   :  { %v2132_v49 = vsel %vm2106_vm3, %v2122_v33, %v2131_v47  ;;  %v333_v59 = vor.u32 %v331_v54, %v329_v45  ;;  %v337_v60 = vrot.slane %v335_v55, 1  ;;  %v2143_v3 = vshrl.u32 %v3801_v1, 16 }
  0x10   :  { %v1594_v61 = vsel %vm1587_vm2, %v1591_v41, %v1593_v56  ;;  %v2140_v62 = vor.u32 %v2139_v58, %v2136_v57  ;;  %v2146_v4 = vshll.u32 %v3801_v1, 16  ;;  %v339_v5 = vshrl.u32 %v3756_v51, 16 }
  0x11   :  { %v338_v63 = vsel %vm310_vm0, %v333_v59, %v337_v60  ;;  %v343_v6 = vshll.u32 %v3757_v2, 16  ;;  %v1595_v7 = vrot.slane %v3801_v1, 1  ;;  %v2145_v8 = vrot.slane %v2143_v3, 1 }
  0x12   :  { %v2141_v0 = vsel %vm2106_vm3, %v2131_v47, %v2140_v62  ;;  %v341_v10 = vor.u32 %v339_v5, %v337_v60  ;;  %v2152_v18 = vshrl.u32 %v3802_v16, 16  ;;  %v2155_v19 = vshll.u32 %v3802_v16, 16  ;;  %v3760_v47 = vld [vmem:[%s5160_s0 + $0x38] sm:$0xff] }
  0x13   :  { %v345_v11 = vrot.slane %v343_v6, 1  ;;  %v1596_v12 = vsel %vm1587_vm2, %v1593_v56, %v1595_v7  ;;  %v347_v20 = vshrl.u32 %v3757_v2, 16  ;;  %v351_v21 = vshll.u32 %v3758_v17, 16 }
  0x14   :  { %v1597_v22 = vrot.slane %v3802_v16, 1  ;;  %v2154_v23 = vrot.slane %v2152_v18, 1  ;;  %v2157_v24 = vrot.slane %v2155_v19, 2  ;;  %v2161_v33 = vshrl.u32 %v3803_v31, 16 }
  0x15   :  { %v346_v14 = vsel %vm310_vm0, %v341_v10, %v345_v11  ;;  %v349_v25 = vor.u32 %v347_v20, %v345_v11  ;;  %v353_v26 = vrot.slane %v351_v21, 1  ;;  %v2164_v34 = vshll.u32 %v3803_v31, 16 }
  0x16   :  { %v1598_v27 = vsel %vm1587_vm2, %v1595_v7, %v1597_v22  ;;  %v2158_v28 = vor.u32 %v2157_v24, %v2154_v23  ;;  %v359_v36 = vshll.u32 %v3759_v32, 16  ;;  %v1599_v37 = vrot.slane %v3803_v31, 1  ;;  %v4021_v31 = vld [vmem:[%s5160_s0 + $0x50] sm:$0xff] }
  0x17   :  { %v354_v29 = vsel %vm310_vm0, %v349_v25, %v353_v26  ;;  %v2163_v38 = vrot.slane %v2161_v33, 1  ;;  %v2166_v39 = vrot.slane %v2164_v34, 2  ;;  %v363_v50 = vshrl.u32 %v3759_v32, 16 }
  0x18   :  { %v361_v41 = vrot.slane %v359_v36, 1  ;;  %v1600_v42 = vsel %vm1587_vm2, %v1597_v22, %v1599_v37  ;;  %v371_v1 = vshrl.u32 %v3760_v47, 16 }
  0x19   :  { %3455 = vmatmul.msk.bf16.gmra.mxu1 %vm650_vm1, %v3754_v9  ;;  %v2148_v9 = vrot.slane %v2146_v4, 2  ;;  %v2167_v43 = vor.u32 %v2166_v39, %v2163_v38 }
  0x1a   :  { %3664 = vmatmul.msk.bf16.gmra.mxu2 %vm650_vm1, %v1592_v46  ;;  %v3804_v46 = vld [vmem:[%s5160_s0 + $0x40] sm:$0xff]  ;;  %v365_v55 = vor.u32 %v363_v50, %v361_v41 }
  0x1b   :  { %v2149_v13 = vor.u32 %v2148_v9, %v2145_v8  ;;  %v2168_v45 = vsel %vm2106_vm3, %v2158_v28, %v2167_v43  ;;  %v1601_v52 = vrot.slane %v3804_v46, 1 }
  0x1c   :  { %3406 = vmatmul.msk.bf16.gmra.mxu0 %vm650_vm1, %v330_v48  ;;  %v2170_v48 = vshrl.u32 %v3804_v46, 16 }
  0x1d   :  { %v2150_v15 = vsel %vm2106_vm3, %v2140_v62, %v2149_v13  ;;  %v2159_v30 = vsel %vm2106_vm3, %v2149_v13, %v2158_v28  ;;  %v1602_v57 = vsel %vm1587_vm2, %v1599_v37, %v1601_v52  ;;  %v3761_v62 = vld [vmem:[%s5160_s0 + $0x40] sm:$0xff]  ;;  %v3762_v13 = vld [vmem:[%s5160_s0 + $0x48] sm:$0xff] }
  0x1e   :  { %3713 = vmatmul.msk.bf16.gmra.mxu3 %vm650_vm1, %v2132_v49  ;;  %v2173_v49 = vshll.u32 %v3804_v46, 16  ;;  %v2172_v53 = vrot.slane %v2170_v48, 1  ;;  %v379_v16 = vshrl.u32 %v3761_v62, 16  ;;  %v4029_v37 = vld [vmem:[%s5161_s2] ss:$0 sm:$0xff]  ;;  %v387_v39 = vshrl.u32 %v3762_v13, 16 }
  0x20   :  { %v2175_v54 = vrot.slane %v2173_v49, 2 }
  0x22   :  { %v2176_v58 = vor.u32 %v2175_v54, %v2172_v53 }
  0x24   :  { %v2177_v60 = vsel %vm2106_vm3, %v2167_v43, %v2176_v58 }
  0x29   :  { %3456 = vmatmul.msk.bf16.gmra.mxu1 %vm650_vm1, %v3755_v35  ;;  %v355_v35 = vshrl.u32 %v3758_v17, 16 }
  0x2a   :  { %3665 = vmatmul.msk.bf16.gmra.mxu2 %vm650_vm1, %v1594_v61  ;;  %v3805_v61 = vld [vmem:[%s5160_s0 + $0x48] sm:$0xff] }
  0x2b   :  { %v357_v40 = vor.u32 %v355_v35, %v353_v26  ;;  %v1603_v3 = vrot.slane %v3805_v61, 1 }
  0x2c   :  { %3407 = vmatmul.msk.bf16.gmra.mxu0 %vm650_vm1, %v338_v63  ;;  %v2179_v63 = vshrl.u32 %v3805_v61, 16 }
  0x2d   :  { %v362_v44 = vsel %vm310_vm0, %v357_v40, %v361_v41  ;;  %v1604_v8 = vsel %vm1587_vm2, %v1601_v52, %v1603_v3  ;;  %v391_v40 = vshll.u32 %v4021_v31, 16 }
  0x2e   :  { %3714 = vmatmul.msk.bf16.gmra.mxu3 %vm650_vm1, %v2141_v0  ;;  %v2182_v0 = vshll.u32 %v3805_v61, 16  ;;  %v2181_v4 = vrot.slane %v2179_v63, 1  ;;  %v4047_v63 = vld [vmem:[%s5160_s0 + $0x60] sm:$0xff] }
  0x2f   :  { %v393_v49 = vrot.slane %v391_v40, 1 }
  0x30   :  { %v2184_v5 = vrot.slane %v2182_v0, 2 }
  0x32   :  { %v2185_v9 = vor.u32 %v2184_v5, %v2181_v4 }
  0x34   :  { %v2186_v11 = vsel %vm2106_vm3, %v2176_v58, %v2185_v9 }
  0x39   :  { %3457 = vmatmul.msk.bf16.gmra.mxu1 %vm650_vm1, %v3756_v51  ;;  %v367_v51 = vshll.u32 %v3760_v47, 16 }
  0x3a   :  { %3666 = vmatmul.msk.bf16.gmra.mxu2 %vm650_vm1, %v1596_v12  ;;  %v3806_v12 = vld [vmem:[%s5160_s0 + $0x50] sm:$0xff] }
  0x3b   :  { %v369_v56 = vrot.slane %v367_v51, 1  ;;  %v1605_v18 = vrot.slane %v3806_v12, 1 }
  0x3c   :  { %3408 = vmatmul.msk.bf16.gmra.mxu0 %vm650_vm1, %v346_v14  ;;  %v2188_v14 = vshrl.u32 %v3806_v12, 16 }
  0x3d   :  { %v370_v59 = vsel %vm310_vm0, %v365_v55, %v369_v56  ;;  %v373_v6 = vor.u32 %v371_v1, %v369_v56  ;;  %v1606_v24 = vsel %vm1587_vm2, %v1603_v3, %v1605_v18  ;;  %v4053_v1 = vld [vmem:[%s5160_s0 + $0x58] sm:$0xff] }
  0x3e   :  { %3715 = vmatmul.msk.bf16.gmra.mxu3 %vm650_vm1, %v2150_v15  ;;  %v2191_v15 = vshll.u32 %v3806_v12, 16  ;;  %v2190_v19 = vrot.slane %v2188_v14, 1  ;;  %v1609_v14 = vrot.slane %v4047_v63, 1 }
  0x40   :  { %v2193_v20 = vrot.slane %v2191_v15, 2 }
  0x42   :  { %v2194_v25 = vor.u32 %v2193_v20, %v2190_v19 }
  0x49   :  { %3458 = vmatmul.msk.bf16.gmra.mxu1 %vm650_vm1, %v3757_v2  ;;  %v375_v2 = vshll.u32 %v3761_v62, 16 }
  0x4a   :  { %3667 = vmatmul.msk.bf16.gmra.mxu2 %vm650_vm1, %v1598_v27 }
  0x4b   :  { %v377_v7 = vrot.slane %v375_v2, 1 }
  0x4c   :  { %3409 = vmatmul.msk.bf16.gmra.mxu0 %vm650_vm1, %v354_v29  ;;  %v2195_v29 = vsel %vm2106_vm3, %v2185_v9, %v2194_v25 }
  0x4d   :  { %v378_v10 = vsel %vm310_vm0, %v373_v6, %v377_v7  ;;  %v381_v21 = vor.u32 %v379_v16, %v377_v7  ;;  %v2206_v6 = vshrl.u32 %v4047_v63, 16  ;;  %v2209_v7 = vshll.u32 %v4047_v63, 16 }
  0x4e   :  { %3716 = vmatmul.msk.bf16.gmra.mxu3 %vm650_vm1, %v2159_v30  ;;  %v4016_v30 = vld [vmem:[%s5160_s0 + $0x58] sm:$0xff] }
  0x4f   :  { %v2197_v35 = vshrl.u32 %v4016_v30, 16  ;;  %v2200_v36 = vshll.u32 %v4016_v30, 16  ;;  %v1607_v43 = vrot.slane %v4016_v30, 1  ;;  %v2208_v15 = vrot.slane %v2206_v6, 1 }
  0x50   :  { %v2211_v16 = vrot.slane %v2209_v7, 2  ;;  %v4113_v7 = vld [vmem:[%s5160_s0 + $0x70] sm:$0xff] }
  0x51   :  { %v1608_v54 = vsel %vm1587_vm2, %v1605_v18, %v1607_v43 }
  0x59   :  { %3459 = vmatmul.msk.bf16.gmra.mxu1 %vm650_vm1, %v3758_v17  ;;  %v383_v17 = vshll.u32 %v3762_v13, 16 }
  0x5a   :  { %3668 = vmatmul.msk.bf16.gmra.mxu2 %vm650_vm1, %v1600_v42 }
  0x5b   :  { %v385_v22 = vrot.slane %v383_v17, 1 }
  0x5c   :  { %3410 = vmatmul.msk.bf16.gmra.mxu0 %vm650_vm1, %v362_v44  ;;  %v2199_v44 = vrot.slane %v2197_v35, 1  ;;  %v4080_v35 = vld [vmem:[%s5160_s0 + $0x68] sm:$0xff] }
  0x5d   :  { %v386_v27 = vsel %vm310_vm0, %v381_v21, %v385_v22  ;;  %v389_v48 = vor.u32 %v387_v39, %v385_v22 }
  0x5e   :  { %3717 = vmatmul.msk.bf16.gmra.mxu3 %vm650_vm1, %v2168_v45  ;;  %v2202_v45 = vrot.slane %v2200_v36, 2  ;;  %v4086_v36 = vld [vmem:[%s5160_s0 + $0x60] sm:$0xff] }
  0x5f   :  { %v394_v58 = vsel %vm310_vm0, %v389_v48, %v393_v49 }
  0x60   :  { %v2203_v55 = vor.u32 %v2202_v45, %v2199_v44 }
  0x69   :  { %3460 = vmatmul.msk.bf16.gmra.mxu1 %vm650_vm1, %v3759_v32 }
  0x6a   :  { %3669 = vmatmul.msk.bf16.gmra.mxu2 %vm650_vm1, %v1602_v57 }
  0x6c   :  { %3411 = vmatmul.msk.bf16.gmra.mxu0 %vm650_vm1, %v370_v59 }
  0x6e   :  { %3718 = vmatmul.msk.bf16.gmra.mxu3 %vm650_vm1, %v2177_v60 }
  0x79   :  { %3461 = vmatmul.msk.bf16.gmra.mxu1 %vm650_vm1, %v3760_v47 }
  0x7a   :  { %3670 = vmatmul.msk.bf16.gmra.mxu2 %vm650_vm1, %v1604_v8 }
  0x7c   :  { %3412 = vmatmul.msk.bf16.gmra.mxu0 %vm650_vm1, %v378_v10  ;;  %v395_v10 = vshrl.u32 %v4021_v31, 16 }
  0x7e   :  { %3719 = vmatmul.msk.bf16.gmra.mxu3 %vm650_vm1, %v2186_v11  ;;  %v399_v11 = vshll.u32 %v4053_v1, 16  ;;  %v397_v19 = vor.u32 %v395_v10, %v393_v49 }
  0x80   :  { %v401_v20 = vrot.slane %v399_v11, 1 }
  0x86   :  { %v1092_v23 = vpop.f32.mrf.mxu1 }
  0x89   :  { %v783_v26 = vpop.f32.mrf.mxu0  ;;  %3462 = vmatmul.msk.bf16.gmra.mxu1 %vm650_vm1, %v3761_v62  ;;  %v2204_v62 = vsel %vm2106_vm3, %v2194_v25, %v2203_v55  ;;  %v1610_v25 = vsel %vm1587_vm2, %v1607_v43, %v1609_v14  ;;  %v2218_v43 = vshll.u32 %v4080_v35, 16 }
  0x8a   :  { %v1093_v28 = vadd.f32 %v1092_v23, %v783_v26  ;;  %3671 = vmatmul.msk.bf16.gmra.mxu2 %vm650_vm1, %v1606_v24  ;;  %v2212_v26 = vor.u32 %v2211_v16, %v2208_v15 }
  0x8c   :  { %3413 = vmatmul.msk.bf16.gmra.mxu0 %vm650_vm1, %v386_v27 }
  0x8d   :  { %v1813_v32 = vpop.f32.mrf.mxu2 }
  0x8e   :  { %3720 = vmatmul.msk.bf16.gmra.mxu3 %vm650_vm1, %v2195_v29  ;;  %v2017_v33 = vadd.f32 %v1813_v32, %v1093_v28  ;;  %v1094_v34 = vpop.f32.mrf.mxu1  ;;  %v402_v29 = vsel %vm310_vm0, %v397_v19, %v401_v20 }
  0x91   :  { %v785_v38 = vpop.f32.mrf.mxu0  ;;  %v2619_v41 = vpop.f32.mrf.mxu3 }
  0x92   :  { %v2823_v42 = vadd.f32 %v2619_v41, %v2017_v33  ;;  %v1095_v47 = vadd.f32 %v1094_v34, %v785_v38  ;;  %v2213_v34 = vsel %vm2106_vm3, %v2203_v55, %v2212_v26 }
  0x94   :  { %v2908_v46 = vadd.f32 %v4029_v37, %v2823_v42  ;;  %v2215_v42 = vshrl.u32 %v4080_v35, 16 }
  0x95   :  { %v1815_v50 = vpop.f32.mrf.mxu2 }
  0x96   :  { %v2989_v51 = vmax.f32 %v2908_v46, 0.0  ;;  %v2018_v52 = vadd.f32 %v1815_v50, %v1095_v47  ;;  %v1097_v53 = vpop.f32.mrf.mxu1  ;;  %v403_v46 = vshrl.u32 %v4053_v1, 16  ;;  %v407_v47 = vshll.u32 %v4086_v36, 16 }
  0x97   :  { %v1611_v50 = vrot.slane %v4080_v35, 1 }
  0x98   :  { %v3070_v56 = vpack.c.bf16 %v2989_v51, %v2989_v51  ;;  %v2217_v51 = vrot.slane %v2215_v42, 1  ;;  %v405_v55 = vor.u32 %v403_v46, %v401_v20 }
  0x99   :  { %v788_v57 = vpop.f32.mrf.mxu0  ;;  %v2621_v59 = vpop.f32.mrf.mxu3  ;;  %3463 = vmatmul.msk.bf16.gmra.mxu1 %vm650_vm1, %v3762_v13 }
  0x9a   :  { %3152 = vst.msk [vmem:[%s5162_s3] sm:$0xf] %vm3151_vm4, %v3070_v56  ;;  %v2824_v60 = vadd.f32 %v2621_v59, %v2018_v52  ;;  %v1098_v61 = vadd.f32 %v1097_v53, %v788_v57  ;;  %3672 = vmatmul.msk.bf16.gmra.mxu2 %vm650_vm1, %v1608_v54  ;;  %v2220_v52 = vrot.slane %v2218_v43, 2  ;;  %v409_v56 = vrot.slane %v407_v47, 1  ;;  %v4146_v43 = vld [vmem:[%s5160_s0 + $0x78] sm:$0xff] }
  0x9c   :  { %3414 = vmatmul.msk.bf16.gmra.mxu0 %vm650_vm1, %v394_v58  ;;  %v2909_v0 = vadd.f32 %v4029_v37, %v2824_v60 }
  0x9d   :  { %v1818_v2 = vpop.f32.mrf.mxu2 }
  0x9e   :  { %v2990_v3 = vmax.f32 %v2909_v0, 0.0  ;;  %3721 = vmatmul.msk.bf16.gmra.mxu3 %vm650_vm1, %v2204_v62  ;;  %v2019_v4 = vadd.f32 %v1818_v2, %v1098_v61  ;;  %v1099_v5 = vpop.f32.mrf.mxu1  ;;  %v1612_v61 = vsel %vm1587_vm2, %v1609_v14, %v1611_v50  ;;  %v2221_v62 = vor.u32 %v2220_v52, %v2217_v51 }
  0x9f   :  { %v410_v2 = vsel %vm310_vm0, %v405_v55, %v409_v56  ;;  %v2227_v14 = vshll.u32 %v4113_v7, 16 }
  0xa0   :  { %v3071_v8 = vpack.c.bf16 %v2990_v3, %v2990_v3  ;;  %v2222_v6 = vsel %vm2106_vm3, %v2212_v26, %v2221_v62 }
  0xa1   :  { %v790_v9 = vpop.f32.mrf.mxu0  ;;  %v2624_v12 = vpop.f32.mrf.mxu3 }
  0xa2   :  { %3153 = vst.msk [vmem:[%s5162_s3 + $0x4] sm:$0xf] %vm3151_vm4, %v3071_v8  ;;  %v2825_v13 = vadd.f32 %v2624_v12, %v2019_v4  ;;  %v1100_v18 = vadd.f32 %v1099_v5, %v790_v9  ;;  %v4119_v8 = vld [vmem:[%s5160_s0 + $0x68] sm:$0xff] }
  0xa4   :  { %v2910_v17 = vadd.f32 %v4029_v37, %v2825_v13  ;;  %v2224_v13 = vshrl.u32 %v4113_v7, 16 }
  0xa5   :  { %v1820_v21 = vpop.f32.mrf.mxu2 }
  0xa6   :  { %v2991_v22 = vmax.f32 %v2910_v17, 0.0  ;;  %v2020_v23 = vadd.f32 %v1820_v21, %v1100_v18  ;;  %v1102_v24 = vpop.f32.mrf.mxu1  ;;  %v411_v17 = vshrl.u32 %v4086_v36, 16  ;;  %v415_v18 = vshll.u32 %v4119_v8, 16 }
  0xa7   :  { %v1613_v21 = vrot.slane %v4113_v7, 1 }
  0xa8   :  { %v3072_v27 = vpack.c.bf16 %v2991_v22, %v2991_v22  ;;  %v2226_v22 = vrot.slane %v2224_v13, 1  ;;  %v413_v26 = vor.u32 %v411_v17, %v409_v56 }
  0xa9   :  { %v793_v28 = vpop.f32.mrf.mxu0  ;;  %v2626_v30 = vpop.f32.mrf.mxu3  ;;  %3464 = vmatmul.msk.bf16.gmra.mxu1 %vm650_vm1, %v4021_v31 }
  0xaa   :  { %3154 = vst.msk [vmem:[%s5162_s3 + $0x8] sm:$0xf] %vm3151_vm4, %v3072_v27  ;;  %v2826_v32 = vadd.f32 %v2626_v30, %v2020_v23  ;;  %v1103_v33 = vadd.f32 %v1102_v24, %v793_v28  ;;  %3673 = vmatmul.msk.bf16.gmra.mxu2 %vm650_vm1, %v1610_v25  ;;  %v2229_v23 = vrot.slane %v2227_v14, 2  ;;  %v417_v27 = vrot.slane %v415_v18, 1  ;;  %v4179_v14 = vld [vmem:[%s5160_s0 + $0x80] sm:$0xff] }
  0xac   :  { %3415 = vmatmul.msk.bf16.gmra.mxu0 %vm650_vm1, %v402_v29  ;;  %v2911_v31 = vadd.f32 %v4029_v37, %v2826_v32 }
  0xad   :  { %v1823_v38 = vpop.f32.mrf.mxu2 }
  0xae   :  { %v2992_v39 = vmax.f32 %v2911_v31, 0.0  ;;  %3722 = vmatmul.msk.bf16.gmra.mxu3 %vm650_vm1, %v2213_v34  ;;  %v2021_v40 = vadd.f32 %v1823_v38, %v1103_v33  ;;  %v1104_v41 = vpop.f32.mrf.mxu1  ;;  %v1614_v33 = vsel %vm1587_vm2, %v1611_v50, %v1613_v21  ;;  %v2230_v34 = vor.u32 %v2229_v23, %v2226_v22 }
  0xaf   :  { %v418_v38 = vsel %vm310_vm0, %v413_v26, %v417_v27  ;;  %v2236_v50 = vshll.u32 %v4146_v43, 16 }
  0xb0   :  { %v3073_v44 = vpack.c.bf16 %v2992_v39, %v2992_v39  ;;  %v2231_v42 = vsel %vm2106_vm3, %v2221_v62, %v2230_v34 }
  0xb1   :  { %v795_v45 = vpop.f32.mrf.mxu0  ;;  %v2629_v48 = vpop.f32.mrf.mxu3 }
  0xb2   :  { %3155 = vst.msk [vmem:[%s5162_s3 + $0xc] sm:$0xf] %vm3151_vm4, %v3073_v44  ;;  %v2827_v49 = vadd.f32 %v2629_v48, %v2021_v40  ;;  %v1105_v54 = vadd.f32 %v1104_v41, %v795_v45  ;;  %v4152_v44 = vld [vmem:[%s5160_s0 + $0x70] sm:$0xff] }
  0xb4   :  { %v2912_v53 = vadd.f32 %v4029_v37, %v2827_v49  ;;  %v2233_v49 = vshrl.u32 %v4146_v43, 16 }
  0xb5   :  { %v1825_v57 = vpop.f32.mrf.mxu2 }
  0xb6   :  { %v2993_v58 = vmax.f32 %v2912_v53, 0.0  ;;  %v2022_v59 = vadd.f32 %v1825_v57, %v1105_v54  ;;  %v1107_v60 = vpop.f32.mrf.mxu1  ;;  %v419_v53 = vshrl.u32 %v4119_v8, 16  ;;  %v423_v54 = vshll.u32 %v4152_v44, 16 }
  0xb7   :  { %v1615_v57 = vrot.slane %v4146_v43, 1 }
  0xb8   :  { %v3074_v63 = vpack.c.bf16 %v2993_v58, %v2993_v58  ;;  %v2235_v58 = vrot.slane %v2233_v49, 1  ;;  %v421_v62 = vor.u32 %v419_v53, %v417_v27 }
  0xb9   :  { %v798_v0 = vpop.f32.mrf.mxu0  ;;  %v2631_v3 = vpop.f32.mrf.mxu3  ;;  %3465 = vmatmul.msk.bf16.gmra.mxu1 %vm650_vm1, %v4053_v1 }
  0xba   :  { %3156 = vst.msk [vmem:[%s5162_s3 + $0x10] sm:$0xf] %vm3151_vm4, %v3074_v63  ;;  %v2828_v4 = vadd.f32 %v2631_v3, %v2022_v59  ;;  %v1108_v5 = vadd.f32 %v1107_v60, %v798_v0  ;;  %3674 = vmatmul.msk.bf16.gmra.mxu2 %vm650_vm1, %v1612_v61  ;;  %v2238_v59 = vrot.slane %v2236_v50, 2  ;;  %v425_v63 = vrot.slane %v423_v54, 1  ;;  %v4212_v50 = vld [vmem:[%s5160_s0 + $0x88] sm:$0xff] }
  0xbc   :  { %3416 = vmatmul.msk.bf16.gmra.mxu0 %vm650_vm1, %v410_v2  ;;  %v2913_v1 = vadd.f32 %v4029_v37, %v2828_v4 }
  0xbd   :  { %v1828_v9 = vpop.f32.mrf.mxu2 }
  0xbe   :  { %v2994_v10 = vmax.f32 %v2913_v1, 0.0  ;;  %3723 = vmatmul.msk.bf16.gmra.mxu3 %vm650_vm1, %v2222_v6  ;;  %v2023_v11 = vadd.f32 %v1828_v9, %v1108_v5  ;;  %v1109_v12 = vpop.f32.mrf.mxu1  ;;  %v1616_v5 = vsel %vm1587_vm2, %v1613_v21, %v1615_v57  ;;  %v2239_v6 = vor.u32 %v2238_v59, %v2235_v58 }
  0xbf   :  { %v426_v9 = vsel %vm310_vm0, %v421_v62, %v425_v63  ;;  %v2245_v21 = vshll.u32 %v4179_v14, 16 }
  0xc0   :  { %v3075_v15 = vpack.c.bf16 %v2994_v10, %v2994_v10  ;;  %v2240_v13 = vsel %vm2106_vm3, %v2230_v34, %v2239_v6 }
  0xc1   :  { %v800_v16 = vpop.f32.mrf.mxu0  ;;  %v2634_v19 = vpop.f32.mrf.mxu3 }
  0xc2   :  { %3157 = vst.msk [vmem:[%s5162_s3 + $0x14] sm:$0xf] %vm3151_vm4, %v3075_v15  ;;  %v2829_v20 = vadd.f32 %v2634_v19, %v2023_v11  ;;  %v1110_v25 = vadd.f32 %v1109_v12, %v800_v16  ;;  %v4185_v15 = vld [vmem:[%s5160_s0 + $0x78] sm:$0xff] }
  0xc4   :  { %v2914_v24 = vadd.f32 %v4029_v37, %v2829_v20  ;;  %v2242_v20 = vshrl.u32 %v4179_v14, 16 }
  0xc5   :  { %v1830_v28 = vpop.f32.mrf.mxu2 }
  0xc6   :  { %v2995_v29 = vmax.f32 %v2914_v24, 0.0  ;;  %v2024_v30 = vadd.f32 %v1830_v28, %v1110_v25  ;;  %v1112_v32 = vpop.f32.mrf.mxu1  ;;  %v427_v24 = vshrl.u32 %v4152_v44, 16  ;;  %v431_v25 = vshll.u32 %v4185_v15, 16 }
  0xc7   :  { %v1617_v28 = vrot.slane %v4179_v14, 1 }
  0xc8   :  { %v3076_v35 = vpack.c.bf16 %v2995_v29, %v2995_v29  ;;  %v2244_v29 = vrot.slane %v2242_v20, 1  ;;  %v429_v34 = vor.u32 %v427_v24, %v425_v63 }
  0xc9   :  { %v803_v31 = vpop.f32.mrf.mxu0  ;;  %v2636_v39 = vpop.f32.mrf.mxu3  ;;  %3466 = vmatmul.msk.bf16.gmra.mxu1 %vm650_vm1, %v4086_v36 }
  0xca   :  { %3158 = vst.msk [vmem:[%s5162_s3 + $0x18] sm:$0xf] %vm3151_vm4, %v3076_v35  ;;  %v2830_v40 = vadd.f32 %v2636_v39, %v2024_v30  ;;  %v1113_v41 = vadd.f32 %v1112_v32, %v803_v31  ;;  %3675 = vmatmul.msk.bf16.gmra.mxu2 %vm650_vm1, %v1614_v33  ;;  %v2247_v30 = vrot.slane %v2245_v21, 2  ;;  %v433_v35 = vrot.slane %v431_v25, 1  ;;  %v4245_v21 = vld [vmem:[%s5160_s0 + $0x90] sm:$0xff] }
  0xcc   :  { %3417 = vmatmul.msk.bf16.gmra.mxu0 %vm650_vm1, %v418_v38  ;;  %v2915_v36 = vadd.f32 %v4029_v37, %v2830_v40 }
  0xcd   :  { %v1833_v45 = vpop.f32.mrf.mxu2 }
  0xce   :  { %v2996_v46 = vmax.f32 %v2915_v36, 0.0  ;;  %3724 = vmatmul.msk.bf16.gmra.mxu3 %vm650_vm1, %v2231_v42  ;;  %v2025_v47 = vadd.f32 %v1833_v45, %v1113_v41  ;;  %v1114_v48 = vpop.f32.mrf.mxu1  ;;  %v1618_v41 = vsel %vm1587_vm2, %v1615_v57, %v1617_v28  ;;  %v2248_v42 = vor.u32 %v2247_v30, %v2244_v29 }
  0xcf   :  { %v434_v45 = vsel %vm310_vm0, %v429_v34, %v433_v35  ;;  %v2254_v57 = vshll.u32 %v4212_v50, 16 }
  0xd0   :  { %v3077_v51 = vpack.c.bf16 %v2996_v46, %v2996_v46  ;;  %v2249_v49 = vsel %vm2106_vm3, %v2239_v6, %v2248_v42 }
  0xd1   :  { %v805_v52 = vpop.f32.mrf.mxu0  ;;  %v2639_v55 = vpop.f32.mrf.mxu3 }
  0xd2   :  { %3159 = vst.msk [vmem:[%s5162_s3 + $0x1c] sm:$0xf] %vm3151_vm4, %v3077_v51  ;;  %v2831_v56 = vadd.f32 %v2639_v55, %v2025_v47  ;;  %v1115_v61 = vadd.f32 %v1114_v48, %v805_v52  ;;  %v4218_v51 = vld [vmem:[%s5160_s0 + $0x80] sm:$0xff] }
  0xd4   :  { %v2916_v60 = vadd.f32 %v4029_v37, %v2831_v56  ;;  %v2251_v56 = vshrl.u32 %v4212_v50, 16 }
  0xd5   :  { %v1835_v0 = vpop.f32.mrf.mxu2 }
  0xd6   :  { %v2997_v2 = vmax.f32 %v2916_v60, 0.0  ;;  %v2026_v3 = vadd.f32 %v1835_v0, %v1115_v61  ;;  %v1117_v4 = vpop.f32.mrf.mxu1  ;;  %v435_v60 = vshrl.u32 %v4185_v15, 16  ;;  %v439_v61 = vshll.u32 %v4218_v51, 16 }
  0xd7   :  { %v1619_v0 = vrot.slane %v4212_v50, 1 }
  0xd8   :  { %v3078_v7 = vpack.c.bf16 %v2997_v2, %v2997_v2  ;;  %v2253_v2 = vrot.slane %v2251_v56, 1  ;;  %v437_v6 = vor.u32 %v435_v60, %v433_v35 }
  0xd9   :  { %v808_v1 = vpop.f32.mrf.mxu0  ;;  %v2641_v10 = vpop.f32.mrf.mxu3  ;;  %3467 = vmatmul.msk.bf16.gmra.mxu1 %vm650_vm1, %v4119_v8 }
  0xda   :  { %3160 = vst.msk [vmem:[%s5162_s3 + $0x20] sm:$0xf] %vm3151_vm4, %v3078_v7  ;;  %v2832_v11 = vadd.f32 %v2641_v10, %v2026_v3  ;;  %v1118_v12 = vadd.f32 %v1117_v4, %v808_v1  ;;  %3676 = vmatmul.msk.bf16.gmra.mxu2 %vm650_vm1, %v1616_v5  ;;  %v2256_v3 = vrot.slane %v2254_v57, 2  ;;  %v441_v7 = vrot.slane %v439_v61, 1  ;;  %v4278_v57 = vld [vmem:[%s5160_s0 + $0x98] sm:$0xff] }
  0xdc   :  { %3418 = vmatmul.msk.bf16.gmra.mxu0 %vm650_vm1, %v426_v9  ;;  %v2917_v8 = vadd.f32 %v4029_v37, %v2832_v11 }
  0xdd   :  { %v1838_v16 = vpop.f32.mrf.mxu2 }
  0xde   :  { %v2998_v17 = vmax.f32 %v2917_v8, 0.0  ;;  %3725 = vmatmul.msk.bf16.gmra.mxu3 %vm650_vm1, %v2240_v13  ;;  %v2027_v18 = vadd.f32 %v1838_v16, %v1118_v12  ;;  %v1119_v19 = vpop.f32.mrf.mxu1  ;;  %v1620_v12 = vsel %vm1587_vm2, %v1617_v28, %v1619_v0  ;;  %v2257_v13 = vor.u32 %v2256_v3, %v2253_v2 }
  0xdf   :  { %v442_v16 = vsel %vm310_vm0, %v437_v6, %v441_v7  ;;  %v2263_v28 = vshll.u32 %v4245_v21, 16 }
  0xe0   :  { %v3079_v22 = vpack.c.bf16 %v2998_v17, %v2998_v17  ;;  %v2258_v20 = vsel %vm2106_vm3, %v2248_v42, %v2257_v13 }
  0xe1   :  { %v810_v23 = vpop.f32.mrf.mxu0  ;;  %v2644_v26 = vpop.f32.mrf.mxu3 }
  0xe2   :  { %3161 = vst.msk [vmem:[%s5162_s3 + $0x24] sm:$0xf] %vm3151_vm4, %v3079_v22  ;;  %v2833_v27 = vadd.f32 %v2644_v26, %v2027_v18  ;;  %v1120_v33 = vadd.f32 %v1119_v19, %v810_v23  ;;  %v4251_v22 = vld [vmem:[%s5160_s0 + $0x88] sm:$0xff] }
  0xe4   :  { %v2918_v32 = vadd.f32 %v4029_v37, %v2833_v27  ;;  %v2260_v27 = vshrl.u32 %v4245_v21, 16 }
  0xe5   :  { %v1840_v31 = vpop.f32.mrf.mxu2 }
  0xe6   :  { %v2999_v38 = vmax.f32 %v2918_v32, 0.0  ;;  %v2028_v39 = vadd.f32 %v1840_v31, %v1120_v33  ;;  %v1122_v40 = vpop.f32.mrf.mxu1  ;;  %v443_v32 = vshrl.u32 %v4218_v51, 16  ;;  %v447_v33 = vshll.u32 %v4251_v22, 16 }
  0xe7   :  { %v1621_v31 = vrot.slane %v4245_v21, 1 }
  0xe8   :  { %v3080_v43 = vpack.c.bf16 %v2999_v38, %v2999_v38  ;;  %v2262_v38 = vrot.slane %v2260_v27, 1  ;;  %v445_v42 = vor.u32 %v443_v32, %v441_v7 }
  0xe9   :  { %v813_v36 = vpop.f32.mrf.mxu0  ;;  %v2646_v46 = vpop.f32.mrf.mxu3  ;;  %3468 = vmatmul.msk.bf16.gmra.mxu1 %vm650_vm1, %v4152_v44 }
  0xea   :  { %3162 = vst.msk [vmem:[%s5162_s3 + $0x28] sm:$0xf] %vm3151_vm4, %v3080_v43  ;;  %v2834_v47 = vadd.f32 %v2646_v46, %v2028_v39  ;;  %v1123_v48 = vadd.f32 %v1122_v40, %v813_v36  ;;  %3677 = vmatmul.msk.bf16.gmra.mxu2 %vm650_vm1, %v1618_v41  ;;  %v2265_v39 = vrot.slane %v2263_v28, 2  ;;  %v449_v43 = vrot.slane %v447_v33, 1  ;;  %v4311_v28 = vld [vmem:[%s5160_s0 + $0xa0] sm:$0xff] }
  0xec   :  { %3419 = vmatmul.msk.bf16.gmra.mxu0 %vm650_vm1, %v434_v45  ;;  %v2919_v44 = vadd.f32 %v4029_v37, %v2834_v47 }
  0xed   :  { %v1843_v52 = vpop.f32.mrf.mxu2 }
  0xee   :  { %v3000_v53 = vmax.f32 %v2919_v44, 0.0  ;;  %3726 = vmatmul.msk.bf16.gmra.mxu3 %vm650_vm1, %v2249_v49  ;;  %v2029_v54 = vadd.f32 %v1843_v52, %v1123_v48  ;;  %v1124_v55 = vpop.f32.mrf.mxu1  ;;  %v1622_v48 = vsel %vm1587_vm2, %v1619_v0, %v1621_v31  ;;  %v2266_v49 = vor.u32 %v2265_v39, %v2262_v38 }
  0xef   :  { %v450_v52 = vsel %vm310_vm0, %v445_v42, %v449_v43  ;;  %v2272_v0 = vshll.u32 %v4278_v57, 16 }
  0xf0   :  { %v3081_v58 = vpack.c.bf16 %v3000_v53, %v3000_v53  ;;  %v2267_v56 = vsel %vm2106_vm3, %v2257_v13, %v2266_v49 }
  0xf1   :  { %v815_v59 = vpop.f32.mrf.mxu0  ;;  %v2649_v62 = vpop.f32.mrf.mxu3 }
  0xf2   :  { %3163 = vst.msk [vmem:[%s5162_s3 + $0x2c] sm:$0xf] %vm3151_vm4, %v3081_v58  ;;  %v2835_v63 = vadd.f32 %v2649_v62, %v2029_v54  ;;  %v1125_v5 = vadd.f32 %v1124_v55, %v815_v59  ;;  %v4284_v58 = vld [vmem:[%s5160_s0 + $0x90] sm:$0xff] }
  0xf4   :  { %v2920_v4 = vadd.f32 %v4029_v37, %v2835_v63  ;;  %v2269_v63 = vshrl.u32 %v4278_v57, 16 }
  0xf5   :  { %v1845_v1 = vpop.f32.mrf.mxu2 }
  0xf6   :  { %v3001_v9 = vmax.f32 %v2920_v4, 0.0  ;;  %v2030_v10 = vadd.f32 %v1845_v1, %v1125_v5  ;;  %v1127_v11 = vpop.f32.mrf.mxu1  ;;  %v451_v4 = vshrl.u32 %v4251_v22, 16  ;;  %v455_v5 = vshll.u32 %v4284_v58, 16 }
  0xf7   :  { %v1623_v1 = vrot.slane %v4278_v57, 1 }
  0xf8   :  { %v3082_v14 = vpack.c.bf16 %v3001_v9, %v3001_v9  ;;  %v2271_v9 = vrot.slane %v2269_v63, 1  ;;  %v453_v13 = vor.u32 %v451_v4, %v449_v43 }
  0xf9   :  { %v818_v8 = vpop.f32.mrf.mxu0  ;;  %v2651_v17 = vpop.f32.mrf.mxu3  ;;  %3469 = vmatmul.msk.bf16.gmra.mxu1 %vm650_vm1, %v4185_v15 }
  0xfa   :  { %3164 = vst.msk [vmem:[%s5162_s3 + $0x30] sm:$0xf] %vm3151_vm4, %v3082_v14  ;;  %v2836_v18 = vadd.f32 %v2651_v17, %v2030_v10  ;;  %v1128_v19 = vadd.f32 %v1127_v11, %v818_v8  ;;  %3678 = vmatmul.msk.bf16.gmra.mxu2 %vm650_vm1, %v1620_v12  ;;  %v2274_v10 = vrot.slane %v2272_v0, 2  ;;  %v457_v14 = vrot.slane %v455_v5, 1  ;;  %v4344_v0 = vld [vmem:[%s5160_s0 + $0xa8] sm:$0xff] }
  0xfc   :  { %3420 = vmatmul.msk.bf16.gmra.mxu0 %vm650_vm1, %v442_v16  ;;  %v2921_v15 = vadd.f32 %v4029_v37, %v2836_v18 }
  0xfd   :  { %v1848_v23 = vpop.f32.mrf.mxu2 }
  0xfe   :  { %v3002_v24 = vmax.f32 %v2921_v15, 0.0  ;;  %3727 = vmatmul.msk.bf16.gmra.mxu3 %vm650_vm1, %v2258_v20  ;;  %v2031_v25 = vadd.f32 %v1848_v23, %v1128_v19  ;;  %v1129_v26 = vpop.f32.mrf.mxu1  ;;  %v1624_v19 = vsel %vm1587_vm2, %v1621_v31, %v1623_v1  ;;  %v2275_v20 = vor.u32 %v2274_v10, %v2271_v9 }
  0xff   :  { %v458_v23 = vsel %vm310_vm0, %v453_v13, %v457_v14  ;;  %v2281_v31 = vshll.u32 %v4311_v28, 16 }
 0x100   :  { %v3083_v29 = vpack.c.bf16 %v3002_v24, %v3002_v24  ;;  %v2276_v27 = vsel %vm2106_vm3, %v2266_v49, %v2275_v20 }
 0x101   :  { %v820_v30 = vpop.f32.mrf.mxu0  ;;  %v2654_v34 = vpop.f32.mrf.mxu3 }
 0x102   :  { %3165 = vst.msk [vmem:[%s5162_s3 + $0x34] sm:$0xf] %vm3151_vm4, %v3083_v29  ;;  %v2837_v35 = vadd.f32 %v2654_v34, %v2031_v25  ;;  %v1130_v41 = vadd.f32 %v1129_v26, %v820_v30  ;;  %v4317_v29 = vld [vmem:[%s5160_s0 + $0x98] sm:$0xff] }
 0x104   :  { %v2922_v40 = vadd.f32 %v4029_v37, %v2837_v35  ;;  %v2278_v35 = vshrl.u32 %v4311_v28, 16 }
 0x105   :  { %v1850_v36 = vpop.f32.mrf.mxu2 }
 0x106   :  { %v3003_v45 = vmax.f32 %v2922_v40, 0.0  ;;  %v2032_v46 = vadd.f32 %v1850_v36, %v1130_v41  ;;  %v1132_v47 = vpop.f32.mrf.mxu1  ;;  %v459_v40 = vshrl.u32 %v4284_v58, 16  ;;  %v463_v41 = vshll.u32 %v4317_v29, 16 }
 0x107   :  { %v1625_v36 = vrot.slane %v4311_v28, 1 }
 0x108   :  { %v3084_v50 = vpack.c.bf16 %v3003_v45, %v3003_v45  ;;  %v2280_v45 = vrot.slane %v2278_v35, 1  ;;  %v461_v49 = vor.u32 %v459_v40, %v457_v14 }
 0x109   :  { %v823_v44 = vpop.f32.mrf.mxu0  ;;  %v2656_v53 = vpop.f32.mrf.mxu3  ;;  %3470 = vmatmul.msk.bf16.gmra.mxu1 %vm650_vm1, %v4218_v51 }
 0x10a   :  { %3166 = vst.msk [vmem:[%s5162_s3 + $0x38] sm:$0xf] %vm3151_vm4, %v3084_v50  ;;  %v2838_v54 = vadd.f32 %v2656_v53, %v2032_v46  ;;  %v1133_v55 = vadd.f32 %v1132_v47, %v823_v44  ;;  %3679 = vmatmul.msk.bf16.gmra.mxu2 %vm650_vm1, %v1622_v48  ;;  %v2283_v46 = vrot.slane %v2281_v31, 2  ;;  %v465_v50 = vrot.slane %v463_v41, 1  ;;  %v4377_v31 = vld [vmem:[%s5160_s0 + $0xb0] sm:$0xff] }
 0x10c   :  { %3421 = vmatmul.msk.bf16.gmra.mxu0 %vm650_vm1, %v450_v52  ;;  %v2923_v51 = vadd.f32 %v4029_v37, %v2838_v54 }
 0x10d   :  { %v1853_v59 = vpop.f32.mrf.mxu2 }
 0x10e   :  { %v3004_v60 = vmax.f32 %v2923_v51, 0.0  ;;  %3728 = vmatmul.msk.bf16.gmra.mxu3 %vm650_vm1, %v2267_v56  ;;  %v2033_v61 = vadd.f32 %v1853_v59, %v1133_v55  ;;  %v1134_v62 = vpop.f32.mrf.mxu1  ;;  %v1626_v55 = vsel %vm1587_vm2, %v1623_v1, %v1625_v36  ;;  %v2284_v56 = vor.u32 %v2283_v46, %v2280_v45 }
 0x10f   :  { %v466_v59 = vsel %vm310_vm0, %v461_v49, %v465_v50  ;;  %v2290_v1 = vshll.u32 %v4344_v0, 16 }
 0x110   :  { %v3085_v2 = vpack.c.bf16 %v3004_v60, %v3004_v60  ;;  %v2285_v63 = vsel %vm2106_vm3, %v2275_v20, %v2284_v56 }
 0x111   :  { %v825_v3 = vpop.f32.mrf.mxu0  ;;  %v2659_v6 = vpop.f32.mrf.mxu3 }
 0x112   :  { %3167 = vst.msk [vmem:[%s5162_s3 + $0x3c] sm:$0xf] %vm3151_vm4, %v3085_v2  ;;  %v2839_v7 = vadd.f32 %v2659_v6, %v2033_v61  ;;  %v1135_v12 = vadd.f32 %v1134_v62, %v825_v3  ;;  %v4350_v2 = vld [vmem:[%s5160_s0 + $0xa0] sm:$0xff] }
 0x114   :  { %v2924_v11 = vadd.f32 %v4029_v37, %v2839_v7  ;;  %v2287_v7 = vshrl.u32 %v4344_v0, 16 }
 0x115   :  { %v1855_v8 = vpop.f32.mrf.mxu2 }
 0x116   :  { %v3005_v16 = vmax.f32 %v2924_v11, 0.0  ;;  %v2034_v17 = vadd.f32 %v1855_v8, %v1135_v12  ;;  %v1137_v18 = vpop.f32.mrf.mxu1  ;;  %v467_v11 = vshrl.u32 %v4317_v29, 16  ;;  %v471_v12 = vshll.u32 %v4350_v2, 16 }
 0x117   :  { %v1627_v8 = vrot.slane %v4344_v0, 1 }
 0x118   :  { %v3086_v21 = vpack.c.bf16 %v3005_v16, %v3005_v16  ;;  %v2289_v16 = vrot.slane %v2287_v7, 1  ;;  %v469_v20 = vor.u32 %v467_v11, %v465_v50 }
 0x119   :  { %v828_v15 = vpop.f32.mrf.mxu0  ;;  %v2661_v24 = vpop.f32.mrf.mxu3  ;;  %3471 = vmatmul.msk.bf16.gmra.mxu1 %vm650_vm1, %v4251_v22 }
 0x11a   :  { %3168 = vst.msk [vmem:[%s5162_s3 + $0x40] sm:$0xf] %vm3151_vm4, %v3086_v21  ;;  %v2840_v25 = vadd.f32 %v2661_v24, %v2034_v17  ;;  %v1138_v26 = vadd.f32 %v1137_v18, %v828_v15  ;;  %3680 = vmatmul.msk.bf16.gmra.mxu2 %vm650_vm1, %v1624_v19  ;;  %v2292_v17 = vrot.slane %v2290_v1, 2  ;;  %v473_v21 = vrot.slane %v471_v12, 1  ;;  %v4410_v1 = vld [vmem:[%s5160_s0 + $0xb8] sm:$0xff] }
 0x11c   :  { %3422 = vmatmul.msk.bf16.gmra.mxu0 %vm650_vm1, %v458_v23  ;;  %v2925_v22 = vadd.f32 %v4029_v37, %v2840_v25 }
 0x11d   :  { %v1858_v30 = vpop.f32.mrf.mxu2 }
 0x11e   :  { %v3006_v32 = vmax.f32 %v2925_v22, 0.0  ;;  %3729 = vmatmul.msk.bf16.gmra.mxu3 %vm650_vm1, %v2276_v27  ;;  %v2035_v33 = vadd.f32 %v1858_v30, %v1138_v26  ;;  %v1139_v34 = vpop.f32.mrf.mxu1  ;;  %v1628_v26 = vsel %vm1587_vm2, %v1625_v36, %v1627_v8  ;;  %v2293_v27 = vor.u32 %v2292_v17, %v2289_v16 }
 0x11f   :  { %v474_v30 = vsel %vm310_vm0, %v469_v20, %v473_v21  ;;  %v2299_v36 = vshll.u32 %v4377_v31, 16 }
 0x120   :  { %v3087_v38 = vpack.c.bf16 %v3006_v32, %v3006_v32  ;;  %v2294_v35 = vsel %vm2106_vm3, %v2284_v56, %v2293_v27 }
 0x121   :  { %v830_v39 = vpop.f32.mrf.mxu0  ;;  %v2664_v42 = vpop.f32.mrf.mxu3 }
 0x122   :  { %3169 = vst.msk [vmem:[%s5162_s3 + $0x44] sm:$0xf] %vm3151_vm4, %v3087_v38  ;;  %v2841_v43 = vadd.f32 %v2664_v42, %v2035_v33  ;;  %v1140_v48 = vadd.f32 %v1139_v34, %v830_v39  ;;  %v4383_v38 = vld [vmem:[%s5160_s0 + $0xa8] sm:$0xff] }
 0x124   :  { %v2926_v47 = vadd.f32 %v4029_v37, %v2841_v43  ;;  %v2296_v43 = vshrl.u32 %v4377_v31, 16 }
 0x125   :  { %v1860_v44 = vpop.f32.mrf.mxu2 }
 0x126   :  { %v3007_v52 = vmax.f32 %v2926_v47, 0.0  ;;  %v2036_v53 = vadd.f32 %v1860_v44, %v1140_v48  ;;  %v1142_v54 = vpop.f32.mrf.mxu1  ;;  %v475_v47 = vshrl.u32 %v4350_v2, 16  ;;  %v479_v48 = vshll.u32 %v4383_v38, 16 }
 0x127   :  { %v1629_v44 = vrot.slane %v4377_v31, 1 }
 0x128   :  { %v3088_v57 = vpack.c.bf16 %v3007_v52, %v3007_v52  ;;  %v2298_v52 = vrot.slane %v2296_v43, 1  ;;  %v477_v56 = vor.u32 %v475_v47, %v473_v21  ;;  %v4443_v43 = vld [vmem:[%s5160_s0 + $0xc0] sm:$0xff] }
 0x129   :  { %v833_v51 = vpop.f32.mrf.mxu0  ;;  %v2666_v60 = vpop.f32.mrf.mxu3  ;;  %3472 = vmatmul.msk.bf16.gmra.mxu1 %vm650_vm1, %v4284_v58 }
 0x12a   :  { %3170 = vst.msk [vmem:[%s5162_s3 + $0x48] sm:$0xf] %vm3151_vm4, %v3088_v57  ;;  %v2842_v61 = vadd.f32 %v2666_v60, %v2036_v53  ;;  %v1143_v62 = vadd.f32 %v1142_v54, %v833_v51  ;;  %3681 = vmatmul.msk.bf16.gmra.mxu2 %vm650_vm1, %v1626_v55  ;;  %v2301_v53 = vrot.slane %v2299_v36, 2  ;;  %v481_v57 = vrot.slane %v479_v48, 1 }
 0x12c   :  { %3423 = vmatmul.msk.bf16.gmra.mxu0 %vm650_vm1, %v466_v59  ;;  %v2927_v58 = vadd.f32 %v4029_v37, %v2842_v61 }
 0x12d   :  { %v1863_v3 = vpop.f32.mrf.mxu2 }
 0x12e   :  { %v3008_v4 = vmax.f32 %v2927_v58, 0.0  ;;  %3730 = vmatmul.msk.bf16.gmra.mxu3 %vm650_vm1, %v2285_v63  ;;  %v2037_v5 = vadd.f32 %v1863_v3, %v1143_v62  ;;  %v1144_v6 = vpop.f32.mrf.mxu1  ;;  %v1630_v62 = vsel %vm1587_vm2, %v1627_v8, %v1629_v44  ;;  %v2302_v63 = vor.u32 %v2301_v53, %v2298_v52 }
 0x12f   :  { %v482_v3 = vsel %vm310_vm0, %v477_v56, %v481_v57  ;;  %v2308_v8 = vshll.u32 %v4410_v1, 16 }
 0x130   :  { %v3089_v9 = vpack.c.bf16 %v3008_v4, %v3008_v4  ;;  %v2303_v7 = vsel %vm2106_vm3, %v2293_v27, %v2302_v63 }
 0x131   :  { %v835_v10 = vpop.f32.mrf.mxu0  ;;  %v2669_v13 = vpop.f32.mrf.mxu3 }
 0x132   :  { %3171 = vst.msk [vmem:[%s5162_s3 + $0x4c] sm:$0xf] %vm3151_vm4, %v3089_v9  ;;  %v2843_v14 = vadd.f32 %v2669_v13, %v2037_v5  ;;  %v1145_v19 = vadd.f32 %v1144_v6, %v835_v10  ;;  %v4416_v9 = vld [vmem:[%s5160_s0 + $0xb0] sm:$0xff] }
 0x134   :  { %v2928_v18 = vadd.f32 %v4029_v37, %v2843_v14  ;;  %v2305_v14 = vshrl.u32 %v4410_v1, 16 }
 0x135   :  { %v1865_v15 = vpop.f32.mrf.mxu2 }
 0x136   :  { %v3009_v23 = vmax.f32 %v2928_v18, 0.0  ;;  %v2038_v24 = vadd.f32 %v1865_v15, %v1145_v19  ;;  %v1147_v25 = vpop.f32.mrf.mxu1  ;;  %v483_v18 = vshrl.u32 %v4383_v38, 16  ;;  %v487_v19 = vshll.u32 %v4416_v9, 16 }
 0x137   :  { %v1631_v15 = vrot.slane %v4410_v1, 1 }
 0x138   :  { %v3090_v28 = vpack.c.bf16 %v3009_v23, %v3009_v23  ;;  %v2307_v23 = vrot.slane %v2305_v14, 1  ;;  %v485_v27 = vor.u32 %v483_v18, %v481_v57 }
 0x139   :  { %v838_v22 = vpop.f32.mrf.mxu0  ;;  %v2671_v32 = vpop.f32.mrf.mxu3  ;;  %3473 = vmatmul.msk.bf16.gmra.mxu1 %vm650_vm1, %v4317_v29 }
 0x13a   :  { %3172 = vst.msk [vmem:[%s5162_s3 + $0x50] sm:$0xf] %vm3151_vm4, %v3090_v28  ;;  %v2844_v33 = vadd.f32 %v2671_v32, %v2038_v24  ;;  %v1148_v34 = vadd.f32 %v1147_v25, %v838_v22  ;;  %3682 = vmatmul.msk.bf16.gmra.mxu2 %vm650_vm1, %v1628_v26  ;;  %v2310_v24 = vrot.slane %v2308_v8, 2  ;;  %v489_v28 = vrot.slane %v487_v19, 1  ;;  %v4481_v8 = vld [vmem:[%s5160_s0 + $0xc8] sm:$0xff] }
 0x13c   :  { %3424 = vmatmul.msk.bf16.gmra.mxu0 %vm650_vm1, %v474_v30  ;;  %v2929_v29 = vadd.f32 %v4029_v37, %v2844_v33 }
 0x13d   :  { %v1868_v39 = vpop.f32.mrf.mxu2 }
 0x13e   :  { %v3010_v40 = vmax.f32 %v2929_v29, 0.0  ;;  %3731 = vmatmul.msk.bf16.gmra.mxu3 %vm650_vm1, %v2294_v35  ;;  %v2039_v41 = vadd.f32 %v1868_v39, %v1148_v34  ;;  %v1149_v42 = vpop.f32.mrf.mxu1  ;;  %v1632_v34 = vsel %vm1587_vm2, %v1629_v44, %v1631_v15  ;;  %v2311_v35 = vor.u32 %v2310_v24, %v2307_v23 }
 0x13f   :  { %v490_v39 = vsel %vm310_vm0, %v485_v27, %v489_v28  ;;  %v2317_v44 = vshll.u32 %v4443_v43, 16 }
 0x140   :  { %v3091_v45 = vpack.c.bf16 %v3010_v40, %v3010_v40 }
 0x141   :  { %v840_v46 = vpop.f32.mrf.mxu0  ;;  %v2674_v49 = vpop.f32.mrf.mxu3 }
 0x142   :  { %3173 = vst.msk [vmem:[%s5162_s3 + $0x54] sm:$0xf] %vm3151_vm4, %v3091_v45  ;;  %v2845_v50 = vadd.f32 %v2674_v49, %v2039_v41  ;;  %v1150_v55 = vadd.f32 %v1149_v42, %v840_v46  ;;  %v2312_v42 = vsel %vm2106_vm3, %v2302_v63, %v2311_v35  ;;  %v4454_v45 = vld [vmem:[%s5160_s0 + $0xb8] sm:$0xff] }
 0x144   :  { %v2930_v54 = vadd.f32 %v4029_v37, %v2845_v50  ;;  %v2314_v50 = vshrl.u32 %v4443_v43, 16 }
 0x145   :  { %v1870_v51 = vpop.f32.mrf.mxu2 }
 0x146   :  { %v3011_v59 = vmax.f32 %v2930_v54, 0.0  ;;  %v2040_v60 = vadd.f32 %v1870_v51, %v1150_v55  ;;  %v1152_v61 = vpop.f32.mrf.mxu1  ;;  %v491_v54 = vshrl.u32 %v4416_v9, 16  ;;  %v495_v55 = vshll.u32 %v4454_v45, 16 }
 0x147   :  { %v1633_v51 = vrot.slane %v4443_v43, 1 }
 0x148   :  { %v3092_v0 = vpack.c.bf16 %v3011_v59, %v3011_v59  ;;  %v2316_v59 = vrot.slane %v2314_v50, 1  ;;  %v493_v63 = vor.u32 %v491_v54, %v489_v28 }
 0x149   :  { %v843_v58 = vpop.f32.mrf.mxu0  ;;  %v2676_v4 = vpop.f32.mrf.mxu3  ;;  %3474 = vmatmul.msk.bf16.gmra.mxu1 %vm650_vm1, %v4350_v2 }
 0x14a   :  { %3174 = vst.msk [vmem:[%s5162_s3 + $0x58] sm:$0xf] %vm3151_vm4, %v3092_v0  ;;  %v2846_v5 = vadd.f32 %v2676_v4, %v2040_v60  ;;  %v1153_v6 = vadd.f32 %v1152_v61, %v843_v58  ;;  %3683 = vmatmul.msk.bf16.gmra.mxu2 %vm650_vm1, %v1630_v62  ;;  %v2319_v60 = vrot.slane %v2317_v44, 2  ;;  %v497_v0 = vrot.slane %v495_v55, 1  ;;  %v4514_v44 = vld [vmem:[%s5160_s0 + $0xd0] sm:$0xff] }
 0x14c   :  { %3425 = vmatmul.msk.bf16.gmra.mxu0 %vm650_vm1, %v482_v3  ;;  %v2931_v2 = vadd.f32 %v4029_v37, %v2846_v5 }
 0x14d   :  { %v1873_v10 = vpop.f32.mrf.mxu2 }
 0x14e   :  { %v3012_v11 = vmax.f32 %v2931_v2, 0.0  ;;  %3732 = vmatmul.msk.bf16.gmra.mxu3 %vm650_vm1, %v2303_v7  ;;  %v2041_v12 = vadd.f32 %v1873_v10, %v1153_v6  ;;  %v1154_v13 = vpop.f32.mrf.mxu1  ;;  %v1634_v6 = vsel %vm1587_vm2, %v1631_v15, %v1633_v51  ;;  %v2320_v7 = vor.u32 %v2319_v60, %v2316_v59 }
 0x14f   :  { %v498_v10 = vsel %vm310_vm0, %v493_v63, %v497_v0  ;;  %v2326_v15 = vshll.u32 %v4481_v8, 16 }
 0x150   :  { %v3093_v16 = vpack.c.bf16 %v3012_v11, %v3012_v11  ;;  %v2321_v14 = vsel %vm2106_vm3, %v2311_v35, %v2320_v7 }
 0x151   :  { %v845_v17 = vpop.f32.mrf.mxu0  ;;  %v2679_v20 = vpop.f32.mrf.mxu3 }
 0x152   :  { %3175 = vst.msk [vmem:[%s5162_s3 + $0x5c] sm:$0xf] %vm3151_vm4, %v3093_v16  ;;  %v2847_v21 = vadd.f32 %v2679_v20, %v2041_v12  ;;  %v1155_v26 = vadd.f32 %v1154_v13, %v845_v17  ;;  %v4487_v16 = vld [vmem:[%s5160_s0 + $0xc0] sm:$0xff] }
 0x154   :  { %v2932_v25 = vadd.f32 %v4029_v37, %v2847_v21  ;;  %v2323_v21 = vshrl.u32 %v4481_v8, 16 }
 0x155   :  { %v1875_v22 = vpop.f32.mrf.mxu2 }
 0x156   :  { %v3013_v30 = vmax.f32 %v2932_v25, 0.0  ;;  %v2042_v32 = vadd.f32 %v1875_v22, %v1155_v26  ;;  %v1157_v33 = vpop.f32.mrf.mxu1  ;;  %v499_v25 = vshrl.u32 %v4454_v45, 16  ;;  %v503_v26 = vshll.u32 %v4487_v16, 16 }
 0x157   :  { %v1635_v22 = vrot.slane %v4481_v8, 1 }
 0x158   :  { %v3094_v31 = vpack.c.bf16 %v3013_v30, %v3013_v30  ;;  %v2325_v30 = vrot.slane %v2323_v21, 1  ;;  %v501_v35 = vor.u32 %v499_v25, %v497_v0 }
 0x159   :  { %v848_v29 = vpop.f32.mrf.mxu0  ;;  %v2681_v40 = vpop.f32.mrf.mxu3  ;;  %3475 = vmatmul.msk.bf16.gmra.mxu1 %vm650_vm1, %v4383_v38  ;;  %v4448_v38 = vld [vmem:[%s5161_s2] ss:$0 sm:$0xff] }
 0x15a   :  { %3176 = vst.msk [vmem:[%s5162_s3 + $0x60] sm:$0xf] %vm3151_vm4, %v3094_v31  ;;  %v2848_v37 = vadd.f32 %v2681_v40, %v2042_v32  ;;  %v1158_v41 = vadd.f32 %v1157_v33, %v848_v29  ;;  %3684 = vmatmul.msk.bf16.gmra.mxu2 %vm650_vm1, %v1632_v34  ;;  %v2328_v32 = vrot.slane %v2326_v15, 2  ;;  %v505_v31 = vrot.slane %v503_v26, 1  ;;  %v4547_v15 = vld [vmem:[%s5160_s0 + $0xd8] sm:$0xff] }
 0x15c   :  { %3426 = vmatmul.msk.bf16.gmra.mxu0 %vm650_vm1, %v490_v39  ;;  %v2933_v36 = vadd.f32 %v4448_v38, %v2848_v37 }
 0x15d   :  { %v1878_v46 = vpop.f32.mrf.mxu2 }
 0x15e   :  { %v3014_v47 = vmax.f32 %v2933_v36, 0.0  ;;  %3733 = vmatmul.msk.bf16.gmra.mxu3 %vm650_vm1, %v2312_v42  ;;  %v2043_v48 = vadd.f32 %v1878_v46, %v1158_v41  ;;  %v1159_v49 = vpop.f32.mrf.mxu1  ;;  %v1636_v41 = vsel %vm1587_vm2, %v1633_v51, %v1635_v22  ;;  %v2329_v42 = vor.u32 %v2328_v32, %v2325_v30 }
 0x15f   :  { %v506_v46 = vsel %vm310_vm0, %v501_v35, %v505_v31  ;;  %v2335_v51 = vshll.u32 %v4514_v44, 16 }
 0x160   :  { %v3095_v52 = vpack.c.bf16 %v3014_v47, %v3014_v47  ;;  %v2330_v50 = vsel %vm2106_vm3, %v2320_v7, %v2329_v42 }
 0x161   :  { %v850_v53 = vpop.f32.mrf.mxu0  ;;  %v2684_v56 = vpop.f32.mrf.mxu3 }
 0x162   :  { %3177 = vst.msk [vmem:[%s5162_s3 + $0x64] sm:$0xf] %vm3151_vm4, %v3095_v52  ;;  %v2849_v57 = vadd.f32 %v2684_v56, %v2043_v48  ;;  %v1160_v62 = vadd.f32 %v1159_v49, %v850_v53  ;;  %v4520_v52 = vld [vmem:[%s5160_s0 + $0xc8] sm:$0xff] }
 0x164   :  { %v2934_v61 = vadd.f32 %v4448_v38, %v2849_v57  ;;  %v2332_v57 = vshrl.u32 %v4514_v44, 16 }
 0x165   :  { %v1880_v58 = vpop.f32.mrf.mxu2 }
 0x166   :  { %v3015_v3 = vmax.f32 %v2934_v61, 0.0  ;;  %v2044_v4 = vadd.f32 %v1880_v58, %v1160_v62  ;;  %v1162_v5 = vpop.f32.mrf.mxu1  ;;  %v507_v61 = vshrl.u32 %v4487_v16, 16  ;;  %v511_v62 = vshll.u32 %v4520_v52, 16 }
 0x167   :  { %v1637_v58 = vrot.slane %v4514_v44, 1 }
 0x168   :  { %v3096_v1 = vpack.c.bf16 %v3015_v3, %v3015_v3  ;;  %v2334_v3 = vrot.slane %v2332_v57, 1  ;;  %v509_v7 = vor.u32 %v507_v61, %v505_v31 }
 0x169   :  { %v853_v2 = vpop.f32.mrf.mxu0  ;;  %v2686_v11 = vpop.f32.mrf.mxu3  ;;  %3476 = vmatmul.msk.bf16.gmra.mxu1 %vm650_vm1, %v4416_v9 }
 0x16a   :  { %3178 = vst.msk [vmem:[%s5162_s3 + $0x68] sm:$0xf] %vm3151_vm4, %v3096_v1  ;;  %v2850_v12 = vadd.f32 %v2686_v11, %v2044_v4  ;;  %v1163_v13 = vadd.f32 %v1162_v5, %v853_v2  ;;  %3685 = vmatmul.msk.bf16.gmra.mxu2 %vm650_vm1, %v1634_v6  ;;  %v2337_v4 = vrot.slane %v2335_v51, 2  ;;  %v513_v1 = vrot.slane %v511_v62, 1  ;;  %v4580_v51 = vld [vmem:[%s5160_s0 + $0xe0] sm:$0xff] }
 0x16c   :  { %3427 = vmatmul.msk.bf16.gmra.mxu0 %vm650_vm1, %v498_v10  ;;  %v2935_v9 = vadd.f32 %v4448_v38, %v2850_v12 }
 0x16d   :  { %v1883_v17 = vpop.f32.mrf.mxu2 }
 0x16e   :  { %v3016_v18 = vmax.f32 %v2935_v9, 0.0  ;;  %3734 = vmatmul.msk.bf16.gmra.mxu3 %vm650_vm1, %v2321_v14  ;;  %v2045_v19 = vadd.f32 %v1883_v17, %v1163_v13  ;;  %v1164_v20 = vpop.f32.mrf.mxu1  ;;  %v1638_v13 = vsel %vm1587_vm2, %v1635_v22, %v1637_v58  ;;  %v2338_v14 = vor.u32 %v2337_v4, %v2334_v3 }
 0x16f   :  { %v514_v17 = vsel %vm310_vm0, %v509_v7, %v513_v1  ;;  %v2344_v22 = vshll.u32 %v4547_v15, 16 }
 0x170   :  { %v3097_v23 = vpack.c.bf16 %v3016_v18, %v3016_v18  ;;  %v2339_v21 = vsel %vm2106_vm3, %v2329_v42, %v2338_v14 }
 0x171   :  { %v855_v24 = vpop.f32.mrf.mxu0  ;;  %v2689_v27 = vpop.f32.mrf.mxu3 }
 0x172   :  { %3179 = vst.msk [vmem:[%s5162_s3 + $0x6c] sm:$0xf] %vm3151_vm4, %v3097_v23  ;;  %v2851_v28 = vadd.f32 %v2689_v27, %v2045_v19  ;;  %v1165_v34 = vadd.f32 %v1164_v20, %v855_v24  ;;  %v4553_v23 = vld [vmem:[%s5160_s0 + $0xd0] sm:$0xff] }
 0x174   :  { %v2936_v33 = vadd.f32 %v4448_v38, %v2851_v28  ;;  %v2341_v28 = vshrl.u32 %v4547_v15, 16 }
 0x175   :  { %v1885_v29 = vpop.f32.mrf.mxu2 }
 0x176   :  { %v3017_v39 = vmax.f32 %v2936_v33, 0.0  ;;  %v2046_v40 = vadd.f32 %v1885_v29, %v1165_v34  ;;  %v1167_v37 = vpop.f32.mrf.mxu1  ;;  %v515_v33 = vshrl.u32 %v4520_v52, 16  ;;  %v519_v34 = vshll.u32 %v4553_v23, 16 }
 0x177   :  { %v1639_v29 = vrot.slane %v4547_v15, 1 }
 0x178   :  { %v3098_v43 = vpack.c.bf16 %v3017_v39, %v3017_v39  ;;  %v2343_v39 = vrot.slane %v2341_v28, 1  ;;  %v517_v42 = vor.u32 %v515_v33, %v513_v1 }
 0x179   :  { %v858_v36 = vpop.f32.mrf.mxu0  ;;  %v2691_v47 = vpop.f32.mrf.mxu3  ;;  %3477 = vmatmul.msk.bf16.gmra.mxu1 %vm650_vm1, %v4454_v45 }
 0x17a   :  { %3180 = vst.msk [vmem:[%s5162_s3 + $0x70] sm:$0xf] %vm3151_vm4, %v3098_v43  ;;  %v2852_v48 = vadd.f32 %v2691_v47, %v2046_v40  ;;  %v1168_v49 = vadd.f32 %v1167_v37, %v858_v36  ;;  %3686 = vmatmul.msk.bf16.gmra.mxu2 %vm650_vm1, %v1636_v41  ;;  %v2346_v40 = vrot.slane %v2344_v22, 2  ;;  %v521_v43 = vrot.slane %v519_v34, 1  ;;  %v4613_v22 = vld [vmem:[%s5160_s0 + $0xe8] sm:$0xff] }
 0x17c   :  { %3428 = vmatmul.msk.bf16.gmra.mxu0 %vm650_vm1, %v506_v46  ;;  %v2937_v45 = vadd.f32 %v4448_v38, %v2852_v48 }
 0x17d   :  { %v1888_v53 = vpop.f32.mrf.mxu2 }
 0x17e   :  { %v3018_v54 = vmax.f32 %v2937_v45, 0.0  ;;  %3735 = vmatmul.msk.bf16.gmra.mxu3 %vm650_vm1, %v2330_v50  ;;  %v2047_v55 = vadd.f32 %v1888_v53, %v1168_v49  ;;  %v1169_v56 = vpop.f32.mrf.mxu1  ;;  %v1640_v49 = vsel %vm1587_vm2, %v1637_v58, %v1639_v29  ;;  %v2347_v50 = vor.u32 %v2346_v40, %v2343_v39 }
 0x17f   :  { %v522_v53 = vsel %vm310_vm0, %v517_v42, %v521_v43  ;;  %v2353_v58 = vshll.u32 %v4580_v51, 16 }
 0x180   :  { %v3099_v59 = vpack.c.bf16 %v3018_v54, %v3018_v54  ;;  %v2348_v57 = vsel %vm2106_vm3, %v2338_v14, %v2347_v50 }
 0x181   :  { %v860_v60 = vpop.f32.mrf.mxu0  ;;  %v2694_v63 = vpop.f32.mrf.mxu3 }
 0x182   :  { %3181 = vst.msk [vmem:[%s5162_s3 + $0x74] sm:$0xf] %vm3151_vm4, %v3099_v59  ;;  %v2853_v0 = vadd.f32 %v2694_v63, %v2047_v55  ;;  %v1170_v6 = vadd.f32 %v1169_v56, %v860_v60  ;;  %v4586_v59 = vld [vmem:[%s5160_s0 + $0xd8] sm:$0xff] }
 0x184   :  { %v2938_v5 = vadd.f32 %v4448_v38, %v2853_v0  ;;  %v2350_v0 = vshrl.u32 %v4580_v51, 16 }
 0x185   :  { %v1890_v2 = vpop.f32.mrf.mxu2 }
 0x186   :  { %v3019_v10 = vmax.f32 %v2938_v5, 0.0  ;;  %v2048_v11 = vadd.f32 %v1890_v2, %v1170_v6  ;;  %v1172_v12 = vpop.f32.mrf.mxu1  ;;  %v523_v5 = vshrl.u32 %v4553_v23, 16  ;;  %v527_v6 = vshll.u32 %v4586_v59, 16 }
 0x187   :  { %v1641_v2 = vrot.slane %v4580_v51, 1 }
 0x188   :  { %v3100_v8 = vpack.c.bf16 %v3019_v10, %v3019_v10  ;;  %v2352_v10 = vrot.slane %v2350_v0, 1  ;;  %v525_v14 = vor.u32 %v523_v5, %v521_v43 }
 0x189   :  { %v863_v9 = vpop.f32.mrf.mxu0  ;;  %v2696_v18 = vpop.f32.mrf.mxu3  ;;  %3478 = vmatmul.msk.bf16.gmra.mxu1 %vm650_vm1, %v4487_v16 }
 0x18a   :  { %3182 = vst.msk [vmem:[%s5162_s3 + $0x78] sm:$0xf] %vm3151_vm4, %v3100_v8  ;;  %v2854_v19 = vadd.f32 %v2696_v18, %v2048_v11  ;;  %v1173_v20 = vadd.f32 %v1172_v12, %v863_v9  ;;  %3687 = vmatmul.msk.bf16.gmra.mxu2 %vm650_vm1, %v1638_v13  ;;  %v2355_v11 = vrot.slane %v2353_v58, 2  ;;  %v529_v8 = vrot.slane %v527_v6, 1  ;;  %v4646_v58 = vld [vmem:[%s5160_s0 + $0xf0] sm:$0xff] }
 0x18c   :  { %3429 = vmatmul.msk.bf16.gmra.mxu0 %vm650_vm1, %v514_v17  ;;  %v2939_v16 = vadd.f32 %v4448_v38, %v2854_v19 }
 0x18d   :  { %v1893_v24 = vpop.f32.mrf.mxu2 }
 0x18e   :  { %v3020_v25 = vmax.f32 %v2939_v16, 0.0  ;;  %3736 = vmatmul.msk.bf16.gmra.mxu3 %vm650_vm1, %v2339_v21  ;;  %v2049_v26 = vadd.f32 %v1893_v24, %v1173_v20  ;;  %v1174_v27 = vpop.f32.mrf.mxu1  ;;  %v1642_v20 = vsel %vm1587_vm2, %v1639_v29, %v1641_v2  ;;  %v2356_v21 = vor.u32 %v2355_v11, %v2352_v10 }
 0x18f   :  { %v530_v24 = vsel %vm310_vm0, %v525_v14, %v529_v8  ;;  %v2362_v29 = vshll.u32 %v4613_v22, 16 }
 0x190   :  { %v3101_v30 = vpack.c.bf16 %v3020_v25, %v3020_v25  ;;  %v2357_v28 = vsel %vm2106_vm3, %v2347_v50, %v2356_v21 }
 0x191   :  { %v865_v32 = vpop.f32.mrf.mxu0  ;;  %v2699_v35 = vpop.f32.mrf.mxu3 }
 0x192   :  { %3183 = vst.msk [vmem:[%s5162_s3 + $0x7c] sm:$0xf] %vm3151_vm4, %v3101_v30  ;;  %v2855_v31 = vadd.f32 %v2699_v35, %v2049_v26  ;;  %v1175_v41 = vadd.f32 %v1174_v27, %v865_v32  ;;  %v4619_v30 = vld [vmem:[%s5160_s0 + $0xe0] sm:$0xff] }
 0x194   :  { %v2940_v37 = vadd.f32 %v4448_v38, %v2855_v31  ;;  %v2359_v31 = vshrl.u32 %v4613_v22, 16 }
 0x195   :  { %v1895_v36 = vpop.f32.mrf.mxu2 }
 0x196   :  { %v3021_v46 = vmax.f32 %v2940_v37, 0.0  ;;  %v2050_v47 = vadd.f32 %v1895_v36, %v1175_v41  ;;  %v1177_v48 = vpop.f32.mrf.mxu1  ;;  %v531_v37 = vshrl.u32 %v4586_v59, 16  ;;  %v535_v41 = vshll.u32 %v4619_v30, 16 }
 0x197   :  { %v1643_v36 = vrot.slane %v4613_v22, 1 }
 0x198   :  { %v3102_v44 = vpack.c.bf16 %v3021_v46, %v3021_v46  ;;  %v2361_v46 = vrot.slane %v2359_v31, 1  ;;  %v533_v50 = vor.u32 %v531_v37, %v529_v8 }
 0x199   :  { %v868_v45 = vpop.f32.mrf.mxu0  ;;  %v2701_v54 = vpop.f32.mrf.mxu3  ;;  %3479 = vmatmul.msk.bf16.gmra.mxu1 %vm650_vm1, %v4520_v52 }
 0x19a   :  { %3184 = vst.msk [vmem:[%s5162_s3 + $0x80] sm:$0xf] %vm3151_vm4, %v3102_v44  ;;  %v2856_v55 = vadd.f32 %v2701_v54, %v2050_v47  ;;  %v1178_v56 = vadd.f32 %v1177_v48, %v868_v45  ;;  %3688 = vmatmul.msk.bf16.gmra.mxu2 %vm650_vm1, %v1640_v49  ;;  %v2364_v47 = vrot.slane %v2362_v29, 2  ;;  %v537_v44 = vrot.slane %v535_v41, 1  ;;  %v4679_v29 = vld [vmem:[%s5160_s0 + $0xf8] sm:$0xff] }
 0x19c   :  { %3430 = vmatmul.msk.bf16.gmra.mxu0 %vm650_vm1, %v522_v53  ;;  %v2941_v52 = vadd.f32 %v4448_v38, %v2856_v55 }
 0x19d   :  { %v1898_v60 = vpop.f32.mrf.mxu2 }
 0x19e   :  { %v3022_v61 = vmax.f32 %v2941_v52, 0.0  ;;  %3737 = vmatmul.msk.bf16.gmra.mxu3 %vm650_vm1, %v2348_v57  ;;  %v2051_v62 = vadd.f32 %v1898_v60, %v1178_v56  ;;  %v1179_v63 = vpop.f32.mrf.mxu1  ;;  %v1644_v56 = vsel %vm1587_vm2, %v1641_v2, %v1643_v36  ;;  %v2365_v57 = vor.u32 %v2364_v47, %v2361_v46 }
 0x19f   :  { %v538_v60 = vsel %vm310_vm0, %v533_v50, %v537_v44  ;;  %v2371_v2 = vshll.u32 %v4646_v58, 16 }
 0x1a0   :  { %v3103_v3 = vpack.c.bf16 %v3022_v61, %v3022_v61  ;;  %v2366_v0 = vsel %vm2106_vm3, %v2356_v21, %v2365_v57 }
 0x1a1   :  { %v870_v4 = vpop.f32.mrf.mxu0  ;;  %v2704_v7 = vpop.f32.mrf.mxu3 }
 0x1a2   :  { %3185 = vst.msk [vmem:[%s5162_s3 + $0x84] sm:$0xf] %vm3151_vm4, %v3103_v3  ;;  %v2857_v1 = vadd.f32 %v2704_v7, %v2051_v62  ;;  %v1180_v13 = vadd.f32 %v1179_v63, %v870_v4  ;;  %v4652_v3 = vld [vmem:[%s5160_s0 + $0xe8] sm:$0xff] }
 0x1a4   :  { %v2942_v12 = vadd.f32 %v4448_v38, %v2857_v1  ;;  %v2368_v1 = vshrl.u32 %v4646_v58, 16 }
 0x1a5   :  { %v1900_v9 = vpop.f32.mrf.mxu2 }
 0x1a6   :  { %v3023_v17 = vmax.f32 %v2942_v12, 0.0  ;;  %v2052_v18 = vadd.f32 %v1900_v9, %v1180_v13  ;;  %v1182_v19 = vpop.f32.mrf.mxu1  ;;  %v539_v12 = vshrl.u32 %v4619_v30, 16  ;;  %v543_v13 = vshll.u32 %v4652_v3, 16 }
 0x1a7   :  { %v1645_v9 = vrot.slane %v4646_v58, 1 }
 0x1a8   :  { %v3104_v15 = vpack.c.bf16 %v3023_v17, %v3023_v17  ;;  %v2370_v17 = vrot.slane %v2368_v1, 1  ;;  %v541_v21 = vor.u32 %v539_v12, %v537_v44 }
 0x1a9   :  { %v873_v16 = vpop.f32.mrf.mxu0  ;;  %v2706_v25 = vpop.f32.mrf.mxu3  ;;  %3480 = vmatmul.msk.bf16.gmra.mxu1 %vm650_vm1, %v4553_v23 }
 0x1aa   :  { %3186 = vst.msk [vmem:[%s5162_s3 + $0x88] sm:$0xf] %vm3151_vm4, %v3104_v15  ;;  %v2858_v26 = vadd.f32 %v2706_v25, %v2052_v18  ;;  %v1183_v27 = vadd.f32 %v1182_v19, %v873_v16  ;;  %3689 = vmatmul.msk.bf16.gmra.mxu2 %vm650_vm1, %v1642_v20  ;;  %v2373_v18 = vrot.slane %v2371_v2, 2  ;;  %v545_v15 = vrot.slane %v543_v13, 1  ;;  %v4712_v2 = vld [vmem:[%s5160_s0 + $0x100] sm:$0xff] }
 0x1ac   :  { %3431 = vmatmul.msk.bf16.gmra.mxu0 %vm650_vm1, %v530_v24  ;;  %v2943_v23 = vadd.f32 %v4448_v38, %v2858_v26 }
 0x1ad   :  { %v1903_v32 = vpop.f32.mrf.mxu2 }
 0x1ae   :  { %v3024_v33 = vmax.f32 %v2943_v23, 0.0  ;;  %3738 = vmatmul.msk.bf16.gmra.mxu3 %vm650_vm1, %v2357_v28  ;;  %v2053_v34 = vadd.f32 %v1903_v32, %v1183_v27  ;;  %v1184_v35 = vpop.f32.mrf.mxu1  ;;  %v1646_v27 = vsel %vm1587_vm2, %v1643_v36, %v1645_v9  ;;  %v2374_v28 = vor.u32 %v2373_v18, %v2370_v17 }
 0x1af   :  { %v546_v32 = vsel %vm310_vm0, %v541_v21, %v545_v15  ;;  %v2380_v36 = vshll.u32 %v4679_v29, 16 }
 0x1b0   :  { %v3105_v39 = vpack.c.bf16 %v3024_v33, %v3024_v33  ;;  %v2375_v31 = vsel %vm2106_vm3, %v2365_v57, %v2374_v28 }
 0x1b1   :  { %v875_v40 = vpop.f32.mrf.mxu0  ;;  %v2709_v42 = vpop.f32.mrf.mxu3 }
 0x1b2   :  { %3187 = vst.msk [vmem:[%s5162_s3 + $0x8c] sm:$0xf] %vm3151_vm4, %v3105_v39  ;;  %v2859_v43 = vadd.f32 %v2709_v42, %v2053_v34  ;;  %v1185_v49 = vadd.f32 %v1184_v35, %v875_v40  ;;  %v4685_v39 = vld [vmem:[%s5160_s0 + $0xf0] sm:$0xff] }
 0x1b4   :  { %v2944_v48 = vadd.f32 %v4448_v38, %v2859_v43  ;;  %v2377_v43 = vshrl.u32 %v4679_v29, 16 }
 0x1b5   :  { %v1905_v45 = vpop.f32.mrf.mxu2 }
 0x1b6   :  { %v3025_v53 = vmax.f32 %v2944_v48, 0.0  ;;  %v2054_v54 = vadd.f32 %v1905_v45, %v1185_v49  ;;  %v1187_v55 = vpop.f32.mrf.mxu1  ;;  %v547_v48 = vshrl.u32 %v4652_v3, 16  ;;  %v551_v49 = vshll.u32 %v4685_v39, 16 }
 0x1b7   :  { %v1647_v45 = vrot.slane %v4679_v29, 1 }
 0x1b8   :  { %v3106_v51 = vpack.c.bf16 %v3025_v53, %v3025_v53  ;;  %v2379_v53 = vrot.slane %v2377_v43, 1  ;;  %v549_v57 = vor.u32 %v547_v48, %v545_v15 }
 0x1b9   :  { %v878_v52 = vpop.f32.mrf.mxu0  ;;  %v2711_v61 = vpop.f32.mrf.mxu3  ;;  %3481 = vmatmul.msk.bf16.gmra.mxu1 %vm650_vm1, %v4586_v59 }
 0x1ba   :  { %3188 = vst.msk [vmem:[%s5162_s3 + $0x90] sm:$0xf] %vm3151_vm4, %v3106_v51  ;;  %v2860_v62 = vadd.f32 %v2711_v61, %v2054_v54  ;;  %v1188_v63 = vadd.f32 %v1187_v55, %v878_v52  ;;  %3690 = vmatmul.msk.bf16.gmra.mxu2 %vm650_vm1, %v1644_v56  ;;  %v2382_v54 = vrot.slane %v2380_v36, 2  ;;  %v553_v51 = vrot.slane %v551_v49, 1  ;;  %v4745_v36 = vld [vmem:[%s5160_s0 + $0x108] sm:$0xff] }
 0x1bc   :  { %3432 = vmatmul.msk.bf16.gmra.mxu0 %vm650_vm1, %v538_v60  ;;  %v2945_v59 = vadd.f32 %v4448_v38, %v2860_v62 }
 0x1bd   :  { %v1908_v4 = vpop.f32.mrf.mxu2 }
 0x1be   :  { %v3026_v5 = vmax.f32 %v2945_v59, 0.0  ;;  %3739 = vmatmul.msk.bf16.gmra.mxu3 %vm650_vm1, %v2366_v0  ;;  %v2055_v6 = vadd.f32 %v1908_v4, %v1188_v63  ;;  %v1189_v7 = vpop.f32.mrf.mxu1  ;;  %v1648_v63 = vsel %vm1587_vm2, %v1645_v9, %v1647_v45  ;;  %v2383_v0 = vor.u32 %v2382_v54, %v2379_v53 }
 0x1bf   :  { %v554_v4 = vsel %vm310_vm0, %v549_v57, %v553_v51  ;;  %v2389_v9 = vshll.u32 %v4712_v2, 16 }
 0x1c0   :  { %v3107_v10 = vpack.c.bf16 %v3026_v5, %v3026_v5  ;;  %v2384_v1 = vsel %vm2106_vm3, %v2374_v28, %v2383_v0 }
 0x1c1   :  { %v880_v11 = vpop.f32.mrf.mxu0  ;;  %v2714_v14 = vpop.f32.mrf.mxu3 }
 0x1c2   :  { %3189 = vst.msk [vmem:[%s5162_s3 + $0x94] sm:$0xf] %vm3151_vm4, %v3107_v10  ;;  %v2861_v8 = vadd.f32 %v2714_v14, %v2055_v6  ;;  %v1190_v20 = vadd.f32 %v1189_v7, %v880_v11  ;;  %v4718_v10 = vld [vmem:[%s5160_s0 + $0xf8] sm:$0xff] }
 0x1c4   :  { %v2946_v19 = vadd.f32 %v4448_v38, %v2861_v8  ;;  %v2386_v8 = vshrl.u32 %v4712_v2, 16 }
 0x1c5   :  { %v1910_v16 = vpop.f32.mrf.mxu2 }
 0x1c6   :  { %v3027_v24 = vmax.f32 %v2946_v19, 0.0  ;;  %v2056_v25 = vadd.f32 %v1910_v16, %v1190_v20  ;;  %v1192_v26 = vpop.f32.mrf.mxu1  ;;  %v555_v19 = vshrl.u32 %v4685_v39, 16  ;;  %v559_v20 = vshll.u32 %v4718_v10, 16 }
 0x1c7   :  { %v1649_v16 = vrot.slane %v4712_v2, 1 }
 0x1c8   :  { %v3108_v22 = vpack.c.bf16 %v3027_v24, %v3027_v24  ;;  %v2388_v24 = vrot.slane %v2386_v8, 1  ;;  %v557_v28 = vor.u32 %v555_v19, %v553_v51 }
 0x1c9   :  { %v883_v23 = vpop.f32.mrf.mxu0  ;;  %v2716_v33 = vpop.f32.mrf.mxu3  ;;  %3482 = vmatmul.msk.bf16.gmra.mxu1 %vm650_vm1, %v4619_v30 }
 0x1ca   :  { %3190 = vst.msk [vmem:[%s5162_s3 + $0x98] sm:$0xf] %vm3151_vm4, %v3108_v22  ;;  %v2862_v34 = vadd.f32 %v2716_v33, %v2056_v25  ;;  %v1193_v35 = vadd.f32 %v1192_v26, %v883_v23  ;;  %3691 = vmatmul.msk.bf16.gmra.mxu2 %vm650_vm1, %v1646_v27  ;;  %v2391_v25 = vrot.slane %v2389_v9, 2  ;;  %v561_v22 = vrot.slane %v559_v20, 1  ;;  %v4778_v9 = vld [vmem:[%s5160_s0 + $0x110] sm:$0xff] }
 0x1cc   :  { %3433 = vmatmul.msk.bf16.gmra.mxu0 %vm650_vm1, %v546_v32  ;;  %v2947_v30 = vadd.f32 %v4448_v38, %v2862_v34 }
 0x1cd   :  { %v1913_v40 = vpop.f32.mrf.mxu2 }
 0x1ce   :  { %v3028_v37 = vmax.f32 %v2947_v30, 0.0  ;;  %3740 = vmatmul.msk.bf16.gmra.mxu3 %vm650_vm1, %v2375_v31  ;;  %v2057_v41 = vadd.f32 %v1913_v40, %v1193_v35  ;;  %v1194_v42 = vpop.f32.mrf.mxu1  ;;  %v1650_v35 = vsel %vm1587_vm2, %v1647_v45, %v1649_v16  ;;  %v2392_v31 = vor.u32 %v2391_v25, %v2388_v24 }
 0x1cf   :  { %v562_v40 = vsel %vm310_vm0, %v557_v28, %v561_v22  ;;  %v2398_v45 = vshll.u32 %v4745_v36, 16 }
 0x1d0   :  { %v3109_v46 = vpack.c.bf16 %v3028_v37, %v3028_v37  ;;  %v2393_v43 = vsel %vm2106_vm3, %v2383_v0, %v2392_v31 }
 0x1d1   :  { %v885_v47 = vpop.f32.mrf.mxu0  ;;  %v2719_v50 = vpop.f32.mrf.mxu3 }
 0x1d2   :  { %3191 = vst.msk [vmem:[%s5162_s3 + $0x9c] sm:$0xf] %vm3151_vm4, %v3109_v46  ;;  %v2863_v44 = vadd.f32 %v2719_v50, %v2057_v41  ;;  %v1195_v56 = vadd.f32 %v1194_v42, %v885_v47  ;;  %v4751_v46 = vld [vmem:[%s5160_s0 + $0x100] sm:$0xff] }
 0x1d4   :  { %v2948_v55 = vadd.f32 %v4448_v38, %v2863_v44  ;;  %v2395_v44 = vshrl.u32 %v4745_v36, 16 }
 0x1d5   :  { %v1915_v52 = vpop.f32.mrf.mxu2 }
 0x1d6   :  { %v3029_v60 = vmax.f32 %v2948_v55, 0.0  ;;  %v2058_v61 = vadd.f32 %v1915_v52, %v1195_v56  ;;  %v1197_v62 = vpop.f32.mrf.mxu1  ;;  %v563_v55 = vshrl.u32 %v4718_v10, 16  ;;  %v567_v56 = vshll.u32 %v4751_v46, 16 }
 0x1d7   :  { %v1651_v52 = vrot.slane %v4745_v36, 1 }
 0x1d8   :  { %v3110_v58 = vpack.c.bf16 %v3029_v60, %v3029_v60  ;;  %v2397_v60 = vrot.slane %v2395_v44, 1  ;;  %v565_v0 = vor.u32 %v563_v55, %v561_v22 }
 0x1d9   :  { %v888_v59 = vpop.f32.mrf.mxu0  ;;  %v2721_v5 = vpop.f32.mrf.mxu3  ;;  %3483 = vmatmul.msk.bf16.gmra.mxu1 %vm650_vm1, %v4652_v3 }
 0x1da   :  { %3192 = vst.msk [vmem:[%s5162_s3 + $0xa0] sm:$0xf] %vm3151_vm4, %v3110_v58  ;;  %v2864_v6 = vadd.f32 %v2721_v5, %v2058_v61  ;;  %v1198_v7 = vadd.f32 %v1197_v62, %v888_v59  ;;  %3692 = vmatmul.msk.bf16.gmra.mxu2 %vm650_vm1, %v1648_v63  ;;  %v2400_v61 = vrot.slane %v2398_v45, 2  ;;  %v569_v58 = vrot.slane %v567_v56, 1  ;;  %v4811_v45 = vld [vmem:[%s5160_s0 + $0x118] sm:$0xff] }
 0x1dc   :  { %3434 = vmatmul.msk.bf16.gmra.mxu0 %vm650_vm1, %v554_v4  ;;  %v2949_v3 = vadd.f32 %v4448_v38, %v2864_v6 }
 0x1dd   :  { %v1918_v11 = vpop.f32.mrf.mxu2 }
 0x1de   :  { %v3030_v12 = vmax.f32 %v2949_v3, 0.0  ;;  %3741 = vmatmul.msk.bf16.gmra.mxu3 %vm650_vm1, %v2384_v1  ;;  %v2059_v13 = vadd.f32 %v1918_v11, %v1198_v7  ;;  %v1199_v14 = vpop.f32.mrf.mxu1  ;;  %v1652_v7 = vsel %vm1587_vm2, %v1649_v16, %v1651_v52  ;;  %v2401_v1 = vor.u32 %v2400_v61, %v2397_v60 }
 0x1df   :  { %v570_v11 = vsel %vm310_vm0, %v565_v0, %v569_v58  ;;  %v2407_v16 = vshll.u32 %v4778_v9, 16 }
 0x1e0   :  { %v3111_v17 = vpack.c.bf16 %v3030_v12, %v3030_v12  ;;  %v2402_v8 = vsel %vm2106_vm3, %v2392_v31, %v2401_v1 }
 0x1e1   :  { %v890_v18 = vpop.f32.mrf.mxu0  ;;  %v2724_v21 = vpop.f32.mrf.mxu3 }
 0x1e2   :  { %3193 = vst.msk [vmem:[%s5162_s3 + $0xa4] sm:$0xf] %vm3151_vm4, %v3111_v17  ;;  %v2865_v15 = vadd.f32 %v2724_v21, %v2059_v13  ;;  %v1200_v27 = vadd.f32 %v1199_v14, %v890_v18  ;;  %v4784_v17 = vld [vmem:[%s5160_s0 + $0x108] sm:$0xff] }
 0x1e4   :  { %v2950_v26 = vadd.f32 %v4448_v38, %v2865_v15  ;;  %v2404_v15 = vshrl.u32 %v4778_v9, 16 }
 0x1e5   :  { %v1920_v23 = vpop.f32.mrf.mxu2 }
 0x1e6   :  { %v3031_v32 = vmax.f32 %v2950_v26, 0.0  ;;  %v2060_v33 = vadd.f32 %v1920_v23, %v1200_v27  ;;  %v1202_v34 = vpop.f32.mrf.mxu1  ;;  %v571_v26 = vshrl.u32 %v4751_v46, 16  ;;  %v575_v27 = vshll.u32 %v4784_v17, 16 }
 0x1e7   :  { %v1653_v23 = vrot.slane %v4778_v9, 1 }
 0x1e8   :  { %v3112_v29 = vpack.c.bf16 %v3031_v32, %v3031_v32  ;;  %v2406_v32 = vrot.slane %v2404_v15, 1  ;;  %v573_v31 = vor.u32 %v571_v26, %v569_v58 }
 0x1e9   :  { %v893_v30 = vpop.f32.mrf.mxu0  ;;  %v2726_v37 = vpop.f32.mrf.mxu3  ;;  %3484 = vmatmul.msk.bf16.gmra.mxu1 %vm650_vm1, %v4685_v39 }
 0x1ea   :  { %3194 = vst.msk [vmem:[%s5162_s3 + $0xa8] sm:$0xf] %vm3151_vm4, %v3112_v29  ;;  %v2866_v41 = vadd.f32 %v2726_v37, %v2060_v33  ;;  %v1203_v42 = vadd.f32 %v1202_v34, %v893_v30  ;;  %3693 = vmatmul.msk.bf16.gmra.mxu2 %vm650_vm1, %v1650_v35  ;;  %v2409_v33 = vrot.slane %v2407_v16, 2  ;;  %v577_v29 = vrot.slane %v575_v27, 1  ;;  %v4844_v16 = vld [vmem:[%s5160_s0 + $0x120] sm:$0xff] }
 0x1ec   :  { %3435 = vmatmul.msk.bf16.gmra.mxu0 %vm650_vm1, %v562_v40  ;;  %v2951_v39 = vadd.f32 %v4448_v38, %v2866_v41 }
 0x1ed   :  { %v1923_v47 = vpop.f32.mrf.mxu2 }
 0x1ee   :  { %v3032_v48 = vmax.f32 %v2951_v39, 0.0  ;;  %3742 = vmatmul.msk.bf16.gmra.mxu3 %vm650_vm1, %v2393_v43  ;;  %v2061_v49 = vadd.f32 %v1923_v47, %v1203_v42  ;;  %v1204_v50 = vpop.f32.mrf.mxu1  ;;  %v1654_v42 = vsel %vm1587_vm2, %v1651_v52, %v1653_v23  ;;  %v2410_v43 = vor.u32 %v2409_v33, %v2406_v32 }
 0x1ef   :  { %v578_v47 = vsel %vm310_vm0, %v573_v31, %v577_v29  ;;  %v2416_v52 = vshll.u32 %v4811_v45, 16 }
 0x1f0   :  { %v3113_v53 = vpack.c.bf16 %v3032_v48, %v3032_v48  ;;  %v2411_v44 = vsel %vm2106_vm3, %v2401_v1, %v2410_v43 }
 0x1f1   :  { %v895_v54 = vpop.f32.mrf.mxu0  ;;  %v2729_v57 = vpop.f32.mrf.mxu3 }
 0x1f2   :  { %3195 = vst.msk [vmem:[%s5162_s3 + $0xac] sm:$0xf] %vm3151_vm4, %v3113_v53  ;;  %v2867_v51 = vadd.f32 %v2729_v57, %v2061_v49  ;;  %v1205_v63 = vadd.f32 %v1204_v50, %v895_v54  ;;  %v4817_v53 = vld [vmem:[%s5160_s0 + $0x110] sm:$0xff] }
 0x1f4   :  { %v2952_v62 = vadd.f32 %v4448_v38, %v2867_v51  ;;  %v2413_v51 = vshrl.u32 %v4811_v45, 16 }
 0x1f5   :  { %v1925_v59 = vpop.f32.mrf.mxu2 }
 0x1f6   :  { %v3033_v4 = vmax.f32 %v2952_v62, 0.0  ;;  %v2062_v5 = vadd.f32 %v1925_v59, %v1205_v63  ;;  %v1207_v6 = vpop.f32.mrf.mxu1  ;;  %v579_v62 = vshrl.u32 %v4784_v17, 16  ;;  %v583_v63 = vshll.u32 %v4817_v53, 16 }
 0x1f7   :  { %v1655_v59 = vrot.slane %v4811_v45, 1 }
 0x1f8   :  { %v3114_v2 = vpack.c.bf16 %v3033_v4, %v3033_v4  ;;  %v2415_v4 = vrot.slane %v2413_v51, 1  ;;  %v581_v1 = vor.u32 %v579_v62, %v577_v29  ;;  %v4877_v51 = vld [vmem:[%s5160_s0 + $0x128] sm:$0xff] }
 0x1f9   :  { %v898_v3 = vpop.f32.mrf.mxu0  ;;  %v2731_v12 = vpop.f32.mrf.mxu3  ;;  %3485 = vmatmul.msk.bf16.gmra.mxu1 %vm650_vm1, %v4718_v10 }
 0x1fa   :  { %3196 = vst.msk [vmem:[%s5162_s3 + $0xb0] sm:$0xf] %vm3151_vm4, %v3114_v2  ;;  %v2868_v13 = vadd.f32 %v2731_v12, %v2062_v5  ;;  %v1208_v14 = vadd.f32 %v1207_v6, %v898_v3  ;;  %3694 = vmatmul.msk.bf16.gmra.mxu2 %vm650_vm1, %v1652_v7  ;;  %v2418_v5 = vrot.slane %v2416_v52, 2  ;;  %v585_v2 = vrot.slane %v583_v63, 1 }
 0x1fc   :  { %3436 = vmatmul.msk.bf16.gmra.mxu0 %vm650_vm1, %v570_v11  ;;  %v2953_v10 = vadd.f32 %v4448_v38, %v2868_v13 }
 0x1fd   :  { %v1928_v18 = vpop.f32.mrf.mxu2 }
 0x1fe   :  { %v3034_v19 = vmax.f32 %v2953_v10, 0.0  ;;  %3743 = vmatmul.msk.bf16.gmra.mxu3 %vm650_vm1, %v2402_v8  ;;  %v2063_v20 = vadd.f32 %v1928_v18, %v1208_v14  ;;  %v1209_v21 = vpop.f32.mrf.mxu1  ;;  %v1656_v14 = vsel %vm1587_vm2, %v1653_v23, %v1655_v59  ;;  %v2419_v8 = vor.u32 %v2418_v5, %v2415_v4 }
 0x1ff   :  { %v586_v18 = vsel %vm310_vm0, %v581_v1, %v585_v2  ;;  %v2425_v23 = vshll.u32 %v4844_v16, 16 }
 0x200   :  { %v3115_v24 = vpack.c.bf16 %v3034_v19, %v3034_v19  ;;  %v2420_v15 = vsel %vm2106_vm3, %v2410_v43, %v2419_v8 }
 0x201   :  { %v900_v25 = vpop.f32.mrf.mxu0  ;;  %v2734_v28 = vpop.f32.mrf.mxu3 }
 0x202   :  { %3197 = vst.msk [vmem:[%s5162_s3 + $0xb4] sm:$0xf] %vm3151_vm4, %v3115_v24  ;;  %v2869_v22 = vadd.f32 %v2734_v28, %v2063_v20  ;;  %v1210_v35 = vadd.f32 %v1209_v21, %v900_v25  ;;  %v4850_v24 = vld [vmem:[%s5160_s0 + $0x118] sm:$0xff] }
 0x204   :  { %v2954_v34 = vadd.f32 %v4448_v38, %v2869_v22  ;;  %v2422_v22 = vshrl.u32 %v4844_v16, 16 }
 0x205   :  { %v1930_v30 = vpop.f32.mrf.mxu2 }
 0x206   :  { %v3035_v40 = vmax.f32 %v2954_v34, 0.0  ;;  %v2064_v37 = vadd.f32 %v1930_v30, %v1210_v35  ;;  %v1212_v41 = vpop.f32.mrf.mxu1  ;;  %v587_v34 = vshrl.u32 %v4817_v53, 16  ;;  %v591_v35 = vshll.u32 %v4850_v24, 16 }
 0x207   :  { %v1657_v30 = vrot.slane %v4844_v16, 1 }
 0x208   :  { %v3116_v36 = vpack.c.bf16 %v3035_v40, %v3035_v40  ;;  %v2424_v40 = vrot.slane %v2422_v22, 1  ;;  %v589_v43 = vor.u32 %v587_v34, %v585_v2 }
 0x209   :  { %v903_v39 = vpop.f32.mrf.mxu0  ;;  %v2736_v48 = vpop.f32.mrf.mxu3  ;;  %3486 = vmatmul.msk.bf16.gmra.mxu1 %vm650_vm1, %v4751_v46 }
 0x20a   :  { %3198 = vst.msk [vmem:[%s5162_s3 + $0xb8] sm:$0xf] %vm3151_vm4, %v3116_v36  ;;  %v2870_v49 = vadd.f32 %v2736_v48, %v2064_v37  ;;  %v1213_v50 = vadd.f32 %v1212_v41, %v903_v39  ;;  %3695 = vmatmul.msk.bf16.gmra.mxu2 %vm650_vm1, %v1654_v42  ;;  %v2427_v37 = vrot.slane %v2425_v23, 2  ;;  %v593_v36 = vrot.slane %v591_v35, 1  ;;  %v4915_v23 = vld [vmem:[%s5160_s0 + $0x130] sm:$0xff] }
 0x20c   :  { %3437 = vmatmul.msk.bf16.gmra.mxu0 %vm650_vm1, %v578_v47  ;;  %v2955_v46 = vadd.f32 %v4448_v38, %v2870_v49 }
 0x20d   :  { %v1933_v54 = vpop.f32.mrf.mxu2 }
 0x20e   :  { %v3036_v55 = vmax.f32 %v2955_v46, 0.0  ;;  %3744 = vmatmul.msk.bf16.gmra.mxu3 %vm650_vm1, %v2411_v44  ;;  %v2065_v56 = vadd.f32 %v1933_v54, %v1213_v50  ;;  %v1214_v57 = vpop.f32.mrf.mxu1  ;;  %v1658_v50 = vsel %vm1587_vm2, %v1655_v59, %v1657_v30  ;;  %v2428_v44 = vor.u32 %v2427_v37, %v2424_v40 }
 0x20f   :  { %v594_v54 = vsel %vm310_vm0, %v589_v43, %v593_v36  ;;  %v2434_v59 = vshll.u32 %v4877_v51, 16 }
 0x210   :  { %v3117_v60 = vpack.c.bf16 %v3036_v55, %v3036_v55 }
 0x211   :  { %v905_v61 = vpop.f32.mrf.mxu0  ;;  %v2739_v0 = vpop.f32.mrf.mxu3 }
 0x212   :  { %3199 = vst.msk [vmem:[%s5162_s3 + $0xbc] sm:$0xf] %vm3151_vm4, %v3117_v60  ;;  %v2871_v58 = vadd.f32 %v2739_v0, %v2065_v56  ;;  %v1215_v7 = vadd.f32 %v1214_v57, %v905_v61  ;;  %v2429_v57 = vsel %vm2106_vm3, %v2419_v8, %v2428_v44  ;;  %v4888_v60 = vld [vmem:[%s5160_s0 + $0x120] sm:$0xff] }
 0x214   :  { %v2956_v6 = vadd.f32 %v4448_v38, %v2871_v58  ;;  %v2431_v58 = vshrl.u32 %v4877_v51, 16 }
 0x215   :  { %v1935_v3 = vpop.f32.mrf.mxu2 }
 0x216   :  { %v3037_v11 = vmax.f32 %v2956_v6, 0.0  ;;  %v2066_v12 = vadd.f32 %v1935_v3, %v1215_v7  ;;  %v1217_v13 = vpop.f32.mrf.mxu1  ;;  %v595_v6 = vshrl.u32 %v4850_v24, 16  ;;  %v599_v7 = vshll.u32 %v4888_v60, 16 }
 0x217   :  { %v1659_v3 = vrot.slane %v4877_v51, 1 }
 0x218   :  { %v3118_v9 = vpack.c.bf16 %v3037_v11, %v3037_v11  ;;  %v2433_v11 = vrot.slane %v2431_v58, 1  ;;  %v597_v8 = vor.u32 %v595_v6, %v593_v36 }
 0x219   :  { %v908_v10 = vpop.f32.mrf.mxu0  ;;  %v2741_v19 = vpop.f32.mrf.mxu3  ;;  %3487 = vmatmul.msk.bf16.gmra.mxu1 %vm650_vm1, %v4784_v17 }
 0x21a   :  { %3200 = vst.msk [vmem:[%s5162_s3 + $0xc0] sm:$0xf] %vm3151_vm4, %v3118_v9  ;;  %v2872_v20 = vadd.f32 %v2741_v19, %v2066_v12  ;;  %v1218_v21 = vadd.f32 %v1217_v13, %v908_v10  ;;  %3696 = vmatmul.msk.bf16.gmra.mxu2 %vm650_vm1, %v1656_v14  ;;  %v2436_v12 = vrot.slane %v2434_v59, 2  ;;  %v601_v9 = vrot.slane %v599_v7, 1  ;;  %v4948_v59 = vld [vmem:[%s5160_s0 + $0x138] sm:$0xff] }
 0x21c   :  { %3438 = vmatmul.msk.bf16.gmra.mxu0 %vm650_vm1, %v586_v18  ;;  %v2957_v17 = vadd.f32 %v4448_v38, %v2872_v20 }
 0x21d   :  { %v1938_v25 = vpop.f32.mrf.mxu2 }
 0x21e   :  { %v3038_v26 = vmax.f32 %v2957_v17, 0.0  ;;  %3745 = vmatmul.msk.bf16.gmra.mxu3 %vm650_vm1, %v2420_v15  ;;  %v2067_v27 = vadd.f32 %v1938_v25, %v1218_v21  ;;  %v1219_v28 = vpop.f32.mrf.mxu1  ;;  %v1660_v21 = vsel %vm1587_vm2, %v1657_v30, %v1659_v3  ;;  %v2437_v15 = vor.u32 %v2436_v12, %v2433_v11 }
 0x21f   :  { %v602_v25 = vsel %vm310_vm0, %v597_v8, %v601_v9  ;;  %v2443_v30 = vshll.u32 %v4915_v23, 16 }
 0x220   :  { %v3119_v32 = vpack.c.bf16 %v3038_v26, %v3038_v26  ;;  %v2438_v22 = vsel %vm2106_vm3, %v2428_v44, %v2437_v15 }
 0x221   :  { %v910_v33 = vpop.f32.mrf.mxu0  ;;  %v2744_v31 = vpop.f32.mrf.mxu3 }
 0x222   :  { %3201 = vst.msk [vmem:[%s5162_s3 + $0xc4] sm:$0xf] %vm3151_vm4, %v3119_v32  ;;  %v2873_v29 = vadd.f32 %v2744_v31, %v2067_v27  ;;  %v1220_v42 = vadd.f32 %v1219_v28, %v910_v33  ;;  %v4921_v32 = vld [vmem:[%s5160_s0 + $0x128] sm:$0xff] }
 0x224   :  { %v2958_v41 = vadd.f32 %v4448_v38, %v2873_v29  ;;  %v2440_v29 = vshrl.u32 %v4915_v23, 16 }
 0x225   :  { %v1940_v39 = vpop.f32.mrf.mxu2 }
 0x226   :  { %v3039_v47 = vmax.f32 %v2958_v41, 0.0  ;;  %v2068_v48 = vadd.f32 %v1940_v39, %v1220_v42  ;;  %v1222_v49 = vpop.f32.mrf.mxu1  ;;  %v603_v41 = vshrl.u32 %v4888_v60, 16  ;;  %v607_v42 = vshll.u32 %v4921_v32, 16 }
 0x227   :  { %v1661_v39 = vrot.slane %v4915_v23, 1 }
 0x228   :  { %v3120_v45 = vpack.c.bf16 %v3039_v47, %v3039_v47  ;;  %v2442_v47 = vrot.slane %v2440_v29, 1  ;;  %v605_v44 = vor.u32 %v603_v41, %v601_v9 }
 0x229   :  { %v913_v46 = vpop.f32.mrf.mxu0  ;;  %v2746_v55 = vpop.f32.mrf.mxu3  ;;  %3488 = vmatmul.msk.bf16.gmra.mxu1 %vm650_vm1, %v4817_v53  ;;  %v4882_v53 = vld [vmem:[%s5161_s2] ss:$0 sm:$0xff] }
 0x22a   :  { %3202 = vst.msk [vmem:[%s5162_s3 + $0xc8] sm:$0xf] %vm3151_vm4, %v3120_v45  ;;  %v2874_v38 = vadd.f32 %v2746_v55, %v2068_v48  ;;  %v1223_v56 = vadd.f32 %v1222_v49, %v913_v46  ;;  %3697 = vmatmul.msk.bf16.gmra.mxu2 %vm650_vm1, %v1658_v50  ;;  %v2445_v48 = vrot.slane %v2443_v30, 2  ;;  %v609_v45 = vrot.slane %v607_v42, 1  ;;  %v4981_v30 = vld [vmem:[%s5160_s0 + $0x140] sm:$0xff] }
 0x22c   :  { %3439 = vmatmul.msk.bf16.gmra.mxu0 %vm650_vm1, %v594_v54  ;;  %v2959_v52 = vadd.f32 %v4882_v53, %v2874_v38 }
 0x22d   :  { %v1943_v61 = vpop.f32.mrf.mxu2 }
 0x22e   :  { %v3040_v62 = vmax.f32 %v2959_v52, 0.0  ;;  %3746 = vmatmul.msk.bf16.gmra.mxu3 %vm650_vm1, %v2429_v57  ;;  %v2069_v63 = vadd.f32 %v1943_v61, %v1223_v56  ;;  %v1224_v0 = vpop.f32.mrf.mxu1  ;;  %v1662_v56 = vsel %vm1587_vm2, %v1659_v3, %v1661_v39  ;;  %v2446_v57 = vor.u32 %v2445_v48, %v2442_v47 }
 0x22f   :  { %v610_v61 = vsel %vm310_vm0, %v605_v44, %v609_v45  ;;  %v2452_v3 = vshll.u32 %v4948_v59, 16 }
 0x230   :  { %v3121_v4 = vpack.c.bf16 %v3040_v62, %v3040_v62  ;;  %v2447_v58 = vsel %vm2106_vm3, %v2437_v15, %v2446_v57 }
 0x231   :  { %v915_v5 = vpop.f32.mrf.mxu0  ;;  %v2749_v1 = vpop.f32.mrf.mxu3 }
 0x232   :  { %3203 = vst.msk [vmem:[%s5162_s3 + $0xcc] sm:$0xf] %vm3151_vm4, %v3121_v4  ;;  %v2875_v2 = vadd.f32 %v2749_v1, %v2069_v63  ;;  %v1225_v14 = vadd.f32 %v1224_v0, %v915_v5  ;;  %v4954_v4 = vld [vmem:[%s5160_s0 + $0x130] sm:$0xff] }
 0x234   :  { %v2960_v13 = vadd.f32 %v4882_v53, %v2875_v2  ;;  %v2449_v2 = vshrl.u32 %v4948_v59, 16 }
 0x235   :  { %v1945_v10 = vpop.f32.mrf.mxu2 }
 0x236   :  { %v3041_v18 = vmax.f32 %v2960_v13, 0.0  ;;  %v2070_v19 = vadd.f32 %v1945_v10, %v1225_v14  ;;  %v1227_v20 = vpop.f32.mrf.mxu1  ;;  %v611_v13 = vshrl.u32 %v4921_v32, 16  ;;  %v615_v14 = vshll.u32 %v4954_v4, 16 }
 0x237   :  { %v1663_v10 = vrot.slane %v4948_v59, 1 }
 0x238   :  { %v3122_v16 = vpack.c.bf16 %v3041_v18, %v3041_v18  ;;  %v2451_v18 = vrot.slane %v2449_v2, 1  ;;  %v613_v15 = vor.u32 %v611_v13, %v609_v45 }
 0x239   :  { %v918_v17 = vpop.f32.mrf.mxu0  ;;  %v2751_v26 = vpop.f32.mrf.mxu3  ;;  %3489 = vmatmul.msk.bf16.gmra.mxu1 %vm650_vm1, %v4850_v24 }
 0x23a   :  { %3204 = vst.msk [vmem:[%s5162_s3 + $0xd0] sm:$0xf] %vm3151_vm4, %v3122_v16  ;;  %v2876_v27 = vadd.f32 %v2751_v26, %v2070_v19  ;;  %v1228_v28 = vadd.f32 %v1227_v20, %v918_v17  ;;  %3698 = vmatmul.msk.bf16.gmra.mxu2 %vm650_vm1, %v1660_v21  ;;  %v2454_v19 = vrot.slane %v2452_v3, 2  ;;  %v617_v16 = vrot.slane %v615_v14, 1  ;;  %v1377_v14 = vld [vmem:[%s5160_s0 + $0x14c] sm:$0x1] }
 0x23c   :  { %3440 = vmatmul.msk.bf16.gmra.mxu0 %vm650_vm1, %v602_v25  ;;  %v2961_v24 = vadd.f32 %v4882_v53, %v2876_v27 }
 0x23d   :  { %v1948_v33 = vpop.f32.mrf.mxu2 }
 0x23e   :  { %v3042_v34 = vmax.f32 %v2961_v24, 0.0  ;;  %3747 = vmatmul.msk.bf16.gmra.mxu3 %vm650_vm1, %v2438_v22  ;;  %v2071_v35 = vadd.f32 %v1948_v33, %v1228_v28  ;;  %v1229_v31 = vpop.f32.mrf.mxu1  ;;  %v1664_v28 = vsel %vm1587_vm2, %v1661_v39, %v1663_v10  ;;  %v2455_v22 = vor.u32 %v2454_v19, %v2451_v18 }
 0x23f   :  { %v618_v33 = vsel %vm310_vm0, %v613_v15, %v617_v16  ;;  %v2461_v39 = vshll.u32 %v4981_v30, 16  ;;  %v1545_v19 = vunpack.c.l.b16 %v1377_v14 }
 0x240   :  { %v3123_v40 = vpack.c.bf16 %v3042_v34, %v3042_v34  ;;  %v2456_v29 = vsel %vm2106_vm3, %v2446_v57, %v2455_v22 }
 0x241   :  { %v920_v37 = vpop.f32.mrf.mxu0  ;;  %v2754_v43 = vpop.f32.mrf.mxu3 }
 0x242   :  { %3205 = vst.msk [vmem:[%s5162_s3 + $0xd4] sm:$0xf] %vm3151_vm4, %v3123_v40  ;;  %v2877_v36 = vadd.f32 %v2754_v43, %v2071_v35  ;;  %v1230_v50 = vadd.f32 %v1229_v31, %v920_v37  ;;  %v4987_v40 = vld [vmem:[%s5160_s0 + $0x138] sm:$0xff] }
 0x244   :  { %v2962_v49 = vadd.f32 %v4882_v53, %v2877_v36  ;;  %v2458_v36 = vshrl.u32 %v4981_v30, 16 }
 0x245   :  { %v1950_v46 = vpop.f32.mrf.mxu2 }
 0x246   :  { %v3043_v54 = vmax.f32 %v2962_v49, 0.0  ;;  %v2072_v55 = vadd.f32 %v1950_v46, %v1230_v50  ;;  %v1232_v38 = vpop.f32.mrf.mxu1  ;;  %v619_v49 = vshrl.u32 %v4954_v4, 16  ;;  %v623_v50 = vshll.u32 %v4987_v40, 16 }
 0x247   :  { %v1665_v46 = vrot.slane %v4981_v30, 1 }
 0x248   :  { %v3124_v51 = vpack.c.bf16 %v3043_v54, %v3043_v54  ;;  %v2460_v54 = vrot.slane %v2458_v36, 1  ;;  %v621_v57 = vor.u32 %v619_v49, %v617_v16 }
 0x249   :  { %v923_v52 = vpop.f32.mrf.mxu0  ;;  %v2756_v62 = vpop.f32.mrf.mxu3  ;;  %3490 = vmatmul.msk.bf16.gmra.mxu1 %vm650_vm1, %v4888_v60 }
 0x24a   :  { %3206 = vst.msk [vmem:[%s5162_s3 + $0xd8] sm:$0xf] %vm3151_vm4, %v3124_v51  ;;  %v2878_v63 = vadd.f32 %v2756_v62, %v2072_v55  ;;  %v1233_v0 = vadd.f32 %v1232_v38, %v923_v52  ;;  %3699 = vmatmul.msk.bf16.gmra.mxu2 %vm650_vm1, %v1662_v56  ;;  %v2463_v55 = vrot.slane %v2461_v39, 2  ;;  %v625_v51 = vrot.slane %v623_v50, 1  ;;  %v1376_v52 = vld [vmem:[%s5160_s0 + $0x148] sm:$0xf] }
 0x24c   :  { %3441 = vmatmul.msk.bf16.gmra.mxu0 %vm650_vm1, %v610_v61  ;;  %v2963_v60 = vadd.f32 %v4882_v53, %v2878_v63  ;;  %v2098_v61 = vld [vmem:[%s5160_s0 + $0x14c] sm:$0x3]  ;;  %v95_v63 = vld [vmem:[%s5160_s0 + $0x140] sm:$0xf] }
 0x24d   :  { %v1953_v5 = vpop.f32.mrf.mxu2 }
 0x24e   :  { %v3044_v6 = vmax.f32 %v2963_v60, 0.0  ;;  %3748 = vmatmul.msk.bf16.gmra.mxu3 %vm650_vm1, %v2447_v58  ;;  %v2073_v7 = vadd.f32 %v1953_v5, %v1233_v0  ;;  %v1234_v1 = vpop.f32.mrf.mxu1  ;;  %v100_v0 = vld [vmem:[%s5160_s0 + $0x144] sm:$0x1]  ;;  %v1666_v5 = vsel %vm1587_vm2, %v1663_v10, %v1665_v46 }
 0x24f   :  { %v268_v13 = vunpack.c.l.b16 %v100_v0 }
 0x250   :  { %v3125_v11 = vpack.c.bf16 %v3044_v6, %v3044_v6  ;;  %v2464_v6 = vor.u32 %v2463_v55, %v2460_v54 }
 0x251   :  { %v925_v12 = vpop.f32.mrf.mxu0  ;;  %v2759_v8 = vpop.f32.mrf.mxu3 }
 0x252   :  { %3207 = vst.msk [vmem:[%s5162_s3 + $0xdc] sm:$0xf] %vm3151_vm4, %v3125_v11  ;;  %v2879_v9 = vadd.f32 %v2759_v8, %v2073_v7  ;;  %v1235_v21 = vadd.f32 %v1234_v1, %v925_v12  ;;  %v1544_v7 = vunpack.c.l.b16 %v1376_v52  ;;  %v2104_v1 = vunpack.c.l.b16 %v2098_v61 }
 0x253   :  { %v626_v11 = vsel %vm310_vm0, %v621_v57, %v625_v51  ;;  %v5016_v12 = vunpack.c.l.b16 %v95_v63  ;;  %v2465_v18 = vsel %vm2106_vm3, %v2455_v22, %v2464_v6 }
 0x254   :  { %v2964_v20 = vadd.f32 %v4882_v53, %v2879_v9 }
 0x255   :  { %v1955_v17 = vpop.f32.mrf.mxu2  ;;  %v309_v15 = vpack.c.b16 %v268_v13, %v5016_v12 }
 0x256   :  { %v3045_v25 = vmax.f32 %v2964_v20, 0.0  ;;  %v2074_v26 = vadd.f32 %v1955_v17, %v1235_v21  ;;  %v1237_v27 = vpop.f32.mrf.mxu1  ;;  %v2105_v20 = vpack.c.b16 %v2104_v1, %v1544_v7 }
 0x257   :  { %v631_v22 = vshll.u32 %v309_v15, 16 }
 0x258   :  { %v3126_v23 = vpack.c.bf16 %v3045_v25, %v3045_v25 }
 0x259   :  { %v928_v24 = vpop.f32.mrf.mxu0  ;;  %v2761_v34 = vpop.f32.mrf.mxu3  ;;  %3491 = vmatmul.msk.bf16.gmra.mxu1 %vm650_vm1, %v4921_v32 }
 0x25a   :  { %3208 = vst.msk [vmem:[%s5162_s3 + $0xe0] sm:$0xf] %vm3151_vm4, %v3126_v23  ;;  %v2880_v35 = vadd.f32 %v2761_v34, %v2074_v26  ;;  %v1238_v31 = vadd.f32 %v1237_v27, %v928_v24  ;;  %3700 = vmatmul.msk.bf16.gmra.mxu2 %vm650_vm1, %v1664_v28  ;;  %v1586_v26 = vpack.c.b16 %v1545_v19, %v1544_v7  ;;  %v2467_v27 = vshrl.u32 %v2105_v20, 16 }
 0x25b   :  { %v2470_v28 = vshll.u32 %v2105_v20, 16 }
 0x25c   :  { %3442 = vmatmul.msk.bf16.gmra.mxu0 %vm650_vm1, %v618_v33  ;;  %v2965_v32 = vadd.f32 %v4882_v53, %v2880_v35  ;;  %v627_v33 = vshrl.u32 %v4987_v40, 16 }
 0x25d   :  { %v1958_v37 = vpop.f32.mrf.mxu2 }
 0x25e   :  { %v3046_v41 = vmax.f32 %v2965_v32, 0.0  ;;  %3749 = vmatmul.msk.bf16.gmra.mxu3 %vm650_vm1, %v2456_v29  ;;  %v2075_v42 = vadd.f32 %v1958_v37, %v1238_v31  ;;  %v1239_v43 = vpop.f32.mrf.mxu1  ;;  %v1667_v31 = vrot.slane %v1586_v26, 1  ;;  %v2469_v29 = vrot.slane %v2467_v27, 1 }
 0x25f   :  { %v2472_v32 = vrot.slane %v2470_v28, 2 }
 0x260   :  { %v3127_v47 = vpack.c.bf16 %v3046_v41, %v3046_v41  ;;  %v1668_v49 = vsel %vm1587_vm2, %v1665_v46, %v1667_v31 }
 0x261   :  { %v930_v48 = vpop.f32.mrf.mxu0  ;;  %v2764_v44 = vpop.f32.mrf.mxu3  ;;  %v2473_v50 = vor.u32 %v2472_v32, %v2469_v29 }
 0x262   :  { %3209 = vst.msk [vmem:[%s5162_s3 + $0xe4] sm:$0xf] %vm3151_vm4, %v3127_v47  ;;  %v2881_v45 = vadd.f32 %v2764_v44, %v2075_v42  ;;  %v1240_v56 = vadd.f32 %v1239_v43, %v930_v48  ;;  %v629_v42 = vor.u32 %v627_v33, %v625_v51  ;;  %v633_v43 = vrot.slane %v631_v22, 1 }
 0x263   :  { %v2474_v30 = vsel %vm2106_vm3, %v2464_v6, %v2473_v50  ;;  %v987_v6 = vpack.c.b16 %v5016_v12, %v5016_v12 }
 0x264   :  { %v2966_v38 = vadd.f32 %v4882_v53, %v2881_v45  ;;  %v634_v54 = vsel %vm310_vm0, %v629_v42, %v633_v43 }
 0x265   :  { %v1960_v62 = vpop.f32.mrf.mxu2 }
 0x266   :  { %v3047_v58 = vmax.f32 %v2966_v38, 0.0  ;;  %v2076_v59 = vadd.f32 %v1960_v62, %v1240_v56  ;;  %v1242_v60 = vpop.f32.mrf.mxu1 }
 0x268   :  { %v3128_v2 = vpack.c.bf16 %v3047_v58, %v3047_v58  ;;  %v635_v58 = vshrl.u32 %v309_v15, 16 }
 0x269   :  { %v933_v3 = vpop.f32.mrf.mxu0  ;;  %v2766_v8 = vpop.f32.mrf.mxu3  ;;  %3492 = vmatmul.msk.bf16.gmra.mxu1 %vm650_vm1, %v4954_v4 }
 0x26a   :  { %3210 = vst.msk [vmem:[%s5162_s3 + $0xe8] sm:$0xf] %vm3151_vm4, %v3128_v2  ;;  %v2882_v9 = vadd.f32 %v2766_v8, %v2076_v59  ;;  %v1243_v10 = vadd.f32 %v1242_v60, %v933_v3  ;;  %3701 = vmatmul.msk.bf16.gmra.mxu2 %vm650_vm1, %v1666_v5  ;;  %v637_v3 = vor.u32 %v635_v58, %v633_v43 }
 0x26c   :  { %3443 = vmatmul.msk.bf16.gmra.mxu0 %vm650_vm1, %v626_v11  ;;  %v2967_v21 = vadd.f32 %v4882_v53, %v2882_v9 }
 0x26d   :  { %v1963_v4 = vpop.f32.mrf.mxu2 }
 0x26e   :  { %v3048_v16 = vmax.f32 %v2967_v21, 0.0  ;;  %3750 = vmatmul.msk.bf16.gmra.mxu3 %vm650_vm1, %v2465_v18  ;;  %v2077_v17 = vadd.f32 %v1963_v4, %v1243_v10  ;;  %v1244_v25 = vpop.f32.mrf.mxu1 }
 0x270   :  { %v3129_v23 = vpack.c.bf16 %v3048_v16, %v3048_v16 }
 0x271   :  { %v935_v24 = vpop.f32.mrf.mxu0  ;;  %v2769_v34 = vpop.f32.mrf.mxu3 }
 0x272   :  { %3211 = vst.msk [vmem:[%s5162_s3 + $0xec] sm:$0xf] %vm3151_vm4, %v3129_v23  ;;  %v2883_v35 = vadd.f32 %v2769_v34, %v2077_v17  ;;  %v1245_v41 = vadd.f32 %v1244_v25, %v935_v24 }
 0x274   :  { %v2968_v37 = vadd.f32 %v4882_v53, %v2883_v35 }
 0x275   :  { %v1965_v36 = vpop.f32.mrf.mxu2 }
 0x276   :  { %v3049_v39 = vmax.f32 %v2968_v37, 0.0  ;;  %v2078_v47 = vadd.f32 %v1965_v36, %v1245_v41  ;;  %v1247_v48 = vpop.f32.mrf.mxu1 }
 0x278   :  { %v3130_v44 = vpack.c.bf16 %v3049_v39, %v3049_v39 }
 0x279   :  { %v938_v45 = vpop.f32.mrf.mxu0  ;;  %v2771_v55 = vpop.f32.mrf.mxu3  ;;  %3493 = vmatmul.msk.bf16.gmra.mxu1 %vm650_vm1, %v4987_v40 }
 0x27a   :  { %3212 = vst.msk [vmem:[%s5162_s3 + $0xf0] sm:$0xf] %vm3151_vm4, %v3130_v44  ;;  %v2884_v38 = vadd.f32 %v2771_v55, %v2078_v47  ;;  %v1248_v56 = vadd.f32 %v1247_v48, %v938_v45  ;;  %3702 = vmatmul.msk.bf16.gmra.mxu2 %vm650_vm1, %v1668_v49 }
 0x27c   :  { %3444 = vmatmul.msk.bf16.gmra.mxu0 %vm650_vm1, %v634_v54  ;;  %v2969_v46 = vadd.f32 %v4882_v53, %v2884_v38 }
 0x27d   :  { %v1968_v57 = vpop.f32.mrf.mxu2 }
 0x27e   :  { %v3050_v51 = vmax.f32 %v2969_v46, 0.0  ;;  %3751 = vmatmul.msk.bf16.gmra.mxu3 %vm650_vm1, %v2474_v30  ;;  %v2079_v40 = vadd.f32 %v1968_v57, %v1248_v56  ;;  %v1249_v52 = vpop.f32.mrf.mxu1 }
 0x280   :  { %v3131_v61 = vpack.c.bf16 %v3050_v51, %v3050_v51 }
 0x281   :  { %v940_v62 = vpop.f32.mrf.mxu0  ;;  %v2774_v63 = vpop.f32.mrf.mxu3 }
 0x282   :  { %3213 = vst.msk [vmem:[%s5162_s3 + $0xf4] sm:$0xf] %vm3151_vm4, %v3131_v61  ;;  %v2885_v0 = vadd.f32 %v2774_v63, %v2079_v40  ;;  %v1250_v60 = vadd.f32 %v1249_v52, %v940_v62 }
 0x284   :  { %v2970_v59 = vadd.f32 %v4882_v53, %v2885_v0 }
 0x285   :  { %v1970_v5 = vpop.f32.mrf.mxu2 }
 0x286   :  { %v3051_v7 = vmax.f32 %v2970_v59, 0.0  ;;  %v2080_v1 = vadd.f32 %v1970_v5, %v1250_v60  ;;  %v1252_v2 = vpop.f32.mrf.mxu1 }
 0x288   :  { %v3132_v11 = vpack.c.bf16 %v3051_v7, %v3051_v7 }
 0x289   :  { %v943_v13 = vpop.f32.mrf.mxu0  ;;  %v2776_v14 = vpop.f32.mrf.mxu3  ;;  %3494 = vmatmul.msk.bf16.gmra.mxu1 %vm650_vm1, %v987_v6 }
 0x28a   :  { %3214 = vst.msk [vmem:[%s5162_s3 + $0xf8] sm:$0xf] %vm3151_vm4, %v3132_v11  ;;  %v2886_v8 = vadd.f32 %v2776_v14, %v2080_v1  ;;  %v1253_v9 = vadd.f32 %v1252_v2, %v943_v13  ;;  %3703 = vmatmul.msk.bf16.gmra.mxu2 %vm650_vm1, %v1667_v31 }
 0x28c   :  { %3445 = vmatmul.msk.bf16.gmra.mxu0 %vm650_vm1, %v637_v3  ;;  %v2971_v12 = vadd.f32 %v4882_v53, %v2886_v8 }
 0x28d   :  { %v1973_v10 = vpop.f32.mrf.mxu2 }
 0x28e   :  { %v3052_v18 = vmax.f32 %v2971_v12, 0.0  ;;  %3752 = vmatmul.msk.bf16.gmra.mxu3 %vm650_vm1, %v2473_v50  ;;  %v2081_v19 = vadd.f32 %v1973_v10, %v1253_v9  ;;  %v1254_v20 = vpop.f32.mrf.mxu1 }
 0x290   :  { %v3133_v21 = vpack.c.bf16 %v3052_v18, %v3052_v18 }
 0x291   :  { %v945_v15 = vpop.f32.mrf.mxu0  ;;  %v2779_v4 = vpop.f32.mrf.mxu3 }
 0x292   :  { %3215 = vst.msk [vmem:[%s5162_s3 + $0xfc] sm:$0xf] %vm3151_vm4, %v3133_v21  ;;  %v2887_v16 = vadd.f32 %v2779_v4, %v2081_v19  ;;  %v1255_v25 = vadd.f32 %v1254_v20, %v945_v15 }
 0x294   :  { %v2972_v17 = vadd.f32 %v4882_v53, %v2887_v16 }
 0x295   :  { %v1975_v26 = vpop.f32.mrf.mxu2 }
 0x296   :  { %v3053_v27 = vmax.f32 %v2972_v17, 0.0  ;;  %v2082_v28 = vadd.f32 %v1975_v26, %v1255_v25  ;;  %v1257_v23 = vpop.f32.mrf.mxu1 }
 0x298   :  { %v3134_v24 = vpack.c.bf16 %v3053_v27, %v3053_v27 }
 0x299   :  { %v948_v33 = vpop.f32.mrf.mxu0  ;;  %v2781_v22 = vpop.f32.mrf.mxu3 }
 0x29a   :  { %3216 = vst.msk [vmem:[%s5162_s3 + $0x100] sm:$0xf] %vm3151_vm4, %v3134_v24  ;;  %v2888_v34 = vadd.f32 %v2781_v22, %v2082_v28  ;;  %v1258_v35 = vadd.f32 %v1257_v23, %v948_v33 }
 0x29c   :  { %v2973_v31 = vadd.f32 %v4882_v53, %v2888_v34 }
 0x29d   :  { %v1978_v29 = vpop.f32.mrf.mxu2 }
 0x29e   :  { %v3054_v32 = vmax.f32 %v2973_v31, 0.0  ;;  %v2083_v37 = vadd.f32 %v1978_v29, %v1258_v35  ;;  %v1259_v41 = vpop.f32.mrf.mxu1 }
 0x2a0   :  { %v3135_v42 = vpack.c.bf16 %v3054_v32, %v3054_v32 }
 0x2a1   :  { %v950_v43 = vpop.f32.mrf.mxu0  ;;  %v2784_v36 = vpop.f32.mrf.mxu3 }
 0x2a2   :  { %3217 = vst.msk [vmem:[%s5162_s3 + $0x104] sm:$0xf] %vm3151_vm4, %v3135_v42  ;;  %v2889_v39 = vadd.f32 %v2784_v36, %v2083_v37  ;;  %v1260_v48 = vadd.f32 %v1259_v41, %v950_v43 }
 0x2a4   :  { %v2974_v47 = vadd.f32 %v4882_v53, %v2889_v39 }
 0x2a5   :  { %v1980_v49 = vpop.f32.mrf.mxu2 }
 0x2a6   :  { %v3055_v50 = vmax.f32 %v2974_v47, 0.0  ;;  %v2084_v44 = vadd.f32 %v1980_v49, %v1260_v48  ;;  %v1262_v45 = vpop.f32.mrf.mxu1 }
 0x2a8   :  { %v3136_v54 = vpack.c.bf16 %v3055_v50, %v3055_v50 }
 0x2a9   :  { %v953_v55 = vpop.f32.mrf.mxu0  ;;  %v2786_v38 = vpop.f32.mrf.mxu3 }
 0x2aa   :  { %3218 = vst.msk [vmem:[%s5162_s3 + $0x108] sm:$0xf] %vm3151_vm4, %v3136_v54  ;;  %v2890_v56 = vadd.f32 %v2786_v38, %v2084_v44  ;;  %v1263_v30 = vadd.f32 %v1262_v45, %v953_v55 }
 0x2ac   :  { %v2975_v46 = vadd.f32 %v4882_v53, %v2890_v56 }
 0x2ad   :  { %v1983_v57 = vpop.f32.mrf.mxu2 }
 0x2ae   :  { %v3056_v51 = vmax.f32 %v2975_v46, 0.0  ;;  %v2085_v40 = vadd.f32 %v1983_v57, %v1263_v30  ;;  %v1264_v52 = vpop.f32.mrf.mxu1 }
 0x2b0   :  { %v3137_v61 = vpack.c.bf16 %v3056_v51, %v3056_v51 }
 0x2b1   :  { %v955_v62 = vpop.f32.mrf.mxu0  ;;  %v2789_v63 = vpop.f32.mrf.mxu3 }
 0x2b2   :  { %3219 = vst.msk [vmem:[%s5162_s3 + $0x10c] sm:$0xf] %vm3151_vm4, %v3137_v61  ;;  %v2891_v0 = vadd.f32 %v2789_v63, %v2085_v40  ;;  %v1265_v59 = vadd.f32 %v1264_v52, %v955_v62 }
 0x2b4   :  { %v2976_v58 = vadd.f32 %v4882_v53, %v2891_v0 }
 0x2b5   :  { %v1985_v60 = vpop.f32.mrf.mxu2 }
 0x2b6   :  { %v3057_v5 = vmax.f32 %v2976_v58, 0.0  ;;  %v2086_v6 = vadd.f32 %v1985_v60, %v1265_v59  ;;  %v1267_v7 = vpop.f32.mrf.mxu1 }
 0x2b8   :  { %v3138_v1 = vpack.c.bf16 %v3057_v5, %v3057_v5 }
 0x2b9   :  { %v958_v2 = vpop.f32.mrf.mxu0  ;;  %v2791_v3 = vpop.f32.mrf.mxu3 }
 0x2ba   :  { %3220 = vst.msk [vmem:[%s5162_s3 + $0x110] sm:$0xf] %vm3151_vm4, %v3138_v1  ;;  %v2892_v11 = vadd.f32 %v2791_v3, %v2086_v6  ;;  %v1268_v13 = vadd.f32 %v1267_v7, %v958_v2 }
 0x2bc   :  { %v2977_v14 = vadd.f32 %v4882_v53, %v2892_v11 }
 0x2bd   :  { %v1988_v8 = vpop.f32.mrf.mxu2 }
 0x2be   :  { %v3058_v9 = vmax.f32 %v2977_v14, 0.0  ;;  %v2087_v12 = vadd.f32 %v1988_v8, %v1268_v13  ;;  %v1269_v10 = vpop.f32.mrf.mxu1 }
 0x2c0   :  { %v3139_v18 = vpack.c.bf16 %v3058_v9, %v3058_v9 }
 0x2c1   :  { %v960_v19 = vpop.f32.mrf.mxu0  ;;  %v2794_v20 = vpop.f32.mrf.mxu3 }
 0x2c2   :  { %3221 = vst.msk [vmem:[%s5162_s3 + $0x114] sm:$0xf] %vm3151_vm4, %v3139_v18  ;;  %v2893_v21 = vadd.f32 %v2794_v20, %v2087_v12  ;;  %v1270_v4 = vadd.f32 %v1269_v10, %v960_v19 }
 0x2c4   :  { %v2978_v15 = vadd.f32 %v4882_v53, %v2893_v21 }
 0x2c5   :  { %v1990_v16 = vpop.f32.mrf.mxu2 }
 0x2c6   :  { %v3059_v17 = vmax.f32 %v2978_v15, 0.0  ;;  %v2088_v25 = vadd.f32 %v1990_v16, %v1270_v4  ;;  %v1272_v26 = vpop.f32.mrf.mxu1 }
 0x2c8   :  { %v3140_v27 = vpack.c.bf16 %v3059_v17, %v3059_v17 }
 0x2c9   :  { %v963_v28 = vpop.f32.mrf.mxu0  ;;  %v2796_v23 = vpop.f32.mrf.mxu3 }
 0x2ca   :  { %3222 = vst.msk [vmem:[%s5162_s3 + $0x118] sm:$0xf] %vm3151_vm4, %v3140_v27  ;;  %v2894_v24 = vadd.f32 %v2796_v23, %v2088_v25  ;;  %v1273_v33 = vadd.f32 %v1272_v26, %v963_v28 }
 0x2cc   :  { %v2979_v22 = vadd.f32 %v4882_v53, %v2894_v24 }
 0x2cd   :  { %v1993_v34 = vpop.f32.mrf.mxu2 }
 0x2ce   :  { %v3060_v35 = vmax.f32 %v2979_v22, 0.0  ;;  %v2089_v31 = vadd.f32 %v1993_v34, %v1273_v33  ;;  %v1274_v29 = vpop.f32.mrf.mxu1 }
 0x2d0   :  { %v3141_v32 = vpack.c.bf16 %v3060_v35, %v3060_v35 }
 0x2d1   :  { %v965_v37 = vpop.f32.mrf.mxu0  ;;  %v2799_v41 = vpop.f32.mrf.mxu3 }
 0x2d2   :  { %3223 = vst.msk [vmem:[%s5162_s3 + $0x11c] sm:$0xf] %vm3151_vm4, %v3141_v32  ;;  %v2895_v42 = vadd.f32 %v2799_v41, %v2089_v31  ;;  %v1275_v36 = vadd.f32 %v1274_v29, %v965_v37 }
 0x2d4   :  { %v2980_v43 = vadd.f32 %v4882_v53, %v2895_v42 }
 0x2d5   :  { %v1995_v39 = vpop.f32.mrf.mxu2 }
 0x2d6   :  { %v3061_v47 = vmax.f32 %v2980_v43, 0.0  ;;  %v2090_v48 = vadd.f32 %v1995_v39, %v1275_v36  ;;  %v1277_v49 = vpop.f32.mrf.mxu1 }
 0x2d8   :  { %v3142_v50 = vpack.c.bf16 %v3061_v47, %v3061_v47 }
 0x2d9   :  { %v968_v44 = vpop.f32.mrf.mxu0  ;;  %v2801_v45 = vpop.f32.mrf.mxu3 }
 0x2da   :  { %3224 = vst.msk [vmem:[%s5162_s3 + $0x120] sm:$0xf] %vm3151_vm4, %v3142_v50  ;;  %v2896_v54 = vadd.f32 %v2801_v45, %v2090_v48  ;;  %v1278_v55 = vadd.f32 %v1277_v49, %v968_v44 }
 0x2dc   :  { %v2981_v38 = vadd.f32 %v4882_v53, %v2896_v54 }
 0x2dd   :  { %v1998_v56 = vpop.f32.mrf.mxu2 }
 0x2de   :  { %v3062_v30 = vmax.f32 %v2981_v38, 0.0  ;;  %v2091_v46 = vadd.f32 %v1998_v56, %v1278_v55  ;;  %v1279_v57 = vpop.f32.mrf.mxu1 }
 0x2e0   :  { %v3143_v51 = vpack.c.bf16 %v3062_v30, %v3062_v30 }
 0x2e1   :  { %v970_v40 = vpop.f32.mrf.mxu0  ;;  %v2804_v52 = vpop.f32.mrf.mxu3 }
 0x2e2   :  { %3225 = vst.msk [vmem:[%s5162_s3 + $0x124] sm:$0xf] %vm3151_vm4, %v3143_v51  ;;  %v2897_v61 = vadd.f32 %v2804_v52, %v2091_v46  ;;  %v1280_v63 = vadd.f32 %v1279_v57, %v970_v40 }
 0x2e4   :  { %v2982_v62 = vadd.f32 %v4882_v53, %v2897_v61 }
 0x2e5   :  { %v2000_v0 = vpop.f32.mrf.mxu2 }
 0x2e6   :  { %v3063_v58 = vmax.f32 %v2982_v62, 0.0  ;;  %v2092_v59 = vadd.f32 %v2000_v0, %v1280_v63  ;;  %v1282_v60 = vpop.f32.mrf.mxu1 }
 0x2e8   :  { %v3144_v5 = vpack.c.bf16 %v3063_v58, %v3063_v58 }
 0x2e9   :  { %v973_v6 = vpop.f32.mrf.mxu0  ;;  %v2806_v7 = vpop.f32.mrf.mxu3 }
 0x2ea   :  { %3226 = vst.msk [vmem:[%s5162_s3 + $0x128] sm:$0xf] %vm3151_vm4, %v3144_v5  ;;  %v2898_v1 = vadd.f32 %v2806_v7, %v2092_v59  ;;  %v1283_v2 = vadd.f32 %v1282_v60, %v973_v6 }
 0x2ec   :  { %v2983_v3 = vadd.f32 %v4882_v53, %v2898_v1 }
 0x2ed   :  { %v2003_v11 = vpop.f32.mrf.mxu2 }
 0x2ee   :  { %v3064_v13 = vmax.f32 %v2983_v3, 0.0  ;;  %v2093_v14 = vadd.f32 %v2003_v11, %v1283_v2  ;;  %v1284_v8 = vpop.f32.mrf.mxu1 }
 0x2f0   :  { %v3145_v9 = vpack.c.bf16 %v3064_v13, %v3064_v13 }
 0x2f1   :  { %v975_v12 = vpop.f32.mrf.mxu0  ;;  %v2809_v10 = vpop.f32.mrf.mxu3 }
 0x2f2   :  { %3227 = vst.msk [vmem:[%s5162_s3 + $0x12c] sm:$0xf] %vm3151_vm4, %v3145_v9  ;;  %v2899_v18 = vadd.f32 %v2809_v10, %v2093_v14  ;;  %v1285_v20 = vadd.f32 %v1284_v8, %v975_v12 }
 0x2f4   :  { %v2984_v19 = vadd.f32 %v4882_v53, %v2899_v18 }
 0x2f5   :  { %v2005_v21 = vpop.f32.mrf.mxu2 }
 0x2f6   :  { %v3065_v15 = vmax.f32 %v2984_v19, 0.0  ;;  %v2094_v4 = vadd.f32 %v2005_v21, %v1285_v20  ;;  %v1287_v16 = vpop.f32.mrf.mxu1 }
 0x2f8   :  { %v3146_v17 = vpack.c.bf16 %v3065_v15, %v3065_v15 }
 0x2f9   :  { %v978_v25 = vpop.f32.mrf.mxu0  ;;  %v2811_v26 = vpop.f32.mrf.mxu3 }
 0x2fa   :  { %3228 = vst.msk [vmem:[%s5162_s3 + $0x130] sm:$0xf] %vm3151_vm4, %v3146_v17  ;;  %v2900_v27 = vadd.f32 %v2811_v26, %v2094_v4  ;;  %v1288_v28 = vadd.f32 %v1287_v16, %v978_v25 }
 0x2fc   :  { %v2985_v23 = vadd.f32 %v4882_v53, %v2900_v27 }
 0x2fd   :  { %v2008_v24 = vpop.f32.mrf.mxu2 }
 0x2fe   :  { %v3066_v33 = vmax.f32 %v2985_v23, 0.0  ;;  %v2095_v22 = vadd.f32 %v2008_v24, %v1288_v28  ;;  %v1289_v34 = vpop.f32.mrf.mxu1 }
 0x300   :  { %v3147_v35 = vpack.c.bf16 %v3066_v33, %v3066_v33 }
 0x301   :  { %v980_v31 = vpop.f32.mrf.mxu0  ;;  %v2814_v29 = vpop.f32.mrf.mxu3 }
 0x302   :  { %3229 = vst.msk [vmem:[%s5162_s3 + $0x134] sm:$0xf] %vm3151_vm4, %v3147_v35  ;;  %v2901_v32 = vadd.f32 %v2814_v29, %v2095_v22  ;;  %v1290_v41 = vadd.f32 %v1289_v34, %v980_v31 }
 0x304   :  { %v2986_v37 = vadd.f32 %v4882_v53, %v2901_v32 }
 0x305   :  { %v2010_v42 = vpop.f32.mrf.mxu2 }
 0x306   :  { %v3067_v43 = vmax.f32 %v2986_v37, 0.0  ;;  %v2096_v36 = vadd.f32 %v2010_v42, %v1290_v41  ;;  %v1292_v39 = vpop.f32.mrf.mxu1 }
 0x308   :  { %v3148_v47 = vpack.c.bf16 %v3067_v43, %v3067_v43 }
 0x309   :  { %v983_v48 = vpop.f32.mrf.mxu0  ;;  %v2816_v49 = vpop.f32.mrf.mxu3 }
 0x30a   :  { %3230 = vst.msk [vmem:[%s5162_s3 + $0x138] sm:$0xf] %vm3151_vm4, %v3148_v47  ;;  %v2902_v50 = vadd.f32 %v2816_v49, %v2096_v36  ;;  %v1293_v44 = vadd.f32 %v1292_v39, %v983_v48 }
 0x30c   :  { %v2987_v45 = vadd.f32 %v4882_v53, %v2902_v50 }
 0x30d   :  { %v2013_v54 = vpop.f32.mrf.mxu2 }
 0x30e   :  { %v3068_v55 = vmax.f32 %v2987_v45, 0.0  ;;  %v2097_v38 = vadd.f32 %v2013_v54, %v1293_v44  ;;  %v1294_v56 = vpop.f32.mrf.mxu1 }
 0x310   :  { %v3149_v30 = vpack.c.bf16 %v3068_v55, %v3068_v55 }
 0x311   :  { %v985_v46 = vpop.f32.mrf.mxu0  ;;  %v2819_v57 = vpop.f32.mrf.mxu3 }
 0x312   :  { %3231 = vst.msk [vmem:[%s5162_s3 + $0x13c] sm:$0xf] %vm3151_vm4, %v3149_v30  ;;  %v2903_v51 = vadd.f32 %v2819_v57, %v2097_v38 }
 0x314   :  { %v2988_v40 = vadd.f32 %v4882_v53, %v2903_v51 }
 0x315   :  { %v2015_v52 = vpop.f32.mrf.mxu2 }
 0x316   :  { %v3069_v61 = vmax.f32 %v2988_v40, 0.0 }
 0x318   :  { %v3150_v62 = vpack.c.bf16 %v3069_v61, %v3069_v61 }
 0x319   :  { %v2821_v63 = vpop.f32.mrf.mxu3 }
 0x31a   :  { %3232 = vst.msk [vmem:[%s5162_s3 + $0x140] sm:$0xf] %vm3151_vm4, %v3150_v62 }

// kernel: generator_forward.7
= control target key start
LH: loop header
LB: loop body
LE: loop exit
PB: predicated region body
PF: predicated region fallthrough
CT: control target
= control target key end

     0   :  { %vm262_vm0 = vsmask.f32 7424  ;;  %vm638_vm1 = vcmask 261120   ;;  %vm1267_vm2 = vcmask 1046528   ;;  %vm1880_vm3 = vsmask.f32 6400  ;;  %s7791_s1 = inlined_call_operand.vmem [shape: bf16[3808,28], index: 1, kind: input, shape index: {}]   ;;  %s7792_s0 = inlined_call_operand.vmem [shape: bf16[68,544], index: 0, kind: input, shape index: {}]   ;;  %s7793_s2 = inlined_call_operand.vmem [shape: f32[1,28], index: 2, kind: input, shape index: {}]   ;;  %s7794_s3 = inlined_call_operand.vmem [shape: f32[62,28], index: 3, kind: output, shape index: {}]  }
   0x1   :  { %v5268_v0 = vld [vmem:[%s7791_s1 + $0x148] sm:$0xff]  ;;  %v5267_v4 = vld [vmem:[%s7791_s1 + $0x140] sm:$0xff]  ;;  %v5266_v8 = vld [vmem:[%s7791_s1 + $0x138] sm:$0xff]  ;;  %vm2550_vm4 = vcmask 1045504   ;;  %vm3065_vm5 = vsmask.f32 5376 }
   0x2   :  { %v5525_v1 = vld [vmem:[%s7791_s1 + $0x188] sm:$0xff]  ;;  %651 = vmatpush.bf16.msra.mxu0 %v5268_v0  ;;  %v5540_v5 = vld [vmem:[%s7791_s1 + $0x180] sm:$0xff]  ;;  %v5555_v9 = vld [vmem:[%s7791_s1 + $0x178] sm:$0xff]  ;;  %vm3680_vm6 = vcmask 1044480   ;;  %vm4123_vm7 = vcmask 228352   ;;  %vm4131_vm8 = vcmask 226304  }
   0x3   :  { %v5284_v2 = vld [vmem:[%s7791_s1 + $0x1c8] sm:$0xff]  ;;  %5480 = vmatpush.bf16.msra.mxu1 %v5525_v1  ;;  %v5283_v6 = vld [vmem:[%s7791_s1 + $0x1c0] sm:$0xff]  ;;  %v5282_v10 = vld [vmem:[%s7791_s1 + $0x1b8] sm:$0xff] }
   0x4   :  { %v5292_v3 = vld [vmem:[%s7791_s1 + $0x208] sm:$0xff]  ;;  %709 = vmatpush.bf16.msra.mxu2 %v5284_v2  ;;  %v5291_v7 = vld [vmem:[%s7791_s1 + $0x200] sm:$0xff]  ;;  %v5290_v11 = vld [vmem:[%s7791_s1 + $0x1f8] sm:$0xff] }
   0x5   :  { %738 = vmatpush.bf16.msra.mxu3 %v5292_v3  ;;  %v5265_v12 = vld [vmem:[%s7791_s1 + $0x130] sm:$0xff]  ;;  %v5575_v14 = vld [vmem:[%s7792_s0] sm:$0xff]  ;;  %v5264_v19 = vld [vmem:[%s7791_s1 + $0x128] sm:$0xff] }
   0x6   :  { %652 = vmatpush.bf16.msra.mxu0 %v5267_v4  ;;  %v5570_v13 = vld [vmem:[%s7791_s1 + $0x170] sm:$0xff]  ;;  %v202_v18 = vunpack.c.l.b16 %v5575_v14  ;;  %v5595_v20 = vld [vmem:[%s7791_s1 + $0x168] sm:$0xff]  ;;  %v4141_v23 = vld [vmem:[%s7792_s0 + $0x3c] sm:$0xf0] }
   0x7   :  { %5481 = vmatpush.bf16.msra.mxu1 %v5540_v5  ;;  %v5281_v15 = vld [vmem:[%s7791_s1 + $0x1b0] sm:$0xff]  ;;  %v5217_v22 = vld [vmem:[%s7792_s0 + $0x2c] sm:$0xf]  ;;  %v4139_v25 = vld [vmem:[%s7792_s0 + $0x28] sm:$0xf] }
   0x8   :  { %710 = vmatpush.bf16.msra.mxu2 %v5283_v6  ;;  %v5289_v16 = vld [vmem:[%s7791_s1 + $0x1f0] sm:$0xff]  ;;  %v5280_v24 = vld [vmem:[%s7791_s1 + $0x1a8] sm:$0xff]  ;;  %v5616_v27 = vld [vmem:[%s7792_s0 + $0x1c] sm:$0xff]  ;;  %v5632_v32 = vor.u32 %v5217_v22, %v4141_v23 }
   0x9   :  { %739 = vmatpush.bf16.msra.mxu3 %v5291_v7  ;;  %v5586_v17 = vld [vmem:[%s7792_s0 + $0x14] sm:$0xff]  ;;  %v16_v26 = vld [vmem:[%s7792_s0 + $0x8] sm:$0xff]  ;;  %v5219_v28 = vld [vmem:[%s7792_s0 + $0x38] sm:$0xf0]  ;;  %v209_v37 = vunpack.c.l.b16 %v5616_v27  ;;  %v210_v49 = vunpack.c.h.b16 %v5616_v27 }
   0xa   :  { %653 = vmatpush.bf16.msra.mxu0 %v5266_v8  ;;  %v207_v21 = vunpack.c.l.b16 %v5586_v17  ;;  %v5222_v30 = vld [vmem:[%s7792_s0 + $0x54] sm:$0xf]  ;;  %v4161_v31 = vld [vmem:[%s7792_s0 + $0x64] sm:$0xf0]  ;;  %v204_v33 = vunpack.c.l.b16 %v16_v26  ;;  %v4147_v35 = vld [vmem:[%s7792_s0 + $0x30] sm:$0xf]  ;;  %v5650_v40 = vor.u32 %v5219_v28, %v4139_v25  ;;  %v205_v43 = vunpack.c.h.b16 %v16_v26 }
   0xb   :  { %5482 = vmatpush.bf16.msra.mxu1 %v5555_v9  ;;  %v5288_v34 = vld [vmem:[%s7791_s1 + $0x1e8] sm:$0xff]  ;;  %v5220_v36 = vld [vmem:[%s7792_s0 + $0x40] sm:$0xf0]  ;;  %v5218_v38 = vld [vmem:[%s7792_s0 + $0x34] sm:$0xf]  ;;  %v5652_v41 = vor.u32 %v5222_v30, %v4161_v31  ;;  %v283_v47 = vshll.u32 %v5632_v32, 16 }
   0xc   :  { %711 = vmatpush.bf16.msra.mxu2 %v5282_v10  ;;  %v5624_v29 = vpack.c.b16 %v207_v21, %v202_v18  ;;  %v4149_v39 = vld [vmem:[%s7792_s0 + $0x44] sm:$0xf0]  ;;  %v5656_v42 = vpack.c.b16 %v209_v37, %v204_v33  ;;  %v5263_v44 = vld [vmem:[%s7791_s1 + $0x120] sm:$0xff]  ;;  %v5669_v48 = vor.u32 %v5220_v36, %v4147_v35  ;;  %v5683_v54 = vpack.c.b16 %v210_v49, %v205_v43  ;;  %v5262_v59 = vld [vmem:[%s7791_s1 + $0x118] sm:$0xff] }
   0xd   :  { %740 = vmatpush.bf16.msra.mxu3 %v5290_v11  ;;  %v5665_v45 = vld [vmem:[%s7791_s1 + $0x160] sm:$0xff]  ;;  %v5679_v53 = vor.u32 %v5218_v38, %v4149_v39  ;;  %v271_v56 = vshll.u32 %v5650_v40, 16  ;;  %v331_v57 = vshrl.u32 %v5632_v32, 16  ;;  %v335_v58 = vshll.u32 %v5652_v41, 16  ;;  %v5696_v60 = vld [vmem:[%s7791_s1 + $0x158] sm:$0xff]  ;;  %v5261_v11 = vld [vmem:[%s7791_s1 + $0x110] sm:$0xff] }
   0xe   :  { %654 = vmatpush.bf16.msra.mxu0 %v5265_v12  ;;  %v266_v46 = vshll.u32 %v5624_v29, 16  ;;  %v5279_v50 = vld [vmem:[%s7791_s1 + $0x1a0] sm:$0xff]  ;;  %v290_v52 = vshll.u32 %v5656_v42, 16  ;;  %v264_v55 = vshrl.u32 %v5624_v29, 16  ;;  %v5698_v62 = vrot.slane %v283_v47, 1  ;;  %v5278_v2 = vld [vmem:[%s7791_s1 + $0x198] sm:$0xff] }
   0xf   :  { %5483 = vmatpush.bf16.msra.mxu1 %v5570_v13  ;;  %v5287_v51 = vld [vmem:[%s7791_s1 + $0x1e0] sm:$0xff]  ;;  %v295_v63 = vshll.u32 %v5669_v48, 16  ;;  %v302_v0 = vshll.u32 %v5683_v54, 16  ;;  %v5286_v3 = vld [vmem:[%s7791_s1 + $0x1d8] sm:$0xff]  ;;  %v288_v4 = vshrl.u32 %v5656_v42, 16  ;;  %v300_v7 = vshrl.u32 %v5683_v54, 16 }
  0x10   :  { %712 = vmatpush.bf16.msra.mxu2 %v5281_v15  ;;  %v268_v61 = vrot.slane %v266_v46, 1  ;;  %v292_v6 = vrot.slane %v290_v52, 1  ;;  %v307_v8 = vshll.u32 %v5679_v53, 16  ;;  %v5718_v12 = vld [vmem:[%s7791_s1 + $0x150] sm:$0xff]  ;;  %v273_v18 = vrot.slane %v271_v56, 1  ;;  %v5730_v30 = vld [vmem:[%s7792_s0 + $0x78] sm:$0xff] }
  0x11   :  { %741 = vmatpush.bf16.msra.mxu3 %v5289_v16  ;;  %v304_v10 = vrot.slane %v302_v0, 1  ;;  %v5277_v15 = vld [vmem:[%s7791_s1 + $0x190] sm:$0xff]  ;;  %v337_v22 = vrot.slane %v335_v58, 1  ;;  %v297_v25 = vrot.slane %v295_v63, 1  ;;  %v5740_v33 = vld [vmem:[%s7791_s1 + $0x218] sm:$0xff]  ;;  %v233_v43 = vunpack.c.h.b16 %v5730_v30 }
  0x12   :  { %655 = vmatpush.bf16.msra.mxu0 %v5264_v19  ;;  %v269_v16 = vor.u32 %v268_v61, %v264_v55  ;;  %v333_v19 = vor.u32 %v331_v57, %v5698_v62  ;;  %v5285_v23 = vld [vmem:[%s7791_s1 + $0x1d0] sm:$0xff]  ;;  %v309_v28 = vrot.slane %v307_v8, 1  ;;  %v5224_v39 = vld [vmem:[%s7792_s0 + $0x60] sm:$0xf0]  ;;  %v5225_v52 = vld [vmem:[%s7792_s0 + $0x68] sm:$0xf0] }
  0x13   :  { %5484 = vmatpush.bf16.msra.mxu1 %v5595_v20  ;;  %v305_v26 = vor.u32 %v304_v10, %v300_v7  ;;  %v5735_v31 = vld [vmem:[%s7792_s0 + $0x8c] sm:$0xff]  ;;  %v5223_v56 = vld [vmem:[%s7792_s0 + $0x5c] sm:$0xf]  ;;  %v339_v8 = vshrl.u32 %v5669_v48, 16 }
  0x14   :  { %713 = vmatpush.bf16.msra.mxu2 %v5280_v24  ;;  %v293_v24 = vor.u32 %v292_v6, %v288_v4  ;;  %v274_v35 = vsel %vm262_vm0, %v269_v16, %v273_v18  ;;  %v338_v36 = vsel %vm262_vm0, %v333_v19, %v337_v22  ;;  %v4159_v38 = vld [vmem:[%s7792_s0 + $0x50] sm:$0xf]  ;;  %v323_v4 = vshrl.u32 %v5650_v40, 16  ;;  %v5232_v16 = vld [vmem:[%s7791_s1 + $0x28] sm:$0xff]  ;;  %v5239_v19 = vld [vmem:[%s7791_s1 + $0x60] sm:$0xff] }
  0x15   :  { %742 = vmatpush.bf16.msra.mxu3 %v5288_v34  ;;  %v5242_v34 = vld [vmem:[%s7791_s1 + $0x78] sm:$0xff]  ;;  %v310_v47 = vsel %vm262_vm0, %v305_v26, %v309_v28  ;;  %v5241_v55 = vld [vmem:[%s7791_s1 + $0x70] sm:$0xff]  ;;  %v5777_v58 = vor.u32 %v5224_v39, %v4159_v38  ;;  %v5231_v39 = vld [vmem:[%s7791_s1 + $0x20] sm:$0xff] }
  0x16   :  { %656 = vmatpush.bf16.msra.mxu0 %v5263_v44  ;;  %v238_v44 = vunpack.c.h.b16 %v5735_v31  ;;  %v298_v46 = vsel %vm262_vm0, %v293_v24, %v297_v25  ;;  %v4169_v57 = vld [vmem:[%s7792_s0 + $0x6c] sm:$0xf0] }
  0x17   :  { %5485 = vmatpush.bf16.msra.mxu1 %v5665_v45  ;;  %v5788_v63 = vld [vmem:[%s7791_s1 + $0x210] sm:$0xff]  ;;  %v5791_v0 = vor.u32 %v5223_v56, %v4169_v57  ;;  %v327_v6 = vshll.u32 %v5777_v58, 16  ;;  %v5230_v57 = vld [vmem:[%s7791_s1 + $0x18] sm:$0xff] }
  0x18   :  { %714 = vmatpush.bf16.msra.mxu2 %v5279_v50  ;;  %v5234_v50 = vld [vmem:[%s7791_s1 + $0x38] sm:$0xff] }
  0x19   :  { %743 = vmatpush.bf16.msra.mxu3 %v5287_v51  ;;  %v4167_v51 = vld [vmem:[%s7792_s0 + $0x58] sm:$0xf]  ;;  %v329_v24 = vrot.slane %v327_v6, 1 }
  0x1a   :  { %657 = vmatpush.bf16.msra.mxu0 %v5262_v59  ;;  %v5781_v59 = vpack.c.b16 %v238_v44, %v233_v43  ;;  %v5783_v61 = vor.u32 %v5225_v52, %v4167_v51  ;;  %v5824_v44 = vld [vmem:[%s7792_s0 + $0x80] sm:$0xff] }
  0x1b   :  { %5486 = vmatpush.bf16.msra.mxu1 %v5696_v60 }
  0x1c   :  { %715 = vmatpush.bf16.msra.mxu2 %v5278_v2  ;;  %v5233_v2 = vld [vmem:[%s7791_s1 + $0x30] sm:$0xff]  ;;  %v375_v7 = vshll.u32 %v5781_v59, 16  ;;  %v343_v10 = vshll.u32 %v5783_v61, 16 }
  0x1d   :  { %744 = vmatpush.bf16.msra.mxu3 %v5286_v3  ;;  %v5240_v3 = vld [vmem:[%s7791_s1 + $0x68] sm:$0xff] }
  0x1e   :  { %658 = vmatpush.bf16.msra.mxu0 %v5261_v11  ;;  %v347_v11 = vshrl.u32 %v5679_v53, 16 }
  0x1f   :  { %5487 = vmatpush.bf16.msra.mxu1 %v5718_v12 }
  0x20   :  { %716 = vmatpush.bf16.msra.mxu2 %v5277_v15  ;;  %v351_v15 = vshll.u32 %v5791_v0, 16 }
  0x21   :  { %745 = vmatpush.bf16.msra.mxu3 %v5285_v23  ;;  %659 = vmatmul.bf16.vlgmr.msra.gmra.mxu0 %v274_v35  ;;  %v325_v23 = vor.u32 %v323_v4, %v273_v18  ;;  %v345_v35 = vrot.slane %v343_v10, 1  ;;  %v108_v18 = vld [vmem:[%s7792_s0 + $0x94] sm:$0xff] }
  0x22   :  { %693 = vmatmul.bf16.vlgmr.msra.gmra.mxu1 %v338_v36  ;;  %680 = vmatpush.bf16.msrb.mxu0 %v5525_v1  ;;  %v371_v1 = vshrl.u32 %v5652_v41, 16  ;;  %v349_v36 = vor.u32 %v347_v11, %v309_v28  ;;  %v353_v38 = vrot.slane %v351_v15, 1  ;;  %v239_v52 = vunpack.c.l.b16 %v108_v18 }
  0x23   :  { %717 = vmatmul.bf16.vlgmr.msra.gmra.mxu2 %v298_v46  ;;  %1038 = vmatpush.bf16.msrb.mxu1 %v5234_v50  ;;  %v234_v50 = vunpack.c.l.b16 %v5824_v44  ;;  %v240_v56 = vunpack.c.h.b16 %v108_v18 }
  0x24   :  { %1067 = vmatpush.bf16.msrb.mxu2 %v5242_v34  ;;  %746 = vmatmul.bf16.vlgmr.msra.gmra.mxu3 %v310_v47  ;;  %v373_v26 = vor.u32 %v371_v1, %v337_v22  ;;  %v5815_v34 = vrot.slane %v375_v7, 1  ;;  %v5238_v22 = vld [vmem:[%s7791_s1 + $0x58] sm:$0xff]  ;;  %v237_v47 = vunpack.c.l.b16 %v5735_v31  ;;  %v354_v51 = vsel %vm262_vm0, %v349_v36, %v353_v38  ;;  %v5237_v31 = vld [vmem:[%s7791_s1 + $0x50] sm:$0xff] }
  0x25   :  { %5488 = vmatpush.bf16.msrb.mxu3 %v5740_v33  ;;  %v5856_v4 = vpack.c.b16 %v239_v52, %v234_v50  ;;  %v5229_v1 = vld [vmem:[%s7791_s1 + $0x10] sm:$0xff]  ;;  %v5260_v52 = vld [vmem:[%s7791_s1 + $0x108] sm:$0xff] }
  0x26   :  { %681 = vmatpush.bf16.msrb.mxu0 %v5540_v5  ;;  %v341_v5 = vor.u32 %v339_v8, %v297_v25  ;;  %v232_v25 = vunpack.c.l.b16 %v5730_v30  ;;  %v378_v28 = vsel %vm262_vm0, %v373_v26, %v5815_v34  ;;  %v363_v8 = vshrl.u32 %v5777_v58, 16  ;;  %v5228_v26 = vld [vmem:[%s7791_s1 + $0x8] sm:$0xff]  ;;  %v5315_v30 = vld [vmem:[%s7791_s1 + $0x2c0] sm:$0xff] }
  0x27   :  { %1039 = vmatpush.bf16.msrb.mxu1 %v5233_v2  ;;  %v203_v2 = vunpack.c.h.b16 %v5575_v14  ;;  %v5236_v14 = vld [vmem:[%s7791_s1 + $0x48] sm:$0xff] }
  0x28   :  { %1068 = vmatpush.bf16.msrb.mxu2 %v5241_v55  ;;  %v346_v46 = vsel %vm262_vm0, %v341_v5, %v345_v35  ;;  %v235_v55 = vunpack.c.h.b16 %v5824_v44  ;;  %v5235_v5 = vld [vmem:[%s7791_s1 + $0x40] sm:$0xff]  ;;  %v365_v18 = vor.u32 %v363_v8, %v329_v24 }
  0x29   :  { %5489 = vmatpush.bf16.msrb.mxu3 %v5788_v63  ;;  %v5247_v8 = vld [vmem:[%s7791_s1 + $0xa0] sm:$0xff] }
  0x2a   :  { %682 = vmatpush.bf16.msrb.mxu0 %v5555_v9  ;;  %v330_v9 = vsel %vm262_vm0, %v325_v23, %v329_v24  ;;  %v5860_v6 = vpack.c.b16 %v240_v56, %v235_v55 }
  0x2b   :  { %1040 = vmatpush.bf16.msrb.mxu1 %v5232_v16  ;;  %v379_v16 = vshrl.u32 %v5783_v61, 16 }
  0x2c   :  { %1069 = vmatpush.bf16.msrb.mxu2 %v5240_v3  ;;  %v208_v3 = vunpack.c.h.b16 %v5586_v17  ;;  %v391_v23 = vshll.u32 %v5860_v6, 16 }
  0x2e   :  { %683 = vmatpush.bf16.msrb.mxu0 %v5570_v13  ;;  %v5850_v13 = vpack.c.b16 %v237_v47, %v232_v25  ;;  %v5871_v7 = vpack.c.b16 %v208_v3, %v203_v2  ;;  %v409_v2 = vshrl.u32 %v5856_v4, 16 }
  0x2f   :  { %1041 = vmatpush.bf16.msrb.mxu1 %v5231_v39  ;;  %v406_v39 = vshrl.u32 %v5781_v59, 16 }
  0x30   :  { %1070 = vmatpush.bf16.msrb.mxu2 %v5239_v19  ;;  %v367_v10 = vshll.u32 %v5850_v13, 16  ;;  %v276_v11 = vshrl.u32 %v5871_v7, 16  ;;  %v278_v15 = vshll.u32 %v5871_v7, 16  ;;  %v387_v19 = vshrl.u32 %v5791_v0, 16 }
  0x31   :  { %664 = vmatmul.bf16.gmra.mxu0 %v330_v9  ;;  %v1293_v17 = vrot.slane %v5850_v13, 1 }
  0x32   :  { %698 = vmatmul.bf16.gmra.mxu1 %v378_v28  ;;  %684 = vmatpush.bf16.msrb.mxu0 %v5595_v20  ;;  %v383_v20 = vshll.u32 %v5856_v4, 16  ;;  %v280_v36 = vrot.slane %v278_v15, 1  ;;  %v381_v28 = vor.u32 %v379_v16, %v345_v35  ;;  %v389_v47 = vor.u32 %v387_v19, %v353_v38 }
  0x33   :  { %722 = vmatmul.bf16.gmra.mxu2 %v346_v46  ;;  %1042 = vmatpush.bf16.msrb.mxu1 %v5230_v57  ;;  %v408_v35 = vor.u32 %v406_v39, %v5815_v34  ;;  %v5248_v34 = vld [vmem:[%s7791_s1 + $0xa8] sm:$0xff] }
  0x34   :  { %1071 = vmatpush.bf16.msrb.mxu2 %v5238_v22  ;;  %751 = vmatmul.bf16.gmra.mxu3 %v354_v51  ;;  %v369_v22 = vrot.slane %v367_v10, 1  ;;  %v281_v9 = vor.u32 %v280_v36, %v276_v11  ;;  %v385_v46 = vrot.slane %v383_v20, 1  ;;  %v393_v51 = vrot.slane %v391_v23, 1  ;;  %v5937_v10 = vld [vmem:[%s7792_s0 + $0x88] sm:$0xf] }
  0x35   :  { %v109_v11 = vld [vmem:[%s7792_s0 + $0x9c] sm:$0xf]  ;;  %v236_v23 = vunpack.c.l.b16 %v5937_v10  ;;  %v5300_v39 = vld [vmem:[%s7791_s1 + $0x248] sm:$0xff] }
  0x36   :  { %685 = vmatpush.bf16.msrb.mxu0 %v5665_v45  ;;  %v5227_v45 = vld [vmem:[%s7791_s1] sm:$0xff]  ;;  %v5898_v24 = vsel %vm262_vm0, %v281_v9, %v5698_v62  ;;  %v370_v38 = vsel %vm262_vm0, %v365_v18, %v369_v22  ;;  %v386_v56 = vsel %vm262_vm0, %v381_v28, %v385_v46  ;;  %v394_v57 = vsel %vm262_vm0, %v389_v47, %v393_v51  ;;  %v5302_v62 = vld [vmem:[%s7791_s1 + $0x258] sm:$0xff]  ;;  %v5347_v10 = vld [vmem:[%s7791_s1 + $0x348] sm:$0xff] }
  0x37   :  { %1043 = vmatpush.bf16.msrb.mxu1 %v5229_v1  ;;  %v412_v1 = vshrl.u32 %v5860_v6, 16  ;;  %v411_v16 = vor.u32 %v409_v2, %v385_v46  ;;  %v5299_v9 = vld [vmem:[%s7791_s1 + $0x240] sm:$0xff] }
  0x38   :  { %1072 = vmatpush.bf16.msrb.mxu2 %v5237_v31  ;;  %v403_v31 = vshrl.u32 %v5850_v13, 16 }
  0x39   :  { %v414_v20 = vor.u32 %v412_v1, %v393_v51  ;;  %v17_v51 = vld [vmem:[%s7792_s0 + $0x10] sm:$0xf] }
  0x3a   :  { %686 = vmatpush.bf16.msrb.mxu0 %v5696_v60  ;;  %v5250_v60 = vld [vmem:[%s7791_s1 + $0xb8] sm:$0xff]  ;;  %v405_v15 = vor.u32 %v403_v31, %v369_v22  ;;  %v5259_v22 = vld [vmem:[%s7791_s1 + $0x100] sm:$0xff] }
  0x3b   :  { %1044 = vmatpush.bf16.msrb.mxu1 %v5228_v26  ;;  %1096 = vmatpush.bf16.msra.mxu3 %v5250_v60  ;;  %v241_v26 = vunpack.c.l.b16 %v109_v11  ;;  %v5243_v60 = vld [vmem:[%s7791_s1 + $0x80] sm:$0xff]  ;;  %v5258_v31 = vld [vmem:[%s7791_s1 + $0xf8] sm:$0xff] }
  0x3c   :  { %1073 = vmatpush.bf16.msrb.mxu2 %v5236_v14  ;;  %v5226_v14 = vld [vmem:[%s7792_s0 + $0x70] sm:$0xf0] }
  0x3d   :  { %v5955_v18 = vpack.c.b16 %v241_v26, %v236_v23 }
  0x3e   :  { %687 = vmatpush.bf16.msrb.mxu0 %v5718_v12  ;;  %v5249_v12 = vld [vmem:[%s7791_s1 + $0xb0] sm:$0xff] }
  0x3f   :  { %1045 = vmatpush.bf16.msrb.mxu1 %v5227_v45  ;;  %1097 = vmatpush.bf16.msra.mxu3 %v5249_v12  ;;  %v399_v47 = vshll.u32 %v5955_v18, 16  ;;  %v5976_v45 = vld [vmem:[%s7792_s0 + $0x24] sm:$0xf] }
  0x40   :  { %1074 = vmatpush.bf16.msrb.mxu2 %v5235_v5  ;;  %v5246_v5 = vld [vmem:[%s7791_s1 + $0x98] sm:$0xff] }
  0x41   :  { %669 = vmatmul.bf16.gmra.mxu0 %v370_v38  ;;  %v211_v38 = vunpack.c.l.b16 %v5976_v45  ;;  %v5363_v45 = vld [vmem:[%s7791_s1 + $0x3c8] sm:$0xff] }
  0x42   :  { %773 = vmatpush.bf16.msra.mxu0 %v5740_v33  ;;  %703 = vmatmul.bf16.gmra.mxu1 %v408_v35  ;;  %v5301_v33 = vld [vmem:[%s7791_s1 + $0x250] sm:$0xff]  ;;  %v206_v35 = vunpack.c.l.b16 %v17_v51 }
  0x43   :  { %1160 = vmatpush.bf16.msra.mxu1 %v5260_v52  ;;  %727 = vmatmul.bf16.gmra.mxu2 %v386_v56  ;;  %v5244_v52 = vld [vmem:[%s7791_s1 + $0x88] sm:$0xff]  ;;  %v5253_v51 = vld [vmem:[%s7791_s1 + $0xd0] sm:$0xff] }
  0x44   :  { %756 = vmatmul.bf16.gmra.mxu3 %v394_v57  ;;  %1535 = vmatpush.bf16.msra.mxu2 %v5302_v62  ;;  %v401_v57 = vrot.slane %v399_v47, 1  ;;  %v5988_v62 = vpack.c.b16 %v211_v38, %v206_v35  ;;  %v5296_v47 = vld [vmem:[%s7791_s1 + $0x228] sm:$0xff]  ;;  %v5307_v35 = vld [vmem:[%s7791_s1 + $0x280] sm:$0xff] }
  0x45   :  { %1098 = vmatpush.bf16.msra.mxu3 %v5248_v34  ;;  %v5221_v34 = vld [vmem:[%s7792_s0 + $0x48] sm:$0xf0] }
  0x46   :  { %774 = vmatpush.bf16.msra.mxu0 %v5788_v63  ;;  %v4175_v63 = vld [vmem:[%s7792_s0 + $0x60] sm:$0xf]  ;;  %v314_v1 = vshll.u32 %v5988_v62, 16  ;;  %v312_v11 = vshrl.u32 %v5988_v62, 16 }
  0x47   :  { %v5942_v19 = vor.u32 %v5226_v14, %v4175_v63  ;;  %1161 = vmatpush.bf16.msra.mxu1 %v5259_v22  ;;  %v5310_v63 = vld [vmem:[%s7791_s1 + $0x298] sm:$0xff] }
  0x48   :  { %1536 = vmatpush.bf16.msra.mxu2 %v5301_v33  ;;  %v4155_v33 = vld [vmem:[%s7792_s0 + $0x38] sm:$0xf] }
  0x49   :  { %1099 = vmatpush.bf16.msra.mxu3 %v5247_v8  ;;  %v359_v36 = vshll.u32 %v5942_v19, 16  ;;  %v395_v46 = vshrl.u32 %v5942_v19, 16  ;;  %v6004_v2 = vor.u32 %v5221_v34, %v4155_v33  ;;  %v5298_v14 = vld [vmem:[%s7791_s1 + $0x238] sm:$0xff]  ;;  %v5297_v8 = vld [vmem:[%s7791_s1 + $0x230] sm:$0xff]  ;;  %v5251_v34 = vld [vmem:[%s7791_s1 + $0xc0] sm:$0xff] }
  0x4b   :  { %v5966_v28 = vrot.slane %v359_v36, 1  ;;  %v415_v36 = vshrl.u32 %v5955_v18, 16 }
  0x4c   :  { %1537 = vmatpush.bf16.msra.mxu2 %v5300_v39  ;;  %v5255_v39 = vld [vmem:[%s7791_s1 + $0xe0] sm:$0xff] }
  0x4d   :  { %1100 = vmatpush.bf16.msra.mxu3 %v5246_v5  ;;  %v397_v56 = vor.u32 %v395_v46, %v5966_v28  ;;  %v417_v22 = vor.u32 %v415_v36, %v401_v57  ;;  %v5308_v46 = vld [vmem:[%s7791_s1 + $0x288] sm:$0xff]  ;;  %v5314_v36 = vld [vmem:[%s7791_s1 + $0x2b8] sm:$0xff] }
  0x4f   :  { %v402_v12 = vsel %vm262_vm0, %v397_v56, %v401_v57  ;;  %v355_v56 = vshrl.u32 %v6004_v2, 16  ;;  %v36_v57 = vld [vmem:[%s7792_s0 + $0x8c] sm:$0x77] }
  0x50   :  { %1538 = vmatpush.bf16.msra.mxu2 %v5299_v9  ;;  %v5254_v9 = vld [vmem:[%s7791_s1 + $0xd8] sm:$0xff] }
  0x51   :  { %674 = vmatmul.bf16.gmra.mxu0 %v405_v15  ;;  %v316_v15 = vrot.slane %v314_v1, 1 }
  0x52   :  { %1046 = vmatmul.bf16.vlgmr.msrb.gmra.mxu1 %v5624_v29  ;;  %v5245_v29 = vld [vmem:[%s7791_s1 + $0x90] sm:$0xff] }
  0x53   :  { %732 = vmatmul.bf16.gmra.mxu2 %v411_v16  ;;  %1101 = vmatpush.bf16.msra.mxu3 %v5245_v29  ;;  %v319_v16 = vshll.u32 %v6004_v2, 16  ;;  %v317_v26 = vor.u32 %v316_v15, %v312_v11  ;;  %v5324_v11 = vld [vmem:[%s7791_s1 + $0x308] sm:$0xff]  ;;  %v800_v15 = vunpack.c.h.b16 %v36_v57 }
  0x54   :  { %761 = vmatmul.bf16.gmra.mxu3 %v414_v20  ;;  %1539 = vmatpush.bf16.msra.mxu2 %v5298_v14  ;;  %v5256_v20 = vld [vmem:[%s7791_s1 + $0xe8] sm:$0xff] }
  0x55   :  { %v321_v5 = vrot.slane %v319_v16, 1  ;;  %v805_v16 = vpack.c.b16 %v800_v15, %v233_v43  ;;  %v5323_v43 = vld [vmem:[%s7791_s1 + $0x300] sm:$0xff]  ;;  %v5349_v15 = vld [vmem:[%s7791_s1 + $0x358] sm:$0xff] }
  0x57   :  { %1102 = vmatpush.bf16.msra.mxu3 %v5244_v52  ;;  %v322_v29 = vsel %vm262_vm0, %v317_v26, %v321_v5  ;;  %v5326_v52 = vld [vmem:[%s7791_s1 + $0x318] sm:$0xff]  ;;  %v357_v33 = vor.u32 %v355_v56, %v321_v5  ;;  %v5304_v26 = vld [vmem:[%s7791_s1 + $0x268] sm:$0xff]  ;;  %v5303_v5 = vld [vmem:[%s7791_s1 + $0x260] sm:$0xff] }
  0x58   :  { %1540 = vmatpush.bf16.msra.mxu2 %v5297_v8  ;;  %1622 = vmatpush.bf16.msrb.mxu1 %v5326_v52  ;;  %v5316_v8 = vld [vmem:[%s7791_s1 + $0x2c8] sm:$0xff] }
  0x59   :  { %v362_v14 = vsel %vm262_vm0, %v357_v33, %v5966_v28  ;;  %v5325_v28 = vld [vmem:[%s7791_s1 + $0x310] sm:$0xff]  ;;  %v5312_v33 = vld [vmem:[%s7791_s1 + $0x2a8] sm:$0xff] }
  0x5b   :  { %1103 = vmatpush.bf16.msra.mxu3 %v5243_v60  ;;  %v5252_v60 = vld [vmem:[%s7791_s1 + $0xc8] sm:$0xff] }
  0x5c   :  { %1541 = vmatpush.bf16.msra.mxu2 %v5296_v47  ;;  %1623 = vmatpush.bf16.msrb.mxu1 %v5325_v28  ;;  %v5313_v47 = vld [vmem:[%s7791_s1 + $0x2b0] sm:$0xff]  ;;  %v5319_v28 = vld [vmem:[%s7791_s1 + $0x2e0] sm:$0xff] }
  0x60   :  { %1624 = vmatpush.bf16.msrb.mxu1 %v5324_v11 }
  0x61   :  { %688 = vmatmul.bf16.vlgmr.msrb.gmra.mxu0 %v5898_v24  ;;  %v5257_v24 = vld [vmem:[%s7791_s1 + $0xf0] sm:$0xff] }
  0x62   :  { %1051 = vmatmul.bf16.gmra.mxu1 %v5650_v40  ;;  %1125 = vmatpush.bf16.msrb.mxu0 %v5258_v31  ;;  %v5318_v31 = vld [vmem:[%s7791_s1 + $0x2d8] sm:$0xff] }
  0x63   :  { %1075 = vmatmul.bf16.vlgmr.msrb.gmra.mxu2 %v5871_v7  ;;  %v5309_v7 = vld [vmem:[%s7791_s1 + $0x290] sm:$0xff] }
  0x64   :  { %4315 = vmatmul.msk.bf16.vlgmr.msrb.gmra.mxu3 %vm638_vm1, %v402_v12  ;;  %v799_v12 = vunpack.c.l.b16 %v36_v57  ;;  %1625 = vmatpush.bf16.msrb.mxu1 %v5323_v43 }
  0x65   :  { %1564 = vmatpush.bf16.msrb.mxu3 %v5310_v63  ;;  %v5295_v63 = vld [vmem:[%s7791_s1 + $0x220] sm:$0xff] }
  0x66   :  { %1126 = vmatpush.bf16.msrb.mxu0 %v5257_v24  ;;  %v804_v1 = vpack.c.b16 %v799_v12, %v232_v25  ;;  %1542 = vmatpush.bf16.msra.mxu2 %v5295_v63  ;;  %v5306_v25 = vld [vmem:[%s7791_s1 + $0x278] sm:$0xff]  ;;  %v5317_v24 = vld [vmem:[%s7791_s1 + $0x2d0] sm:$0xff]  ;;  %v5327_v12 = vld [vmem:[%s7791_s1 + $0x320] sm:$0xff]  ;;  %v1283_v63 = vrot.slane %v5777_v58, 1 }
  0x69   :  { %1565 = vmatpush.bf16.msrb.mxu3 %v5309_v7  ;;  %v5328_v7 = vld [vmem:[%s7791_s1 + $0x328] sm:$0xff] }
  0x6a   :  { %1127 = vmatpush.bf16.msrb.mxu0 %v5256_v20  ;;  %1657 = vmatpush.bf16.msrb.mxu2 %v5328_v7  ;;  %v6103_v20 = vld [vmem:[%s7792_s0] sm:$0xee] }
  0x6d   :  { %1566 = vmatpush.bf16.msrb.mxu3 %v5308_v46 }
  0x6e   :  { %1128 = vmatpush.bf16.msrb.mxu0 %v5255_v39  ;;  %v5322_v39 = vld [vmem:[%s7791_s1 + $0x2f8] sm:$0xff]  ;;  %1658 = vmatpush.bf16.msrb.mxu2 %v5327_v12 }
  0x6f   :  { %1626 = vmatpush.bf16.msrb.mxu1 %v5322_v39 }
  0x71   :  { %4313 = vmatmul.msk.bf16.vlgmr.msra.gmra.mxu0 %vm638_vm1, %v322_v29  ;;  %1567 = vmatpush.bf16.msrb.mxu3 %v5307_v35 }
  0x72   :  { %1056 = vmatmul.bf16.gmra.mxu1 %v5777_v58  ;;  %1129 = vmatpush.bf16.msrb.mxu0 %v5254_v9 }
  0x73   :  { %1080 = vmatmul.bf16.gmra.mxu2 %v5632_v32 }
  0x74   :  { %4316 = vmatmul.msk.bf16.gmra.mxu3 %vm638_vm1, %v417_v22  ;;  %v1269_v22 = vrot.slane %v5650_v40, 1  ;;  %v5351_v40 = vld [vmem:[%s7791_s1 + $0x368] sm:$0xff] }
  0x75   :  { %1568 = vmatpush.bf16.msrb.mxu3 %v5306_v25 }
  0x76   :  { %1130 = vmatpush.bf16.msrb.mxu0 %v5253_v51  ;;  %v5321_v51 = vld [vmem:[%s7791_s1 + $0x2f0] sm:$0xff]  ;;  %v1284_v11 = vsel %vm1267_vm2, %v1269_v22, %v1283_v63 }
  0x77   :  { %1627 = vmatpush.bf16.msrb.mxu1 %v5321_v51 }
  0x7a   :  { %1131 = vmatpush.bf16.msrb.mxu0 %v5252_v60  ;;  %v37_v60 = vld [vmem:[%s7792_s0 + $0x94] sm:$0x77] }
  0x7e   :  { %1132 = vmatpush.bf16.msrb.mxu0 %v5251_v34  ;;  %v5350_v34 = vld [vmem:[%s7791_s1 + $0x360] sm:$0xff] }
  0x81   :  { %4314 = vmatmul.msk.bf16.gmra.mxu0 %vm638_vm1, %v362_v14 }
  0x82   :  { %1593 = vmatpush.bf16.msra.mxu0 %v5318_v31  ;;  %1061 = vmatmul.bf16.gmra.mxu1 %v804_v1  ;;  %v5320_v31 = vld [vmem:[%s7791_s1 + $0x2e8] sm:$0xff]  ;;  %v801_v1 = vunpack.c.l.b16 %v37_v60 }
  0x83   :  { %1085 = vmatmul.bf16.gmra.mxu2 %v5652_v41  ;;  %1628 = vmatpush.bf16.msrb.mxu1 %v5320_v31 }
  0x84   :  { %1104 = vmatmul.bf16.vlgmr.msra.gmra.mxu3 %v5656_v42  ;;  %v5305_v42 = vld [vmem:[%s7791_s1 + $0x270] sm:$0xff] }
  0x85   :  { %1569 = vmatpush.bf16.msrb.mxu3 %v5305_v42 }
  0x86   :  { %1594 = vmatpush.bf16.msra.mxu0 %v5317_v24  ;;  %v5311_v24 = vld [vmem:[%s7791_s1 + $0x2a0] sm:$0xff] }
  0x87   :  { %1629 = vmatpush.bf16.msrb.mxu1 %v5319_v28 }
  0x89   :  { %1570 = vmatpush.bf16.msrb.mxu3 %v5304_v26 }
  0x8a   :  { %1595 = vmatpush.bf16.msra.mxu0 %v5316_v8  ;;  %v806_v8 = vpack.c.b16 %v801_v1, %v234_v50  ;;  %v1294_v1 = vsel %vm1267_vm2, %v1283_v63, %v1293_v17  ;;  %v5366_v63 = vld [vmem:[%s7791_s1 + $0x3e0] sm:$0xff] }
  0x8d   :  { %1571 = vmatpush.bf16.msrb.mxu3 %v5303_v5 }
  0x8e   :  { %1596 = vmatpush.bf16.msra.mxu0 %v5315_v30 }
  0x91   :  { %1133 = vmatmul.bf16.vlgmr.msrb.gmra.mxu0 %v5683_v54  ;;  %v1257_v54 = vunpack.c.l.b16 %v6103_v20  ;;  %2313 = vmatpush.bf16.msra.mxu3 %v5351_v40 }
  0x92   :  { %4453 = vmatmul.msk.bf16.vlgmr.msra.gmra.mxu1 %vm638_vm1, %v5988_v62  ;;  %1597 = vmatpush.bf16.msra.mxu0 %v5314_v36 }
  0x93   :  { %1090 = vmatmul.bf16.gmra.mxu2 %v805_v16  ;;  %v1262_v62 = vpack.c.b16 %v207_v21, %v1257_v54  ;;  %v1258_v16 = vunpack.c.h.b16 %v6103_v20  ;;  %v5348_v20 = vld [vmem:[%s7791_s1 + $0x350] sm:$0xff] }
  0x94   :  { %1109 = vmatmul.bf16.gmra.mxu3 %v5669_v48 }
  0x95   :  { %v1268_v29 = vrot.slane %v1262_v62, 1  ;;  %2314 = vmatpush.bf16.msra.mxu3 %v5350_v34  ;;  %v38_v62 = vld [vmem:[%s7792_s0 + $0x9c] sm:$0x7]  ;;  %v1263_v36 = vpack.c.b16 %v208_v3, %v1258_v16 }
  0x96   :  { %1598 = vmatpush.bf16.msra.mxu0 %v5313_v47  ;;  %v1272_v47 = vrot.slane %v5632_v32, 1  ;;  %v1184_v32 = vld [vmem:[%s7792_s0 + $0x8] sm:$0xee] }
  0x97   :  { %v1270_v46 = vsel %vm1267_vm2, %v1268_v29, %v1269_v22  ;;  %v5359_v29 = vld [vmem:[%s7791_s1 + $0x3a8] sm:$0xff]  ;;  %v1271_v3 = vrot.slane %v1263_v36, 1  ;;  %v1259_v44 = vunpack.c.l.b16 %v1184_v32  ;;  %v1285_v36 = vrot.slane %v5652_v41, 1  ;;  %v1185_v41 = vld [vmem:[%s7792_s0 + $0x10] sm:$0xe] }
  0x98   :  { %v5367_v22 = vld [vmem:[%s7791_s1 + $0x3e8] sm:$0xff] }
  0x99   :  { %2315 = vmatpush.bf16.msra.mxu3 %v5349_v15  ;;  %2371 = vmatpush.bf16.msra.mxu1 %v5367_v22  ;;  %v1264_v15 = vpack.c.b16 %v209_v37, %v1259_v44  ;;  %v1275_v37 = vrot.slane %v5669_v48, 1 }
  0x9a   :  { %1599 = vmatpush.bf16.msra.mxu0 %v5312_v33 }
  0x9d   :  { %2316 = vmatpush.bf16.msra.mxu3 %v5348_v20  ;;  %2372 = vmatpush.bf16.msra.mxu1 %v5366_v63  ;;  %v1287_v63 = vrot.slane %v5783_v61, 1 }
  0x9e   :  { %v6131_v21 = vpop.f32.mrf.mxu0  ;;  %1600 = vmatpush.bf16.msra.mxu0 %v5311_v24  ;;  %v1273_v24 = vsel %vm1267_vm2, %v1271_v3, %v1272_v47 }
  0x9f   :  { %v694_v9 = vpop.f32.mrf.mxu1 }
  0xa1   :  { %1138 = vmatmul.bf16.gmra.mxu0 %v5679_v53  ;;  %2317 = vmatpush.bf16.msra.mxu3 %v5347_v10  ;;  %v5344_v10 = vld [vmem:[%s7791_s1 + $0x330] sm:$0xff] }
  0xa2   :  { %4454 = vmatmul.msk.bf16.gmra.mxu1 %vm638_vm1, %v6004_v2  ;;  %2342 = vmatpush.bf16.msrb.mxu0 %v5359_v29 }
  0xa3   :  { %1543 = vmatmul.bf16.vlgmr.msra.gmra.mxu2 %v1270_v46  ;;  %v803_v46 = vunpack.c.l.b16 %v38_v62  ;;  %v5357_v62 = vld [vmem:[%s7791_s1 + $0x398] sm:$0xff] }
  0xa4   :  { %1114 = vmatmul.bf16.gmra.mxu3 %v5783_v61 }
  0xa5   :  { %v808_v12 = vpack.c.b16 %v803_v46, %v236_v23  ;;  %v5358_v23 = vld [vmem:[%s7791_s1 + $0x3a0] sm:$0xff] }
  0xa6   :  { %v6147_v52 = vpop.f32.mrf.mxu2  ;;  %v6151_v56 = vpop.f32.mrf.mxu0  ;;  %2343 = vmatpush.bf16.msrb.mxu0 %v5358_v23  ;;  %v5355_v23 = vld [vmem:[%s7791_s1 + $0x388] sm:$0xff] }
  0xa7   :  { %v6149_v35 = vpop.f32.mrf.mxu3  ;;  %v696_v57 = vpop.f32.mrf.mxu1 }
  0xaa   :  { %2344 = vmatpush.bf16.msrb.mxu0 %v5357_v62 }
  0xae   :  { %v6169_v14 = vpop.f32.mrf.mxu2  ;;  %v665_v7 = vpop.f32.mrf.mxu0 }
  0xaf   :  { %v6171_v25 = vpop.f32.mrf.mxu3  ;;  %v699_v42 = vpop.f32.mrf.mxu1  ;;  %v695_v58 = vadd.f32 %v694_v9, %v665_v7  ;;  %v802_v9 = vunpack.c.h.b16 %v37_v60 }
  0xb1   :  { %1143 = vmatmul.bf16.gmra.mxu0 %v5791_v0 }
  0xb2   :  { %4455 = vmatmul.msk.bf16.gmra.mxu1 %vm638_vm1, %v5942_v19 }
  0xb3   :  { %1548 = vmatmul.bf16.gmra.mxu2 %v1284_v11 }
  0xb4   :  { %1119 = vmatmul.bf16.gmra.mxu3 %v806_v8 }
  0xb6   :  { %v723_v50 = vpop.f32.mrf.mxu2  ;;  %v667_v43 = vpop.f32.mrf.mxu0 }
  0xb7   :  { %v752_v26 = vpop.f32.mrf.mxu3  ;;  %v724_v30 = vadd.f32 %v723_v50, %v695_v58  ;;  %v701_v54 = vpop.f32.mrf.mxu1  ;;  %v697_v5 = vadd.f32 %v696_v57, %v667_v43  ;;  %v807_v57 = vpack.c.b16 %v802_v9, %v235_v55  ;;  %v1260_v55 = vunpack.c.h.b16 %v1184_v32  ;;  %v5346_v43 = vld [vmem:[%s7791_s1 + $0x340] sm:$0xff] }
  0xb8   :  { %2318 = vmatpush.bf16.msra.mxu3 %v5346_v43  ;;  %v1288_v43 = vsel %vm1267_vm2, %v1275_v37, %v1287_v63 }
  0xb9   :  { %v6194_v39 = vadd.f32 %v752_v26, %v724_v30  ;;  %v1265_v16 = vpack.c.b16 %v210_v49, %v1260_v55  ;;  %v5375_v30 = vld [vmem:[%s7791_s1 + $0x428] sm:$0xff]  ;;  %v1278_v49 = vrot.slane %v5679_v53, 1  ;;  %v5373_v55 = vld [vmem:[%s7791_s1 + $0x418] sm:$0xff] }
  0xba   :  { %2400 = vmatpush.bf16.msra.mxu2 %v5375_v30 }
  0xbb   :  { %v1277_v27 = vrot.slane %v1265_v16, 1 }
  0xbd   :  { %v1279_v53 = vsel %vm1267_vm2, %v1277_v27, %v1278_v49 }
  0xbe   :  { %v725_v40 = vpop.f32.mrf.mxu2  ;;  %v670_v34 = vpop.f32.mrf.mxu0 }
  0xbf   :  { %v754_v51 = vpop.f32.mrf.mxu3  ;;  %v726_v33 = vadd.f32 %v725_v40, %v697_v5  ;;  %v704_v60 = vpop.f32.mrf.mxu1  ;;  %v700_v31 = vadd.f32 %v699_v42, %v670_v34  ;;  %v1274_v5 = vrot.slane %v1264_v15, 1  ;;  %v1286_v40 = vsel %vm1267_vm2, %v1272_v47, %v1285_v36  ;;  %v5345_v47 = vld [vmem:[%s7791_s1 + $0x338] sm:$0xff] }
  0xc0   :  { %v1261_v34 = vunpack.c.l.b16 %v1185_v41  ;;  %2319 = vmatpush.bf16.msra.mxu3 %v5345_v47  ;;  %v5361_v41 = vld [vmem:[%s7791_s1 + $0x3b8] sm:$0xff]  ;;  %v1299_v47 = vrot.slane %v5860_v6, 1  ;;  %v5392_v6 = vld [vmem:[%s7791_s1 + $0x4b0] sm:$0xff] }
  0xc1   :  { %v6218_v28 = vadd.f32 %v754_v51, %v726_v33  ;;  %1148 = vmatmul.bf16.gmra.mxu0 %v807_v57  ;;  %v1276_v48 = vsel %vm1267_vm2, %v1274_v5, %v1275_v37  ;;  %v5374_v57 = vld [vmem:[%s7791_s1 + $0x420] sm:$0xff]  ;;  %v5364_v33 = vld [vmem:[%s7791_s1 + $0x3d0] sm:$0xff] }
  0xc2   :  { %4456 = vmatmul.msk.bf16.gmra.mxu1 %vm638_vm1, %v808_v12  ;;  %v5356_v12 = vld [vmem:[%s7791_s1 + $0x390] sm:$0xff]  ;;  %2401 = vmatpush.bf16.msra.mxu2 %v5374_v57  ;;  %v1266_v32 = vpack.c.b16 %v211_v38, %v1261_v34  ;;  %v1295_v38 = vrot.slane %v5781_v59, 1  ;;  %v6404_v59 = vld [vmem:[%s7792_s0 + $0x8] sm:$0xee] }
  0xc3   :  { %1553 = vmatmul.bf16.gmra.mxu2 %v1294_v1  ;;  %2345 = vmatpush.bf16.msrb.mxu0 %v5356_v12  ;;  %v5372_v37 = vld [vmem:[%s7791_s1 + $0x410] sm:$0xff] }
  0xc4   :  { %1572 = vmatmul.bf16.vlgmr.msrb.gmra.mxu3 %v1273_v24  ;;  %v1296_v27 = vsel %vm1267_vm2, %v1285_v36, %v1295_v38 }
  0xc5   :  { %2320 = vmatpush.bf16.msra.mxu3 %v5344_v10 }
  0xc6   :  { %v728_v7 = vpop.f32.mrf.mxu2  ;;  %v672_v58 = vpop.f32.mrf.mxu0  ;;  %2402 = vmatpush.bf16.msra.mxu2 %v5373_v55 }
  0xc7   :  { %v757_v42 = vpop.f32.mrf.mxu3  ;;  %v729_v8 = vadd.f32 %v728_v7, %v700_v31  ;;  %v706_v11 = vpop.f32.mrf.mxu1  ;;  %v702_v50 = vadd.f32 %v701_v54, %v672_v58  ;;  %v5365_v54 = vld [vmem:[%s7791_s1 + $0x3d8] sm:$0xff]  ;;  %v1289_v7 = vrot.slane %v5791_v0, 1  ;;  %2346 = vmatpush.bf16.msrb.mxu0 %v5355_v23 }
  0xc8   :  { %2373 = vmatpush.bf16.msra.mxu1 %v5365_v54 }
  0xc9   :  { %v6234_v26 = vadd.f32 %v757_v42, %v729_v8  ;;  %v1280_v42 = vrot.slane %v1266_v32, 1  ;;  %v1281_v8 = vrot.slane %v6004_v2, 1  ;;  %5490 = vmatpush.bf16.msrb.mxu3 %v5375_v30  ;;  %v1290_v62 = vsel %vm1267_vm2, %v1278_v49, %v1289_v7  ;;  %v5362_v49 = vld [vmem:[%s7791_s1 + $0x3c0] sm:$0xff] }
  0xca   :  { %2403 = vmatpush.bf16.msra.mxu2 %v5372_v37 }
  0xcb   :  { %v1282_v30 = vsel %vm1267_vm2, %v1280_v42, %v1281_v8 }
  0xcc   :  { %2374 = vmatpush.bf16.msra.mxu1 %v5364_v33 }
  0xcd   :  { %5491 = vmatpush.bf16.msrb.mxu3 %v5374_v57  ;;  %v1297_v57 = vrot.slane %v5856_v4, 1  ;;  %v5384_v4 = vld [vmem:[%s7791_s1 + $0x470] sm:$0xff] }
  0xce   :  { %v730_v20 = vpop.f32.mrf.mxu2  ;;  %v675_v9 = vpop.f32.mrf.mxu0 }
  0xcf   :  { %v759_v29 = vpop.f32.mrf.mxu3  ;;  %v731_v22 = vadd.f32 %v730_v20, %v702_v50  ;;  %v6251_v46 = vpop.f32.mrf.mxu1  ;;  %v705_v3 = vadd.f32 %v704_v60, %v675_v9  ;;  %v1298_v23 = vsel %vm1267_vm2, %v1287_v63, %v1297_v57  ;;  %v5370_v63 = vld [vmem:[%s7791_s1 + $0x400] sm:$0xff] }
  0xd0   :  { %2375 = vmatpush.bf16.msra.mxu1 %v5363_v45  ;;  %v1300_v45 = vsel %vm1267_vm2, %v1289_v7, %v1299_v47 }
  0xd1   :  { %v6256_v51 = vadd.f32 %v759_v29, %v731_v22  ;;  %1601 = vmatmul.bf16.vlgmr.msra.gmra.mxu0 %v1276_v48  ;;  %5492 = vmatpush.bf16.msrb.mxu3 %v5373_v55 }
  0xd2   :  { %1630 = vmatmul.bf16.vlgmr.msrb.gmra.mxu1 %v1279_v53 }
  0xd3   :  { %1558 = vmatmul.bf16.gmra.mxu2 %v1293_v17 }
  0xd4   :  { %1577 = vmatmul.bf16.gmra.mxu3 %v1286_v40  ;;  %2376 = vmatpush.bf16.msra.mxu1 %v5362_v49 }
  0xd5   :  { %5493 = vmatpush.bf16.msrb.mxu3 %v5372_v37 }
  0xd6   :  { %v733_v60 = vpop.f32.mrf.mxu2  ;;  %v677_v31 = vpop.f32.mrf.mxu0 }
  0xd7   :  { %v762_v13 = vpop.f32.mrf.mxu3  ;;  %v734_v17 = vadd.f32 %v733_v60, %v705_v3  ;;  %v6275_v1 = vpop.f32.mrf.mxu1  ;;  %v707_v24 = vadd.f32 %v706_v11, %v677_v31  ;;  %v6333_v3 = vld [vmem:[%s7792_s0] sm:$0xee]  ;;  %v4599_v60 = vld [vmem:[%s7792_s0 + $0x28] sm:$0xf] }
  0xd8   :  { %v1810_v12 = vunpack.c.l.b16 %v6333_v3  ;;  %2377 = vmatpush.bf16.msra.mxu1 %v5361_v41 }
  0xd9   :  { %v6279_v44 = vadd.f32 %v762_v13, %v734_v17  ;;  %v5331_v13 = vld [vmem:[%s7792_s0 + $0x38] sm:$0xf0] }
  0xda   :  { %v6386_v61 = vor.u32 %v5331_v13, %v4599_v60  ;;  %v5332_v60 = vld [vmem:[%s7792_s0 + $0x40] sm:$0xf0]  ;;  %v4619_v13 = vld [vmem:[%s7792_s0 + $0x50] sm:$0xf] }
  0xde   :  { %v735_v58 = vpop.f32.mrf.mxu2  ;;  %v689_v16 = vpop.f32.mrf.mxu0 }
  0xdf   :  { %v764_v11 = vpop.f32.mrf.mxu3  ;;  %v736_v15 = vadd.f32 %v735_v58, %v707_v24  ;;  %v6297_v50 = vpop.f32.mrf.mxu1  ;;  %v690_v5 = vadd.f32 %v689_v16, %v6131_v21  ;;  %v5354_v21 = vld [vmem:[%s7791_s1 + $0x380] sm:$0xff]  ;;  %v5352_v24 = vld [vmem:[%s7791_s1 + $0x370] sm:$0xff] }
  0xe0   :  { %2347 = vmatpush.bf16.msrb.mxu0 %v5354_v21 }
  0xe1   :  { %v6312_v54 = vadd.f32 %v764_v11, %v736_v15  ;;  %v719_v20 = vadd.f32 %v6147_v52, %v690_v5  ;;  %1606 = vmatmul.bf16.gmra.mxu0 %v1288_v43  ;;  %v7821_v15 = vshll.u32 %v6386_v61, 16 }
  0xe2   :  { %1635 = vmatmul.bf16.gmra.mxu1 %v1290_v62 }
  0xe3   :  { %4593 = vmatmul.msk.bf16.vlgmr.msrb.gmra.mxu2 %vm638_vm1, %v1282_v30  ;;  %v748_v36 = vadd.f32 %v6149_v35, %v719_v20  ;;  %v1691_v35 = vld [vmem:[%s7792_s0 + $0x14] sm:$0xff] }
  0xe4   :  { %1582 = vmatmul.bf16.gmra.mxu3 %v1296_v27  ;;  %v6351_v33 = vunpack.c.l.b16 %v1691_v35 }
  0xe6   :  { %v1076_v29 = vpop.f32.mrf.mxu2  ;;  %v691_v9 = vpop.f32.mrf.mxu0  ;;  %v1855_v42 = vpack.c.b16 %v6351_v33, %v1810_v12 }
  0xe7   :  { %v786_v52 = vpop.f32.mrf.mxu3  ;;  %v6327_v48 = vpop.f32.mrf.mxu1  ;;  %v692_v53 = vadd.f32 %v691_v9, %v6151_v56  ;;  %v5353_v56 = vld [vmem:[%s7791_s1 + $0x378] sm:$0xff] }
  0xe8   :  { %v787_v22 = vadd.f32 %v786_v52, %v6234_v26  ;;  %v5371_v26 = vld [vmem:[%s7791_s1 + $0x408] sm:$0xff]  ;;  %2348 = vmatpush.bf16.msrb.mxu0 %v5353_v56  ;;  %v1882_v2 = vshrl.u32 %v1855_v42, 16  ;;  %v1885_v7 = vshll.u32 %v1855_v42, 16  ;;  %v1811_v52 = vunpack.c.h.b16 %v6333_v3  ;;  %v5393_v3 = vld [vmem:[%s7791_s1 + $0x4b8] sm:$0xff] }
  0xe9   :  { %v721_v40 = vadd.f32 %v6169_v14, %v692_v53  ;;  %v1291_v14 = vrot.slane %v5942_v19, 1  ;;  %2404 = vmatpush.bf16.msra.mxu2 %v5371_v26  ;;  %5494 = vmatpush.bf16.msrb.mxu3 %v5371_v26  ;;  %v5369_v53 = vld [vmem:[%s7791_s1 + $0x3f8] sm:$0xff]  ;;  %v5329_v26 = vld [vmem:[%s7792_s0 + $0x2c] sm:$0xf] }
  0xea   :  { %v1884_v30 = vrot.slane %v1882_v2, 1  ;;  %v1887_v20 = vrot.slane %v1885_v7, 2 }
  0xeb   :  { %v750_v34 = vadd.f32 %v6171_v25, %v721_v40  ;;  %v5360_v25 = vld [vmem:[%s7791_s1 + $0x3b0] sm:$0xff]  ;;  %v5385_v40 = vld [vmem:[%s7791_s1 + $0x478] sm:$0xff] }
  0xec   :  { %2349 = vmatpush.bf16.msrb.mxu0 %v5352_v24  ;;  %2378 = vmatpush.bf16.msra.mxu1 %v5360_v25  ;;  %v1888_v56 = vor.u32 %v1887_v20, %v1884_v30 }
  0xed   :  { %2405 = vmatpush.bf16.msra.mxu2 %v5370_v63  ;;  %5495 = vmatpush.bf16.msrb.mxu3 %v5370_v63 }
  0xee   :  { %v1078_v31 = vpop.f32.mrf.mxu2  ;;  %v776_v55 = vpop.f32.mrf.mxu0 }
  0xef   :  { %v788_v17 = vpop.f32.mrf.mxu3  ;;  %v1057_v10 = vpop.f32.mrf.mxu1  ;;  %v777_v58 = vadd.f32 %v776_v55, %v748_v36  ;;  %v1895_v36 = vrot.slane %v7821_v15, 2 }
  0xf0   :  { %v789_v32 = vadd.f32 %v788_v17, %v6256_v51  ;;  %v6379_v11 = vadd.f32 %v1057_v10, %v787_v22  ;;  %v1292_v51 = vsel %vm1267_vm2, %v1281_v8, %v1291_v14  ;;  %v1890_v8 = vshrl.u32 %v6386_v61, 16  ;;  %2828 = vmatpush.bf16.msra.mxu0 %v5385_v40  ;;  %v5336_v17 = vld [vmem:[%s7792_s0 + $0x60] sm:$0xf0]  ;;  %2857 = vmatpush.bf16.msrb.mxu1 %v5393_v3  ;;  %v5368_v10 = vld [vmem:[%s7791_s1 + $0x3f0] sm:$0xff] }
  0xf1   :  { %v1048_v0 = vadd.f32 %v6251_v46, %v777_v58  ;;  %1611 = vmatmul.bf16.gmra.mxu0 %v1298_v23  ;;  %v1812_v22 = vunpack.c.l.b16 %v6404_v59  ;;  %2406 = vmatpush.bf16.msra.mxu2 %v5369_v53  ;;  %v6480_v7 = vor.u32 %v5336_v17, %v4619_v13 }
  0xf2   :  { %1640 = vmatmul.bf16.gmra.mxu1 %v1300_v45  ;;  %v1892_v49 = vrot.slane %v1890_v8, 1  ;;  %5496 = vmatpush.bf16.msrb.mxu3 %v5369_v53 }
  0xf3   :  { %4594 = vmatmul.msk.bf16.gmra.mxu2 %vm638_vm1, %v1292_v51  ;;  %v6397_v16 = vadd.f32 %v1076_v29, %v1048_v0  ;;  %v6419_v29 = vunpack.c.h.b16 %v1691_v35  ;;  %v1301_v35 = vrot.slane %v5955_v18, 1 }
  0xf4   :  { %1587 = vmatmul.bf16.gmra.mxu3 %v1295_v38  ;;  %v6409_v38 = vld [vmem:[%s7792_s0 + $0x1c] sm:$0xff]  ;;  %v6442_v41 = vor.u32 %v1895_v36, %v1892_v49  ;;  %2829 = vmatpush.bf16.msra.mxu0 %v5384_v4 }
  0xf5   :  { %v1302_v58 = vsel %vm1267_vm2, %v1291_v14, %v1301_v35  ;;  %2407 = vmatpush.bf16.msra.mxu2 %v5368_v10  ;;  %2858 = vmatpush.bf16.msrb.mxu1 %v5392_v6 }
  0xf6   :  { %v6399_v43 = vpop.f32.mrf.mxu2  ;;  %v778_v5 = vpop.f32.mrf.mxu0  ;;  %v1897_v2 = vsel %vm1880_vm3, %v1888_v56, %v6442_v41  ;;  %5497 = vmatpush.bf16.msrb.mxu3 %v5368_v10  ;;  %v6533_v10 = vunpack.c.h.b16 %v6409_v38 }
  0xf7   :  { %v791_v46 = vpop.f32.mrf.mxu3  ;;  %v1059_v27 = vpop.f32.mrf.mxu1  ;;  %v779_v37 = vadd.f32 %v778_v5, %v750_v34  ;;  %v4607_v34 = vld [vmem:[%s7792_s0 + $0x30] sm:$0xf] }
  0xf8   :  { %v792_v62 = vadd.f32 %v791_v46, %v6279_v44  ;;  %v6412_v21 = vadd.f32 %v1059_v27, %v789_v32  ;;  %v6423_v44 = vunpack.c.l.b16 %v6409_v38  ;;  %v6473_v51 = vor.u32 %v5332_v60, %v4607_v34  ;;  %v4621_v38 = vld [vmem:[%s7792_s0 + $0x64] sm:$0xf0] }
  0xf9   :  { %v1050_v9 = vadd.f32 %v6275_v1, %v779_v37  ;;  %v4601_v1 = vld [vmem:[%s7792_s0 + $0x3c] sm:$0xf0] }
  0xfa   :  { %v1857_v24 = vpack.c.b16 %v6423_v44, %v1812_v22  ;;  %v6462_v55 = vor.u32 %v5329_v26, %v4601_v1  ;;  %v7802_v27 = vshrl.u32 %v6473_v51, 16  ;;  %v7797_v30 = vshll.u32 %v6473_v51, 16 }
  0xfb   :  { %v6444_v12 = vadd.f32 %v1078_v31, %v1050_v9  ;;  %v1856_v31 = vpack.c.b16 %v6419_v29, %v1811_v52 }
  0xfc   :  { %v1916_v5 = vshrl.u32 %v1857_v24, 16  ;;  %v7817_v14 = vshll.u32 %v6462_v55, 16  ;;  %v1926_v1 = vrot.slane %v7802_v27, 1  ;;  %v1929_v56 = vrot.slane %v7797_v30, 2 }
  0xfd   :  { %v1902_v46 = vshll.u32 %v1856_v31, 16 }
  0xfe   :  { %v6460_v32 = vpop.f32.mrf.mxu2  ;;  %v781_v45 = vpop.f32.mrf.mxu0  ;;  %v1912_v22 = vrot.slane %v7817_v14, 2  ;;  %v1918_v9 = vrot.slane %v1916_v5, 1 }
  0xff   :  { %v793_v25 = vpop.f32.mrf.mxu3  ;;  %v1062_v42 = vpop.f32.mrf.mxu1  ;;  %v782_v0 = vadd.f32 %v781_v45, %v6194_v39  ;;  %v7820_v39 = vshrl.u32 %v6462_v55, 16  ;;  %v1904_v37 = vrot.slane %v1902_v46, 2  ;;  %v5383_v45 = vld [vmem:[%s7791_s1 + $0x468] sm:$0xff] }
 0x100   :  { %v794_v23 = vadd.f32 %v793_v25, %v6312_v54  ;;  %v6476_v63 = vadd.f32 %v1062_v42, %v792_v62  ;;  %v1899_v54 = vshrl.u32 %v1856_v31, 16  ;;  %v1919_v62 = vshll.u32 %v1857_v24, 16  ;;  %v5341_v31 = vld [vmem:[%s7792_s0 + $0x88] sm:$0xf0]  ;;  %2830 = vmatpush.bf16.msra.mxu0 %v5383_v45 }
 0x101   :  { %v1053_v19 = vadd.f32 %v6297_v50, %v782_v0  ;;  %1616 = vmatmul.bf16.gmra.mxu0 %v1297_v57  ;;  %v7816_v50 = vshrl.u32 %v6480_v7, 16  ;;  %v7815_v57 = vshll.u32 %v6480_v7, 16  ;;  %v1909_v52 = vrot.slane %v7820_v39, 1  ;;  %v5391_v42 = vld [vmem:[%s7791_s1 + $0x4a8] sm:$0xff] }
 0x102   :  { %1645 = vmatmul.bf16.gmra.mxu1 %v1299_v47  ;;  %v1901_v20 = vrot.slane %v1899_v54, 1  ;;  %v1921_v53 = vrot.slane %v1919_v62, 2  ;;  %v1813_v25 = vunpack.c.h.b16 %v6404_v59  ;;  %v5334_v59 = vld [vmem:[%s7792_s0 + $0x54] sm:$0xf]  ;;  %v4627_v54 = vld [vmem:[%s7792_s0 + $0x58] sm:$0xf] }
 0x103   :  { %4595 = vmatmul.msk.bf16.gmra.mxu2 %vm638_vm1, %v1302_v58  ;;  %v6501_v47 = vadd.f32 %v6399_v43, %v1053_v19  ;;  %v1969_v13 = vrot.slane %v7816_v50, 1  ;;  %v6544_v58 = vor.u32 %v1929_v56, %v1926_v1  ;;  %v5337_v46 = vld [vmem:[%s7792_s0 + $0x68] sm:$0xf0]  ;;  %v5330_v19 = vld [vmem:[%s7792_s0 + $0x34] sm:$0xf]  ;;  %2859 = vmatpush.bf16.msrb.mxu1 %v5391_v42 }
 0x104   :  { %2321 = vmatmul.bf16.vlgmr.msra.gmra.mxu3 %v1897_v2  ;;  %v1905_v17 = vor.u32 %v1904_v37, %v1901_v20  ;;  %v6573_v20 = vor.u32 %v5334_v59, %v4621_v38  ;;  %v1858_v37 = vpack.c.b16 %v6533_v10, %v1813_v25 }
 0x106   :  { %v1086_v49 = vpop.f32.mrf.mxu2  ;;  %v783_v3 = vpop.f32.mrf.mxu0  ;;  %7827 = vst [vmem:[#allocation2_spill] sm:$0xff] %v6573_v20  ;;  %v1936_v18 = vshll.u32 %v1858_v37, 16 }
 0x107   :  { %v1105_v36 = vpop.f32.mrf.mxu3  ;;  %v6508_v40 = vadd.f32 %v1086_v49, %v6379_v11  ;;  %v1064_v26 = vpop.f32.mrf.mxu1  ;;  %v784_v34 = vadd.f32 %v783_v3, %v6218_v28  ;;  %v1972_v11 = vrot.slane %v7815_v57, 2  ;;  %v6529_v28 = vor.u32 %v1912_v22, %v1909_v52  ;;  %v5400_v3 = vld [vmem:[%s7791_s1 + $0x4f0] sm:$0xff] }
 0x108   :  { %v1106_v43 = vadd.f32 %v1105_v36, %v6397_v16  ;;  %v6516_v60 = vadd.f32 %v1064_v26, %v794_v23  ;;  %v4639_v16 = vld [vmem:[%s7792_s0 + $0x78] sm:$0xf] }
 0x109   :  { %v1055_v24 = vadd.f32 %v6327_v48, %v784_v34  ;;  %v5401_v23 = vld [vmem:[%s7791_s1 + $0x4f8] sm:$0xff]  ;;  %v1922_v48 = vor.u32 %v1921_v53, %v1918_v9  ;;  %v6552_v0 = vor.u32 %v1972_v11, %v1969_v13  ;;  %v6563_v5 = vor.u32 %v5341_v31, %v4639_v16  ;;  %v5382_v16 = vld [vmem:[%s7791_s1 + $0x460] sm:$0xff] }
 0x10a   :  { %2886 = vmatpush.bf16.msrb.mxu2 %v5401_v23  ;;  %v1914_v6 = vsel %vm1880_vm3, %v1905_v17, %v6529_v28  ;;  %v6582_v53 = vor.u32 %v5337_v46, %v4627_v54  ;;  %v7814_v13 = vshrl.u32 %v6573_v20, 16  ;;  %v7813_v11 = vshll.u32 %v6573_v20, 16  ;;  %v5390_v31 = vld [vmem:[%s7791_s1 + $0x4a0] sm:$0xff]  ;;  %2831 = vmatpush.bf16.msra.mxu0 %v5382_v16  ;;  %v5339_v16 = vld [vmem:[%s7792_s0 + $0x7c] sm:$0xf] }
 0x10b   :  { %v6555_v2 = vadd.f32 %v6460_v32, %v1055_v24  ;;  %v4609_v32 = vld [vmem:[%s7792_s0 + $0x44] sm:$0xf0]  ;;  %v1931_v9 = vsel %vm1880_vm3, %v1922_v48, %v6544_v58  ;;  %v1974_v1 = vsel %vm1880_vm3, %v6442_v41, %v6552_v0  ;;  %v7809_v56 = vshll.u32 %v6563_v5, 16  ;;  %2860 = vmatpush.bf16.msrb.mxu1 %v5390_v31  ;;  %v4641_v31 = vld [vmem:[%s7792_s0 + $0x8c] sm:$0xf0] }
 0x10c   :  { %v7796_v41 = vshrl.u32 %v6582_v53, 16  ;;  %v7795_v17 = vshll.u32 %v6582_v53, 16  ;;  %v5399_v24 = vld [vmem:[%s7791_s1 + $0x4e8] sm:$0xff]  ;;  %v1978_v59 = vrot.slane %v7814_v13, 1  ;;  %v1981_v38 = vrot.slane %v7813_v11, 2 }
 0x10d   :  { %v2017_v48 = vrot.slane %v7809_v56, 2 }
 0x10e   :  { %v1088_v62 = vpop.f32.mrf.mxu2  ;;  %v1134_v52 = vpop.f32.mrf.mxu0  ;;  %2887 = vmatpush.bf16.msrb.mxu2 %v5400_v3  ;;  %v6636_v3 = vor.u32 %v1981_v38, %v1978_v59  ;;  %v5342_v59 = vld [vmem:[%s7792_s0 + $0x90] sm:$0xf0]  ;;  %v5335_v38 = vld [vmem:[%s7792_s0 + $0x5c] sm:$0xf] }
 0x10f   :  { %v1107_v4 = vpop.f32.mrf.mxu3  ;;  %v6577_v49 = vadd.f32 %v1088_v62, %v6412_v21  ;;  %v1163_v22 = vpop.f32.mrf.mxu1  ;;  %v1135_v26 = vadd.f32 %v1134_v52, %v1106_v43  ;;  %v6590_v21 = vor.u32 %v5330_v19, %v4609_v32  ;;  %v1933_v43 = vshrl.u32 %v1858_v37, 16 }
 0x110   :  { %v1108_v36 = vadd.f32 %v1107_v4, %v6444_v12  ;;  %v7812_v12 = vshrl.u32 %v6563_v5, 16  ;;  %v1987_v4 = vrot.slane %v7796_v41, 1  ;;  %v1938_v52 = vrot.slane %v1936_v18, 2 }
 0x111   :  { %v6594_v34 = vadd.f32 %v1163_v22, %v1135_v26  ;;  %2350 = vmatmul.bf16.vlgmr.msrb.gmra.mxu0 %v1914_v6  ;;  %v7803_v25 = vshll.u32 %v6590_v21, 16  ;;  %v1935_v54 = vrot.slane %v1933_v43, 1  ;;  %v1990_v6 = vrot.slane %v7795_v17, 2  ;;  %v5398_v26 = vld [vmem:[%s7791_s1 + $0x4e0] sm:$0xff] }
 0x112   :  { %2379 = vmatmul.bf16.vlgmr.msra.gmra.mxu1 %v1931_v9  ;;  %v2014_v23 = vrot.slane %v7812_v12, 1  ;;  %2888 = vmatpush.bf16.msrb.mxu2 %v5399_v24  ;;  %v6652_v43 = vld [vmem:[%s7792_s0 + $0xa0] sm:$0x11] }
 0x113   :  { %4596 = vmatmul.msk.bf16.gmra.mxu2 %vm638_vm1, %v1301_v35  ;;  %v7806_v35 = vshrl.u32 %v6590_v21, 16  ;;  %v1946_v9 = vrot.slane %v7803_v25, 2  ;;  %v1939_v18 = vor.u32 %v1938_v52, %v1935_v54 }
 0x114   :  { %2326 = vmatmul.bf16.gmra.mxu3 %v1974_v1  ;;  %v6647_v1 = vor.u32 %v1990_v6, %v1987_v4  ;;  %v6660_v24 = vor.u32 %v2017_v48, %v2014_v23  ;;  %v4629_v23 = vld [vmem:[%s7792_s0 + $0x6c] sm:$0xf0]  ;;  %v6680_v4 = vor.u32 %v5339_v16, %v4641_v31 }
 0x115   :  { %v1943_v22 = vrot.slane %v7806_v35, 1 }
 0x116   :  { %v1091_v45 = vpop.f32.mrf.mxu2  ;;  %v1136_v32 = vpop.f32.mrf.mxu0  ;;  %2889 = vmatpush.bf16.msrb.mxu2 %v5398_v26  ;;  %7828 = vst [vmem:[#allocation3_spill] sm:$0xff] %v6680_v4  ;;  %v7807_v31 = vshll.u32 %v6680_v4, 16 }
 0x117   :  { %v1110_v42 = vpop.f32.mrf.mxu3  ;;  %v6623_v46 = vadd.f32 %v1091_v45, %v6476_v63  ;;  %v1165_v62 = vpop.f32.mrf.mxu1  ;;  %v1137_v37 = vadd.f32 %v1136_v32, %v1108_v36  ;;  %v5389_v36 = vld [vmem:[%s7791_s1 + $0x498] sm:$0xff]  ;;  %v6662_v45 = vor.u32 %v1946_v9, %v1943_v22  ;;  %v1983_v32 = vsel %vm1880_vm3, %v6529_v28, %v6636_v3 }
 0x118   :  { %v1111_v19 = vadd.f32 %v1110_v42, %v6501_v47  ;;  %v5381_v47 = vld [vmem:[%s7791_s1 + $0x458] sm:$0xff]  ;;  %v4647_v42 = vld [vmem:[%s7792_s0 + $0x80] sm:$0xf]  ;;  %2861 = vmatpush.bf16.msrb.mxu1 %v5389_v36  ;;  %v1992_v9 = vsel %vm1880_vm3, %v6544_v58, %v6647_v1  ;;  %v2019_v28 = vsel %vm1880_vm3, %v6552_v0, %v6660_v24  ;;  %v7808_v58 = vshrl.u32 %v6680_v4, 16 }
 0x119   :  { %v6634_v63 = vadd.f32 %v1165_v62, %v1137_v37  ;;  %2832 = vmatpush.bf16.msra.mxu0 %v5381_v47  ;;  %v1850_v62 = vunpack.c.l.b16 %v6652_v43  ;;  %v6689_v47 = vor.u32 %v5342_v59, %v4647_v42  ;;  %v1948_v36 = vsel %vm1880_vm3, %v1939_v18, %v6662_v45  ;;  %v5377_v42 = vld [vmem:[%s7791_s1 + $0x438] sm:$0xff]  ;;  %v5380_v59 = vld [vmem:[%s7791_s1 + $0x450] sm:$0xff] }
 0x11a   :  { %2435 = vmatpush.bf16.msra.mxu3 %v5377_v42 }
 0x11b   :  { %v7799_v0 = vshrl.u32 %v6689_v47, 16  ;;  %v7798_v18 = vshll.u32 %v6689_v47, 16 }
 0x11d   :  { %2833 = vmatpush.bf16.msra.mxu0 %v5380_v59  ;;  %v2035_v42 = vrot.slane %v7798_v18, 2 }
 0x11e   :  { %v1093_v48 = vpop.f32.mrf.mxu2  ;;  %v1139_v52 = vpop.f32.mrf.mxu0 }
 0x11f   :  { %v1112_v54 = vpop.f32.mrf.mxu3  ;;  %v6683_v6 = vadd.f32 %v1093_v48, %v6516_v60  ;;  %v1168_v22 = vpop.f32.mrf.mxu1  ;;  %v1140_v26 = vadd.f32 %v1139_v52, %v1111_v19  ;;  %v6696_v60 = vor.u32 %v5335_v38, %v4629_v23  ;;  %v5397_v19 = vld [vmem:[%s7791_s1 + $0x4d8] sm:$0xff]  ;;  %v5388_v38 = vld [vmem:[%s7791_s1 + $0x490] sm:$0xff]  ;;  %v2023_v52 = vrot.slane %v7808_v58, 1 }
 0x120   :  { %v1113_v37 = vadd.f32 %v1112_v54, %v6555_v2  ;;  %v6700_v2 = vpack.c.b16 %v1850_v62, %v1850_v62  ;;  %2890 = vmatpush.bf16.msrb.mxu2 %v5397_v19  ;;  %2862 = vmatpush.bf16.msrb.mxu1 %v5388_v38  ;;  %v2032_v19 = vrot.slane %v7799_v0, 1 }
 0x121   :  { %v6698_v16 = vadd.f32 %v1168_v22, %v1140_v26  ;;  %2355 = vmatmul.bf16.gmra.mxu0 %v1983_v32  ;;  %v7801_v23 = vshrl.u32 %v6696_v60, 16  ;;  %v7800_v48 = vshll.u32 %v6696_v60, 16  ;;  %v2026_v22 = vrot.slane %v7807_v31, 2 }
 0x122   :  { %2384 = vmatmul.bf16.gmra.mxu1 %v1992_v9  ;;  %v2057_v62 = vshll.u32 %v6700_v2, 16  ;;  %v5396_v9 = vld [vmem:[%s7791_s1 + $0x4d0] sm:$0xff]  ;;  %v6752_v18 = vor.u32 %v2035_v42, %v2032_v19 }
 0x123   :  { %2408 = vmatmul.bf16.vlgmr.msra.gmra.mxu2 %v1948_v36  ;;  %v1996_v17 = vrot.slane %v7801_v23, 1  ;;  %v1999_v38 = vrot.slane %v7800_v48, 2 }
 0x124   :  { %2331 = vmatmul.bf16.gmra.mxu3 %v2019_v28  ;;  %2891 = vmatpush.bf16.msrb.mxu2 %v5396_v9  ;;  %v2059_v30 = vrot.slane %v2057_v62, 2  ;;  %v5395_v62 = vld [vmem:[%s7791_s1 + $0x4c8] sm:$0xff]  ;;  %v5340_v9 = vld [vmem:[%s7792_s0 + $0x84] sm:$0xf] }
 0x126   :  { %v6720_v32 = vpop.f32.mrf.mxu2  ;;  %v1141_v28 = vpop.f32.mrf.mxu0 }
 0x127   :  { %v1115_v54 = vpop.f32.mrf.mxu3  ;;  %v1170_v36 = vpop.f32.mrf.mxu1  ;;  %v1142_v59 = vadd.f32 %v1141_v28, %v1113_v37  ;;  %v5379_v37 = vld [vmem:[%s7791_s1 + $0x448] sm:$0xff] }
 0x128   :  { %v1116_v26 = vadd.f32 %v1115_v54, %v6508_v40  ;;  %v6741_v40 = vor.u32 %v2026_v22, %v2023_v52  ;;  %v5376_v54 = vld [vmem:[%s7791_s1 + $0x430] sm:$0xff]  ;;  %v5387_v28 = vld [vmem:[%s7791_s1 + $0x488] sm:$0xff]  ;;  %v6757_v52 = vor.u32 %v1999_v38, %v1996_v17  ;;  %2834 = vmatpush.bf16.msra.mxu0 %v5379_v37  ;;  %2892 = vmatpush.bf16.msrb.mxu2 %v5395_v62  ;;  %v5378_v38 = vld [vmem:[%s7791_s1 + $0x440] sm:$0xff] }
 0x129   :  { %v6739_v41 = vadd.f32 %v1170_v36, %v1142_v59  ;;  %v1713_v22 = vld [vmem:[%s7792_s0 + $0xa8] sm:$0x11]  ;;  %2436 = vmatpush.bf16.msra.mxu3 %v5376_v54  ;;  %v4649_v36 = vld [vmem:[%s7792_s0 + $0x94] sm:$0xf0]  ;;  %2863 = vmatpush.bf16.msrb.mxu1 %v5387_v28  ;;  %v2060_v17 = vsel %vm1880_vm3, %v6660_v24, %v2059_v30  ;;  %v5386_v54 = vld [vmem:[%s7791_s1 + $0x480] sm:$0xff]  ;;  %v1851_v24 = vunpack.c.h.b16 %v6652_v43 }
 0x12a   :  { %v2028_v59 = vsel %vm1880_vm3, %v6636_v3, %v6741_v40  ;;  %v5394_v37 = vld [vmem:[%s7791_s1 + $0x4c0] sm:$0xff]  ;;  %v2037_v3 = vsel %vm1880_vm3, %v6647_v1, %v6752_v18  ;;  %v1852_v0 = vunpack.c.l.b16 %v1713_v22  ;;  %v2001_v23 = vsel %vm1880_vm3, %v6662_v45, %v6757_v52 }
 0x12b   :  { %v1853_v27 = vunpack.c.h.b16 %v1713_v22  ;;  %v6792_v25 = vor.u32 %v5340_v9, %v4649_v36  ;;  %v6796_v1 = vpack.c.b16 %v1851_v24, %v1851_v24  ;;  %v5427_v24 = vld [vmem:[%s7791_s1 + $0x5c8] sm:$0xff] }
 0x12c   :  { %2835 = vmatpush.bf16.msra.mxu0 %v5378_v38  ;;  %2893 = vmatpush.bf16.msrb.mxu2 %v5394_v37  ;;  %v6798_v43 = vpack.c.b16 %v1852_v0, %v1852_v0  ;;  %v1693_v0 = vld [vmem:[%s7792_s0 + $0x24] sm:$0xf] }
 0x12d   :  { %2864 = vmatpush.bf16.msrb.mxu1 %v5386_v54  ;;  %v7805_v45 = vshrl.u32 %v6792_v25, 16  ;;  %v7804_v22 = vshll.u32 %v6792_v25, 16 }
 0x12e   :  { %v6768_v42 = vpop.f32.mrf.mxu2  ;;  %v1144_v62 = vpop.f32.mrf.mxu0 }
 0x12f   :  { %v1117_v19 = vpop.f32.mrf.mxu3  ;;  %v1173_v30 = vpop.f32.mrf.mxu1  ;;  %v1145_v48 = vadd.f32 %v1144_v62, %v1116_v26  ;;  %v6800_v26 = vpack.c.b16 %v1853_v27, %v1853_v27  ;;  %v1690_v27 = vld [vmem:[%s7792_s0 + $0x10] sm:$0xe]  ;;  %v2041_v54 = vrot.slane %v7805_v45, 1 }
 0x130   :  { %v1118_v28 = vadd.f32 %v1117_v19, %v6577_v49  ;;  %3472 = vmatpush.bf16.msra.mxu2 %v5427_v24 }
 0x131   :  { %v6794_v49 = vadd.f32 %v1173_v30, %v1145_v48  ;;  %2360 = vmatmul.bf16.gmra.mxu0 %v2028_v59  ;;  %v2072_v37 = vshll.u32 %v6800_v26, 16  ;;  %v1814_v30 = vunpack.c.l.b16 %v1690_v27  ;;  %v4615_v27 = vld [vmem:[%s7792_s0 + $0x38] sm:$0xf] }
 0x132   :  { %2389 = vmatmul.bf16.gmra.mxu1 %v2037_v3  ;;  %v6822_v3 = vunpack.c.l.b16 %v1693_v0  ;;  %v5333_v0 = vld [vmem:[%s7792_s0 + $0x48] sm:$0xf0] }
 0x133   :  { %2413 = vmatmul.bf16.gmra.mxu2 %v2001_v23  ;;  %v2067_v23 = vshll.u32 %v6798_v43, 16  ;;  %v6850_v58 = vor.u32 %v5333_v0, %v4615_v27 }
 0x134   :  { %2336 = vmatmul.bf16.gmra.mxu3 %v2060_v17  ;;  %v2062_v17 = vshll.u32 %v6796_v1, 16 }
 0x135   :  { %v7811_v27 = vshrl.u32 %v6850_v58, 16  ;;  %v7810_v0 = vshll.u32 %v6850_v58, 16 }
 0x136   :  { %v6804_v36 = vpop.f32.mrf.mxu2  ;;  %v1146_v19 = vpop.f32.mrf.mxu0 }
 0x137   :  { %v1120_v9 = vpop.f32.mrf.mxu3  ;;  %v1175_v59 = vpop.f32.mrf.mxu1  ;;  %v1147_v38 = vadd.f32 %v1146_v19, %v1118_v28  ;;  %v5411_v28 = vld [vmem:[%s7791_s1 + $0x548] sm:$0xff]  ;;  %v2069_v19 = vrot.slane %v2067_v23, 2  ;;  %v1859_v23 = vpack.c.b16 %v6822_v3, %v1814_v30  ;;  %v5409_v30 = vld [vmem:[%s7791_s1 + $0x538] sm:$0xff] }
 0x138   :  { %v1121_v48 = vadd.f32 %v1120_v9, %v6623_v46  ;;  %v2044_v46 = vrot.slane %v7804_v22, 2  ;;  %v2064_v9 = vrot.slane %v2062_v17, 2  ;;  %v5419_v22 = vld [vmem:[%s7791_s1 + $0x588] sm:$0xff]  ;;  %2950 = vmatpush.bf16.msrb.mxu0 %v5411_v28 }
 0x139   :  { %v6820_v62 = vadd.f32 %v1175_v59, %v1147_v38  ;;  %v2074_v59 = vrot.slane %v2072_v37, 2  ;;  %3443 = vmatpush.bf16.msra.mxu1 %v5419_v22  ;;  %v2070_v24 = vsel %vm1880_vm3, %v6752_v18, %v2069_v19  ;;  %v6861_v18 = vld [vmem:[%s7792_s0 + $0x8] sm:$0xcc] }
 0x13a   :  { %v2045_v45 = vor.u32 %v2044_v46, %v2041_v54  ;;  %v2065_v37 = vsel %vm1880_vm3, %v6741_v40, %v2064_v9 }
 0x13c   :  { %v2046_v31 = vsel %vm1880_vm3, %v6757_v52, %v2045_v45  ;;  %v2075_v22 = vsel %vm1880_vm3, %v2045_v45, %v2074_v59  ;;  %v1950_v52 = vshrl.u32 %v1859_v23, 16  ;;  %v1953_v45 = vshll.u32 %v1859_v23, 16  ;;  %v5418_v59 = vld [vmem:[%s7791_s1 + $0x580] sm:$0xff]  ;;  %v5408_v23 = vld [vmem:[%s7791_s1 + $0x530] sm:$0xff] }
 0x13d   :  { %3444 = vmatpush.bf16.msra.mxu1 %v5418_v59  ;;  %v1963_v59 = vrot.slane %v7810_v0, 2 }
 0x13e   :  { %v6839_v17 = vpop.f32.mrf.mxu2  ;;  %v1149_v54 = vpop.f32.mrf.mxu0 }
 0x13f   :  { %v1122_v38 = vpop.f32.mrf.mxu3  ;;  %v1178_v46 = vpop.f32.mrf.mxu1  ;;  %v1150_v28 = vadd.f32 %v1149_v54, %v1121_v48  ;;  %v5426_v48 = vld [vmem:[%s7791_s1 + $0x5c0] sm:$0xff] }
 0x140   :  { %v1123_v35 = vadd.f32 %v1122_v38, %v6683_v6  ;;  %v2466_v6 = vld [vmem:[%s7792_s0] sm:$0xcc]  ;;  %v2542_v38 = vunpack.c.l.b16 %v6861_v18  ;;  %3473 = vmatpush.bf16.msra.mxu2 %v5426_v48  ;;  %v1960_v48 = vrot.slane %v7811_v27, 1 }
 0x141   :  { %v6863_v40 = vadd.f32 %v1178_v46, %v1150_v28  ;;  %2365 = vmatmul.bf16.gmra.mxu0 %v2065_v37  ;;  %v2540_v9 = vunpack.c.l.b16 %v2466_v6  ;;  %v2541_v19 = vunpack.c.h.b16 %v2466_v6  ;;  %v1952_v46 = vrot.slane %v1950_v52, 1 }
 0x142   :  { %2394 = vmatmul.bf16.gmra.mxu1 %v2070_v24  ;;  %v1955_v37 = vrot.slane %v1953_v45, 2  ;;  %v6891_v52 = vpack.c.b16 %v6423_v44, %v2542_v38  ;;  %v2552_v38 = vrot.slane %v6386_v61, 2  ;;  %v6908_v0 = vor.u32 %v1963_v59, %v1960_v48  ;;  %v5338_v48 = vld [vmem:[%s7792_s0 + $0x70] sm:$0xf0] }
 0x143   :  { %2418 = vmatmul.bf16.gmra.mxu2 %v2046_v31  ;;  %v6881_v6 = vpack.c.b16 %v6351_v33, %v2540_v9 }
 0x144   :  { %2423 = vmatmul.bf16.vlgmr.msrb.gmra.mxu3 %v2075_v22  ;;  %v1956_v9 = vor.u32 %v1955_v37, %v1952_v46  ;;  %v2558_v46 = vrot.slane %v6473_v51, 2  ;;  %v5406_v37 = vld [vmem:[%s7791_s1 + $0x520] sm:$0xff] }
 0x145   :  { %2915 = vmatpush.bf16.msrb.mxu3 %v5409_v30  ;;  %v6884_v30 = vpack.c.b16 %v6419_v29, %v2541_v19  ;;  %v5417_v19 = vld [vmem:[%s7791_s1 + $0x578] sm:$0xff] }
 0x146   :  { %v6877_v31 = vpop.f32.mrf.mxu2  ;;  %v1151_v28 = vpop.f32.mrf.mxu0  ;;  %3445 = vmatpush.bf16.msra.mxu1 %v5417_v19  ;;  %v1965_v50 = vsel %vm1880_vm3, %v1956_v9, %v6908_v0  ;;  %v5416_v9 = vld [vmem:[%s7791_s1 + $0x570] sm:$0xff] }
 0x147   :  { %v1573_v54 = vpop.f32.mrf.mxu3  ;;  %v1180_v22 = vpop.f32.mrf.mxu1  ;;  %v1152_v56 = vadd.f32 %v1151_v28, %v1123_v35  ;;  %v5425_v35 = vld [vmem:[%s7791_s1 + $0x5b8] sm:$0xff]  ;;  %v2555_v28 = vrot.slane %v6462_v55, 2 }
 0x148   :  { %v1574_v24 = vadd.f32 %v1573_v54, %v6720_v32  ;;  %v5407_v32 = vld [vmem:[%s7791_s1 + $0x528] sm:$0xff]  ;;  %v2551_v54 = vrot.slane %v6881_v6, 2  ;;  %3474 = vmatpush.bf16.msra.mxu2 %v5425_v35 }
 0x149   :  { %2916 = vmatpush.bf16.msrb.mxu3 %v5408_v23  ;;  %v6896_v45 = vadd.f32 %v1180_v22, %v1152_v56  ;;  %v2554_v23 = vrot.slane %v6884_v30, 2  ;;  %v2557_v56 = vrot.slane %v6891_v52, 2  ;;  %v4635_v22 = vld [vmem:[%s7792_s0 + $0x60] sm:$0xf] }
 0x14a   :  { %v2553_v11 = vsel %vm2550_vm4, %v2551_v54, %v2552_v38  ;;  %v6935_v14 = vor.u32 %v5338_v48, %v4635_v22  ;;  %3446 = vmatpush.bf16.msra.mxu1 %v5416_v9 }
 0x14b   :  { %v2556_v13 = vsel %vm2550_vm4, %v2554_v23, %v2555_v28  ;;  %v2559_v19 = vsel %vm2550_vm4, %v2557_v56, %v2558_v46 }
 0x14d   :  { %2917 = vmatpush.bf16.msrb.mxu3 %v5407_v32 }
 0x14e   :  { %v6921_v59 = vpop.f32.mrf.mxu2  ;;  %v1602_v32 = vpop.f32.mrf.mxu0 }
 0x14f   :  { %v1575_v27 = vpop.f32.mrf.mxu3  ;;  %v1631_v35 = vpop.f32.mrf.mxu1  ;;  %v1603_v57 = vadd.f32 %v1602_v32, %v1574_v24  ;;  %v5405_v24 = vld [vmem:[%s7791_s1 + $0x518] sm:$0xff] }
 0x150   :  { %v1576_v12 = vadd.f32 %v1575_v27, %v6768_v42  ;;  %v5424_v27 = vld [vmem:[%s7791_s1 + $0x5b0] sm:$0xff] }
 0x151   :  { %2918 = vmatpush.bf16.msrb.mxu3 %v5406_v37  ;;  %v6937_v42 = vadd.f32 %v1631_v35, %v1603_v57  ;;  %2836 = vmatmul.bf16.vlgmr.msra.gmra.mxu0 %v2553_v11  ;;  %v7819_v57 = vshrl.u32 %v6935_v14, 16  ;;  %v7818_v11 = vshll.u32 %v6935_v14, 16  ;;  %v5423_v35 = vld [vmem:[%s7791_s1 + $0x5a8] sm:$0xff] }
 0x152   :  { %2865 = vmatmul.bf16.vlgmr.msrb.gmra.mxu1 %v2556_v13  ;;  %3475 = vmatpush.bf16.msra.mxu2 %v5424_v27  ;;  %v2568_v27 = vrot.slane %v6573_v20, 2 }
 0x153   :  { %2894 = vmatmul.bf16.vlgmr.msrb.gmra.mxu2 %v2559_v19  ;;  %v2005_v22 = vrot.slane %v7819_v57, 1  ;;  %v2008_v48 = vrot.slane %v7818_v11, 2  ;;  %v5404_v19 = vld [vmem:[%s7791_s1 + $0x510] sm:$0xff] }
 0x154   :  { %4793 = vmatmul.msk.bf16.vlgmr.msra.gmra.mxu3 %vm638_vm1, %v1965_v50 }
 0x155   :  { %2919 = vmatpush.bf16.msrb.mxu3 %v5405_v24  ;;  %v5415_v24 = vld [vmem:[%s7791_s1 + $0x568] sm:$0xff]  ;;  %v6974_v9 = vor.u32 %v2008_v48, %v2005_v22 }
 0x156   :  { %v6951_v13 = vpop.f32.mrf.mxu2  ;;  %v1604_v23 = vpop.f32.mrf.mxu0  ;;  %3476 = vmatpush.bf16.msra.mxu2 %v5423_v35  ;;  %3447 = vmatpush.bf16.msra.mxu1 %v5415_v24 }
 0x157   :  { %v1578_v54 = vpop.f32.mrf.mxu3  ;;  %v1633_v56 = vpop.f32.mrf.mxu1  ;;  %v1605_v37 = vadd.f32 %v1604_v23, %v1576_v12  ;;  %v5410_v12 = vld [vmem:[%s7791_s1 + $0x540] sm:$0xff]  ;;  %v4655_v23 = vld [vmem:[%s7792_s0 + $0x88] sm:$0xf]  ;;  %v2010_v24 = vsel %vm1880_vm3, %v6908_v0, %v6974_v9 }
 0x158   :  { %v1579_v50 = vadd.f32 %v1578_v54, %v6804_v36  ;;  %v2566_v36 = vrot.slane %v6480_v7, 2  ;;  %v2570_v54 = vrot.slane %v6582_v53, 2  ;;  %2951 = vmatpush.bf16.msrb.mxu0 %v5410_v12  ;;  %v5403_v0 = vld [vmem:[%s7791_s1 + $0x508] sm:$0xff] }
 0x159   :  { %v6958_v32 = vadd.f32 %v1633_v56, %v1605_v37  ;;  %2920 = vmatpush.bf16.msrb.mxu3 %v5404_v19  ;;  %v5343_v56 = vld [vmem:[%s7792_s0 + $0x98] sm:$0xf0]  ;;  %v2569_v19 = vsel %vm2550_vm4, %v2555_v28, %v2568_v27  ;;  %v5422_v28 = vld [vmem:[%s7791_s1 + $0x5a0] sm:$0xff] }
 0x15a   :  { %v2567_v35 = vsel %vm2550_vm4, %v2552_v38, %v2566_v36  ;;  %3477 = vmatpush.bf16.msra.mxu2 %v5422_v28 }
 0x15d   :  { %2921 = vmatpush.bf16.msrb.mxu3 %v5403_v0  ;;  %v5421_v0 = vld [vmem:[%s7791_s1 + $0x598] sm:$0xff] }
 0x15e   :  { %v6983_v37 = vpop.f32.mrf.mxu2  ;;  %v1607_v48 = vpop.f32.mrf.mxu0  ;;  %3478 = vmatpush.bf16.msra.mxu2 %v5421_v0 }
 0x15f   :  { %v1580_v11 = vpop.f32.mrf.mxu3  ;;  %v1636_v57 = vpop.f32.mrf.mxu1  ;;  %v1608_v12 = vadd.f32 %v1607_v48, %v1579_v50 }
 0x160   :  { %v1581_v22 = vadd.f32 %v1580_v11, %v6839_v17  ;;  %v2571_v17 = vsel %vm2550_vm4, %v2558_v46, %v2570_v54  ;;  %v7004_v11 = vor.u32 %v5343_v56, %v4655_v23  ;;  %v5414_v46 = vld [vmem:[%s7791_s1 + $0x560] sm:$0xff] }
 0x161   :  { %v7006_v38 = vadd.f32 %v1636_v57, %v1608_v12  ;;  %2841 = vmatmul.bf16.gmra.mxu0 %v2567_v35  ;;  %3448 = vmatpush.bf16.msra.mxu1 %v5414_v46  ;;  %v2578_v46 = vrot.slane %v6680_v4, 2 }
 0x162   :  { %2870 = vmatmul.bf16.gmra.mxu1 %v2569_v19  ;;  %v7823_v57 = vshrl.u32 %v7004_v11, 16  ;;  %v7822_v50 = vshll.u32 %v7004_v11, 16 }
 0x163   :  { %2899 = vmatmul.bf16.gmra.mxu2 %v2571_v17 }
 0x164   :  { %4794 = vmatmul.msk.bf16.gmra.mxu3 %vm638_vm1, %v2010_v24  ;;  %v2050_v17 = vrot.slane %v7823_v57, 1  ;;  %v2053_v39 = vrot.slane %v7822_v50, 2 }
 0x166   :  { %v1660_v56 = vpop.f32.mrf.mxu2  ;;  %v1609_v19 = vpop.f32.mrf.mxu0 }
 0x167   :  { %v1583_v23 = vpop.f32.mrf.mxu3  ;;  %v1661_v35 = vadd.f32 %v1660_v56, %v6937_v42  ;;  %v1638_v12 = vpop.f32.mrf.mxu1  ;;  %v1610_v24 = vadd.f32 %v1609_v19, %v1581_v22  ;;  %v5413_v42 = vld [vmem:[%s7791_s1 + $0x558] sm:$0xff]  ;;  %v2576_v22 = vrot.slane %v6563_v5, 2  ;;  %v1714_v56 = vld [vmem:[%s7792_s0 + $0xb0] sm:$0x1] }
 0x168   :  { %v1584_v48 = vadd.f32 %v1583_v23, %v6877_v31  ;;  %v5402_v31 = vld [vmem:[%s7791_s1 + $0x500] sm:$0xff]  ;;  %v7040_v23 = vor.u32 %v2053_v39, %v2050_v17  ;;  %3449 = vmatpush.bf16.msra.mxu1 %v5413_v42 }
 0x169   :  { %v7027_v15 = vadd.f32 %v1661_v35, %v6594_v34  ;;  %v1639_v28 = vadd.f32 %v1638_v12, %v1610_v24  ;;  %v2580_v34 = vrot.slane %v6689_v47, 2  ;;  %2922 = vmatpush.bf16.msrb.mxu3 %v5402_v31  ;;  %v5420_v12 = vld [vmem:[%s7791_s1 + $0x590] sm:$0xff]  ;;  %v2577_v0 = vsel %vm2550_vm4, %v2566_v36, %v2576_v22 }
 0x16a   :  { %v2579_v31 = vsel %vm2550_vm4, %v2568_v27, %v2578_v46  ;;  %v2055_v57 = vsel %vm1880_vm3, %v6974_v9, %v7040_v23  ;;  %3479 = vmatpush.bf16.msra.mxu2 %v5420_v12  ;;  %v5412_v36 = vld [vmem:[%s7791_s1 + $0x550] sm:$0xff]  ;;  %v5435_v9 = vld [vmem:[%s7791_s1 + $0x608] sm:$0xff] }
 0x16c   :  { %3450 = vmatpush.bf16.msra.mxu1 %v5412_v36 }
 0x16d   :  { %3501 = vmatpush.bf16.msra.mxu3 %v5435_v9 }
 0x16e   :  { %v1662_v19 = vpop.f32.mrf.mxu2  ;;  %v1612_v17 = vpop.f32.mrf.mxu0 }
 0x16f   :  { %v1585_v35 = vpop.f32.mrf.mxu3  ;;  %v1663_v39 = vadd.f32 %v1662_v19, %v6958_v32  ;;  %v1641_v50 = vpop.f32.mrf.mxu1  ;;  %v1613_v42 = vadd.f32 %v1612_v17, %v1584_v48  ;;  %v1854_v32 = vunpack.c.l.b16 %v1714_v56 }
 0x170   :  { %v1586_v24 = vadd.f32 %v1585_v35, %v6921_v59  ;;  %v2581_v59 = vsel %vm2550_vm4, %v2570_v54, %v2580_v34 }
 0x171   :  { %v7069_v35 = vadd.f32 %v1663_v39, %v6634_v63  ;;  %v7071_v27 = vadd.f32 %v1641_v50, %v1613_v42  ;;  %2846 = vmatmul.bf16.gmra.mxu0 %v2577_v0  ;;  %v7077_v54 = vpack.c.b16 %v1854_v32, %v1854_v32  ;;  %v2588_v42 = vrot.slane %v6796_v1, 2 }
 0x172   :  { %2875 = vmatmul.bf16.gmra.mxu1 %v2579_v31  ;;  %v5453_v31 = vld [vmem:[%s7791_s1 + $0x698] sm:$0xff]  ;;  %v2590_v32 = vrot.slane %v6798_v43, 2 }
 0x173   :  { %2904 = vmatmul.bf16.gmra.mxu2 %v2581_v59 }
 0x174   :  { %4795 = vmatmul.msk.bf16.gmra.mxu3 %vm638_vm1, %v2055_v57  ;;  %v2077_v57 = vshll.u32 %v7077_v54, 16  ;;  %3958 = vmatpush.bf16.msrb.mxu2 %v5453_v31  ;;  %v3079_v31 = vshrl.u32 %v6884_v30, 16 }
 0x176   :  { %v1665_v56 = vpop.f32.mrf.mxu2  ;;  %v1614_v19 = vpop.f32.mrf.mxu0  ;;  %v2079_v59 = vrot.slane %v2077_v57, 2  ;;  %v2591_v57 = vsel %vm2550_vm4, %v2580_v34, %v2590_v32  ;;  %v3067_v34 = vshrl.u32 %v6881_v6, 16 }
 0x177   :  { %v1588_v48 = vpop.f32.mrf.mxu3  ;;  %v1666_v50 = vadd.f32 %v1665_v56, %v7006_v38  ;;  %v1643_v12 = vpop.f32.mrf.mxu1  ;;  %v1615_v39 = vadd.f32 %v1614_v19, %v1586_v24  ;;  %v5443_v38 = vld [vmem:[%s7791_s1 + $0x648] sm:$0xff]  ;;  %v2586_v24 = vrot.slane %v6700_v2, 2  ;;  %v2589_v19 = vsel %vm2550_vm4, %v2578_v46, %v2588_v42 }
 0x178   :  { %v1589_v63 = vadd.f32 %v1588_v48, %v6951_v13  ;;  %v5434_v13 = vld [vmem:[%s7791_s1 + $0x600] sm:$0xff]  ;;  %3530 = vmatpush.bf16.msra.mxu0 %v5443_v38 }
 0x179   :  { %v7083_v17 = vadd.f32 %v1666_v50, %v6698_v16  ;;  %v7085_v0 = vadd.f32 %v1643_v12, %v1615_v39  ;;  %v5445_v16 = vld [vmem:[%s7791_s1 + $0x658] sm:$0xff]  ;;  %3502 = vmatpush.bf16.msra.mxu3 %v5434_v13  ;;  %v2587_v1 = vsel %vm2550_vm4, %v2576_v22, %v2586_v24  ;;  %v2468_v12 = vld [vmem:[%s7792_s0 + $0x10] sm:$0xc]  ;;  %v2080_v39 = vsel %vm1880_vm3, %v7040_v23, %v2079_v59 }
 0x17a   :  { %3565 = vmatpush.bf16.msrb.mxu1 %v5445_v16  ;;  %v2543_v22 = vunpack.c.h.b16 %v6861_v18  ;;  %v2544_v46 = vunpack.c.l.b16 %v2468_v12  ;;  %v5452_v23 = vld [vmem:[%s7791_s1 + $0x690] sm:$0xff]  ;;  %v5442_v18 = vld [vmem:[%s7791_s1 + $0x640] sm:$0xff]  ;;  %v3082_v13 = vshll.u32 %v6884_v30, 16  ;;  %v3081_v16 = vrot.slane %v3079_v31, 2 }
 0x17b   :  { %3959 = vmatpush.bf16.msrb.mxu2 %v5452_v23  ;;  %v3074_v59 = vrot.slane %v1890_v8, 2  ;;  %v3069_v30 = vrot.slane %v3067_v34, 2  ;;  %v7830_v12 = vshrl.u32 %v6462_v55, 16  ;;  %v2564_v23 = vrot.slane %v6850_v58, 2 }
 0x17c   :  { %3531 = vmatpush.bf16.msra.mxu0 %v5442_v18  ;;  %v7134_v42 = vpack.c.b16 %v6533_v10, %v2543_v22 }
 0x17e   :  { %v1667_v9 = vpop.f32.mrf.mxu2  ;;  %v1617_v50 = vpop.f32.mrf.mxu0 }
 0x17f   :  { %v1590_v36 = vpop.f32.mrf.mxu3  ;;  %v1668_v56 = vadd.f32 %v1667_v9, %v1639_v28  ;;  %v1646_v2 = vpop.f32.mrf.mxu1  ;;  %v1618_v43 = vadd.f32 %v1617_v50, %v1589_v63  ;;  %v5433_v63 = vld [vmem:[%s7791_s1 + $0x5f8] sm:$0xff]  ;;  %v7829_v50 = vshll.u32 %v6386_v61, 16 }
 0x180   :  { %v1591_v48 = vadd.f32 %v1590_v36, %v6983_v37  ;;  %3503 = vmatpush.bf16.msra.mxu3 %v5433_v63  ;;  %v2561_v63 = vrot.slane %v6590_v21, 2 }
 0x181   :  { %v7114_v37 = vadd.f32 %v1668_v56, %v6739_v41  ;;  %v7116_v28 = vadd.f32 %v1646_v2, %v1618_v43  ;;  %2851 = vmatmul.bf16.gmra.mxu0 %v2587_v1  ;;  %v3070_v41 = vshll.u32 %v6881_v6, 16  ;;  %v7137_v6 = vpack.c.b16 %v6822_v3, %v2544_v46  ;;  %v5441_v46 = vld [vmem:[%s7791_s1 + $0x638] sm:$0xff] }
 0x182   :  { %2880 = vmatmul.bf16.gmra.mxu1 %v2589_v19  ;;  %v3075_v2 = vrot.slane %v7829_v50, 3  ;;  %v3084_v19 = vrot.slane %v3082_v13, 3  ;;  %v3086_v43 = vrot.slane %v7830_v12, 2  ;;  %3532 = vmatpush.bf16.msra.mxu0 %v5441_v46  ;;  %v5440_v12 = vld [vmem:[%s7791_s1 + $0x630] sm:$0xff] }
 0x183   :  { %2909 = vmatmul.bf16.gmra.mxu2 %v2591_v57  ;;  %v3072_v56 = vrot.slane %v3070_v41, 3  ;;  %v2563_v31 = vrot.slane %v7137_v6, 2  ;;  %v2560_v41 = vrot.slane %v7134_v42, 2 }
 0x184   :  { %4796 = vmatmul.msk.bf16.gmra.mxu3 %vm638_vm1, %v2080_v39  ;;  %v7831_v39 = vshll.u32 %v6462_v55, 16  ;;  %v3076_v34 = vor.u32 %v3075_v2, %v3074_v59  ;;  %v3085_v18 = vor.u32 %v3084_v19, %v3081_v16 }
 0x185   :  { %v2565_v59 = vsel %vm2550_vm4, %v2563_v31, %v2564_v23  ;;  %v2562_v16 = vsel %vm2550_vm4, %v2560_v41, %v2561_v63  ;;  %v7833_v31 = vshll.u32 %v6480_v7, 16 }
 0x186   :  { %v1670_v38 = vpop.f32.mrf.mxu2  ;;  %v1619_v36 = vpop.f32.mrf.mxu0  ;;  %v3087_v57 = vrot.slane %v7831_v39, 3  ;;  %3533 = vmatpush.bf16.msra.mxu0 %v5440_v12 }
 0x187   :  { %v2322_v24 = vpop.f32.mrf.mxu3  ;;  %v1671_v32 = vadd.f32 %v1670_v38, %v7071_v27  ;;  %v1648_v9 = vpop.f32.mrf.mxu1  ;;  %v1620_v1 = vadd.f32 %v1619_v36, %v1591_v48  ;;  %v5451_v27 = vld [vmem:[%s7791_s1 + $0x688] sm:$0xff]  ;;  %v5432_v48 = vld [vmem:[%s7791_s1 + $0x5f0] sm:$0xff] }
 0x188   :  { %v3088_v13 = vor.u32 %v3087_v57, %v3086_v43  ;;  %3960 = vmatpush.bf16.msrb.mxu2 %v5451_v27  ;;  %3504 = vmatpush.bf16.msra.mxu3 %v5432_v48  ;;  %v7832_v48 = vshrl.u32 %v6480_v7, 16 }
 0x189   :  { %v7149_v22 = vadd.f32 %v1671_v32, %v6794_v49  ;;  %v7151_v8 = vadd.f32 %v1648_v9, %v1620_v1  ;;  %v3073_v49 = vor.u32 %v3072_v56, %v3069_v30 }
 0x18a   :  { %v3089_v2 = vsel %vm3065_vm5, %v3085_v18, %v3088_v13  ;;  %v3126_v46 = vrot.slane %v7832_v48, 2  ;;  %v7834_v18 = vshrl.u32 %v6573_v20, 16 }
 0x18b   :  { %v3077_v30 = vsel %vm3065_vm5, %v3073_v49, %v3076_v34  ;;  %v3127_v49 = vrot.slane %v7833_v31, 3 }
 0x18e   :  { %v1672_v38 = vpop.f32.mrf.mxu2  ;;  %v2351_v9 = vpop.f32.mrf.mxu0 }
 0x18f   :  { %v2324_v32 = vpop.f32.mrf.mxu3  ;;  %v1673_v36 = vadd.f32 %v1672_v38, %v7085_v0  ;;  %v2380_v50 = vpop.f32.mrf.mxu1  ;;  %v2352_v56 = vadd.f32 %v2351_v9, %v2322_v24  ;;  %v5450_v0 = vld [vmem:[%s7791_s1 + $0x680] sm:$0xff]  ;;  %v5431_v24 = vld [vmem:[%s7791_s1 + $0x5e8] sm:$0xff]  ;;  %v3130_v38 = vrot.slane %v7834_v18, 2 }
 0x190   :  { %3961 = vmatpush.bf16.msrb.mxu2 %v5450_v0  ;;  %3505 = vmatpush.bf16.msra.mxu3 %v5431_v24 }
 0x191   :  { %v7174_v1 = vadd.f32 %v1673_v36, %v6820_v62  ;;  %v2381_v19 = vadd.f32 %v2380_v50, %v2352_v56  ;;  %4933 = vmatmul.msk.bf16.vlgmr.msrb.gmra.mxu0 %vm638_vm1, %v2565_v59  ;;  %v7835_v36 = vshll.u32 %v6573_v20, 16  ;;  %v2574_v56 = vrot.slane %v6935_v14, 2 }
 0x192   :  { %3451 = vmatmul.bf16.vlgmr.msra.gmra.mxu1 %v3077_v30  ;;  %v5430_v30 = vld [vmem:[%s7791_s1 + $0x5e0] sm:$0xff] }
 0x193   :  { %3480 = vmatmul.bf16.vlgmr.msra.gmra.mxu2 %v3089_v2  ;;  %v3131_v9 = vrot.slane %v7835_v36, 3  ;;  %v2572_v2 = vrot.slane %v6696_v60, 2  ;;  %v7836_v36 = vshrl.u32 %v6563_v5, 16 }
 0x194   :  { %2923 = vmatmul.bf16.vlgmr.msrb.gmra.mxu3 %v2562_v16  ;;  %v7210_v16 = vor.u32 %v3127_v49, %v3126_v46 }
 0x195   :  { %v7216_v0 = vor.u32 %v3131_v9, %v3130_v38  ;;  %3506 = vmatpush.bf16.msra.mxu3 %v5430_v30  ;;  %v2573_v31 = vsel %vm2550_vm4, %v2561_v63, %v2572_v2  ;;  %v3146_v9 = vrot.slane %v7836_v36, 2  ;;  %v5446_v36 = vld [vmem:[%s7791_s1 + $0x660] sm:$0xff] }
 0x196   :  { %v1675_v62 = vpop.f32.mrf.mxu2  ;;  %v2353_v57 = vpop.f32.mrf.mxu0  ;;  %v3129_v48 = vsel %vm3065_vm5, %v3076_v34, %v7210_v16  ;;  %v5429_v34 = vld [vmem:[%s7791_s1 + $0x5d8] sm:$0xff] }
 0x197   :  { %v2327_v43 = vpop.f32.mrf.mxu3  ;;  %v1676_v39 = vadd.f32 %v1675_v62, %v7116_v28  ;;  %v2382_v27 = vpop.f32.mrf.mxu1  ;;  %v2354_v41 = vadd.f32 %v2353_v57, %v2324_v32  ;;  %v5449_v28 = vld [vmem:[%s7791_s1 + $0x678] sm:$0xff]  ;;  %v5439_v32 = vld [vmem:[%s7791_s1 + $0x628] sm:$0xff]  ;;  %v3133_v49 = vsel %vm3065_vm5, %v3088_v13, %v7216_v0 }
 0x198   :  { %3962 = vmatpush.bf16.msrb.mxu2 %v5449_v28  ;;  %3534 = vmatpush.bf16.msra.mxu0 %v5439_v32  ;;  %v7837_v28 = vshll.u32 %v6563_v5, 16 }
 0x199   :  { %v7196_v50 = vadd.f32 %v1676_v39, %v6863_v40  ;;  %v7198_v59 = vadd.f32 %v2382_v27, %v2354_v41  ;;  %v5444_v40 = vld [vmem:[%s7791_s1 + $0x650] sm:$0xff]  ;;  %v2575_v27 = vsel %vm2550_vm4, %v2564_v23, %v2574_v56  ;;  %3507 = vmatpush.bf16.msra.mxu3 %v5429_v34 }
 0x19a   :  { %3566 = vmatpush.bf16.msrb.mxu1 %v5444_v40  ;;  %v5448_v23 = vld [vmem:[%s7791_s1 + $0x670] sm:$0xff]  ;;  %v3147_v30 = vrot.slane %v7837_v28, 3  ;;  %v7838_v40 = vshrl.u32 %v6680_v4, 16 }
 0x19c   :  { %3963 = vmatpush.bf16.msrb.mxu2 %v5448_v23  ;;  %v2582_v23 = vrot.slane %v6792_v25, 2 }
 0x19e   :  { %v1677_v24 = vpop.f32.mrf.mxu2  ;;  %v2356_v39 = vpop.f32.mrf.mxu0 }
 0x19f   :  { %v2329_v12 = vpop.f32.mrf.mxu3  ;;  %v1678_v62 = vadd.f32 %v1677_v24, %v7151_v8  ;;  %v2385_v57 = vpop.f32.mrf.mxu1  ;;  %v2357_v46 = vadd.f32 %v2356_v39, %v2327_v43  ;;  %v3150_v24 = vrot.slane %v7838_v40, 2 }
 0x1a1   :  { %v7232_v8 = vadd.f32 %v1678_v62, %v6896_v45  ;;  %v7234_v41 = vadd.f32 %v2385_v57, %v2357_v46  ;;  %4934 = vmatmul.msk.bf16.gmra.mxu0 %vm638_vm1, %v2575_v27  ;;  %v5438_v45 = vld [vmem:[%s7791_s1 + $0x620] sm:$0xff]  ;;  %v7839_v62 = vshll.u32 %v6680_v4, 16  ;;  %v5447_v27 = vld [vmem:[%s7791_s1 + $0x668] sm:$0xff]  ;;  %v2584_v46 = vrot.slane %v7004_v11, 2 }
 0x1a2   :  { %3456 = vmatmul.bf16.gmra.mxu1 %v3129_v48  ;;  %3535 = vmatpush.bf16.msra.mxu0 %v5438_v45  ;;  %v5437_v48 = vld [vmem:[%s7791_s1 + $0x618] sm:$0xff] }
 0x1a3   :  { %3485 = vmatmul.bf16.gmra.mxu2 %v3133_v49  ;;  %v3151_v39 = vrot.slane %v7839_v62, 3 }
 0x1a4   :  { %2928 = vmatmul.bf16.gmra.mxu3 %v2573_v31  ;;  %v7271_v31 = vor.u32 %v3147_v30, %v3146_v9  ;;  %3964 = vmatpush.bf16.msrb.mxu2 %v5447_v27 }
 0x1a5   :  { %v7274_v34 = vor.u32 %v3151_v39, %v3150_v24 }
 0x1a6   :  { %v2409_v13 = vpop.f32.mrf.mxu2  ;;  %v2358_v18 = vpop.f32.mrf.mxu0  ;;  %3536 = vmatpush.bf16.msra.mxu0 %v5437_v48  ;;  %v3149_v40 = vsel %vm3065_vm5, %v7210_v16, %v7271_v31 }
 0x1a7   :  { %v2332_v63 = vpop.f32.mrf.mxu3  ;;  %v7246_v43 = vadd.f32 %v2409_v13, %v2381_v19  ;;  %v2387_v38 = vpop.f32.mrf.mxu1  ;;  %v2359_v32 = vadd.f32 %v2358_v18, %v2329_v12  ;;  %v2981_v19 = vld [vmem:[%s7792_s0 + $0xa0] sm:$0x33]  ;;  %v5428_v12 = vld [vmem:[%s7791_s1 + $0x5d0] sm:$0xff]  ;;  %v3153_v39 = vsel %vm3065_vm5, %v7216_v0, %v7274_v34 }
 0x1a8   :  { %v3055_v49 = vunpack.c.l.b16 %v2981_v19  ;;  %v3056_v45 = vunpack.c.h.b16 %v2981_v19  ;;  %3508 = vmatpush.bf16.msra.mxu3 %v5428_v12  ;;  %3965 = vmatpush.bf16.msrb.mxu2 %v5446_v36 }
 0x1a9   :  { %v7259_v57 = vadd.f32 %v2387_v38, %v2359_v32  ;;  %v5436_v38 = vld [vmem:[%s7791_s1 + $0x610] sm:$0xff]  ;;  %v2585_v32 = vsel %vm2550_vm4, %v2574_v56, %v2584_v46 }
 0x1aa   :  { %v7293_v24 = vpack.c.b16 %v3055_v49, %v3055_v49  ;;  %v7303_v19 = vpack.c.b16 %v3056_v45, %v3056_v45  ;;  %3537 = vmatpush.bf16.msra.mxu0 %v5436_v38 }
 0x1ac   :  { %7840 = vst [vmem:[#allocation4_spill] sm:$0xff] %v7303_v19  ;;  %v3167_v16 = vshrl.u32 %v7293_v24, 16  ;;  %v3176_v0 = vshrl.u32 %v7303_v19, 16  ;;  %v3179_v27 = vshll.u32 %v7303_v19, 16  ;;  %v7846_v19 = vshll.u32 %v6473_v51, 16 }
 0x1ae   :  { %v2411_v18 = vpop.f32.mrf.mxu2  ;;  %v2361_v28 = vpop.f32.mrf.mxu0  ;;  %v3169_v38 = vrot.slane %v3167_v16, 2 }
 0x1af   :  { %v2334_v13 = vpop.f32.mrf.mxu3  ;;  %v7283_v9 = vadd.f32 %v2411_v18, %v7198_v59  ;;  %v2390_v30 = vpop.f32.mrf.mxu1  ;;  %v2362_v62 = vadd.f32 %v2361_v28, %v2332_v63  ;;  %v2583_v59 = vsel %vm2550_vm4, %v2572_v2, %v2582_v23  ;;  %v3170_v63 = vshll.u32 %v7293_v24, 16  ;;  %v5461_v2 = vld [vmem:[%s7791_s1 + $0x6d8] sm:$0xff] }
 0x1b0   :  { %3987 = vmatpush.bf16.msrb.mxu3 %v5461_v2 }
 0x1b1   :  { %v7305_v56 = vadd.f32 %v2390_v30, %v2362_v62  ;;  %4935 = vmatmul.msk.bf16.gmra.mxu0 %vm638_vm1, %v2585_v32  ;;  %v3172_v36 = vrot.slane %v3170_v63, 3  ;;  %v3178_v30 = vrot.slane %v3176_v0, 2  ;;  %v3181_v32 = vrot.slane %v3179_v27, 3  ;;  %v5460_v62 = vld [vmem:[%s7791_s1 + $0x6d0] sm:$0xff] }
 0x1b2   :  { %3461 = vmatmul.bf16.gmra.mxu1 %v3149_v40  ;;  %v5479_v40 = vld [vmem:[%s7791_s1 + $0x768] sm:$0xff]  ;;  %v2592_v63 = vrot.slane %v6800_v26, 2 }
 0x1b3   :  { %3490 = vmatmul.bf16.gmra.mxu2 %v3153_v39  ;;  %v2594_v39 = vrot.slane %v7077_v54, 2  ;;  %v3173_v16 = vor.u32 %v3172_v36, %v3169_v38  ;;  %v3182_v2 = vor.u32 %v3181_v32, %v3178_v30  ;;  %v3094_v30 = vshll.u32 %v6891_v52, 16 }
 0x1b4   :  { %2933 = vmatmul.bf16.gmra.mxu3 %v2583_v59  ;;  %4080 = vmatpush.bf16.msra.mxu2 %v5479_v40  ;;  %v2593_v26 = vsel %vm2550_vm4, %v2582_v23, %v2592_v63  ;;  %v3103_v32 = vshrl.u32 %v7134_v42, 16  ;;  %v3106_v40 = vshll.u32 %v7134_v42, 16  ;;  %v3115_v23 = vshrl.u32 %v7137_v6, 16  ;;  %v5468_v42 = vld [vmem:[%s7791_s1 + $0x710] sm:$0xff] }
 0x1b5   :  { %3988 = vmatpush.bf16.msrb.mxu3 %v5460_v62  ;;  %v3174_v54 = vsel %vm3065_vm5, %v7271_v31, %v3173_v16  ;;  %v3183_v36 = vsel %vm3065_vm5, %v7274_v34, %v3182_v2  ;;  %v3118_v34 = vshll.u32 %v7137_v6, 16  ;;  %v7841_v2 = vshrl.u32 %v6590_v21, 16 }
 0x1b6   :  { %v2414_v48 = vpop.f32.mrf.mxu2  ;;  %v2363_v45 = vpop.f32.mrf.mxu0  ;;  %v3108_v16 = vrot.slane %v3106_v40, 3  ;;  %v3117_v40 = vrot.slane %v3115_v23, 2 }
 0x1b7   :  { %v2337_v12 = vpop.f32.mrf.mxu3  ;;  %v7316_v49 = vadd.f32 %v2414_v48, %v7234_v41  ;;  %v2392_v18 = vpop.f32.mrf.mxu1  ;;  %v2364_v28 = vadd.f32 %v2363_v45, %v2334_v13  ;;  %v5469_v41 = vld [vmem:[%s7791_s1 + $0x718] sm:$0xff] }
 0x1b8   :  { %v5477_v13 = vld [vmem:[%s7791_s1 + $0x758] sm:$0xff]  ;;  %4016 = vmatpush.bf16.msrb.mxu0 %v5469_v41 }
 0x1b9   :  { %v7327_v59 = vadd.f32 %v2392_v18, %v2364_v28  ;;  %4045 = vmatpush.bf16.msra.mxu1 %v5477_v13  ;;  %v2595_v28 = vsel %vm2550_vm4, %v2584_v46, %v2594_v39  ;;  %v7354_v46 = vld [vmem:[%s7792_s0] sm:$0x88]  ;;  %v3096_v13 = vrot.slane %v3094_v30, 3  ;;  %v3105_v39 = vrot.slane %v3103_v32, 2 }
 0x1ba   :  { %v3670_v62 = vunpack.c.l.b16 %v7354_v46 }
 0x1bc   :  { %4017 = vmatpush.bf16.msrb.mxu0 %v5468_v42  ;;  %v3675_v4 = vpack.c.b16 %v6351_v33, %v3670_v62 }
 0x1be   :  { %v2416_v27 = vpop.f32.mrf.mxu2  ;;  %v2366_v45 = vpop.f32.mrf.mxu0 }
 0x1bf   :  { %v2339_v0 = vpop.f32.mrf.mxu3  ;;  %v7335_v48 = vadd.f32 %v2416_v27, %v7259_v57  ;;  %v2395_v18 = vpop.f32.mrf.mxu1  ;;  %v2367_v38 = vadd.f32 %v2366_v45, %v2337_v12  ;;  %v3091_v57 = vshrl.u32 %v6891_v52, 16  ;;  %v5459_v52 = vld [vmem:[%s7791_s1 + $0x6c8] sm:$0xff]  ;;  %v5476_v12 = vld [vmem:[%s7791_s1 + $0x750] sm:$0xff]  ;;  %v3110_v27 = vrot.slane %v7841_v2, 2 }
 0x1c0   :  { %3989 = vmatpush.bf16.msrb.mxu3 %v5459_v52  ;;  %v7842_v45 = vshll.u32 %v6590_v21, 16  ;;  %4046 = vmatpush.bf16.msra.mxu1 %v5476_v12  ;;  %v3120_v52 = vrot.slane %v3118_v34, 3  ;;  %v7845_v2 = vshrl.u32 %v6473_v51, 16  ;;  %v3109_v34 = vor.u32 %v3108_v16, %v3105_v39 }
 0x1c1   :  { %v2396_v31 = vadd.f32 %v2395_v18, %v2367_v38  ;;  %4936 = vmatmul.msk.bf16.gmra.mxu0 %vm638_vm1, %v2595_v28  ;;  %v3093_v41 = vrot.slane %v3091_v57, 2  ;;  %v7843_v28 = vshrl.u32 %v6850_v58, 16  ;;  %v7844_v38 = vshll.u32 %v6850_v58, 16 }
 0x1c2   :  { %3466 = vmatmul.bf16.gmra.mxu1 %v3174_v54  ;;  %v3111_v18 = vrot.slane %v7842_v45, 3  ;;  %v3098_v45 = vrot.slane %v7845_v2, 2 }
 0x1c3   :  { %3495 = vmatmul.bf16.gmra.mxu2 %v3183_v36  ;;  %v3122_v54 = vrot.slane %v7843_v28, 2  ;;  %v3099_v28 = vrot.slane %v7846_v19, 3  ;;  %v3097_v33 = vor.u32 %v3096_v13, %v3093_v41 }
 0x1c4   :  { %2938 = vmatmul.bf16.gmra.mxu3 %v2593_v26  ;;  %v3123_v26 = vrot.slane %v7844_v38, 3  ;;  %v7396_v12 = vor.u32 %v3111_v18, %v3110_v27  ;;  %v3682_v38 = vrot.slane %v6386_v61, 3 }
 0x1c5   :  { %v3100_v62 = vor.u32 %v3099_v28, %v3098_v45  ;;  %v7848_v45 = vshll.u32 %v6696_v60, 16 }
 0x1c6   :  { %v2419_v6 = vpop.f32.mrf.mxu2  ;;  %v2368_v30 = vpop.f32.mrf.mxu0  ;;  %v7398_v19 = vor.u32 %v3123_v26, %v3122_v54  ;;  %v3113_v18 = vsel %vm3065_vm5, %v3109_v34, %v7396_v12  ;;  %v5466_v54 = vld [vmem:[%s7791_s1 + $0x700] sm:$0xff]  ;;  %v7849_v34 = vshrl.u32 %v6935_v14, 16 }
 0x1c7   :  { %v2424_v63 = vpop.f32.mrf.mxu3  ;;  %v7378_v36 = vadd.f32 %v2419_v6, %v7305_v56  ;;  %v2397_v32 = vpop.f32.mrf.mxu1  ;;  %v2369_v42 = vadd.f32 %v2368_v30, %v2339_v0  ;;  %v5458_v56 = vld [vmem:[%s7791_s1 + $0x6c0] sm:$0xff]  ;;  %v5475_v0 = vld [vmem:[%s7791_s1 + $0x748] sm:$0xff]  ;;  %v3121_v6 = vor.u32 %v3120_v52, %v3117_v40  ;;  %v3101_v61 = vsel %vm3065_vm5, %v3097_v33, %v3100_v62 }
 0x1c8   :  { %v7380_v57 = vadd.f32 %v2424_v63, %v2396_v31  ;;  %v5467_v31 = vld [vmem:[%s7791_s1 + $0x708] sm:$0xff]  ;;  %3990 = vmatpush.bf16.msrb.mxu3 %v5458_v56  ;;  %v3681_v63 = vrot.slane %v3675_v4, 3  ;;  %4047 = vmatpush.bf16.msra.mxu1 %v5475_v0  ;;  %v5474_v26 = vld [vmem:[%s7791_s1 + $0x740] sm:$0xff]  ;;  %v7847_v52 = vshrl.u32 %v6696_v60, 16  ;;  %v3139_v28 = vrot.slane %v7848_v45, 3 }
 0x1c9   :  { %v2398_v23 = vadd.f32 %v2397_v32, %v2369_v42  ;;  %4018 = vmatpush.bf16.msrb.mxu0 %v5467_v31  ;;  %v3125_v41 = vsel %vm3065_vm5, %v3121_v6, %v7398_v19  ;;  %v3142_v6 = vrot.slane %v7849_v34, 2  ;;  %v7850_v33 = vshll.u32 %v6935_v14, 16 }
 0x1ca   :  { %v3683_v13 = vsel %vm3680_vm6, %v3681_v63, %v3682_v38  ;;  %v3138_v42 = vrot.slane %v7847_v52, 2 }
 0x1cb   :  { %v3143_v63 = vrot.slane %v7850_v33, 3  ;;  %v7853_v33 = vshrl.u32 %v6792_v25, 16 }
 0x1cc   :  { %4048 = vmatpush.bf16.msra.mxu1 %v5474_v26  ;;  %v3696_v26 = vrot.slane %v6480_v7, 3 }
 0x1cd   :  { %4019 = vmatpush.bf16.msrb.mxu0 %v5466_v54  ;;  %v7452_v54 = vor.u32 %v3143_v63, %v3142_v6  ;;  %v3158_v63 = vrot.slane %v7853_v33, 2  ;;  %v3706_v33 = vrot.slane %v6563_v5, 3 }
 0x1ce   :  { %v2421_v30 = vpop.f32.mrf.mxu2  ;;  %v2837_v16 = vpop.f32.mrf.mxu0  ;;  %v3697_v6 = vsel %vm3680_vm6, %v3682_v38, %v3696_v26 }
 0x1cf   :  { %v2426_v2 = vpop.f32.mrf.mxu3  ;;  %v7402_v20 = vadd.f32 %v2421_v30, %v7327_v59  ;;  %v2866_v27 = vpop.f32.mrf.mxu1  ;;  %v5457_v59 = vld [vmem:[%s7791_s1 + $0x6b8] sm:$0xff] }
 0x1d0   :  { %v7404_v39 = vadd.f32 %v2426_v2, %v2398_v23  ;;  %v2867_v4 = vadd.f32 %v2866_v27, %v2837_v16  ;;  %3991 = vmatpush.bf16.msrb.mxu3 %v5457_v59  ;;  %v7851_v2 = vshrl.u32 %v6582_v53, 16  ;;  %v7852_v27 = vshll.u32 %v6582_v53, 16 }
 0x1d1   :  { %3538 = vmatmul.bf16.vlgmr.msra.gmra.mxu0 %v3113_v18  ;;  %v3140_v59 = vor.u32 %v3139_v28, %v3138_v42  ;;  %v3145_v28 = vsel %vm3065_vm5, %v7398_v19, %v7452_v54  ;;  %v5464_v19 = vld [vmem:[%s7791_s1 + $0x6f0] sm:$0xff] }
 0x1d2   :  { %5073 = vmatmul.msk.bf16.vlgmr.msrb.gmra.mxu1 %vm638_vm1, %v3125_v41  ;;  %v3134_v16 = vrot.slane %v7851_v2, 2  ;;  %v3135_v18 = vrot.slane %v7852_v27, 3 }
 0x1d3   :  { %3966 = vmatmul.bf16.vlgmr.msrb.gmra.mxu2 %v3683_v13  ;;  %v5473_v13 = vld [vmem:[%s7791_s1 + $0x738] sm:$0xff]  ;;  %v3141_v42 = vsel %vm3065_vm5, %v7396_v12, %v3140_v59  ;;  %v5455_v12 = vld [vmem:[%s7791_s1 + $0x6a8] sm:$0xff] }
 0x1d4   :  { %3509 = vmatmul.bf16.vlgmr.msra.gmra.mxu3 %v3101_v61  ;;  %v5465_v61 = vld [vmem:[%s7791_s1 + $0x6f8] sm:$0xff]  ;;  %4049 = vmatpush.bf16.msra.mxu1 %v5473_v13  ;;  %v7856_v13 = vshll.u32 %v7004_v11, 16 }
 0x1d5   :  { %4020 = vmatpush.bf16.msrb.mxu0 %v5465_v61 }
 0x1d6   :  { %v2895_v40 = vpop.f32.mrf.mxu2  ;;  %v2839_v0 = vpop.f32.mrf.mxu0 }
 0x1d7   :  { %v2438_v32 = vpop.f32.mrf.mxu3  ;;  %v7427_v31 = vadd.f32 %v2895_v40, %v2867_v4  ;;  %v2868_v23 = vpop.f32.mrf.mxu1  ;;  %v5456_v4 = vld [vmem:[%s7791_s1 + $0x6b0] sm:$0xff] }
 0x1d8   :  { %v2439_v56 = vadd.f32 %v2438_v32, %v7246_v43  ;;  %v2869_v30 = vadd.f32 %v2868_v23, %v2839_v0  ;;  %v5478_v43 = vld [vmem:[%s7791_s1 + $0x760] sm:$0xff]  ;;  %3992 = vmatpush.bf16.msrb.mxu3 %v5456_v4  ;;  %v7855_v4 = vshrl.u32 %v7004_v11, 16 }
 0x1d9   :  { %4081 = vmatpush.bf16.msra.mxu2 %v5478_v43  ;;  %4021 = vmatpush.bf16.msrb.mxu0 %v5464_v19 }
 0x1da   :  { %v7438_v41 = vadd.f32 %v2439_v56, %v7027_v15  ;;  %v7454_v15 = vor.u32 %v3135_v18, %v3134_v16  ;;  %v3162_v61 = vrot.slane %v7855_v4, 2 }
 0x1dc   :  { %v3137_v34 = vsel %vm3065_vm5, %v3100_v62, %v7454_v15  ;;  %v5472_v62 = vld [vmem:[%s7791_s1 + $0x730] sm:$0xff]  ;;  %3993 = vmatpush.bf16.msrb.mxu3 %v5455_v12  ;;  %v5471_v12 = vld [vmem:[%s7791_s1 + $0x728] sm:$0xff] }
 0x1dd   :  { %4050 = vmatpush.bf16.msra.mxu1 %v5472_v62 }
 0x1de   :  { %v2897_v40 = vpop.f32.mrf.mxu2  ;;  %v2842_v56 = vpop.f32.mrf.mxu0 }
 0x1df   :  { %v2440_v32 = vpop.f32.mrf.mxu3  ;;  %v7458_v45 = vadd.f32 %v2897_v40, %v2869_v30  ;;  %v2871_v0 = vpop.f32.mrf.mxu1  ;;  %v7854_v30 = vshll.u32 %v6792_v25, 16  ;;  %v2982_v40 = vld [vmem:[%s7792_s0 + $0xa8] sm:$0x33] }
 0x1e0   :  { %v2441_v52 = vadd.f32 %v2440_v32, %v7283_v9  ;;  %v2872_v23 = vadd.f32 %v2871_v0, %v2842_v56  ;;  %v3163_v32 = vrot.slane %v7856_v13, 3  ;;  %v7857_v56 = vshrl.u32 %v6689_v47, 16 }
 0x1e1   :  { %3543 = vmatmul.bf16.gmra.mxu0 %v3141_v42  ;;  %v3159_v2 = vrot.slane %v7854_v30, 3  ;;  %v3058_v62 = vunpack.c.h.b16 %v2982_v40  ;;  %v3057_v30 = vunpack.c.l.b16 %v2982_v40  ;;  %4051 = vmatpush.bf16.msra.mxu1 %v5471_v12 }
 0x1e2   :  { %v7471_v9 = vadd.f32 %v2441_v52, %v7069_v35  ;;  %5074 = vmatmul.msk.bf16.gmra.mxu1 %vm638_vm1, %v3145_v28  ;;  %v3154_v0 = vrot.slane %v7857_v56, 2  ;;  %v2983_v28 = vld [vmem:[%s7792_s0 + $0xb0] sm:$0x3] }
 0x1e3   :  { %3971 = vmatmul.bf16.gmra.mxu2 %v3697_v6  ;;  %v5463_v6 = vld [vmem:[%s7791_s1 + $0x6e8] sm:$0xff]  ;;  %v7516_v19 = vor.u32 %v3159_v2, %v3158_v63  ;;  %v7523_v4 = vpack.c.b16 %v3058_v62, %v3058_v62  ;;  %v5462_v63 = vld [vmem:[%s7791_s1 + $0x6e0] sm:$0xff] }
 0x1e4   :  { %3514 = vmatmul.bf16.gmra.mxu3 %v3137_v34  ;;  %v5454_v34 = vld [vmem:[%s7791_s1 + $0x6a0] sm:$0xff]  ;;  %4022 = vmatpush.bf16.msrb.mxu0 %v5463_v6 }
 0x1e5   :  { %3994 = vmatpush.bf16.msrb.mxu3 %v5454_v34 }
 0x1e6   :  { %v2900_v38 = vpop.f32.mrf.mxu2  ;;  %v2844_v18 = vpop.f32.mrf.mxu0 }
 0x1e7   :  { %v2443_v35 = vpop.f32.mrf.mxu3  ;;  %v7488_v27 = vadd.f32 %v2900_v38, %v2872_v23  ;;  %v2873_v43 = vpop.f32.mrf.mxu1  ;;  %v3059_v38 = vunpack.c.l.b16 %v2983_v28 }
 0x1e8   :  { %v2444_v16 = vadd.f32 %v2443_v35, %v7316_v49  ;;  %v2874_v52 = vadd.f32 %v2873_v43, %v2844_v18  ;;  %v7858_v49 = vshll.u32 %v6689_v47, 16  ;;  %v7518_v35 = vor.u32 %v3163_v32, %v3162_v61  ;;  %4023 = vmatpush.bf16.msrb.mxu0 %v5462_v63 }
 0x1e9   :  { %v3161_v43 = vsel %vm3065_vm5, %v3140_v59, %v7516_v19  ;;  %v7534_v40 = vpack.c.b16 %v3059_v38, %v3059_v38 }
 0x1ea   :  { %v3155_v42 = vrot.slane %v7858_v49, 3  ;;  %v7505_v23 = vadd.f32 %v2444_v16, %v7083_v17  ;;  %v3165_v5 = vsel %vm3065_vm5, %v7452_v54, %v7518_v35  ;;  %v7541_v49 = vpack.c.b16 %v3057_v30, %v3057_v30 }
 0x1eb   :  { %v3194_v54 = vshrl.u32 %v7523_v4, 16  ;;  %v3203_v7 = vshrl.u32 %v7534_v40, 16 }
 0x1ec   :  { %v3156_v17 = vor.u32 %v3155_v42, %v3154_v0  ;;  %v3707_v0 = vsel %vm3680_vm6, %v3696_v26, %v3706_v33  ;;  %v3206_v26 = vshll.u32 %v7534_v40, 16  ;;  %v3185_v42 = vshrl.u32 %v7541_v49, 16 }
 0x1ed   :  { %v3188_v28 = vshll.u32 %v7541_v49, 16  ;;  %v3196_v6 = vrot.slane %v3194_v54, 2 }
 0x1ee   :  { %v2902_v18 = vpop.f32.mrf.mxu2  ;;  %v2847_v13 = vpop.f32.mrf.mxu0  ;;  %v3157_v59 = vsel %vm3065_vm5, %v7454_v15, %v3156_v17  ;;  %v3197_v15 = vshll.u32 %v7523_v4, 16 }
 0x1ef   :  { %v2445_v16 = vpop.f32.mrf.mxu3  ;;  %v7529_v61 = vadd.f32 %v2902_v18, %v2874_v52  ;;  %v2876_v32 = vpop.f32.mrf.mxu1  ;;  %v3205_v18 = vrot.slane %v3203_v7, 2 }
 0x1f0   :  { %v2446_v2 = vadd.f32 %v2445_v16, %v7335_v48  ;;  %v2877_v56 = vadd.f32 %v2876_v32, %v2847_v13  ;;  %v5470_v48 = vld [vmem:[%s7791_s1 + $0x720] sm:$0xff]  ;;  %v3199_v12 = vrot.slane %v3197_v15, 3  ;;  %v3190_v13 = vrot.slane %v3188_v28, 3 }
 0x1f1   :  { %3548 = vmatmul.bf16.gmra.mxu0 %v3161_v43  ;;  %4052 = vmatpush.bf16.msra.mxu1 %v5470_v48  ;;  %v3208_v43 = vrot.slane %v3206_v26, 3  ;;  %v3716_v48 = vrot.slane %v7293_v24, 3  ;;  %v3597_v24 = vld [vmem:[%s7792_s0 + $0x8] sm:$0x88] }
 0x1f2   :  { %v7547_v52 = vadd.f32 %v2446_v2, %v7114_v37  ;;  %5075 = vmatmul.msk.bf16.gmra.mxu1 %vm638_vm1, %v3165_v5  ;;  %v3187_v2 = vrot.slane %v3185_v42, 2  ;;  %v3200_v5 = vor.u32 %v3199_v12, %v3196_v6  ;;  %v3598_v6 = vld [vmem:[%s7792_s0 + $0x10] sm:$0x8] }
 0x1f3   :  { %3976 = vmatmul.bf16.gmra.mxu2 %v3707_v0 }
 0x1f4   :  { %3519 = vmatmul.bf16.gmra.mxu3 %v3157_v59  ;;  %v3209_v59 = vor.u32 %v3208_v43, %v3205_v18  ;;  %v3191_v0 = vor.u32 %v3190_v13, %v3187_v2  ;;  %v3201_v26 = vsel %vm3065_vm5, %v7516_v19, %v3200_v5  ;;  %v3672_v19 = vunpack.c.l.b16 %v3597_v24 }
 0x1f6   :  { %v2905_v34 = vpop.f32.mrf.mxu2  ;;  %v2849_v30 = vpop.f32.mrf.mxu0  ;;  %v3192_v28 = vsel %vm3065_vm5, %v3156_v17, %v3191_v0  ;;  %v3671_v17 = vunpack.c.h.b16 %v7354_v46  ;;  %v3677_v43 = vpack.c.b16 %v6423_v44, %v3672_v19  ;;  %v3688_v0 = vrot.slane %v6473_v51, 3 }
 0x1f7   :  { %v2448_v37 = vpop.f32.mrf.mxu3  ;;  %v7557_v38 = vadd.f32 %v2905_v34, %v2877_v56  ;;  %v2878_v16 = vpop.f32.mrf.mxu1  ;;  %v3717_v34 = vsel %vm3680_vm6, %v3706_v33, %v3716_v48  ;;  %v3674_v33 = vunpack.c.l.b16 %v3598_v6  ;;  %v3691_v48 = vrot.slane %v6590_v21, 3 }
 0x1f8   :  { %v2449_v62 = vadd.f32 %v2448_v37, %v7378_v36  ;;  %v2879_v63 = vadd.f32 %v2878_v16, %v2849_v30  ;;  %v3676_v13 = vpack.c.b16 %v6419_v29, %v3671_v17  ;;  %v7859_v17 = vld [vmem:[#allocation2_spill] sm:$0xff] }
 0x1f9   :  { %v3679_v5 = vpack.c.b16 %v6822_v3, %v3674_v33  ;;  %v3698_v33 = vrot.slane %v7859_v17, 3 }
 0x1fa   :  { %v7560_v32 = vadd.f32 %v2449_v62, %v7149_v22  ;;  %v3210_v22 = vsel %vm3065_vm5, %v7518_v35, %v3209_v59  ;;  %v3673_v35 = vunpack.c.h.b16 %v3597_v24  ;;  %v3687_v59 = vrot.slane %v3677_v43, 3 }
 0x1fb   :  { %v3693_v44 = vrot.slane %v3679_v5, 3 }
 0x1fe   :  { %v2907_v15 = vpop.f32.mrf.mxu2  ;;  %v2852_v37 = vpop.f32.mrf.mxu0 }
 0x1ff   :  { %v2450_v54 = vpop.f32.mrf.mxu3  ;;  %v7564_v56 = vadd.f32 %v2907_v15, %v2879_v63  ;;  %v2881_v7 = vpop.f32.mrf.mxu1  ;;  %v3678_v63 = vpack.c.b16 %v6533_v10, %v3673_v35  ;;  %v3685_v15 = vrot.slane %v6462_v55, 3  ;;  %v3694_v10 = vrot.slane %v6850_v58, 3 }
 0x200   :  { %v2451_v36 = vadd.f32 %v2450_v54, %v7402_v20  ;;  %v2882_v42 = vadd.f32 %v2881_v7, %v2852_v37  ;;  %v3684_v54 = vrot.slane %v3676_v13, 3  ;;  %v3702_v35 = vrot.slane %v6696_v60, 3 }
 0x201   :  { %3553 = vmatmul.bf16.gmra.mxu0 %v3201_v26  ;;  %v3689_v26 = vsel %vm3680_vm6, %v3687_v59, %v3688_v0 }
 0x202   :  { %v7576_v20 = vadd.f32 %v2451_v36, %v7174_v1  ;;  %5076 = vmatmul.msk.bf16.gmra.mxu1 %vm638_vm1, %v3210_v22  ;;  %v3686_v21 = vsel %vm3680_vm6, %v3684_v54, %v3685_v15  ;;  %v3695_v22 = vsel %vm3680_vm6, %v3693_v44, %v3694_v10  ;;  %v7860_v44 = vld [vmem:[#allocation3_spill] sm:$0xff] }
 0x203   :  { %3981 = vmatmul.bf16.gmra.mxu2 %v3717_v34 }
 0x204   :  { %3524 = vmatmul.bf16.gmra.mxu3 %v3192_v28 }
 0x206   :  { %v2910_v62 = vpop.f32.mrf.mxu2  ;;  %v2854_v16 = vpop.f32.mrf.mxu0 }
 0x207   :  { %v2453_v12 = vpop.f32.mrf.mxu3  ;;  %v7584_v1 = vadd.f32 %v2910_v62, %v2882_v42  ;;  %v2883_v18 = vpop.f32.mrf.mxu1 }
 0x208   :  { %v2454_v30 = vadd.f32 %v2453_v12, %v7380_v57  ;;  %v2884_v2 = vadd.f32 %v2883_v18, %v2854_v16  ;;  %v3690_v57 = vrot.slane %v3678_v63, 3  ;;  %v3704_v12 = vrot.slane %v6935_v14, 3 }
 0x20a   :  { %v7591_v46 = vadd.f32 %v2454_v30, %v7196_v50  ;;  %v3692_v51 = vsel %vm3680_vm6, %v3690_v57, %v3691_v48  ;;  %v3705_v60 = vsel %vm3680_vm6, %v3694_v10, %v3704_v12  ;;  %v3708_v10 = vrot.slane %v7860_v44, 3 }
 0x20e   :  { %v2912_v37 = vpop.f32.mrf.mxu2  ;;  %v2953_v50 = vpop.f32.mrf.mxu0 }
 0x20f   :  { %v2455_v36 = vpop.f32.mrf.mxu3  ;;  %v7598_v3 = vadd.f32 %v2912_v37, %v2884_v2  ;;  %v3452_v7 = vpop.f32.mrf.mxu1 }
 0x210   :  { %v2456_v29 = vadd.f32 %v2455_v36, %v7404_v39  ;;  %v3714_v36 = vrot.slane %v7004_v11, 3 }
 0x211   :  { %4024 = vmatmul.bf16.vlgmr.msrb.gmra.mxu0 %v3689_v26 }
 0x212   :  { %v7605_v55 = vadd.f32 %v2456_v29, %v7232_v8  ;;  %4053 = vmatmul.bf16.vlgmr.msra.gmra.mxu1 %v3692_v51  ;;  %v3700_v8 = vrot.slane %v6582_v53, 3  ;;  %v3699_v53 = vsel %vm3680_vm6, %v3685_v15, %v3698_v33  ;;  %v3710_v15 = vrot.slane %v6689_v47, 3 }
 0x213   :  { %5213 = vmatmul.msk.bf16.vlgmr.msra.gmra.mxu2 %vm638_vm1, %v3695_v22  ;;  %v3709_v47 = vsel %vm3680_vm6, %v3698_v33, %v3708_v10  ;;  %v3724_v33 = vrot.slane %v7534_v40, 3 }
 0x214   :  { %3995 = vmatmul.bf16.vlgmr.msrb.gmra.mxu3 %v3686_v21  ;;  %v3701_v63 = vsel %vm3680_vm6, %v3688_v0, %v3700_v8  ;;  %v3711_v51 = vsel %vm3680_vm6, %v3700_v8, %v3710_v15  ;;  %v3720_v8 = vrot.slane %v7541_v49, 3 }
 0x216   :  { %v3481_v39 = vpop.f32.mrf.mxu2  ;;  %v2955_v34 = vpop.f32.mrf.mxu0 }
 0x217   :  { %v2924_v58 = vpop.f32.mrf.mxu3  ;;  %v7609_v28 = vadd.f32 %v3481_v39, %v3452_v7  ;;  %v3454_v24 = vpop.f32.mrf.mxu1 }
 0x218   :  { %v2925_v42 = vadd.f32 %v2924_v58, %v7427_v31 }
 0x21a   :  { %v2954_v6 = vadd.f32 %v2953_v50, %v2925_v42 }
 0x21c   :  { %v7612_v19 = vadd.f32 %v2954_v6, %v7438_v41  ;;  %v3703_v41 = vsel %vm3680_vm6, %v3691_v48, %v3702_v35 }
 0x21e   :  { %v3483_v30 = vpop.f32.mrf.mxu2  ;;  %v2958_v18 = vpop.f32.mrf.mxu0 }
 0x21f   :  { %v2926_v62 = vpop.f32.mrf.mxu3  ;;  %v7619_v16 = vadd.f32 %v3483_v30, %v3454_v24  ;;  %v3457_v43 = vpop.f32.mrf.mxu1 }
 0x220   :  { %v2927_v31 = vadd.f32 %v2926_v62, %v7458_v45 }
 0x221   :  { %4029 = vmatmul.bf16.gmra.mxu0 %v3701_v63 }
 0x222   :  { %v2956_v2 = vadd.f32 %v2955_v34, %v2927_v31  ;;  %4058 = vmatmul.bf16.gmra.mxu1 %v3703_v41 }
 0x223   :  { %5214 = vmatmul.msk.bf16.gmra.mxu2 %vm638_vm1, %v3705_v60 }
 0x224   :  { %v7626_v14 = vadd.f32 %v2956_v2, %v7471_v9  ;;  %4000 = vmatmul.bf16.gmra.mxu3 %v3699_v53  ;;  %v3712_v9 = vrot.slane %v6792_v25, 3  ;;  %v3715_v25 = vsel %vm3680_vm6, %v3704_v12, %v3714_v36 }
 0x226   :  { %v3486_v13 = vpop.f32.mrf.mxu2  ;;  %v2960_v0 = vpop.f32.mrf.mxu0 }
 0x227   :  { %v2929_v45 = vpop.f32.mrf.mxu3  ;;  %v7630_v59 = vadd.f32 %v3486_v13, %v3457_v43  ;;  %v3459_v57 = vpop.f32.mrf.mxu1  ;;  %v3721_v43 = vsel %vm3680_vm6, %v3710_v15, %v3720_v8 }
 0x228   :  { %v2930_v5 = vadd.f32 %v2929_v45, %v7488_v27 }
 0x22a   :  { %v2959_v48 = vadd.f32 %v2958_v18, %v2930_v5 }
 0x22c   :  { %v7633_v54 = vadd.f32 %v2959_v48, %v7505_v23  ;;  %v3713_v23 = vsel %vm3680_vm6, %v3702_v35, %v3712_v9  ;;  %v7861_v35 = vld [vmem:[#allocation4_spill] sm:$0xff] }
 0x22d   :  { %v3718_v17 = vrot.slane %v7861_v35, 3 }
 0x22e   :  { %v3488_v29 = vpop.f32.mrf.mxu2  ;;  %v2963_v7 = vpop.f32.mrf.mxu0 }
 0x22f   :  { %v2931_v37 = vpop.f32.mrf.mxu3  ;;  %v7640_v50 = vadd.f32 %v3488_v29, %v3459_v57  ;;  %v3462_v26 = vpop.f32.mrf.mxu1  ;;  %v3719_v49 = vsel %vm3680_vm6, %v3708_v10, %v3718_v17 }
 0x230   :  { %v2932_v27 = vadd.f32 %v2931_v37, %v7529_v61 }
 0x231   :  { %4034 = vmatmul.bf16.gmra.mxu0 %v3711_v51 }
 0x232   :  { %v2961_v21 = vadd.f32 %v2960_v0, %v2932_v27  ;;  %4063 = vmatmul.bf16.gmra.mxu1 %v3713_v23 }
 0x233   :  { %5215 = vmatmul.msk.bf16.gmra.mxu2 %vm638_vm1, %v3715_v25 }
 0x234   :  { %v7647_v11 = vadd.f32 %v2961_v21, %v7547_v52  ;;  %4005 = vmatmul.bf16.gmra.mxu3 %v3709_v47  ;;  %v3722_v52 = vrot.slane %v7523_v4, 3  ;;  %v3725_v4 = vsel %vm3680_vm6, %v3714_v36, %v3724_v33 }
 0x236   :  { %v3491_v22 = vpop.f32.mrf.mxu2  ;;  %v2965_v42 = vpop.f32.mrf.mxu0 }
 0x237   :  { %v2934_v61 = vpop.f32.mrf.mxu3  ;;  %v7651_v39 = vadd.f32 %v3491_v22, %v3462_v26  ;;  %v3464_v34 = vpop.f32.mrf.mxu1 }
 0x238   :  { %v2935_v58 = vadd.f32 %v2934_v61, %v7557_v38 }
 0x23a   :  { %v2964_v24 = vadd.f32 %v2963_v7, %v2935_v58 }
 0x23c   :  { %v7654_v6 = vadd.f32 %v2964_v24, %v7560_v32  ;;  %v3723_v32 = vsel %vm3680_vm6, %v3712_v9, %v3722_v52 }
 0x23e   :  { %v3493_v62 = vpop.f32.mrf.mxu2  ;;  %v2968_v31 = vpop.f32.mrf.mxu0 }
 0x23f   :  { %v2936_v12 = vpop.f32.mrf.mxu3  ;;  %v7661_v30 = vadd.f32 %v3493_v62, %v3464_v34  ;;  %v3467_v18 = vpop.f32.mrf.mxu1 }
 0x240   :  { %v2937_v38 = vadd.f32 %v2936_v12, %v7564_v56 }
 0x241   :  { %4039 = vmatmul.bf16.gmra.mxu0 %v3721_v43 }
 0x242   :  { %v2966_v63 = vadd.f32 %v2965_v42, %v2937_v38  ;;  %4068 = vmatmul.bf16.gmra.mxu1 %v3723_v32 }
 0x243   :  { %5216 = vmatmul.msk.bf16.gmra.mxu2 %vm638_vm1, %v3725_v4 }
 0x244   :  { %v7668_v40 = vadd.f32 %v2966_v63, %v7576_v20  ;;  %4010 = vmatmul.bf16.gmra.mxu3 %v3719_v49 }
 0x246   :  { %v3496_v41 = vpop.f32.mrf.mxu2  ;;  %v2970_v2 = vpop.f32.mrf.mxu0 }
 0x247   :  { %v2939_v56 = vpop.f32.mrf.mxu3  ;;  %v7672_v60 = vadd.f32 %v3496_v41, %v3467_v18  ;;  %v3469_v45 = vpop.f32.mrf.mxu1 }
 0x248   :  { %v2940_v53 = vadd.f32 %v2939_v56, %v7584_v1 }
 0x24a   :  { %v2969_v13 = vadd.f32 %v2968_v31, %v2940_v53 }
 0x24c   :  { %v7675_v5 = vadd.f32 %v2969_v13, %v7591_v46 }
 0x24e   :  { %v3498_v57 = vpop.f32.mrf.mxu2  ;;  %v3539_v15 = vpop.f32.mrf.mxu0 }
 0x24f   :  { %v2941_v0 = vpop.f32.mrf.mxu3  ;;  %v7678_v48 = vadd.f32 %v3498_v57, %v3469_v45  ;;  %v3568_v9 = vpop.f32.mrf.mxu1 }
 0x250   :  { %v2942_v20 = vadd.f32 %v2941_v0, %v7598_v3 }
 0x252   :  { %v2971_v44 = vadd.f32 %v2970_v2, %v2942_v20 }
 0x254   :  { %v7681_v10 = vadd.f32 %v2971_v44, %v7605_v55 }
 0x256   :  { %v7683_v36 = vpop.f32.mrf.mxu2  ;;  %v3541_v29 = vpop.f32.mrf.mxu0 }
 0x257   :  { %v3510_v1 = vpop.f32.mrf.mxu3  ;;  %v3570_v46 = vpop.f32.mrf.mxu1 }
 0x258   :  { %v3511_v37 = vadd.f32 %v3510_v1, %v7609_v28 }
 0x25a   :  { %v3540_v27 = vadd.f32 %v3539_v15, %v3511_v37 }
 0x25c   :  { %v3569_v7 = vadd.f32 %v3568_v9, %v3540_v27 }
 0x25e   :  { %v7687_v26 = vadd.f32 %v3569_v7, %v7612_v19  ;;  %v7689_v51 = vpop.f32.mrf.mxu2  ;;  %v3544_v47 = vpop.f32.mrf.mxu0 }
 0x25f   :  { %v3512_v3 = vpop.f32.mrf.mxu3  ;;  %v3573_v55 = vpop.f32.mrf.mxu1 }
 0x260   :  { %v3513_v23 = vadd.f32 %v3512_v3, %v7619_v16 }
 0x262   :  { %v3542_v25 = vadd.f32 %v3541_v29, %v3513_v23 }
 0x264   :  { %v3571_v21 = vadd.f32 %v3570_v46, %v3542_v25 }
 0x266   :  { %v7693_v61 = vadd.f32 %v3571_v21, %v7626_v14  ;;  %v7695_v22 = vpop.f32.mrf.mxu2  ;;  %v3546_v42 = vpop.f32.mrf.mxu0 }
 0x267   :  { %v3515_v28 = vpop.f32.mrf.mxu3  ;;  %v3575_v19 = vpop.f32.mrf.mxu1 }
 0x268   :  { %v3516_v58 = vadd.f32 %v3515_v28, %v7630_v59 }
 0x26a   :  { %v3545_v34 = vadd.f32 %v3544_v47, %v3516_v58 }
 0x26c   :  { %v3574_v24 = vadd.f32 %v3573_v55, %v3545_v34 }
 0x26e   :  { %v7699_v8 = vadd.f32 %v3574_v24, %v7633_v54  ;;  %v7701_v52 = vpop.f32.mrf.mxu2  ;;  %v3549_v17 = vpop.f32.mrf.mxu0 }
 0x26f   :  { %v3517_v16 = vpop.f32.mrf.mxu3  ;;  %v3578_v14 = vpop.f32.mrf.mxu1 }
 0x270   :  { %v3518_v35 = vadd.f32 %v3517_v16, %v7640_v50 }
 0x272   :  { %v3547_v33 = vadd.f32 %v3546_v42, %v3518_v35 }
 0x274   :  { %v3576_v12 = vadd.f32 %v3575_v19, %v3547_v33 }
 0x276   :  { %v7705_v62 = vadd.f32 %v3576_v12, %v7647_v11  ;;  %v7707_v38 = vpop.f32.mrf.mxu2  ;;  %v3551_v18 = vpop.f32.mrf.mxu0 }
 0x277   :  { %v3520_v59 = vpop.f32.mrf.mxu3  ;;  %v3580_v54 = vpop.f32.mrf.mxu1 }
 0x278   :  { %v3521_v31 = vadd.f32 %v3520_v59, %v7651_v39 }
 0x27a   :  { %v3550_v43 = vadd.f32 %v3549_v17, %v3521_v31 }
 0x27c   :  { %v3579_v32 = vadd.f32 %v3578_v14, %v3550_v43 }
 0x27e   :  { %v7711_v49 = vadd.f32 %v3579_v32, %v7654_v6  ;;  %v7713_v4 = vpop.f32.mrf.mxu2  ;;  %v3554_v56 = vpop.f32.mrf.mxu0 }
 0x27f   :  { %v3522_v50 = vpop.f32.mrf.mxu3  ;;  %v3583_v11 = vpop.f32.mrf.mxu1 }
 0x280   :  { %v3523_v63 = vadd.f32 %v3522_v50, %v7661_v30 }
 0x282   :  { %v3552_v41 = vadd.f32 %v3551_v18, %v3523_v63 }
 0x284   :  { %v3581_v53 = vadd.f32 %v3580_v54, %v3552_v41 }
 0x286   :  { %v7717_v2 = vadd.f32 %v3581_v53, %v7668_v40  ;;  %v7719_v45 = vpop.f32.mrf.mxu2  ;;  %v3556_v0 = vpop.f32.mrf.mxu0 }
 0x287   :  { %v3525_v39 = vpop.f32.mrf.mxu3  ;;  %v3585_v6 = vpop.f32.mrf.mxu1 }
 0x288   :  { %v3526_v13 = vadd.f32 %v3525_v39, %v7672_v60 }
 0x28a   :  { %v3555_v57 = vadd.f32 %v3554_v56, %v3526_v13 }
 0x28c   :  { %v3584_v20 = vadd.f32 %v3583_v11, %v3555_v57 }
 0x28e   :  { %v7723_v15 = vadd.f32 %v3584_v20, %v7675_v5  ;;  %v7725_v9 = vpop.f32.mrf.mxu2  ;;  %v4025_v1 = vpop.f32.mrf.mxu0 }
 0x28f   :  { %v3527_v30 = vpop.f32.mrf.mxu3  ;;  %v4054_v40 = vpop.f32.mrf.mxu1 }
 0x290   :  { %v3528_v44 = vadd.f32 %v3527_v30, %v7678_v48  ;;  %v7735_v48 = vld [vmem:[%s7793_s2] ss:$0 sm:$0xff] }
 0x292   :  { %v3557_v37 = vadd.f32 %v3556_v0, %v3528_v44 }
 0x294   :  { %v3586_v29 = vadd.f32 %v3585_v6, %v3557_v37 }
 0x296   :  { %v7729_v46 = vadd.f32 %v3586_v29, %v7681_v10  ;;  %v4083_v27 = vpop.f32.mrf.mxu2  ;;  %v4027_v3 = vpop.f32.mrf.mxu0 }
 0x297   :  { %v3996_v60 = vpop.f32.mrf.mxu3  ;;  %v4056_v23 = vpop.f32.mrf.mxu1 }
 0x298   :  { %v3997_v7 = vadd.f32 %v3996_v60, %v7683_v36 }
 0x29a   :  { %v4026_v5 = vadd.f32 %v4025_v1, %v3997_v7 }
 0x29c   :  { %v4055_v47 = vadd.f32 %v4054_v40, %v4026_v5 }
 0x29e   :  { %v4084_v55 = vadd.f32 %v4083_v27, %v4055_v47  ;;  %v4085_v21 = vpop.f32.mrf.mxu2  ;;  %v4030_v58 = vpop.f32.mrf.mxu0 }
 0x29f   :  { %v3998_v25 = vpop.f32.mrf.mxu3  ;;  %v4059_v42 = vpop.f32.mrf.mxu1 }
 0x2a0   :  { %v4103_v28 = vadd.f32 %v4084_v55, %v7687_v26  ;;  %v3999_v10 = vadd.f32 %v3998_v25, %v7689_v51 }
 0x2a2   :  { %v4115_v36 = vadd.f32 %v7735_v48, %v4103_v28  ;;  %v4028_v19 = vadd.f32 %v4027_v3, %v3999_v10 }
 0x2a4   :  { %4124 = vst.msk [vmem:[%s7794_s3] sm:$0xff] %vm4123_vm7, %v4115_v36  ;;  %v4057_v34 = vadd.f32 %v4056_v23, %v4028_v19 }
 0x2a6   :  { %v4086_v24 = vadd.f32 %v4085_v21, %v4057_v34  ;;  %v4088_v35 = vpop.f32.mrf.mxu2  ;;  %v4032_v51 = vpop.f32.mrf.mxu0 }
 0x2a7   :  { %v4001_v16 = vpop.f32.mrf.mxu3  ;;  %v4061_v12 = vpop.f32.mrf.mxu1 }
 0x2a8   :  { %v4104_v17 = vadd.f32 %v4086_v24, %v7693_v61  ;;  %v4002_v26 = vadd.f32 %v4001_v16, %v7695_v22 }
 0x2aa   :  { %v4116_v14 = vadd.f32 %v7735_v48, %v4104_v17  ;;  %v4031_v33 = vadd.f32 %v4030_v58, %v4002_v26 }
 0x2ac   :  { %4125 = vst.msk [vmem:[%s7794_s3 + $0x8] sm:$0xff] %vm4123_vm7, %v4116_v14  ;;  %v4060_v59 = vadd.f32 %v4059_v42, %v4031_v33 }
 0x2ae   :  { %v4089_v31 = vadd.f32 %v4088_v35, %v4060_v59  ;;  %v4090_v54 = vpop.f32.mrf.mxu2  ;;  %v4035_v50 = vpop.f32.mrf.mxu0 }
 0x2af   :  { %v4003_v18 = vpop.f32.mrf.mxu3  ;;  %v4064_v56 = vpop.f32.mrf.mxu1 }
 0x2b0   :  { %v4105_v43 = vadd.f32 %v4089_v31, %v7699_v8  ;;  %v4004_v61 = vadd.f32 %v4003_v18, %v7701_v52 }
 0x2b2   :  { %v4117_v22 = vadd.f32 %v7735_v48, %v4105_v43  ;;  %v4033_v32 = vadd.f32 %v4032_v51, %v4004_v61 }
 0x2b4   :  { %4126 = vst.msk [vmem:[%s7794_s3 + $0x10] sm:$0xff] %vm4123_vm7, %v4117_v22  ;;  %v4062_v63 = vadd.f32 %v4061_v12, %v4033_v32 }
 0x2b6   :  { %v4091_v11 = vadd.f32 %v4090_v54, %v4062_v63  ;;  %v4093_v53 = vpop.f32.mrf.mxu2  ;;  %v4037_v6 = vpop.f32.mrf.mxu0 }
 0x2b7   :  { %v4006_v41 = vpop.f32.mrf.mxu3  ;;  %v4066_v20 = vpop.f32.mrf.mxu1 }
 0x2b8   :  { %v4106_v39 = vadd.f32 %v4091_v11, %v7705_v62  ;;  %v4007_v8 = vadd.f32 %v4006_v41, %v7707_v38 }
 0x2ba   :  { %v4118_v52 = vadd.f32 %v7735_v48, %v4106_v39  ;;  %v4036_v13 = vadd.f32 %v4035_v50, %v4007_v8 }
 0x2bc   :  { %4127 = vst.msk [vmem:[%s7794_s3 + $0x18] sm:$0xff] %vm4123_vm7, %v4118_v52  ;;  %v4065_v0 = vadd.f32 %v4064_v56, %v4036_v13 }
 0x2be   :  { %v4094_v57 = vadd.f32 %v4093_v53, %v4065_v0  ;;  %v4095_v62 = vpop.f32.mrf.mxu2  ;;  %v4040_v60 = vpop.f32.mrf.mxu0 }
 0x2bf   :  { %v4008_v30 = vpop.f32.mrf.mxu3 }
 0x2c0   :  { %v4107_v44 = vadd.f32 %v4094_v57, %v7711_v49  ;;  %v4009_v1 = vadd.f32 %v4008_v30, %v7713_v4  ;;  %v4069_v49 = vpop.f32.mrf.mxu1 }
 0x2c2   :  { %v4119_v38 = vadd.f32 %v7735_v48, %v4107_v44  ;;  %v4038_v40 = vadd.f32 %v4037_v6, %v4009_v1 }
 0x2c4   :  { %4128 = vst.msk [vmem:[%s7794_s3 + $0x20] sm:$0xff] %vm4123_vm7, %v4119_v38  ;;  %v4067_v37 = vadd.f32 %v4066_v20, %v4038_v40 }
 0x2c6   :  { %v4096_v29 = vadd.f32 %v4095_v62, %v4067_v37  ;;  %v4098_v5 = vpop.f32.mrf.mxu2 }
 0x2c7   :  { %v4011_v27 = vpop.f32.mrf.mxu3 }
 0x2c8   :  { %v4108_v7 = vadd.f32 %v4096_v29, %v7717_v2  ;;  %v4012_v3 = vadd.f32 %v4011_v27, %v7719_v45  ;;  %v4042_v2 = vpop.f32.mrf.mxu0  ;;  %v4071_v58 = vpop.f32.mrf.mxu1 }
 0x2ca   :  { %v4120_v4 = vadd.f32 %v7735_v48, %v4108_v7  ;;  %v4041_v23 = vadd.f32 %v4040_v60, %v4012_v3 }
 0x2cc   :  { %4129 = vst.msk [vmem:[%s7794_s3 + $0x28] sm:$0xff] %vm4123_vm7, %v4120_v4  ;;  %v4070_v47 = vadd.f32 %v4069_v49, %v4041_v23 }
 0x2ce   :  { %v4099_v55 = vadd.f32 %v4098_v5, %v4070_v47  ;;  %v4100_v36 = vpop.f32.mrf.mxu2 }
 0x2cf   :  { %v4013_v25 = vpop.f32.mrf.mxu3 }
 0x2d0   :  { %v4109_v21 = vadd.f32 %v4099_v55, %v7723_v15  ;;  %v4014_v28 = vadd.f32 %v4013_v25, %v7725_v9 }
 0x2d2   :  { %v4121_v45 = vadd.f32 %v7735_v48, %v4109_v21  ;;  %v4043_v10 = vadd.f32 %v4042_v2, %v4014_v28 }
 0x2d4   :  { %4130 = vst.msk [vmem:[%s7794_s3 + $0x30] sm:$0xff] %vm4123_vm7, %v4121_v45  ;;  %v4072_v42 = vadd.f32 %v4071_v58, %v4043_v10 }
 0x2d6   :  { %v4101_v19 = vadd.f32 %v4100_v36, %v4072_v42 }
 0x2d8   :  { %v4110_v34 = vadd.f32 %v4101_v19, %v7729_v46 }
 0x2da   :  { %v4122_v15 = vadd.f32 %v7735_v48, %v4110_v34 }
 0x2dc   :  { %4132 = vst.msk [vmem:[%s7794_s3 + $0x38] sm:$0x3f] %vm4131_vm8, %v4122_v15 }

</bundles_post_ra>
